<compile_context>
chip_gen: v7x
topology: tpu7x:2x2x1
jax: 0.10.0
libtpu: 0.0.40
codegen_flags: <defaults>
</compile_context>

<pallas_src>
import functools

import jax
import jax.numpy as jnp
from jax.experimental import pallas as pl
from jax.experimental.pallas import tpu as pltpu

NUM_CLASSES = 10
C_POOLED = 480        # Conv2d(480, 1024, ...) input channels
C_EXTRA = 1024        # Conv2d output channels
TCO = 512             # output-channel tile for the conv matmul
TK_FC = 4096          # K tile for the final Linear
VMEM_LIMIT = 32 * 1024 * 1024


# ----------------------------------------------------------------------------
# Kernels
# ----------------------------------------------------------------------------
def _conv_relu_pool_kernel(xcol_ref, w_ref, b_ref, o_ref, *, n_pooled):
    # xcol_ref: (4*n_pooled, Kpad) bf16 im2col rows, grouped by 2x2 pool corner
    # w_ref:    (Kpad, tco)        bf16 conv weights for one Cout tile
    # b_ref:    (1, tco)           f32 conv bias tile
    # o_ref:    (n_pooled, tco)    bf16 pooled+ReLU'd conv output tile
    acc = jnp.dot(xcol_ref[...], w_ref[...],
                  preferred_element_type=jnp.float32)          # one MXU matmul
    acc = jnp.maximum(acc + b_ref[...], 0.0)                    # bias + ReLU (VPU)
    # 2x2 average pool = mean of the four pool-corner row groups (major-axis
    # slices only; no pool matrix, no second matmul).
    p0 = acc[0 * n_pooled:1 * n_pooled]
    p1 = acc[1 * n_pooled:2 * n_pooled]
    p2 = acc[2 * n_pooled:3 * n_pooled]
    p3 = acc[3 * n_pooled:4 * n_pooled]
    o_ref[...] = (0.25 * (p0 + p1 + p2 + p3)).astype(o_ref.dtype)


def _linear_kernel(x_ref, w_ref, b_ref, o_ref, acc_ref):
    # x_ref: (B, tk) bf16, w_ref: (tk, ncls) bf16, b_ref: (1, ncls) f32
    # o_ref: (B, ncls) f32, acc_ref: (B, ncls) f32 scratch
    @pl.when(pl.program_id(0) == 0)
    def _():
        acc_ref[...] = jnp.zeros_like(acc_ref)

    acc_ref[...] += jnp.dot(x_ref[...], w_ref[...],
                            preferred_element_type=jnp.float32)

    @pl.when(pl.program_id(0) == pl.num_programs(0) - 1)
    def _():
        o_ref[...] = (acc_ref[...] + b_ref[...]).astype(o_ref.dtype)


# ----------------------------------------------------------------------------
# One-time parameter reformatting (hoisted out of the forward path)
# ----------------------------------------------------------------------------
def prepare_extra_head_params(conv_w, conv_b, fc_w, fc_b, pooled_hw):
    """Reformat the head weights once at init/load time (never per call)."""
    H, W = pooled_hw
    PH, PW = H // 2, W // 2
    Cout, Cin, KH, KW = conv_w.shape
    k_raw = KH * KW * Cin
    k_pad = ((k_raw + 127) // 128) * 128          # 4320 -> 4352 (lane aligned)

    # PyTorch (Cout, Cin, 3, 3) -> rows ordered (kh, kw, cin), zero-pad K, bf16.
    w_mat = jnp.transpose(conv_w, (2, 3, 1, 0)).reshape(k_raw, Cout)
    w_mat = jnp.pad(w_mat, ((0, k_pad - k_raw), (0, 0))).astype(jnp.bfloat16)
    conv_b2 = conv_b.reshape(1, Cout).astype(jnp.float32)

    num_classes = fc_w.shape[1]
    assert fc_w.shape[0] == Cout * PH * PW
    # torch flatten order (c*PH*PW + s) -> kernel-native order (s*Cout + c).
    fc_w_nat = fc_w.reshape(Cout, PH * PW, num_classes)
    fc_w_nat = jnp.transpose(fc_w_nat, (1, 0, 2)).reshape(Cout * PH * PW,
                                                          num_classes)
    fc_w_nat = fc_w_nat.astype(jnp.bfloat16)      # FC stage is weight-DMA-bound
    fc_b2 = fc_b.reshape(1, num_classes).astype(jnp.float32)
    return w_mat, conv_b2, fc_w_nat, fc_b2


# ----------------------------------------------------------------------------
# Forward path
# ----------------------------------------------------------------------------
def extra_head(pooled_nchw, w_mat, conv_b2, fc_w_nat, fc_b2):
    """Pallas: conv3x3(pad=1) -> ReLU -> AvgPool2d(2,2) -> flatten(1) -> fc."""
    B, Cin, H, W = pooled_nchw.shape
    assert H % 2 == 0 and W % 2 == 0
    PH, PW = H // 2, W // 2
    k_pad, Cout = w_mat.shape
    k_raw = 9 * Cin
    assert k_pad >= k_raw
    num_classes = fc_w_nat.shape[1]
    n_pooled = B * PH * PW

    # Activation prep (XLA, small): NCHW -> NHWC bf16, zero-pad spatial by 1,
    # im2col with rows grouped by pooling corner (dh, dw) so the kernel pools
    # with plain row-block adds.
    x = jnp.transpose(pooled_nchw, (0, 2, 3, 1)).astype(jnp.bfloat16)
    x = jnp.pad(x, ((0, 0), (1, 1), (1, 1), (0, 0)))
    corner_blocks = []
    for dh in (0, 1):
        for dw in (0, 1):
            taps = [x[:, dh + kh: dh + kh + H: 2, dw + kw: dw + kw + W: 2, :]
                    for kh in range(3) for kw in range(3)]      # (B, PH, PW, Cin)
            corner_blocks.append(
                jnp.concatenate(taps, axis=-1).reshape(n_pooled, k_raw))
    xcol = jnp.concatenate(corner_blocks, axis=0)               # (4*n_pooled, 9*Cin)
    xcol = jnp.pad(xcol, ((0, 0), (0, k_pad - k_raw)))          # lane-align K

    tco = TCO if Cout % TCO == 0 else (128 if Cout % 128 == 0 else Cout)
    n_co = Cout // tco

    conv_kernel = functools.partial(_conv_relu_pool_kernel, n_pooled=n_pooled)
    pooled_out = pl.pallas_call(
        conv_kernel,
        out_shape=jax.ShapeDtypeStruct((n_pooled, Cout), jnp.bfloat16),
        grid_spec=pltpu.PrefetchScalarGridSpec(
            num_scalar_prefetch=0,
            grid=(n_co,),
            in_specs=[
                pl.BlockSpec((4 * n_pooled, k_pad), lambda c: (0, 0)),
                pl.BlockSpec((k_pad, tco), lambda c: (0, c)),
                pl.BlockSpec((1, tco), lambda c: (0, c)),
            ],
            out_specs=pl.BlockSpec((n_pooled, tco), lambda c: (0, c)),
        ),
        compiler_params=pltpu.CompilerParams(
            dimension_semantics=("parallel",),
            vmem_limit_bytes=VMEM_LIMIT),
    )(xcol, w_mat, conv_b2)

    # Native flatten: row b, feature index s*Cout + c (fc weight pre-permuted).
    flat = pooled_out.reshape(B, PH * PW * Cout)
    flat_dim = flat.shape[1]

    tk = flat_dim
    for cand in (TK_FC, 2048, 1024, 512, 256, 128):
        if flat_dim % cand == 0:
            tk = cand
            break
    n_k = flat_dim // tk

    fc_out = pl.pallas_call(
        _linear_kernel,
        out_shape=jax.ShapeDtypeStruct((B, num_classes), jnp.float32),
        grid_spec=pltpu.PrefetchScalarGridSpec(
            num_scalar_prefetch=0,
            grid=(n_k,),
            in_specs=[
                pl.BlockSpec((B, tk), lambda k: (0, k)),
                pl.BlockSpec((tk, num_classes), lambda k: (k, 0)),
                pl.BlockSpec((1, num_classes), lambda k: (0, 0)),
            ],
            out_specs=pl.BlockSpec((B, num_classes), lambda k: (0, 0)),
            scratch_shapes=[pltpu.VMEM((B, num_classes), jnp.float32)],
        ),
        compiler_params=pltpu.CompilerParams(
            dimension_semantics=("arbitrary",),
            vmem_limit_bytes=VMEM_LIMIT),
    )(flat, fc_w_nat, fc_b2)

    return fc_out


# ----------------------------------------------------------------------------
# Pure-JAX reference (same bf16 rounding) used to pin layouts / permutations.
# ----------------------------------------------------------------------------
def extra_head_reference(pooled_nchw, conv_w, conv_b, fc_w, fc_b):
    rnd = lambda a: a.astype(jnp.bfloat16).astype(jnp.float32)
    x = rnd(pooled_nchw)
    w = rnd(conv_w)
    y = jax.lax.conv_general_dilated(
        x, w, window_strides=(1, 1), padding="SAME",
        dimension_numbers=("NCHW", "OIHW", "NCHW"))
    y = jax.nn.relu(y + conv_b[None, :, None, None])
    B, Cout, H, W = y.shape
    y = y.reshape(B, Cout, H // 2, 2, W // 2, 2).mean(axis=(3, 5))
    flat = rnd(y.reshape(B, -1))                    # torch flatten order
    return flat @ rnd(fc_w) + fc_b[None, :]


def frozen_googlenet_stub(x_nchw, params):
    # TODO(synk): the real frozen GoogLeNet backbone (`model_cls`) is external
    # and not defined in the module; this frozen, deterministic stand-in only
    # reproduces its interface: (pooled_output[B,480,H/2,W/2],
    # before_last_fc_output, final_output[B,num_classes]).
    w1x1, fcw, fcb = params
    B, C, H, W = x_nchw.shape
    feat = jnp.einsum('bchw,co->bohw', x_nchw, w1x1)      # 1x1 conv C -> 480
    feat = jax.nn.relu(feat)
    feat = feat.reshape(B, C_POOLED, H // 2, 2, W // 2, 2).mean(axis=(3, 5))
    gap = feat.mean(axis=(2, 3))                          # (B, 480)
    before_last = gap
    final = gap @ fcw + fcb                               # (B, num_classes)
    return feat, before_last, final


if __name__ == "__main__":
    key = jax.random.PRNGKey(0)
    ks = jax.random.split(key, 8)

    B, Cin_x, Hx, Wx = 2, 4, 16, 16
    x = jax.random.normal(ks[0], (B, Cin_x, Hx, Wx), jnp.float32)

    # Frozen (non-trainable) stand-in backbone params.
    frozen_params = (
        jax.random.normal(ks[1], (Cin_x, C_POOLED), jnp.float32) * 0.1,
        jax.random.normal(ks[2], (C_POOLED, NUM_CLASSES), jnp.float32) * 0.05,
        jax.random.normal(ks[3], (NUM_CLASSES,), jnp.float32) * 0.01,
    )

    # Trainable extra-head params (shapes from Frozen_GoogLeNet_esc50.__init__;
    # the Linear input dim follows the actual flattened feature size here).
    H_feat, W_feat = Hx // 2, Wx // 2                     # pooled_output spatial
    flat_dim = C_EXTRA * (H_feat // 2) * (W_feat // 2)
    conv_w = jax.random.normal(ks[4], (C_EXTRA, C_POOLED, 3, 3), jnp.float32) * 0.02
    conv_b = jax.random.normal(ks[5], (C_EXTRA,), jnp.float32) * 0.01
    fc_w = jax.random.normal(ks[6], (flat_dim, NUM_CLASSES), jnp.float32) * 0.01
    fc_b = jax.random.normal(ks[7], (NUM_CLASSES,), jnp.float32) * 0.01

    pooled_output, _before_last, final_output = frozen_googlenet_stub(x, frozen_params)

    # One-time weight reformatting (hoisted out of the per-call forward path).
    prep = prepare_extra_head_params(conv_w, conv_b, fc_w, fc_b, (H_feat, W_feat))

    extra_head_jit = jax.jit(extra_head)
    extra_fc_output = extra_head_jit(pooled_output, *prep)

    out = (extra_fc_output, final_output)
    jax.block_until_ready(out)
    assert extra_fc_output.shape == (B, NUM_CLASSES)
    assert final_output.shape == (B, NUM_CLASSES)

    ref = extra_head_reference(pooled_output, conv_w, conv_b, fc_w, fc_b)
    abs_err = jnp.abs(extra_fc_output - ref)
    if not bool(jnp.all(abs_err <= 1e-2 + 1e-2 * jnp.abs(ref))):
        raise AssertionError(
            f"Pallas extra head mismatch vs reference (max abs err "
            f"{float(jnp.max(abs_err)):.3e})")
    print("KERNEL_OK")
</pallas_src>

<mosaic_0001>
module attributes {stable_mosaic.version = 11 : i64} {
  func.func @_conv_relu_pool_kernel(%arg0: i32, %arg1: memref<128x4352xbf16, #tpu.memory_space<vmem>>, %arg2: memref<4352x512xbf16, #tpu.memory_space<vmem>>, %arg3: memref<1x512xf32, #tpu.memory_space<vmem>>, %arg4: memref<32x512xbf16, #tpu.memory_space<vmem>>) attributes {dimension_semantics = [#tpu.dimension_semantics<parallel>], iteration_bounds = array<i64: 2>, scalar_prefetch = 0 : i64, scratch_operands = 0 : i64, tpu.core_type = #tpu.core_type<tc>, window_params = [{pipeline_mode = #tpu.pipeline_mode<synchronous>, transform_indices = @transform_0, window_bounds = array<i64: 128, 4352>}, {transform_indices = @transform_1, window_bounds = array<i64: 4352, 512>}, {transform_indices = @transform_2, window_bounds = array<i64: 1, 512>}, {transform_indices = @transform_3, window_bounds = array<i64: 32, 512>}]} {
    %c0 = arith.constant 0 : index
    %c0_0 = arith.constant 0 : index
    %0 = vector.load %arg1[%c0, %c0_0] : memref<128x4352xbf16, #tpu.memory_space<vmem>>, vector<128x4352xbf16>
    %c0_1 = arith.constant 0 : index
    %c0_2 = arith.constant 0 : index
    %1 = vector.load %arg2[%c0_1, %c0_2] : memref<4352x512xbf16, #tpu.memory_space<vmem>>, vector<4352x512xbf16>
    %cst = arith.constant dense<0.000000e+00> : vector<128x512xf32>
    %2 = tpu.matmul %0, %1, %cst {dimension_numbers = #tpu.dot_dimension_numbers<[1], [0], [0], [1], [0, 0, 1, 1], [], []>} : vector<128x4352xbf16>, vector<4352x512xbf16>, vector<128x512xf32> -> vector<128x512xf32>
    %c0_3 = arith.constant 0 : index
    %c0_4 = arith.constant 0 : index
    %3 = vector.load %arg3[%c0_3, %c0_4] : memref<1x512xf32, #tpu.memory_space<vmem>>, vector<1x512xf32>
    %4 = vector.broadcast %3 : vector<1x512xf32> to vector<128x512xf32>
    %5 = arith.addf %2, %4 : vector<128x512xf32>
    %cst_5 = arith.constant 0.000000e+00 : f32
    %6 = vector.broadcast %cst_5 : f32 to vector<128x512xf32>
    %7 = arith.maximumf %5, %6 : vector<128x512xf32>
    %8 = vector.extract_strided_slice %7 {offsets = [0, 0], sizes = [32, 512], strides = [1, 1]} : vector<128x512xf32> to vector<32x512xf32>
    %9 = vector.extract_strided_slice %7 {offsets = [32, 0], sizes = [32, 512], strides = [1, 1]} : vector<128x512xf32> to vector<32x512xf32>
    %10 = vector.extract_strided_slice %7 {offsets = [64, 0], sizes = [32, 512], strides = [1, 1]} : vector<128x512xf32> to vector<32x512xf32>
    %11 = vector.extract_strided_slice %7 {offsets = [96, 0], sizes = [32, 512], strides = [1, 1]} : vector<128x512xf32> to vector<32x512xf32>
    %12 = arith.addf %8, %9 : vector<32x512xf32>
    %13 = arith.addf %12, %10 : vector<32x512xf32>
    %14 = arith.addf %13, %11 : vector<32x512xf32>
    %cst_6 = arith.constant 2.500000e-01 : f32
    %15 = vector.broadcast %cst_6 : f32 to vector<32x512xf32>
    %16 = arith.mulf %15, %14 : vector<32x512xf32>
    %17 = arith.truncf %16 : vector<32x512xf32> to vector<32x512xbf16>
    %c0_7 = arith.constant 0 : index
    %c0_8 = arith.constant 0 : index
    %18 = vector.load %arg4[%c0_7, %c0_8] : memref<32x512xbf16, #tpu.memory_space<vmem>>, vector<32x512xbf16>
    tpu.vector_store %arg4[%c0_7, %c0_8], %17 {strides = array<i32>} : memref<32x512xbf16, #tpu.memory_space<vmem>>, vector<32x512xbf16>,
    return
  }
  func.func @transform_0(%arg0: i32) -> (i32, i32) {
    %c0_i32 = arith.constant 0 : i32
    %c0_i32_0 = arith.constant 0 : i32
    %c0_i32_1 = arith.constant 0 : i32
    return %c0_i32, %c0_i32_0 : i32, i32
  }
  func.func @transform_1(%arg0: i32) -> (i32, i32) {
    %c0_i32 = arith.constant 0 : i32
    %c0_i32_0 = arith.constant 0 : i32
    return %c0_i32, %arg0 : i32, i32
  }
  func.func @transform_2(%arg0: i32) -> (i32, i32) {
    %c0_i32 = arith.constant 0 : i32
    %c0_i32_0 = arith.constant 0 : i32
    return %c0_i32, %arg0 : i32, i32
  }
  func.func @transform_3(%arg0: i32) -> (i32, i32) {
    %c0_i32 = arith.constant 0 : i32
    %c0_i32_0 = arith.constant 0 : i32
    return %c0_i32, %arg0 : i32, i32
  }
}

module attributes {stable_mosaic.version = 11 : i64} {
  func.func @_linear_kernel(%arg0: i32, %arg1: memref<2x4096xbf16, #tpu.memory_space<vmem>>, %arg2: memref<4096x10xbf16, #tpu.memory_space<vmem>>, %arg3: memref<1x10xf32, #tpu.memory_space<vmem>>, %arg4: memref<2x10xf32, #tpu.memory_space<vmem>>, %arg5: memref<2x10xf32, #tpu.memory_space<vmem>>) attributes {dimension_semantics = [#tpu.dimension_semantics<arbitrary>], iteration_bounds = array<i64: 4>, scalar_prefetch = 0 : i64, scratch_operands = 1 : i64, tpu.core_type = #tpu.core_type<tc>, window_params = [{transform_indices = @transform_0, window_bounds = array<i64: 2, 4096>}, {transform_indices = @transform_1, window_bounds = array<i64: 4096, 10>}, {pipeline_mode = #tpu.pipeline_mode<synchronous>, transform_indices = @transform_2, window_bounds = array<i64: 1, 10>}, {pipeline_mode = #tpu.pipeline_mode<synchronous>, transform_indices = @transform_3, window_bounds = array<i64: 2, 10>}]} {
    %c0_i32 = arith.constant 0 : i32
    %0 = arith.cmpi eq, %arg0, %c0_i32 : i32
    %1 = arith.extui %0 : i1 to i32
    %c0_i32_0 = arith.constant 0 : i32
    %2 = arith.cmpi ne, %1, %c0_i32_0 : i32
    scf.if %2 {
      %cst_9 = arith.constant 0.000000e+00 : f32
      %12 = vector.broadcast %cst_9 : f32 to vector<2x10xf32>
      %c0_10 = arith.constant 0 : index
      %c0_11 = arith.constant 0 : index
      %13 = vector.load %arg5[%c0_10, %c0_11] : memref<2x10xf32, #tpu.memory_space<vmem>>, vector<2x10xf32>
      tpu.vector_store %arg5[%c0_10, %c0_11], %12 {strides = array<i32>} : memref<2x10xf32, #tpu.memory_space<vmem>>, vector<2x10xf32>,
    } else {
    }
    %c0 = arith.constant 0 : index
    %c0_1 = arith.constant 0 : index
    %3 = vector.load %arg5[%c0, %c0_1] : memref<2x10xf32, #tpu.memory_space<vmem>>, vector<2x10xf32>
    %c0_2 = arith.constant 0 : index
    %c0_3 = arith.constant 0 : index
    %4 = vector.load %arg1[%c0_2, %c0_3] : memref<2x4096xbf16, #tpu.memory_space<vmem>>, vector<2x4096xbf16>
    %c0_4 = arith.constant 0 : index
    %c0_5 = arith.constant 0 : index
    %5 = vector.load %arg2[%c0_4, %c0_5] : memref<4096x10xbf16, #tpu.memory_space<vmem>>, vector<4096x10xbf16>
    %cst = arith.constant dense<0.000000e+00> : vector<2x10xf32>
    %6 = tpu.matmul %4, %5, %cst {dimension_numbers = #tpu.dot_dimension_numbers<[1], [0], [0], [1], [0, 0, 1, 1], [], []>} : vector<2x4096xbf16>, vector<4096x10xbf16>, vector<2x10xf32> -> vector<2x10xf32>
    %7 = arith.addf %3, %6 : vector<2x10xf32>
    %c0_6 = arith.constant 0 : index
    %c0_7 = arith.constant 0 : index
    %8 = vector.load %arg5[%c0_6, %c0_7] : memref<2x10xf32, #tpu.memory_space<vmem>>, vector<2x10xf32>
    tpu.vector_store %arg5[%c0_6, %c0_7], %7 {strides = array<i32>} : memref<2x10xf32, #tpu.memory_space<vmem>>, vector<2x10xf32>,
    %c3_i32 = arith.constant 3 : i32
    %9 = arith.cmpi eq, %arg0, %c3_i32 : i32
    %10 = arith.extui %9 : i1 to i32
    %c0_i32_8 = arith.constant 0 : i32
    %11 = arith.cmpi ne, %10, %c0_i32_8 : i32
    scf.if %11 {
      %c0_9 = arith.constant 0 : index
      %c0_10 = arith.constant 0 : index
      %12 = vector.load %arg5[%c0_9, %c0_10] : memref<2x10xf32, #tpu.memory_space<vmem>>, vector<2x10xf32>
      %c0_11 = arith.constant 0 : index
      %c0_12 = arith.constant 0 : index
      %13 = vector.load %arg3[%c0_11, %c0_12] : memref<1x10xf32, #tpu.memory_space<vmem>>, vector<1x10xf32>
      %14 = vector.broadcast %13 : vector<1x10xf32> to vector<2x10xf32>
      %15 = arith.addf %12, %14 : vector<2x10xf32>
      %c0_13 = arith.constant 0 : index
      %c0_14 = arith.constant 0 : index
      %16 = vector.load %arg4[%c0_13, %c0_14] : memref<2x10xf32, #tpu.memory_space<vmem>>, vector<2x10xf32>
      tpu.vector_store %arg4[%c0_13, %c0_14], %15 {strides = array<i32>} : memref<2x10xf32, #tpu.memory_space<vmem>>, vector<2x10xf32>,
    } else {
    }
    return
  }
  func.func @transform_0(%arg0: i32) -> (i32, i32) {
    %c0_i32 = arith.constant 0 : i32
    %c0_i32_0 = arith.constant 0 : i32
    return %c0_i32, %arg0 : i32, i32
  }
  func.func @transform_1(%arg0: i32) -> (i32, i32) {
    %c0_i32 = arith.constant 0 : i32
    %c0_i32_0 = arith.constant 0 : i32
    return %arg0, %c0_i32 : i32, i32
  }
  func.func @transform_2(%arg0: i32) -> (i32, i32) {
    %c0_i32 = arith.constant 0 : i32
    %c0_i32_0 = arith.constant 0 : i32
    %c0_i32_1 = arith.constant 0 : i32
    return %c0_i32, %c0_i32_0 : i32, i32
  }
  func.func @transform_3(%arg0: i32) -> (i32, i32) {
    %c0_i32 = arith.constant 0 : i32
    %c0_i32_0 = arith.constant 0 : i32
    %c0_i32_1 = arith.constant 0 : i32
    return %c0_i32, %c0_i32_0 : i32, i32
  }
}

</mosaic_0001>

<bundles_post_ra>
// kernel: extra_head.3
= control target key start
LH: loop header
LB: loop body
LE: loop exit
PB: predicated region body
PF: predicated region fallthrough
CT: control target
= control target key end

     0   :  { %8 = vsyncpa [#allocation4], 0  ;;  %s4142_s12 = smov 0   ;;  %s4501_s0 = inlined_call_operand.vmem [shape: bf16[2,16384], index: 0, kind: input, shape index: {}]   ;;  %s4502_s1 = inlined_call_operand.vmem [shape: bf16[16384,10], index: 1, kind: input, shape index: {}]   ;;  %s4503_s2 = inlined_call_operand.vmem [shape: f32[1,10], index: 2, kind: input, shape index: {}]   ;;  %s4504_s3 = inlined_call_operand.hbm [shape: f32[2,10], index: 3, kind: output, shape index: {}]  }
   0x1 LB: > { %s4148_s13 = sadd.s32 4294967295, %s4117_s12   ;;  %p3185_p0 = scmp.ge.s32.totalorder %s4117_s12, 1  ;;  %s4117_s12 = sphi %s4142_s12, %s14_s12  }
   0x2   : > { %p144_p1 = scmp.lt.s32.totalorder %s4117_s12, 5 }
   0x4   : > { %p145_p2 = pnand %p3185_p0, %p144_p1 }
   0x5   : > { %s3186_s14 = sshll.u32 (!%p145_p2), %s4148_s13, 5  ;;  %s3187_s15 = sshll.u32 (!%p145_p2), %s4148_s13, 9 }
   0x6   : > { %148 = sbr.rel (%p145_p2) target bundleno = 537 (0x219), region = 32  ;;  %p168_p3 = scmp.lt.s32.totalorder (!%p145_p2), %s3186_s14, 127 }
   0x7   : > { %p173_p4 = scmp.lt.s32.totalorder (!%p145_p2), %s3187_s15, 2047  ;;  %p3189_p5 = scmp.ne.s32.totalorder (!%p145_p2), %s4148_s13, 0 }
   0xd   : > { %s4506_s14 = smov (!%p168_p3, %s3186_s14), 127  ;;  %s4508_s15 = smov (!%p173_p4, %s3187_s15), 2047 }
   0xe   : > { %s4157_s18 = scalar_lea.vmem %s4501_s0, %s4506_s14  ;;  %s3188_s19 = sshll.u32 %s4508_s15, 2  ;;  %vm183_vm0 = vcmask (!%p3189_p5), 74752   ;;  %v4119_v0 = vmov (!%p3189_p5), 0.0  }
   0xf   : > { %s4162_s22 = scalar_lea.vmem %s4502_s1, %s3188_s19  ;;  %182 = sbr.rel (%p3189_p5) target bundleno = 22 (0x16), region = 36  ;;  %184 = vst.msk [vmem:[#allocation2] sm:$0x3] (!%p3189_p5), %vm183_vm0, %v4119_v0 }
  0x16 PF: > { %v3821_v1 = vld [vmem:[%s4162_s22 + $0x40] sm:$0xff]   ;;  %v3825_v5 = vld [vmem:[%s4162_s22 + $0x48] sm:$0xff]   ;;  %v3829_v9 = vld [vmem:[%s4162_s22 + $0x50] sm:$0xff]   ;;  %v710_v29 = vlaneseq  ;;  %v4120_v37 = vmov 1966171168   ;;  %vm3111_vm1 = vcmask 74752  }
  0x17   : > { %v3822_v2 = vld [vmem:[%s4162_s22 + $0xc0] sm:$0xff]   ;;  %3452 = vmatprep.subr.bf16.mxu0 %v3821_v1  ;;  %v3826_v6 = vld [vmem:[%s4162_s22 + $0xc8] sm:$0xff]   ;;  %v3830_v10 = vld [vmem:[%s4162_s22 + $0xd0] sm:$0xff]   ;;  %v708_v38 = vunpack.c.l.s4 %v4120_v37  ;;  %p3446_p6 = scmp.ne.s32.totalorder %s4148_s13, 3 }
  0x18   : > { %v3823_v3 = vld [vmem:[%s4162_s22] sm:$0xff]   ;;  %3474 = vmatprep.subr.bf16.mxu1 %v3822_v2  ;;  %v3827_v7 = vld [vmem:[%s4162_s22 + $0x8] sm:$0xff]   ;;  %v3831_v11 = vld [vmem:[%s4162_s22 + $0x10] sm:$0xff]   ;;  %v711_v34 = vshrl.u32 %v710_v29, 7 }
  0x19   : > { %v3824_v4 = vld [vmem:[%s4162_s22 + $0x80] sm:$0xff]   ;;  %3453 = vmatpush3.bf16.msra.mxu0 %v3823_v3  ;;  %v3828_v8 = vld [vmem:[%s4162_s22 + $0x88] sm:$0xff]   ;;  %v3832_v12 = vld [vmem:[%s4162_s22 + $0x90] sm:$0xff]   ;;  %v709_v41 = vunpack.c.0.s8 %v708_v38 }
  0x1a   : > { %3475 = vmatpush3.bf16.msra.mxu1 %v3824_v4  ;;  %3454 = vmatprep.subr.bf16.mxu0 %v3825_v5  ;;  %v3833_v13 = vld [vmem:[%s4162_s22 + $0x58] sm:$0xff]   ;;  %v3837_v17 = vld [vmem:[%s4162_s22 + $0x60] sm:$0xff]   ;;  %v3841_v21 = vld [vmem:[%s4162_s22 + $0x68] sm:$0xff]  }
  0x1b   : > { %3476 = vmatprep.subr.bf16.mxu1 %v3826_v6  ;;  %v3834_v14 = vld [vmem:[%s4162_s22 + $0xd8] sm:$0xff]   ;;  %v3838_v18 = vld [vmem:[%s4162_s22 + $0xe0] sm:$0xff]   ;;  %v3842_v22 = vld [vmem:[%s4162_s22 + $0xe8] sm:$0xff]   ;;  %v4200_v42 = vsub.s32 %v709_v41, %v711_v34 }
  0x1c   : > { %v3835_v15 = vld [vmem:[%s4162_s22 + $0x18] sm:$0xff]   ;;  %v3839_v19 = vld [vmem:[%s4162_s22 + $0x20] sm:$0xff]   ;;  %v3843_v23 = vld [vmem:[%s4162_s22 + $0x28] sm:$0xff]  }
  0x1d   : > { %3455 = vmatpush3.bf16.msra.mxu0 %v3827_v7  ;;  %v3836_v16 = vld [vmem:[%s4162_s22 + $0x98] sm:$0xff]   ;;  %v3840_v20 = vld [vmem:[%s4162_s22 + $0xa0] sm:$0xff]   ;;  %v3844_v24 = vld [vmem:[%s4162_s22 + $0xa8] sm:$0xff]  }
  0x1e   : > { %3477 = vmatpush3.bf16.msra.mxu1 %v3828_v8  ;;  %3456 = vmatprep.subr.bf16.mxu0 %v3829_v9  ;;  %v3845_v25 = vld [vmem:[%s4162_s22 + $0x70] sm:$0xff]   ;;  %v3849_v30 = vld [vmem:[%s4162_s22 + $0x78] sm:$0xff]   ;;  %v186_v35 = vld [vmem:[%s4157_s18] sm:$0xff] }
  0x1f   : > { %3478 = vmatprep.subr.bf16.mxu1 %v3830_v10  ;;  %v3846_v26 = vld [vmem:[%s4162_s22 + $0xf0] sm:$0xff]   ;;  %v3850_v31 = vld [vmem:[%s4162_s22 + $0xf8] sm:$0xff]   ;;  %v3854_v36 = vld [vmem:[%s4162_s22 + $0x140] sm:$0xff]   ;;  %v706_v40 = vcombine.high %v186_v35, %v186_v35  ;;  %v713_v43 = vrot.slane %v186_v35, %v4200_v42 }
  0x20   : > { %v3847_v27 = vld [vmem:[%s4162_s22 + $0x30] sm:$0xff]   ;;  %v3851_v32 = vld [vmem:[%s4162_s22 + $0x38] sm:$0xff]   ;;  %v3855_v39 = vld [vmem:[%s4162_s22 + $0x1c0] sm:$0xff]  }
  0x21   : > { %3457 = vmatpush3.bf16.msra.mxu0 %v3831_v11  ;;  %v3848_v28 = vld [vmem:[%s4162_s22 + $0xb0] sm:$0xff]   ;;  %v3852_v33 = vld [vmem:[%s4162_s22 + $0xb8] sm:$0xff]   ;;  %v4204_v44 = vrot.slane %v706_v40, %v4200_v42  ;;  %v721_v45 = vcombine.high %v713_v43, %v713_v43  ;;  %v729_v46 = vrot.slane %v713_v43, %v4200_v42  ;;  %v3856_v48 = vld [vmem:[%s4162_s22 + $0x100] sm:$0xff]  }
  0x22   : > { %3479 = vmatpush3.bf16.msra.mxu1 %v3832_v12  ;;  %3458 = vmatprep.subr.bf16.mxu0 %v3833_v13  ;;  %v3857_v50 = vld [vmem:[%s4162_s22 + $0x180] sm:$0xff]   ;;  %v3858_v53 = vld [vmem:[%s4162_s22 + $0x148] sm:$0xff]   ;;  %v3862_v59 = vld [vmem:[%s4162_s22 + $0x150] sm:$0xff]  }
  0x23   : > { %3480 = vmatprep.subr.bf16.mxu1 %v3834_v14  ;;  %v722_v47 = vcombine.high %v4204_v44, %v4204_v44  ;;  %v743_v49 = vrot.slane %v721_v45, %v4200_v42  ;;  %v751_v52 = vcombine.high %v729_v46, %v729_v46  ;;  %v3859_v55 = vld [vmem:[%s4162_s22 + $0x1c8] sm:$0xff]   ;;  %v3863_v60 = vld [vmem:[%s4162_s22 + $0x1d0] sm:$0xff]   ;;  %v3866_v63 = vld [vmem:[%s4162_s22 + $0x158] sm:$0xff]  }
  0x24   : > { %v3860_v56 = vld [vmem:[%s4162_s22 + $0x108] sm:$0xff]   ;;  %v3864_v61 = vld [vmem:[%s4162_s22 + $0x110] sm:$0xff]   ;;  %v3867_v0 = vld [vmem:[%s4162_s22 + $0x1d8] sm:$0xff]  }
  0x25   : > { %3459 = vmatpush3.bf16.msra.mxu0 %v3835_v15  ;;  %v750_v51 = vrot.slane %v722_v47, %v4200_v42  ;;  %2502 = vmatprep.mubr.bf16.mxu0 %v743_v49  ;;  %v753_v54 = vcombine.high %v743_v49, %v743_v49  ;;  %v3861_v58 = vld [vmem:[%s4162_s22 + $0x188] sm:$0xff]   ;;  %v3865_v62 = vld [vmem:[%s4162_s22 + $0x190] sm:$0xff]   ;;  %v3868_v1 = vld [vmem:[%s4162_s22 + $0x118] sm:$0xff]  }
  0x26   : > { %3481 = vmatpush3.bf16.msra.mxu1 %v3836_v16  ;;  %3460 = vmatprep.subr.bf16.mxu0 %v3837_v17  ;;  %v3869_v2 = vld [vmem:[%s4162_s22 + $0x198] sm:$0xff]   ;;  %v3870_v3 = vld [vmem:[%s4162_s22 + $0x160] sm:$0xff]   ;;  %v3874_v7 = vld [vmem:[%s4162_s22 + $0x168] sm:$0xff]  }
  0x27   : > { %3482 = vmatprep.subr.bf16.mxu1 %v3838_v18  ;;  %v754_v57 = vcombine.high %v750_v51, %v750_v51  ;;  %2542 = vmatprep.mubr.bf16.mxu1 %v753_v54  ;;  %v3871_v4 = vld [vmem:[%s4162_s22 + $0x1e0] sm:$0xff]   ;;  %v3875_v8 = vld [vmem:[%s4162_s22 + $0x1e8] sm:$0xff]   ;;  %v3878_v11 = vld [vmem:[%s4162_s22 + $0x170] sm:$0xff]  }
  0x28   : > { %v3872_v5 = vld [vmem:[%s4162_s22 + $0x120] sm:$0xff]   ;;  %v3876_v9 = vld [vmem:[%s4162_s22 + $0x128] sm:$0xff]   ;;  %v3879_v12 = vld [vmem:[%s4162_s22 + $0x1f0] sm:$0xff]  }
  0x29   : > { %3461 = vmatpush3.bf16.msra.mxu0 %v3839_v19  ;;  %v3873_v6 = vld [vmem:[%s4162_s22 + $0x1a0] sm:$0xff]   ;;  %v3877_v10 = vld [vmem:[%s4162_s22 + $0x1a8] sm:$0xff]   ;;  %v3880_v13 = vld [vmem:[%s4162_s22 + $0x130] sm:$0xff]   ;;  %v736_v19 = vrot.slane %v4204_v44, %v4200_v42 }
  0x2a   : > { %3483 = vmatpush3.bf16.msra.mxu1 %v3840_v20  ;;  %3462 = vmatprep.subr.bf16.mxu0 %v3841_v21  ;;  %v3881_v14 = vld [vmem:[%s4162_s22 + $0x1b0] sm:$0xff]   ;;  %v3882_v15 = vld [vmem:[%s4162_s22 + $0x178] sm:$0xff]   ;;  %v3886_v20 = vld [vmem:[%s4162_s22 + $0x240] sm:$0xff]  }
  0x2b   : > { %3484 = vmatprep.subr.bf16.mxu1 %v3842_v22  ;;  %v3883_v16 = vld [vmem:[%s4162_s22 + $0x1f8] sm:$0xff]   ;;  %v3887_v21 = vld [vmem:[%s4162_s22 + $0x2c0] sm:$0xff]   ;;  %v3894_v29 = vld [vmem:[%s4162_s22 + $0x250] sm:$0xff]  }
  0x2c   : > { %v3884_v17 = vld [vmem:[%s4162_s22 + $0x138] sm:$0xff]   ;;  %v3888_v22 = vld [vmem:[%s4162_s22 + $0x200] sm:$0xff]   ;;  %v3906_v41 = vld [vmem:[%s4162_s22 + $0x268] sm:$0xff]  }
  0x2d   : > { %3463 = vmatpush3.bf16.msra.mxu0 %v3843_v23  ;;  %v3885_v18 = vld [vmem:[%s4162_s22 + $0x1b8] sm:$0xff]   ;;  %v3889_v23 = vld [vmem:[%s4162_s22 + $0x280] sm:$0xff]   ;;  %v3907_v43 = vld [vmem:[%s4162_s22 + $0x2e8] sm:$0xff]  }
  0x2e   : > { %3485 = vmatpush3.bf16.msra.mxu1 %v3844_v24  ;;  %3464 = vmatprep.subr.bf16.mxu0 %v3845_v25  ;;  %v752_v24 = vcombine.high %v736_v19, %v736_v19  ;;  %v3890_v25 = vld [vmem:[%s4162_s22 + $0x248] sm:$0xff]   ;;  %v3899_v34 = vld [vmem:[%s4162_s22 + $0x2d8] sm:$0xff]   ;;  %v3902_v37 = vld [vmem:[%s4162_s22 + $0x260] sm:$0xff]  }
  0x2f   : > { %3486 = vmatprep.subr.bf16.mxu1 %v3846_v26  ;;  %v3891_v26 = vld [vmem:[%s4162_s22 + $0x2c8] sm:$0xff]   ;;  %v3900_v35 = vld [vmem:[%s4162_s22 + $0x218] sm:$0xff]   ;;  %v3903_v38 = vld [vmem:[%s4162_s22 + $0x2e0] sm:$0xff]  }
  0x30   : > { %v3905_v40 = vld [vmem:[%s4162_s22 + $0x2a0] sm:$0xff]   ;;  %v3908_v44 = vld [vmem:[%s4162_s22 + $0x228] sm:$0xff]  }
  0x31   : > { %3465 = vmatpush3.bf16.msra.mxu0 %v3847_v27  ;;  %v3892_v27 = vld [vmem:[%s4162_s22 + $0x208] sm:$0xff]  }
  0x32   : > { %3487 = vmatpush3.bf16.msra.mxu1 %v3848_v28  ;;  %3466 = vmatprep.subr.bf16.mxu0 %v3849_v30  ;;  %v3893_v28 = vld [vmem:[%s4162_s22 + $0x288] sm:$0xff]   ;;  %v3895_v30 = vld [vmem:[%s4162_s22 + $0x2d0] sm:$0xff]  }
  0x33   : > { %3488 = vmatprep.subr.bf16.mxu1 %v3850_v31  ;;  %v3896_v31 = vld [vmem:[%s4162_s22 + $0x210] sm:$0xff]   ;;  %v3909_v45 = vld [vmem:[%s4162_s22 + $0x2a8] sm:$0xff]  }
  0x34   : > { %v187_v47 = vld [vmem:[%s4157_s18 + $0x8] sm:$0xff] }
  0x35   : > { %3467 = vmatpush3.bf16.msra.mxu0 %v3851_v32  ;;  %v3897_v32 = vld [vmem:[%s4162_s22 + $0x290] sm:$0xff]   ;;  %v762_v49 = vrot.slane %v187_v47, %v4200_v42 }
  0x36   : > { %3489 = vmatpush3.bf16.msra.mxu1 %v3852_v33  ;;  %3496 = vmatprep.subr.bf16.mxu0 %v3854_v36  ;;  %v3898_v33 = vld [vmem:[%s4162_s22 + $0x258] sm:$0xff]  }
  0x37   : > { %3518 = vmatprep.subr.bf16.mxu1 %v3855_v39  ;;  %v3901_v36 = vld [vmem:[%s4162_s22 + $0x298] sm:$0xff]   ;;  %v3904_v39 = vld [vmem:[%s4162_s22 + $0x220] sm:$0xff]  }
  0x38   : > { %2503 = vmatmul.mubr.bf16.vlgmr.msra.gmra.mrb[0].mxu0 %v729_v46  ;;  %v3910_v46 = vld [vmem:[%s4162_s22 + $0x270] sm:$0xff]  }
  0x39   : > { %3497 = vmatpush3.bf16.msra.mxu0 %v3856_v48  ;;  %2543 = vmatmul.mubr.bf16.vlgmr.msra.gmra.mrb[0].mxu1 %v751_v52  ;;  %v3911_v48 = vld [vmem:[%s4162_s22 + $0x2f0] sm:$0xff]  }
  0x3a   : > { %3498 = vmatprep.subr.bf16.mxu0 %v3858_v53  ;;  %3519 = vmatpush3.bf16.msra.mxu1 %v3857_v50  ;;  %v755_v50 = vcombine.high %v187_v47, %v187_v47  ;;  %v3913_v52 = vld [vmem:[%s4162_s22 + $0x2b0] sm:$0xff]   ;;  %v770_v53 = vcombine.high %v762_v49, %v762_v49 }
  0x3b   : > { %2582 = vmatprep.mubr.bf16.mxu0 %v750_v51  ;;  %3520 = vmatprep.subr.bf16.mxu1 %v3859_v55  ;;  %v3912_v51 = vld [vmem:[%s4162_s22 + $0x230] sm:$0xff]   ;;  %v3914_v55 = vld [vmem:[%s4162_s22 + $0x278] sm:$0xff]  }
  0x3c   : > { %2622 = vmatprep.mubr.bf16.mxu1 %v754_v57  ;;  %v4274_v54 = vrot.slane %v755_v50, %v4200_v42  ;;  %v792_v57 = vrot.slane %v770_v53, %v4200_v42  ;;  %v3961_v47 = vld [vmem:[%s4162_s22 + $0x410] sm:$0xff]   ;;  %v3964_v50 = vld [vmem:[%s4162_s22 + $0x4d8] sm:$0xff]   ;;  %v3967_v53 = vld [vmem:[%s4162_s22 + $0x460] sm:$0xff]  }
  0x3d   : > { %3499 = vmatpush3.bf16.msra.mxu0 %v3860_v56  ;;  %v3915_v56 = vld [vmem:[%s4162_s22 + $0x2f8] sm:$0xff]  }
  0x3e   : > { %3500 = vmatprep.subr.bf16.mxu0 %v3862_v59  ;;  %3521 = vmatpush3.bf16.msra.mxu1 %v3861_v58  ;;  %v771_v58 = vcombine.high %v4274_v54, %v4274_v54  ;;  %v3916_v59 = vld [vmem:[%s4162_s22 + $0x238] sm:$0xff]  }
  0x3f   : > { %3522 = vmatprep.subr.bf16.mxu1 %v3863_v60  ;;  %v3917_v60 = vld [vmem:[%s4162_s22 + $0x2b8] sm:$0xff]  }
  0x41   : > { %3501 = vmatpush3.bf16.msra.mxu0 %v3864_v61  ;;  %v802_v61 = vcombine.high %v792_v57, %v792_v57 }
  0x42   : > { %3502 = vmatprep.subr.bf16.mxu0 %v3866_v63  ;;  %3523 = vmatpush3.bf16.msra.mxu1 %v3865_v62  ;;  %v778_v62 = vrot.slane %v762_v49, %v4200_v42  ;;  %v3918_v63 = vld [vmem:[%s4162_s22 + $0x340] sm:$0xff]   ;;  %v3963_v49 = vld [vmem:[%s4162_s22 + $0x458] sm:$0xff]  }
  0x43   : > { %3524 = vmatprep.subr.bf16.mxu1 %v3867_v0  ;;  %v3919_v0 = vld [vmem:[%s4162_s22 + $0x3c0] sm:$0xff]  }
  0x45   : > { %3503 = vmatpush3.bf16.msra.mxu0 %v3868_v1  ;;  %v799_v1 = vrot.slane %v771_v58, %v4200_v42  ;;  %v3972_v58 = vld [vmem:[%s4162_s22 + $0x4e8] sm:$0xff]  }
  0x46   : > { %3504 = vmatprep.subr.bf16.mxu0 %v3870_v3  ;;  %3525 = vmatpush3.bf16.msra.mxu1 %v3869_v2  ;;  %v3920_v2 = vld [vmem:[%s4162_s22 + $0x300] sm:$0xff]  }
  0x47   : > { %3526 = vmatprep.subr.bf16.mxu1 %v3871_v4  ;;  %v3921_v3 = vld [vmem:[%s4162_s22 + $0x380] sm:$0xff]   ;;  %v800_v4 = vcombine.high %v778_v62, %v778_v62 }
  0x49   : > { %3505 = vmatpush3.bf16.msra.mxu0 %v3872_v5  ;;  %v3922_v5 = vld [vmem:[%s4162_s22 + $0x348] sm:$0xff]  }
  0x4a   : > { %3506 = vmatprep.subr.bf16.mxu0 %v3874_v7  ;;  %3527 = vmatpush3.bf16.msra.mxu1 %v3873_v6  ;;  %v3923_v6 = vld [vmem:[%s4162_s22 + $0x3c8] sm:$0xff]   ;;  %v803_v7 = vcombine.high %v799_v1, %v799_v1 }
  0x4b   : > { %3528 = vmatprep.subr.bf16.mxu1 %v3875_v8  ;;  %v3924_v8 = vld [vmem:[%s4162_s22 + $0x308] sm:$0xff]  }
  0x4d   : > { %3507 = vmatpush3.bf16.msra.mxu0 %v3876_v9  ;;  %v3925_v9 = vld [vmem:[%s4162_s22 + $0x388] sm:$0xff]  }
  0x4e   : > { %3508 = vmatprep.subr.bf16.mxu0 %v3878_v11  ;;  %3529 = vmatpush3.bf16.msra.mxu1 %v3877_v10  ;;  %v3926_v10 = vld [vmem:[%s4162_s22 + $0x350] sm:$0xff]  }
  0x4f   : > { %3530 = vmatprep.subr.bf16.mxu1 %v3879_v12  ;;  %v3927_v11 = vld [vmem:[%s4162_s22 + $0x3d0] sm:$0xff]  }
  0x50   : > { %v3928_v12 = vld [vmem:[%s4162_s22 + $0x310] sm:$0xff]  }
  0x51   : > { %3509 = vmatpush3.bf16.msra.mxu0 %v3880_v13  ;;  %v3929_v13 = vld [vmem:[%s4162_s22 + $0x390] sm:$0xff]  }
  0x52   : > { %3510 = vmatprep.subr.bf16.mxu0 %v3882_v15  ;;  %3531 = vmatpush3.bf16.msra.mxu1 %v3881_v14  ;;  %v3930_v14 = vld [vmem:[%s4162_s22 + $0x358] sm:$0xff]  }
  0x53   : > { %3532 = vmatprep.subr.bf16.mxu1 %v3883_v16  ;;  %v3931_v15 = vld [vmem:[%s4162_s22 + $0x3d8] sm:$0xff]  }
  0x54   : > { %v3932_v16 = vld [vmem:[%s4162_s22 + $0x318] sm:$0xff]  }
  0x55   : > { %3511 = vmatpush3.bf16.msra.mxu0 %v3884_v17  ;;  %v3933_v17 = vld [vmem:[%s4162_s22 + $0x398] sm:$0xff]  }
  0x56   : > { %3540 = vmatprep.subr.bf16.mxu0 %v3886_v20  ;;  %3533 = vmatpush3.bf16.msra.mxu1 %v3885_v18  ;;  %v3934_v18 = vld [vmem:[%s4162_s22 + $0x360] sm:$0xff]  }
  0x57   : > { %3562 = vmatprep.subr.bf16.mxu1 %v3887_v21  ;;  %v3936_v20 = vld [vmem:[%s4162_s22 + $0x320] sm:$0xff]  }
  0x58   : > { %2583 = vmatmul.mubr.bf16.vlgmr.msra.gmra.mrb[4].mxu0 %v736_v19  ;;  %v3935_v19 = vld [vmem:[%s4162_s22 + $0x3e0] sm:$0xff]  }
  0x59   : > { %3541 = vmatpush3.bf16.msra.mxu0 %v3888_v22  ;;  %2623 = vmatmul.mubr.bf16.vlgmr.msra.gmra.mrb[4].mxu1 %v752_v24  ;;  %v3937_v21 = vld [vmem:[%s4162_s22 + $0x3a0] sm:$0xff]   ;;  %v3938_v22 = vld [vmem:[%s4162_s22 + $0x368] sm:$0xff]  }
  0x5a   : > { %3542 = vmatprep.subr.bf16.mxu0 %v3890_v25  ;;  %3563 = vmatpush3.bf16.msra.mxu1 %v3889_v23  ;;  %v3939_v23 = vld [vmem:[%s4162_s22 + $0x3e8] sm:$0xff]  }
  0x5b   : > { %3564 = vmatprep.subr.bf16.mxu1 %v3891_v26  ;;  %2662 = vmatprep.mubr.bf16.mxu0 %v792_v57  ;;  %v3940_v24 = vld [vmem:[%s4162_s22 + $0x328] sm:$0xff]   ;;  %v3942_v26 = vld [vmem:[%s4162_s22 + $0x370] sm:$0xff]  }
  0x5c   : > { %2702 = vmatprep.mubr.bf16.mxu1 %v802_v61  ;;  %v3941_v25 = vld [vmem:[%s4162_s22 + $0x3a8] sm:$0xff]   ;;  %v3975_v61 = vld [vmem:[%s4162_s22 + $0x470] sm:$0xff]  }
  0x5d   : > { %3543 = vmatpush3.bf16.msra.mxu0 %v3892_v27  ;;  %v3943_v27 = vld [vmem:[%s4162_s22 + $0x3f0] sm:$0xff]   ;;  %v3971_v57 = vld [vmem:[%s4162_s22 + $0x468] sm:$0xff]  }
  0x5e   : > { %3544 = vmatprep.subr.bf16.mxu0 %v3894_v29  ;;  %3565 = vmatpush3.bf16.msra.mxu1 %v3893_v28  ;;  %v3944_v28 = vld [vmem:[%s4162_s22 + $0x330] sm:$0xff]  }
  0x5f   : > { %3566 = vmatprep.subr.bf16.mxu1 %v3895_v30  ;;  %v3945_v29 = vld [vmem:[%s4162_s22 + $0x3b0] sm:$0xff]   ;;  %v3946_v30 = vld [vmem:[%s4162_s22 + $0x378] sm:$0xff]  }
  0x61   : > { %3545 = vmatpush3.bf16.msra.mxu0 %v3896_v31  ;;  %v3947_v31 = vld [vmem:[%s4162_s22 + $0x3f8] sm:$0xff]  }
  0x62   : > { %3546 = vmatprep.subr.bf16.mxu0 %v3898_v33  ;;  %3567 = vmatpush3.bf16.msra.mxu1 %v3897_v32  ;;  %v3948_v32 = vld [vmem:[%s4162_s22 + $0x338] sm:$0xff]  }
  0x63   : > { %3568 = vmatprep.subr.bf16.mxu1 %v3899_v34  ;;  %v3949_v33 = vld [vmem:[%s4162_s22 + $0x3b8] sm:$0xff]   ;;  %v785_v34 = vrot.slane %v4274_v54, %v4200_v42  ;;  %v3968_v54 = vld [vmem:[%s4162_s22 + $0x4e0] sm:$0xff]  }
  0x65   : > { %3547 = vmatpush3.bf16.msra.mxu0 %v3900_v35  ;;  %v3951_v35 = vld [vmem:[%s4162_s22 + $0x440] sm:$0xff]  }
  0x66   : > { %3548 = vmatprep.subr.bf16.mxu0 %v3902_v37  ;;  %3569 = vmatpush3.bf16.msra.mxu1 %v3901_v36  ;;  %v3952_v36 = vld [vmem:[%s4162_s22 + $0x4c0] sm:$0xff]  }
  0x67   : > { %3570 = vmatprep.subr.bf16.mxu1 %v3903_v38  ;;  %v3953_v37 = vld [vmem:[%s4162_s22 + $0x400] sm:$0xff]  }
  0x68   : > { %v3954_v38 = vld [vmem:[%s4162_s22 + $0x480] sm:$0xff]  }
  0x69   : > { %3549 = vmatpush3.bf16.msra.mxu0 %v3904_v39  ;;  %v801_v39 = vcombine.high %v785_v34, %v785_v34 }
  0x6a   : > { %3550 = vmatprep.subr.bf16.mxu0 %v3906_v41  ;;  %3571 = vmatpush3.bf16.msra.mxu1 %v3905_v40  ;;  %v3955_v40 = vld [vmem:[%s4162_s22 + $0x448] sm:$0xff]  }
  0x6b   : > { %3572 = vmatprep.subr.bf16.mxu1 %v3907_v43  ;;  %v3956_v41 = vld [vmem:[%s4162_s22 + $0x4c8] sm:$0xff]  }
  0x6c   : > { %v3957_v43 = vld [vmem:[%s4162_s22 + $0x408] sm:$0xff]  }
  0x6d   : > { %3551 = vmatpush3.bf16.msra.mxu0 %v3908_v44  ;;  %v3958_v44 = vld [vmem:[%s4162_s22 + $0x488] sm:$0xff]  }
  0x6e   : > { %3552 = vmatprep.subr.bf16.mxu0 %v3910_v46  ;;  %3573 = vmatpush3.bf16.msra.mxu1 %v3909_v45  ;;  %v3959_v45 = vld [vmem:[%s4162_s22 + $0x450] sm:$0xff]  }
  0x6f   : > { %3574 = vmatprep.subr.bf16.mxu1 %v3911_v48  ;;  %v3960_v46 = vld [vmem:[%s4162_s22 + $0x4d0] sm:$0xff]  }
  0x70   : > { %v3962_v48 = vld [vmem:[%s4162_s22 + $0x490] sm:$0xff]  }
  0x71   : > { %3553 = vmatpush3.bf16.msra.mxu0 %v3912_v51  ;;  %v3965_v51 = vld [vmem:[%s4162_s22 + $0x418] sm:$0xff]  }
  0x72   : > { %3554 = vmatprep.subr.bf16.mxu0 %v3914_v55  ;;  %3575 = vmatpush3.bf16.msra.mxu1 %v3913_v52  ;;  %v3966_v52 = vld [vmem:[%s4162_s22 + $0x498] sm:$0xff]   ;;  %v3969_v55 = vld [vmem:[%s4162_s22 + $0x420] sm:$0xff]  }
  0x73   : > { %3576 = vmatprep.subr.bf16.mxu1 %v3915_v56  ;;  %v3970_v56 = vld [vmem:[%s4162_s22 + $0x4a0] sm:$0xff]  }
  0x75   : > { %3555 = vmatpush3.bf16.msra.mxu0 %v3916_v59  ;;  %v3973_v59 = vld [vmem:[%s4162_s22 + $0x428] sm:$0xff]  }
  0x76   : > { %3584 = vmatprep.subr.bf16.mxu0 %v3918_v63  ;;  %3577 = vmatpush3.bf16.msra.mxu1 %v3917_v60  ;;  %v3974_v60 = vld [vmem:[%s4162_s22 + $0x4a8] sm:$0xff]   ;;  %v3976_v63 = vld [vmem:[%s4162_s22 + $0x4f0] sm:$0xff]  }
  0x77   : > { %3606 = vmatprep.subr.bf16.mxu1 %v3919_v0 }
  0x78   : > { %2663 = vmatmul.mubr.bf16.vlgmr.msra.gmra.mrb[8].mxu0 %v778_v62  ;;  %v188_v62 = vld [vmem:[%s4157_s18 + $0x10] sm:$0xff] }
  0x79   : > { %3585 = vmatpush3.bf16.msra.mxu0 %v3920_v2  ;;  %2742 = vmatprep.mubr.bf16.mxu0 %v799_v1  ;;  %v811_v0 = vrot.slane %v188_v62, %v4200_v42  ;;  %v804_v1 = vcombine.high %v188_v62, %v188_v62  ;;  %v3977_v2 = vld [vmem:[%s4162_s22 + $0x430] sm:$0xff]  }
  0x7a   : > { %2703 = vmatmul.mubr.bf16.vlgmr.msra.gmra.mrb[8].mxu1 %v800_v4  ;;  %3586 = vmatprep.subr.bf16.mxu0 %v3922_v5  ;;  %v4026_v62 = vld [vmem:[%s4162_s22 + $0x610] sm:$0xff]  }
  0x7b   : > { %3607 = vmatpush3.bf16.msra.mxu1 %v3921_v3  ;;  %2782 = vmatprep.mubr.bf16.mxu1 %v803_v7  ;;  %v3978_v3 = vld [vmem:[%s4162_s22 + $0x4b0] sm:$0xff]   ;;  %v819_v4 = vcombine.high %v811_v0, %v811_v0  ;;  %v4350_v5 = vrot.slane %v804_v1, %v4200_v42  ;;  %v3980_v7 = vld [vmem:[%s4162_s22 + $0x4f8] sm:$0xff]  }
  0x7c   : > { %3608 = vmatprep.subr.bf16.mxu1 %v3923_v6  ;;  %v3979_v6 = vld [vmem:[%s4162_s22 + $0x478] sm:$0xff]  }
  0x7d   : > { %3587 = vmatpush3.bf16.msra.mxu0 %v3924_v8  ;;  %v841_v8 = vrot.slane %v819_v4, %v4200_v42  ;;  %v4029_v1 = vld [vmem:[%s4162_s22 + $0x6d8] sm:$0xff]   ;;  %v4032_v4 = vld [vmem:[%s4162_s22 + $0x660] sm:$0xff]  }
  0x7e   : > { %3588 = vmatprep.subr.bf16.mxu0 %v3926_v10  ;;  %v3981_v10 = vld [vmem:[%s4162_s22 + $0x438] sm:$0xff]  }
  0x7f   : > { %3609 = vmatpush3.bf16.msra.mxu1 %v3925_v9  ;;  %v820_v9 = vcombine.high %v4350_v5, %v4350_v5 }
  0x80   : > { %3610 = vmatprep.subr.bf16.mxu1 %v3927_v11  ;;  %v3982_v11 = vld [vmem:[%s4162_s22 + $0x4b8] sm:$0xff]  }
  0x81   : > { %3589 = vmatpush3.bf16.msra.mxu0 %v3928_v12  ;;  %v851_v12 = vcombine.high %v841_v8, %v841_v8 }
  0x82   : > { %3590 = vmatprep.subr.bf16.mxu0 %v3930_v14  ;;  %v3983_v14 = vld [vmem:[%s4162_s22 + $0x540] sm:$0xff]  }
  0x83   : > { %3611 = vmatpush3.bf16.msra.mxu1 %v3929_v13  ;;  %v827_v13 = vrot.slane %v811_v0, %v4200_v42  ;;  %v4028_v0 = vld [vmem:[%s4162_s22 + $0x658] sm:$0xff]  }
  0x84   : > { %3612 = vmatprep.subr.bf16.mxu1 %v3931_v15  ;;  %v3984_v15 = vld [vmem:[%s4162_s22 + $0x5c0] sm:$0xff]  }
  0x85   : > { %3591 = vmatpush3.bf16.msra.mxu0 %v3932_v16  ;;  %v848_v16 = vrot.slane %v820_v9, %v4200_v42  ;;  %v4037_v9 = vld [vmem:[%s4162_s22 + $0x6e8] sm:$0xff]  }
  0x86   : > { %3592 = vmatprep.subr.bf16.mxu0 %v3934_v18  ;;  %v3986_v18 = vld [vmem:[%s4162_s22 + $0x580] sm:$0xff]  }
  0x87   : > { %3613 = vmatpush3.bf16.msra.mxu1 %v3933_v17  ;;  %v3985_v17 = vld [vmem:[%s4162_s22 + $0x500] sm:$0xff]  }
  0x88   : > { %3614 = vmatprep.subr.bf16.mxu1 %v3935_v19  ;;  %v849_v19 = vcombine.high %v827_v13, %v827_v13 }
  0x89   : > { %3593 = vmatpush3.bf16.msra.mxu0 %v3936_v20  ;;  %v3987_v20 = vld [vmem:[%s4162_s22 + $0x548] sm:$0xff]  }
  0x8a   : > { %3594 = vmatprep.subr.bf16.mxu0 %v3938_v22  ;;  %v852_v22 = vcombine.high %v848_v16, %v848_v16 }
  0x8b   : > { %3615 = vmatpush3.bf16.msra.mxu1 %v3937_v21  ;;  %v3988_v21 = vld [vmem:[%s4162_s22 + $0x5c8] sm:$0xff]  }
  0x8c   : > { %3616 = vmatprep.subr.bf16.mxu1 %v3939_v23  ;;  %v3989_v23 = vld [vmem:[%s4162_s22 + $0x508] sm:$0xff]  }
  0x8d   : > { %3595 = vmatpush3.bf16.msra.mxu0 %v3940_v24  ;;  %v3990_v24 = vld [vmem:[%s4162_s22 + $0x588] sm:$0xff]  }
  0x8e   : > { %3596 = vmatprep.subr.bf16.mxu0 %v3942_v26  ;;  %v3992_v26 = vld [vmem:[%s4162_s22 + $0x5d0] sm:$0xff]  }
  0x8f   : > { %3617 = vmatpush3.bf16.msra.mxu1 %v3941_v25  ;;  %v3991_v25 = vld [vmem:[%s4162_s22 + $0x550] sm:$0xff]  }
  0x90   : > { %3618 = vmatprep.subr.bf16.mxu1 %v3943_v27  ;;  %v3993_v27 = vld [vmem:[%s4162_s22 + $0x510] sm:$0xff]  }
  0x91   : > { %3597 = vmatpush3.bf16.msra.mxu0 %v3944_v28  ;;  %v3994_v28 = vld [vmem:[%s4162_s22 + $0x590] sm:$0xff]  }
  0x92   : > { %3598 = vmatprep.subr.bf16.mxu0 %v3946_v30  ;;  %v3996_v30 = vld [vmem:[%s4162_s22 + $0x5d8] sm:$0xff]  }
  0x93   : > { %3619 = vmatpush3.bf16.msra.mxu1 %v3945_v29  ;;  %v3995_v29 = vld [vmem:[%s4162_s22 + $0x558] sm:$0xff]  }
  0x94   : > { %3620 = vmatprep.subr.bf16.mxu1 %v3947_v31  ;;  %v3997_v31 = vld [vmem:[%s4162_s22 + $0x518] sm:$0xff]  }
  0x95   : > { %3599 = vmatpush3.bf16.msra.mxu0 %v3948_v32  ;;  %v3998_v32 = vld [vmem:[%s4162_s22 + $0x598] sm:$0xff]  }
  0x96   : > { %3628 = vmatprep.subr.bf16.mxu0 %v3951_v35  ;;  %v4001_v35 = vld [vmem:[%s4162_s22 + $0x520] sm:$0xff]  }
  0x97   : > { %3621 = vmatpush3.bf16.msra.mxu1 %v3949_v33  ;;  %v3999_v33 = vld [vmem:[%s4162_s22 + $0x560] sm:$0xff]  }
  0x98   : > { %2743 = vmatmul.mubr.bf16.vlgmr.msra.gmra.mrb[12].mxu0 %v785_v34  ;;  %3650 = vmatprep.subr.bf16.mxu1 %v3952_v36  ;;  %v4000_v34 = vld [vmem:[%s4162_s22 + $0x5e0] sm:$0xff]  }
  0x99   : > { %3629 = vmatpush3.bf16.msra.mxu0 %v3953_v37  ;;  %2822 = vmatprep.mubr.bf16.mxu0 %v841_v8  ;;  %v4002_v36 = vld [vmem:[%s4162_s22 + $0x5a0] sm:$0xff]   ;;  %v4003_v37 = vld [vmem:[%s4162_s22 + $0x568] sm:$0xff]  }
  0x9a   : > { %2783 = vmatmul.mubr.bf16.vlgmr.msra.gmra.mrb[12].mxu1 %v801_v39  ;;  %3630 = vmatprep.subr.bf16.mxu0 %v3955_v40  ;;  %v4005_v39 = vld [vmem:[%s4162_s22 + $0x528] sm:$0xff]  }
  0x9b   : > { %3651 = vmatpush3.bf16.msra.mxu1 %v3954_v38  ;;  %2862 = vmatprep.mubr.bf16.mxu1 %v851_v12  ;;  %v4004_v38 = vld [vmem:[%s4162_s22 + $0x5e8] sm:$0xff]   ;;  %v4040_v12 = vld [vmem:[%s4162_s22 + $0x670] sm:$0xff]  }
  0x9c   : > { %3652 = vmatprep.subr.bf16.mxu1 %v3956_v41  ;;  %v4006_v40 = vld [vmem:[%s4162_s22 + $0x5a8] sm:$0xff]   ;;  %v4007_v41 = vld [vmem:[%s4162_s22 + $0x570] sm:$0xff]  }
  0x9d   : > { %3631 = vmatpush3.bf16.msra.mxu0 %v3957_v43  ;;  %v4008_v43 = vld [vmem:[%s4162_s22 + $0x5f0] sm:$0xff]   ;;  %v4036_v8 = vld [vmem:[%s4162_s22 + $0x668] sm:$0xff]  }
  0x9e   : > { %3632 = vmatprep.subr.bf16.mxu0 %v3959_v45  ;;  %v4010_v45 = vld [vmem:[%s4162_s22 + $0x5b0] sm:$0xff]  }
  0x9f   : > { %3653 = vmatpush3.bf16.msra.mxu1 %v3958_v44  ;;  %v4009_v44 = vld [vmem:[%s4162_s22 + $0x530] sm:$0xff]  }
  0xa0   : > { %3654 = vmatprep.subr.bf16.mxu1 %v3960_v46  ;;  %v4011_v46 = vld [vmem:[%s4162_s22 + $0x578] sm:$0xff]  }
  0xa1   : > { %3633 = vmatpush3.bf16.msra.mxu0 %v3961_v47  ;;  %v4012_v47 = vld [vmem:[%s4162_s22 + $0x5f8] sm:$0xff]  }
  0xa2   : > { %3634 = vmatprep.subr.bf16.mxu0 %v3963_v49  ;;  %v4014_v49 = vld [vmem:[%s4162_s22 + $0x5b8] sm:$0xff]  }
  0xa3   : > { %3655 = vmatpush3.bf16.msra.mxu1 %v3962_v48  ;;  %v4013_v48 = vld [vmem:[%s4162_s22 + $0x538] sm:$0xff]  }
  0xa4   : > { %3656 = vmatprep.subr.bf16.mxu1 %v3964_v50  ;;  %v834_v50 = vrot.slane %v4350_v5, %v4200_v42  ;;  %v4033_v5 = vld [vmem:[%s4162_s22 + $0x6e0] sm:$0xff]  }
  0xa5   : > { %3635 = vmatpush3.bf16.msra.mxu0 %v3965_v51  ;;  %v4016_v51 = vld [vmem:[%s4162_s22 + $0x640] sm:$0xff]  }
  0xa6   : > { %3636 = vmatprep.subr.bf16.mxu0 %v3967_v53  ;;  %v4018_v53 = vld [vmem:[%s4162_s22 + $0x600] sm:$0xff]  }
  0xa7   : > { %3657 = vmatpush3.bf16.msra.mxu1 %v3966_v52  ;;  %v4017_v52 = vld [vmem:[%s4162_s22 + $0x6c0] sm:$0xff]  }
  0xa8   : > { %3658 = vmatprep.subr.bf16.mxu1 %v3968_v54  ;;  %v4019_v54 = vld [vmem:[%s4162_s22 + $0x680] sm:$0xff]  }
  0xa9   : > { %3637 = vmatpush3.bf16.msra.mxu0 %v3969_v55  ;;  %v850_v55 = vcombine.high %v834_v50, %v834_v50 }
  0xaa   : > { %3638 = vmatprep.subr.bf16.mxu0 %v3971_v57  ;;  %v4021_v57 = vld [vmem:[%s4162_s22 + $0x6c8] sm:$0xff]  }
  0xab   : > { %3659 = vmatpush3.bf16.msra.mxu1 %v3970_v56  ;;  %v4020_v56 = vld [vmem:[%s4162_s22 + $0x648] sm:$0xff]  }
  0xac   : > { %3660 = vmatprep.subr.bf16.mxu1 %v3972_v58  ;;  %v4022_v58 = vld [vmem:[%s4162_s22 + $0x608] sm:$0xff]  }
  0xad   : > { %3639 = vmatpush3.bf16.msra.mxu0 %v3973_v59  ;;  %v4023_v59 = vld [vmem:[%s4162_s22 + $0x688] sm:$0xff]  }
  0xae   : > { %3640 = vmatprep.subr.bf16.mxu0 %v3975_v61  ;;  %v4025_v61 = vld [vmem:[%s4162_s22 + $0x6d0] sm:$0xff]  }
  0xaf   : > { %3661 = vmatpush3.bf16.msra.mxu1 %v3974_v60  ;;  %v4024_v60 = vld [vmem:[%s4162_s22 + $0x650] sm:$0xff]  }
  0xb0   : > { %3662 = vmatprep.subr.bf16.mxu1 %v3976_v63  ;;  %v4027_v63 = vld [vmem:[%s4162_s22 + $0x690] sm:$0xff]  }
  0xb1   : > { %3641 = vmatpush3.bf16.msra.mxu0 %v3977_v2  ;;  %v4030_v2 = vld [vmem:[%s4162_s22 + $0x618] sm:$0xff]  }
  0xb2   : > { %3642 = vmatprep.subr.bf16.mxu0 %v3979_v6  ;;  %v4034_v6 = vld [vmem:[%s4162_s22 + $0x620] sm:$0xff]  }
  0xb3   : > { %3663 = vmatpush3.bf16.msra.mxu1 %v3978_v3  ;;  %v4031_v3 = vld [vmem:[%s4162_s22 + $0x698] sm:$0xff]  }
  0xb4   : > { %3664 = vmatprep.subr.bf16.mxu1 %v3980_v7  ;;  %v4035_v7 = vld [vmem:[%s4162_s22 + $0x6a0] sm:$0xff]  }
  0xb5   : > { %3643 = vmatpush3.bf16.msra.mxu0 %v3981_v10  ;;  %v4038_v10 = vld [vmem:[%s4162_s22 + $0x628] sm:$0xff]  }
  0xb6   : > { %3672 = vmatprep.subr.bf16.mxu0 %v3983_v14  ;;  %v4041_v14 = vld [vmem:[%s4162_s22 + $0x6f0] sm:$0xff]  }
  0xb7   : > { %3665 = vmatpush3.bf16.msra.mxu1 %v3982_v11  ;;  %v4039_v11 = vld [vmem:[%s4162_s22 + $0x6a8] sm:$0xff]  }
  0xb8   : > { %2823 = vmatmul.mubr.bf16.vlgmr.msra.gmra.mrb[16].mxu0 %v827_v13  ;;  %3694 = vmatprep.subr.bf16.mxu1 %v3984_v15  ;;  %v189_v13 = vld [vmem:[%s4157_s18 + $0x18] sm:$0xff] }
  0xb9   : > { %3673 = vmatpush3.bf16.msra.mxu0 %v3985_v17  ;;  %2902 = vmatprep.mubr.bf16.mxu0 %v848_v16  ;;  %v860_v15 = vrot.slane %v189_v13, %v4200_v42  ;;  %v853_v16 = vcombine.high %v189_v13, %v189_v13  ;;  %v4042_v17 = vld [vmem:[%s4162_s22 + $0x630] sm:$0xff]  }
  0xba   : > { %2863 = vmatmul.mubr.bf16.vlgmr.msra.gmra.mrb[16].mxu1 %v849_v19  ;;  %3674 = vmatprep.subr.bf16.mxu0 %v3987_v20 }
  0xbb   : > { %3695 = vmatpush3.bf16.msra.mxu1 %v3986_v18  ;;  %2942 = vmatprep.mubr.bf16.mxu1 %v852_v22  ;;  %v4044_v18 = vld [vmem:[%s4162_s22 + $0x678] sm:$0xff]   ;;  %v868_v19 = vcombine.high %v860_v15, %v860_v15  ;;  %v4426_v20 = vrot.slane %v853_v16, %v4200_v42 }
  0xbc   : > { %3696 = vmatprep.subr.bf16.mxu1 %v3988_v21  ;;  %v4043_v21 = vld [vmem:[%s4162_s22 + $0x6b0] sm:$0xff]   ;;  %v4045_v22 = vld [vmem:[%s4162_s22 + $0x6f8] sm:$0xff]  }
  0xbd   : > { %3675 = vmatpush3.bf16.msra.mxu0 %v3989_v23  ;;  %v890_v23 = vrot.slane %v868_v19, %v4200_v42 }
  0xbe   : > { %3676 = vmatprep.subr.bf16.mxu0 %v3991_v25  ;;  %v4046_v25 = vld [vmem:[%s4162_s22 + $0x638] sm:$0xff]  }
  0xbf   : > { %3697 = vmatpush3.bf16.msra.mxu1 %v3990_v24  ;;  %v869_v24 = vcombine.high %v4426_v20, %v4426_v20 }
  0xc0   : > { %3698 = vmatprep.subr.bf16.mxu1 %v3992_v26  ;;  %v900_v26 = vcombine.high %v890_v23, %v890_v23 }
  0xc1   : > { %3677 = vmatpush3.bf16.msra.mxu0 %v3993_v27  ;;  %v876_v27 = vrot.slane %v860_v15, %v4200_v42 }
  0xc2   : > { %3678 = vmatprep.subr.bf16.mxu0 %v3995_v29  ;;  %v4047_v29 = vld [vmem:[%s4162_s22 + $0x6b8] sm:$0xff]  }
  0xc3   : > { %3699 = vmatpush3.bf16.msra.mxu1 %v3994_v28  ;;  %v4048_v28 = vld [vmem:[%s4162_s22 + $0x740] sm:$0xff]  }
  0xc4   : > { %3700 = vmatprep.subr.bf16.mxu1 %v3996_v30  ;;  %v897_v30 = vrot.slane %v869_v24, %v4200_v42 }
  0xc5   : > { %3679 = vmatpush3.bf16.msra.mxu0 %v3997_v31  ;;  %v4049_v31 = vld [vmem:[%s4162_s22 + $0x7c0] sm:$0xff]  }
  0xc6   : > { %3680 = vmatprep.subr.bf16.mxu0 %v3999_v33  ;;  %v898_v33 = vcombine.high %v876_v27, %v876_v27 }
  0xc7   : > { %3701 = vmatpush3.bf16.msra.mxu1 %v3998_v32  ;;  %v4050_v32 = vld [vmem:[%s4162_s22 + $0x700] sm:$0xff]  }
  0xc8   : > { %3702 = vmatprep.subr.bf16.mxu1 %v4000_v34  ;;  %v4052_v34 = vld [vmem:[%s4162_s22 + $0x748] sm:$0xff]  }
  0xc9   : > { %3681 = vmatpush3.bf16.msra.mxu0 %v4001_v35  ;;  %v4051_v35 = vld [vmem:[%s4162_s22 + $0x780] sm:$0xff]  }
  0xca   : > { %3682 = vmatprep.subr.bf16.mxu0 %v4003_v37  ;;  %v4053_v37 = vld [vmem:[%s4162_s22 + $0x7c8] sm:$0xff]  }
  0xcb   : > { %3703 = vmatpush3.bf16.msra.mxu1 %v4002_v36  ;;  %v901_v36 = vcombine.high %v897_v30, %v897_v30 }
  0xcc   : > { %3704 = vmatprep.subr.bf16.mxu1 %v4004_v38  ;;  %v4054_v38 = vld [vmem:[%s4162_s22 + $0x708] sm:$0xff]  }
  0xcd   : > { %3683 = vmatpush3.bf16.msra.mxu0 %v4005_v39  ;;  %v4056_v39 = vld [vmem:[%s4162_s22 + $0x750] sm:$0xff]  }
  0xce   : > { %3684 = vmatprep.subr.bf16.mxu0 %v4007_v41  ;;  %v4057_v41 = vld [vmem:[%s4162_s22 + $0x7d0] sm:$0xff]  }
  0xcf   : > { %3705 = vmatpush3.bf16.msra.mxu1 %v4006_v40  ;;  %v4055_v40 = vld [vmem:[%s4162_s22 + $0x788] sm:$0xff]  }
  0xd0   : > { %3706 = vmatprep.subr.bf16.mxu1 %v4008_v43  ;;  %v4058_v43 = vld [vmem:[%s4162_s22 + $0x710] sm:$0xff]  }
  0xd1   : > { %3685 = vmatpush3.bf16.msra.mxu0 %v4009_v44  ;;  %v4060_v44 = vld [vmem:[%s4162_s22 + $0x758] sm:$0xff]  }
  0xd2   : > { %3686 = vmatprep.subr.bf16.mxu0 %v4011_v46  ;;  %v4061_v46 = vld [vmem:[%s4162_s22 + $0x7d8] sm:$0xff]  }
  0xd3   : > { %3707 = vmatpush3.bf16.msra.mxu1 %v4010_v45  ;;  %v4059_v45 = vld [vmem:[%s4162_s22 + $0x790] sm:$0xff]  }
  0xd4   : > { %3708 = vmatprep.subr.bf16.mxu1 %v4012_v47  ;;  %v4062_v47 = vld [vmem:[%s4162_s22 + $0x718] sm:$0xff]  }
  0xd5   : > { %3687 = vmatpush3.bf16.msra.mxu0 %v4013_v48  ;;  %v4064_v48 = vld [vmem:[%s4162_s22 + $0x760] sm:$0xff]  }
  0xd6   : > { %3716 = vmatprep.subr.bf16.mxu0 %v4016_v51  ;;  %v4066_v51 = vld [vmem:[%s4162_s22 + $0x720] sm:$0xff]  }
  0xd7   : > { %3709 = vmatpush3.bf16.msra.mxu1 %v4014_v49  ;;  %v4063_v49 = vld [vmem:[%s4162_s22 + $0x798] sm:$0xff]  }
  0xd8   : > { %2903 = vmatmul.mubr.bf16.vlgmr.msra.gmra.mrb[20].mxu0 %v834_v50  ;;  %3738 = vmatprep.subr.bf16.mxu1 %v4017_v52  ;;  %v4065_v50 = vld [vmem:[%s4162_s22 + $0x7e0] sm:$0xff]   ;;  %v4068_v52 = vld [vmem:[%s4162_s22 + $0x768] sm:$0xff]  }
  0xd9   : > { %3717 = vmatpush3.bf16.msra.mxu0 %v4018_v53  ;;  %2982 = vmatprep.mubr.bf16.mxu0 %v890_v23  ;;  %v4067_v53 = vld [vmem:[%s4162_s22 + $0x7a0] sm:$0xff]  }
  0xda   : > { %2943 = vmatmul.mubr.bf16.vlgmr.msra.gmra.mrb[20].mxu1 %v850_v55  ;;  %3718 = vmatprep.subr.bf16.mxu0 %v4020_v56  ;;  %v4070_v55 = vld [vmem:[%s4162_s22 + $0x728] sm:$0xff]   ;;  %v4072_v56 = vld [vmem:[%s4162_s22 + $0x770] sm:$0xff]  }
  0xdb   : > { %3739 = vmatpush3.bf16.msra.mxu1 %v4019_v54  ;;  %3022 = vmatprep.mubr.bf16.mxu1 %v900_v26  ;;  %v4069_v54 = vld [vmem:[%s4162_s22 + $0x7e8] sm:$0xff]  }
  0xdc   : > { %3740 = vmatprep.subr.bf16.mxu1 %v4021_v57 }
  0xdd   : > { %3719 = vmatpush3.bf16.msra.mxu0 %v4022_v58  ;;  %v4071_v58 = vld [vmem:[%s4162_s22 + $0x7a8] sm:$0xff]  }
  0xde   : > { %3720 = vmatprep.subr.bf16.mxu0 %v4024_v60  ;;  %v4073_v60 = vld [vmem:[%s4162_s22 + $0x7f0] sm:$0xff]  }
  0xdf   : > { %3741 = vmatpush3.bf16.msra.mxu1 %v4023_v59 }
  0xe0   : > { %3742 = vmatprep.subr.bf16.mxu1 %v4025_v61 }
  0xe1   : > { %3721 = vmatpush3.bf16.msra.mxu0 %v4026_v62 }
  0xe2   : > { %3722 = vmatprep.subr.bf16.mxu0 %v4028_v0  ;;  %v4074_v0 = vld [vmem:[%s4162_s22 + $0x730] sm:$0xff]  }
  0xe3   : > { %3743 = vmatpush3.bf16.msra.mxu1 %v4027_v63 }
  0xe4   : > { %3744 = vmatprep.subr.bf16.mxu1 %v4029_v1 }
  0xe5   : > { %3723 = vmatpush3.bf16.msra.mxu0 %v4030_v2 }
  0xe6   : > { %3724 = vmatprep.subr.bf16.mxu0 %v4032_v4 }
  0xe7   : > { %3745 = vmatpush3.bf16.msra.mxu1 %v4031_v3  ;;  %v4076_v3 = vld [vmem:[%s4162_s22 + $0x778] sm:$0xff]  }
  0xe8   : > { %3746 = vmatprep.subr.bf16.mxu1 %v4033_v5 }
  0xe9   : > { %3725 = vmatpush3.bf16.msra.mxu0 %v4034_v6  ;;  %v4075_v6 = vld [vmem:[%s4162_s22 + $0x7b0] sm:$0xff]  }
  0xea   : > { %3726 = vmatprep.subr.bf16.mxu0 %v4036_v8  ;;  %v4077_v8 = vld [vmem:[%s4162_s22 + $0x7f8] sm:$0xff]  }
  0xeb   : > { %3747 = vmatpush3.bf16.msra.mxu1 %v4035_v7 }
  0xec   : > { %3748 = vmatprep.subr.bf16.mxu1 %v4037_v9 }
  0xed   : > { %3727 = vmatpush3.bf16.msra.mxu0 %v4038_v10  ;;  %v4078_v10 = vld [vmem:[%s4162_s22 + $0x738] sm:$0xff]  }
  0xee   : > { %3728 = vmatprep.subr.bf16.mxu0 %v4040_v12  ;;  %v4079_v12 = vld [vmem:[%s4162_s22 + $0x7b8] sm:$0xff]  }
  0xef   : > { %3749 = vmatpush3.bf16.msra.mxu1 %v4039_v11  ;;  %v883_v11 = vrot.slane %v4426_v20, %v4200_v42 }
  0xf0   : > { %3750 = vmatprep.subr.bf16.mxu1 %v4041_v14 }
  0xf1   : > { %3729 = vmatpush3.bf16.msra.mxu0 %v4042_v17  ;;  %v899_v13 = vcombine.high %v883_v11, %v883_v11 }
  0xf2   : > { %3730 = vmatprep.subr.bf16.mxu0 %v4044_v18 }
  0xf3   : > { %3751 = vmatpush3.bf16.msra.mxu1 %v4043_v21 }
  0xf4   : > { %3752 = vmatprep.subr.bf16.mxu1 %v4045_v22 }
  0xf5   : > { %3731 = vmatpush3.bf16.msra.mxu0 %v4046_v25 }
  0xf6   : > { %3760 = vmatprep.subr.bf16.mxu0 %v4048_v28 }
  0xf7   : > { %3753 = vmatpush3.bf16.msra.mxu1 %v4047_v29 }
  0xf8   : > { %2983 = vmatmul.mubr.bf16.vlgmr.msra.gmra.mrb[24].mxu0 %v876_v27  ;;  %3782 = vmatprep.subr.bf16.mxu1 %v4049_v31 }
  0xf9   : > { %3761 = vmatpush3.bf16.msra.mxu0 %v4050_v32  ;;  %3062 = vmatprep.mubr.bf16.mxu0 %v897_v30 }
  0xfa   : > { %3023 = vmatmul.mubr.bf16.vlgmr.msra.gmra.mrb[24].mxu1 %v898_v33  ;;  %3762 = vmatprep.subr.bf16.mxu0 %v4052_v34 }
  0xfb   : > { %3783 = vmatpush3.bf16.msra.mxu1 %v4051_v35  ;;  %3102 = vmatprep.mubr.bf16.mxu1 %v901_v36 }
  0xfc   : > { %3784 = vmatprep.subr.bf16.mxu1 %v4053_v37 }
  0xfd   : > { %3763 = vmatpush3.bf16.msra.mxu0 %v4054_v38 }
  0xfe   : > { %3764 = vmatprep.subr.bf16.mxu0 %v4056_v39 }
  0xff   : > { %3785 = vmatpush3.bf16.msra.mxu1 %v4055_v40 }
 0x100   : > { %3786 = vmatprep.subr.bf16.mxu1 %v4057_v41 }
 0x101   : > { %3765 = vmatpush3.bf16.msra.mxu0 %v4058_v43 }
 0x102   : > { %3766 = vmatprep.subr.bf16.mxu0 %v4060_v44 }
 0x103   : > { %3787 = vmatpush3.bf16.msra.mxu1 %v4059_v45 }
 0x104   : > { %3788 = vmatprep.subr.bf16.mxu1 %v4061_v46 }
 0x105   : > { %3767 = vmatpush3.bf16.msra.mxu0 %v4062_v47 }
 0x106   : > { %3768 = vmatprep.subr.bf16.mxu0 %v4064_v48 }
 0x107   : > { %3789 = vmatpush3.bf16.msra.mxu1 %v4063_v49 }
 0x108   : > { %3790 = vmatprep.subr.bf16.mxu1 %v4065_v50 }
 0x109   : > { %3769 = vmatpush3.bf16.msra.mxu0 %v4066_v51 }
 0x10a   : > { %3770 = vmatprep.subr.bf16.mxu0 %v4068_v52 }
 0x10b   : > { %3791 = vmatpush3.bf16.msra.mxu1 %v4067_v53  ;;  %v3468_v57 = vpop.f32.mrb[0].mxu0 }
 0x10c   : > { %v3469_v59 = vpop.f32.mrb[1].mxu0  ;;  %3792 = vmatprep.subr.bf16.mxu1 %v4069_v54  ;;  %v3490_v61 = vpop.f32.mrb[0].mxu1 }
 0x10d   : > { %v3470_v62 = vadd.f32 %v3469_v59, %v3468_v57  ;;  %v3471_v63 = vpop.f32.mrb[2].mxu0  ;;  %3771 = vmatpush3.bf16.msra.mxu0 %v4070_v55  ;;  %v3491_v1 = vpop.f32.mrb[1].mxu1 }
 0x10e   : > { %v3472_v2 = vpop.f32.mrb[3].mxu0  ;;  %3772 = vmatprep.subr.bf16.mxu0 %v4072_v56  ;;  %v3492_v4 = vadd.f32 %v3491_v1, %v3490_v61  ;;  %v3493_v5 = vpop.f32.mrb[2].mxu1 }
 0x10f   : > { %3793 = vmatpush3.bf16.msra.mxu1 %v4071_v58  ;;  %v3494_v7 = vpop.f32.mrb[3].mxu1 }
 0x110   : > { %3794 = vmatprep.subr.bf16.mxu1 %v4073_v60  ;;  %v2545_v9 = vadd.f32 %v3492_v4, %v3470_v62 }
 0x111   : > { %3773 = vmatpush3.bf16.msra.mxu0 %v4074_v0 }
 0x112   : > { %3774 = vmatprep.subr.bf16.mxu0 %v4076_v3 }
 0x113   : > { %3795 = vmatpush3.bf16.msra.mxu1 %v4075_v6 }
 0x114   : > { %3796 = vmatprep.subr.bf16.mxu1 %v4077_v8 }
 0x115   : > { %3775 = vmatpush3.bf16.msra.mxu0 %v4078_v10 }
 0x117   : > { %3797 = vmatpush3.bf16.msra.mxu1 %v4079_v12 }
 0x118   : > { %3063 = vmatmul.mubr.bf16.vlgmr.msra.gmra.mrb[28].mxu0 %v883_v11 }
 0x11a   : > { %3103 = vmatmul.mubr.bf16.vlgmr.msra.gmra.mrb[28].mxu1 %v899_v13 }
 0x12b   : > { %v3512_v14 = vpop.f32.mrb[4].mxu0 }
 0x12c   : > { %v3513_v15 = vpop.f32.mrb[5].mxu0  ;;  %v3534_v16 = vpop.f32.mrb[4].mxu1 }
 0x12d   : > { %v3514_v17 = vadd.f32 %v3513_v15, %v3512_v14  ;;  %v3515_v18 = vpop.f32.mrb[6].mxu0  ;;  %v3535_v19 = vpop.f32.mrb[5].mxu1 }
 0x12e   : > { %v3516_v21 = vpop.f32.mrb[7].mxu0  ;;  %v3536_v23 = vadd.f32 %v3535_v19, %v3534_v16  ;;  %v3537_v24 = vpop.f32.mrb[6].mxu1 }
 0x12f   : > { %v2585_v22 = vadd.f32 %v3514_v17, %v2545_v9  ;;  %v3538_v25 = vpop.f32.mrb[7].mxu1 }
 0x131   : > { %v2625_v42 = vadd.f32 %v3536_v23, %v2585_v22 }
 0x14b   : > { %v3556_v20 = vpop.f32.mrb[8].mxu0 }
 0x14c   : > { %v3557_v26 = vpop.f32.mrb[9].mxu0 }
 0x14d   : > { %v3578_v27 = vpop.f32.mrb[8].mxu1  ;;  %v3558_v28 = vadd.f32 %v3557_v26, %v3556_v20  ;;  %v3559_v29 = vpop.f32.mrb[10].mxu0 }
 0x14e   : > { %v3579_v30 = vpop.f32.mrb[9].mxu1  ;;  %v3560_v31 = vpop.f32.mrb[11].mxu0 }
 0x14f   : > { %v2665_v32 = vadd.f32 %v3558_v28, %v2625_v42  ;;  %v3580_v33 = vadd.f32 %v3579_v30, %v3578_v27  ;;  %v3581_v34 = vpop.f32.mrb[10].mxu1  ;;  %v185_v31 = vld [vmem:[#allocation2] sm:$0x3] }
 0x150   : > { %v3582_v35 = vpop.f32.mrb[11].mxu1 }
 0x151   : > { %v2705_v36 = vadd.f32 %v3580_v33, %v2665_v32 }
 0x16b   : > { %v3600_v37 = vpop.f32.mrb[12].mxu0 }
 0x16c   : > { %v3601_v38 = vpop.f32.mrb[13].mxu0 }
 0x16d   : > { %v3622_v39 = vpop.f32.mrb[12].mxu1  ;;  %v3602_v40 = vadd.f32 %v3601_v38, %v3600_v37  ;;  %v3603_v41 = vpop.f32.mrb[14].mxu0 }
 0x16e   : > { %v3623_v43 = vpop.f32.mrb[13].mxu1  ;;  %v3604_v44 = vpop.f32.mrb[15].mxu0 }
 0x16f   : > { %v2745_v45 = vadd.f32 %v3602_v40, %v2705_v36  ;;  %v3624_v46 = vadd.f32 %v3623_v43, %v3622_v39  ;;  %v3625_v47 = vpop.f32.mrb[14].mxu1  ;;  %v3447_v36 = vld [vmem:[%s4503_s2] ss:$0 sm:$0xff] (!%p3446_p6) }
 0x170   : > { %v3626_v48 = vpop.f32.mrb[15].mxu1 }
 0x171   : > { %v2785_v49 = vadd.f32 %v3624_v46, %v2745_v45 }
 0x18b   : > { %v3644_v50 = vpop.f32.mrb[16].mxu0 }
 0x18c   : > { %v3645_v51 = vpop.f32.mrb[17].mxu0 }
 0x18d   : > { %v3666_v52 = vpop.f32.mrb[16].mxu1  ;;  %v3646_v53 = vadd.f32 %v3645_v51, %v3644_v50  ;;  %v3647_v54 = vpop.f32.mrb[18].mxu0 }
 0x18e   : > { %v3667_v55 = vpop.f32.mrb[17].mxu1  ;;  %v3648_v56 = vpop.f32.mrb[19].mxu0 }
 0x18f   : > { %v2825_v57 = vadd.f32 %v3646_v53, %v2785_v49  ;;  %v3668_v58 = vadd.f32 %v3667_v55, %v3666_v52  ;;  %v3669_v59 = vpop.f32.mrb[18].mxu1 }
 0x190   : > { %v3670_v60 = vpop.f32.mrb[19].mxu1 }
 0x191   : > { %v2865_v61 = vadd.f32 %v3668_v58, %v2825_v57 }
 0x1ab   : > { %v3688_v62 = vpop.f32.mrb[20].mxu0 }
 0x1ac   : > { %v3689_v63 = vpop.f32.mrb[21].mxu0 }
 0x1ad   : > { %v3710_v0 = vpop.f32.mrb[20].mxu1  ;;  %v3690_v1 = vadd.f32 %v3689_v63, %v3688_v62  ;;  %v3691_v2 = vpop.f32.mrb[22].mxu0 }
 0x1ae   : > { %v3711_v3 = vpop.f32.mrb[21].mxu1  ;;  %v3692_v4 = vpop.f32.mrb[23].mxu0 }
 0x1af   : > { %v2905_v5 = vadd.f32 %v3690_v1, %v2865_v61  ;;  %v3712_v6 = vadd.f32 %v3711_v3, %v3710_v0  ;;  %v3713_v7 = vpop.f32.mrb[22].mxu1 }
 0x1b0   : > { %v3714_v8 = vpop.f32.mrb[23].mxu1 }
 0x1b1   : > { %v2945_v9 = vadd.f32 %v3712_v6, %v2905_v5 }
 0x1cb   : > { %v3732_v10 = vpop.f32.mrb[24].mxu0 }
 0x1cc   : > { %v3733_v11 = vpop.f32.mrb[25].mxu0 }
 0x1cd   : > { %v3754_v12 = vpop.f32.mrb[24].mxu1  ;;  %v3734_v13 = vadd.f32 %v3733_v11, %v3732_v10  ;;  %v3735_v14 = vpop.f32.mrb[26].mxu0 }
 0x1ce   : > { %v3755_v15 = vpop.f32.mrb[25].mxu1  ;;  %v3736_v16 = vpop.f32.mrb[27].mxu0 }
 0x1cf   : > { %v2985_v17 = vadd.f32 %v3734_v13, %v2945_v9  ;;  %v3756_v18 = vadd.f32 %v3755_v15, %v3754_v12  ;;  %v3757_v19 = vpop.f32.mrb[26].mxu1 }
 0x1d0   : > { %v3758_v21 = vpop.f32.mrb[27].mxu1 }
 0x1d1   : > { %v3025_v22 = vadd.f32 %v3756_v18, %v2985_v17 }
 0x1eb   : > { %v3776_v23 = vpop.f32.mrb[28].mxu0 }
 0x1ec   : > { %v3777_v24 = vpop.f32.mrb[29].mxu0 }
 0x1ed   : > { %v3798_v25 = vpop.f32.mrb[28].mxu1  ;;  %v3778_v42 = vadd.f32 %v3777_v24, %v3776_v23  ;;  %v3779_v20 = vpop.f32.mrb[30].mxu0 }
 0x1ee   : > { %v3799_v26 = vpop.f32.mrb[29].mxu1  ;;  %v3780_v27 = vpop.f32.mrb[31].mxu0 }
 0x1ef   : > { %v3065_v28 = vadd.f32 %v3778_v42, %v3025_v22  ;;  %v3800_v29 = vadd.f32 %v3799_v26, %v3798_v25  ;;  %v3801_v30 = vpop.f32.mrb[30].mxu1  ;;  %3116 = sbr.rel (%p3446_p6) target bundleno = 512 (0x200), region = 40 }
 0x1f0   : > { %v3802_v32 = vpop.f32.mrb[31].mxu1 }
 0x1f1   : > { %v3105_v33 = vadd.f32 %v3800_v29, %v3065_v28 }
 0x1f3   : > { %v3110_v34 = vadd.f32 %v3105_v33, %v185_v31 }
 0x1f5   : > { %3112 = vst.msk [vmem:[#allocation2] sm:$0x3] %vm3111_vm1, %v3110_v34 }
 0x1fc   : > { %v3117_v35 = vld [vmem:[#allocation2] sm:$0x3] }
 0x1fd   : > { %v3125_v37 = vadd.f32 %v3447_v36, %v3117_v35 }
 0x1ff   : > { %3126 = vst.msk [vmem:[#allocation3] sm:$0x3] %vm3111_vm1, %v3125_v37 }
 0x200 PF: > { %p3808_p7 = scmp.eq.s32.totalorder %s4148_s13, 3  ;;  %s4121_s25 = smov [#allocation3]  }
 0x201   : > { %s3134_s26 = sshll.u32 %s4121_s25, 4  ;;  %s3135_s26 = int_to_ptr.vmem [resolvable:$true] %s3134_s26 }
 0x202   : > { %s4081_s27 = scalar_lea.vmem %s3135_s26, 32  ;;  %p4088_p11 = scmp.lt.s32.totalorder %s3135_s26, %s3135_s26 }
 0x203   : > { %p4082_p8 = scmp.ne.s32.totalorder %s3135_s26, %s4081_s27  ;;  %p4089_p12 = scmp.lt.s32.totalorder %s4081_s27, %s4081_s27 }
 0x205   : > { %p4083_p9 = pnand %p4082_p8, %p3808_p7  ;;  %p4090_p13 = por %p4089_p12, %p4088_p11 }
 0x207   : > { %p4084_p10 = pneg %p4083_p9 }
 0x209   : > { %p4091_p0 = pnand %p4090_p13, %p4084_p10 }
 0x20b   : > { %4094 = shalt.err (!%p4091_p0)
}
 0x20c   : > { %s4095_s30 = scalar_lea.hbm %s4504_s3, 32 }
 0x20d   : > { %p4096_p1 = scmp.ne.s32.totalorder %s4504_s3, %s4095_s30  ;;  %p4101_p4 = scmp.lt.u32.totalorder %s4095_s30, %s4504_s3 }
 0x20f   : > { %p4097_p2 = pnand %p4096_p1, %p3808_p7 }
 0x211   : > { %p4098_p3 = pneg %p4097_p2 }
 0x213   : > { %p4103_p5 = pnand %p4101_p4, %p4098_p3 }
 0x215   : > { %4106 = shalt.err (!%p4103_p5)
}
 0x216   : > { %3805 = dma.vmem_to_hbm [thread:$0]  (%p3808_p7), %s3135_s26, 32, %s4504_s3, [#allocation4]  }
 0x217   : > { %4112 = dma.done.wait (%p3808_p7), [#allocation4], 32  }
 0x218   : > { %4114 = vsyncadd (%p3808_p7), [#allocation4], 4294967264 }
 0x219 PF: > { %s14_s12 = sadd.s32 1, %s4117_s12  }
 0x21a   : > { %p11_p6 = scmp.ge.s32.totalorder %s14_s12, 6  }
 0x21c   :  { %13 = sbr.rel (!%p11_p6) target bundleno = 1 (0x1), region = 70 }
 0x223   :  { %3147 = vsyncpa [#allocation4], 1 }
 0x224   :  { %3149 = vsyncpa [#allocation4 + $0x1], 1 }

// kernel: extra_head.2
= control target key start
LH: loop header
LB: loop body
LE: loop exit
PB: predicated region body
PF: predicated region fallthrough
CT: control target
= control target key end

     0   :  { %8 = vsyncpa [#allocation3], 0  ;;  %s19418_s0 = inlined_call_operand.vmem [shape: bf16[128,4352], index: 0, kind: input, shape index: {}]   ;;  %s19419_s1 = inlined_call_operand.hbm [shape: bf16[4352,1024], index: 1, kind: input, shape index: {}]   ;;  %s19420_s2 = inlined_call_operand.vmem [shape: f32[1,1024], index: 2, kind: input, shape index: {}]   ;;  %s19421_s3 = inlined_call_operand.vmem [shape: bf16[32,1024], index: 3, kind: output, shape index: {}]  }
   0x1   :  { %10 = vsyncpa [#allocation3 + $0x1], 0  ;;  %s17179_s12 = smov 0   ;;  %s17181_s13 = smov 0  }
   0x2   :  { %s17183_s14 = smov 0   ;;  %s17185_s15 = smov 0  }
   0x3 LB: > { %s17198_s16 = sadd.s32 4294967295, %s17153_s15   ;;  %s17201_s17 = sadd.s32 1, %s17153_s15   ;;  %s17153_s15 = sphi %s17185_s15, %s19429_s15   ;;  %s17149_s14 = sphi %s17183_s14, %s19428_s14   ;;  %s17145_s13 = sphi %s17181_s13, %s19427_s13   ;;  %s17141_s12 = sphi %s17179_s12, %s19426_s12  }
   0x4   : > { %s41_s18 = ssub.s32 %s17153_s15, %s17201_s17  ;;  %s44_s19 = sadd.s32 1, %s17149_s14 }
   0x5   : > { %p42_p0 = scmp.eq.s32.totalorder %s41_s18, 0  ;;  %p51_p1 = scmp.ne.s32.totalorder %s17149_s14, %s17145_s13 }
   0x6   : > { %p52_p2 = scmp.eq.s32.totalorder %s17153_s15, 0  ;;  %p57_p3 = scmp.ne.s32.totalorder %s17145_s13, %s17141_s12 }
   0x7   : > { %s17211_s20 = scalar_select %p42_p0, %s17149_s14, %s44_s19  }
   0x8   : > { %p53_p4 = por %p52_p2, %p51_p1  ;;  %p58_p5 = scmp.eq.s32.totalorder %s17198_s16, 0 }
   0x9   : > { %p107_p6 = scmp.eq.s32.totalorder %s17198_s16, 1  ;;  %p15013_p8 = scmp.lt.s32.totalorder %s17153_s15, 2 }
   0xa   : > { %p17215_p7 = por %p58_p5, %p57_p3  ;;  %s136_s23 = sand.u32 1, %s17149_s14  }
   0xb   : > { %p17220_p9 = por %p107_p6, %p51_p1  ;;  %s15005_s24 = smul.u32 8704, %s136_s23 }
   0xc   : > { %s13907_s25 = sshll.u32 %s17153_s15, 8  ;;  %p17226_p10 = pnand %p15013_p8, %p53_p4 }
   0xd   : > { %s19423_s22 = scalar_select %p17220_p9, 1, 0 }
   0xe   : > { %s17233_s29 = scalar_lea.hbm %s19419_s1, %s13907_s25  ;;  %s140_s30 = scalar_lea.vmem [#allocation2], %s15005_s24 }
   0xf   : > { %s147_s4 = sshll.u32 %s140_s30, 4  ;;  %s17237_s5 = scalar_lea.sflag [#allocation3], %s136_s23  ;;  %s17235_s4 = int_to_ptr.vmem [resolvable:$true] %s147_s4 }
  0x10   : > { %s17089_s6 = scalar_lea.hbm %s17233_s29, 139264  ;;  %p17091_p12 = pneg %p17226_p10 }
  0x11   : > { %p17090_p11 = scmp.ne.s32.totalorder %s17233_s29, %s17089_s6  ;;  %s17094_s9 = scalar_lea.hbm %s19419_s1, 278528 }
  0x12   : > { %p17095_p1 = scmp.lt.u32.totalorder %s17233_s29, %s19419_s1  ;;  %p17096_p2 = scmp.lt.u32.totalorder %s17094_s9, %s17089_s6 }
  0x13   : > { %p17092_p13 = pnand %p17091_p12, %p17090_p11  ;;  %p17098_p4 = scmp.lt.u32.totalorder %s17089_s6, %s17233_s29 }
  0x14   : > { %p17097_p3 = por %p17096_p2, %p17095_p1 }
  0x15   : > { %p17093_p0 = pneg %p17092_p13 }
  0x16   : > { %p17099_p5 = por %p17098_p4, %p17097_p3 }
  0x18   : > { %p17100_p6 = pnand %p17099_p5, %p17093_p0 }
  0x1a   : > { %17103 = shalt.err (!%p17100_p6)
}
  0x1b   : > { %s17104_s12 = scalar_lea.vmem %s17235_s4, 139264  ;;  %s17155_s18 = smov [#allocation2]  }
  0x1c   : > { %p17105_p8 = scmp.ne.s32.totalorder %s17235_s4, %s17104_s12  ;;  %s17109_s19 = sshll.u32 %s17155_s18, 4  ;;  %s17110_s19 = int_to_ptr.vmem [resolvable:$false] %s17109_s19 }
  0x1d   : > { %s17111_s23 = scalar_lea.vmem %s17110_s19, 278528  ;;  %p17112_p9 = scmp.lt.s32.totalorder %s17235_s4, %s17110_s19 }
  0x1e   : > { %p17107_p11 = pnand %p17105_p8, %p17091_p12  ;;  %p17113_p1 = scmp.lt.s32.totalorder %s17111_s23, %s17104_s12 }
  0x20   : > { %p17108_p13 = pneg %p17107_p11  ;;  %p17114_p2 = por %p17113_p1, %p17112_p9 }
  0x22   : > { %p17115_p3 = pnand %p17114_p2, %p17108_p13 }
  0x24   : > { %17118 = shalt.err (!%p17115_p3)
}
  0x25   : > { %s17156_s24 = smov 512   ;;  %s17157_s25 = smov 256  }
  0x26   : > { %s17158_s27 = smov 16   ;;  %p12531_p12 = scmp.ge.s32.totalorder %s17153_s15, 1 }
  0x27   : > { %15012 = dma.hbm_to_vmem [thread:$0]  (!%p17226_p10), %s17233_s29, 139264, %s17235_s4, %s17237_s5, %s17156_s24, %s17157_s25, %s17158_s27  }
  0x28   : > { %p163_p0 = scmp.lt.s32.totalorder %s17153_s15, 3 }
  0x2a   : > { %p164_p4 = pnand %p12531_p12, %p163_p0 }
  0x2b   : > { %s17268_s28 = sand.u32 (!%p164_p4), 1, %s17145_s13  }
  0x2c   : > { %167 = sbr.rel (%p164_p4) target bundleno = 1433 (0x599), region = 32  ;;  %s170_s6 = scalar_lea.sflag (!%p164_p4), [#allocation3], %s17268_s28 }
  0x2d   : > { %s15006_s30 = smul.u32 (!%p164_p4), 8704, %s17268_s28 }
  0x2f   : > { %s17272_s7 = scalar_lea.vmem (!%p164_p4), [#allocation2], %s15006_s30 }
  0x33   : > { %17136 = dma.done.wait (%p17215_p7), %s170_s6, 139264  }
  0x34   : > { %17138 = vsyncadd (%p17215_p7), %s170_s6, 4294828032  ;;  %v15049_v0 = vld [vmem:[%s17272_s7 + $0x4] ss:$16 sps:$4 sm:$0xff]   ;;  %v15051_v1 = vld [vmem:[%s17272_s7 + $0xc] ss:$16 sps:$4 sm:$0xff]   ;;  %s12533_s12 = sshll.u32 %s17198_s16, 2 }
  0x35   : > { %8388 = vmatprep.subr.bf16.mxu0 %v15049_v0  ;;  %v15053_v2 = vld [vmem:[%s17272_s7] ss:$16 sps:$4 sm:$0xff]   ;;  %v15054_v3 = vld [vmem:[%s17272_s7 + $0x8] ss:$16 sps:$4 sm:$0xff]   ;;  %10309 = vmatprep.subr.bf16.mxu1 %v15051_v1  ;;  %v15055_v4 = vld [vmem:[%s17272_s7 + $0x24] ss:$16 sps:$4 sm:$0xff]  }
  0x36   : > { %8389 = vmatpush1.bf16.msra.mxu0 %v15053_v2  ;;  %10310 = vmatpush1.bf16.msra.mxu1 %v15054_v3  ;;  %v15057_v5 = vld [vmem:[%s17272_s7 + $0x2c] ss:$16 sps:$4 sm:$0xff]   ;;  %v15059_v6 = vld [vmem:[%s17272_s7 + $0x20] ss:$16 sps:$4 sm:$0xff]   ;;  %v15060_v7 = vld [vmem:[%s17272_s7 + $0x28] ss:$16 sps:$4 sm:$0xff]  }
  0x37   : > { %8390 = vmatprep.subr.bf16.mxu0 %v15055_v4  ;;  %10311 = vmatprep.subr.bf16.mxu1 %v15057_v5  ;;  %v15061_v8 = vld [vmem:[%s17272_s7 + $0x44] ss:$16 sps:$4 sm:$0xff]   ;;  %v15063_v9 = vld [vmem:[%s17272_s7 + $0x4c] ss:$16 sps:$4 sm:$0xff]   ;;  %v15065_v10 = vld [vmem:[%s17272_s7 + $0x40] ss:$16 sps:$4 sm:$0xff]  }
  0x38   : > { %v15066_v11 = vld [vmem:[%s17272_s7 + $0x48] ss:$16 sps:$4 sm:$0xff]   ;;  %v15067_v12 = vld [vmem:[%s17272_s7 + $0x64] ss:$16 sps:$4 sm:$0xff]   ;;  %v15069_v13 = vld [vmem:[%s17272_s7 + $0x6c] ss:$16 sps:$4 sm:$0xff]  }
  0x39   : > { %v15071_v14 = vld [vmem:[%s17272_s7 + $0x60] ss:$16 sps:$4 sm:$0xff]   ;;  %v15072_v15 = vld [vmem:[%s17272_s7 + $0x68] ss:$16 sps:$4 sm:$0xff]   ;;  %v15073_v16 = vld [vmem:[%s17272_s7 + $0x84] ss:$16 sps:$4 sm:$0xff]  }
  0x3a   : > { %8391 = vmatpush1.bf16.msra.mxu0 %v15059_v6  ;;  %10312 = vmatpush1.bf16.msra.mxu1 %v15060_v7  ;;  %v15075_v17 = vld [vmem:[%s17272_s7 + $0x8c] ss:$16 sps:$4 sm:$0xff]   ;;  %v15077_v18 = vld [vmem:[%s17272_s7 + $0x80] ss:$16 sps:$4 sm:$0xff]   ;;  %v15078_v19 = vld [vmem:[%s17272_s7 + $0x88] ss:$16 sps:$4 sm:$0xff]  }
  0x3b   : > { %8392 = vmatprep.subr.bf16.mxu0 %v15061_v8  ;;  %10313 = vmatprep.subr.bf16.mxu1 %v15063_v9  ;;  %v15079_v20 = vld [vmem:[%s17272_s7 + $0xa4] ss:$16 sps:$4 sm:$0xff]   ;;  %v15081_v21 = vld [vmem:[%s17272_s7 + $0xac] ss:$16 sps:$4 sm:$0xff]   ;;  %v15083_v22 = vld [vmem:[%s17272_s7 + $0xa0] ss:$16 sps:$4 sm:$0xff]  }
  0x3c   : > { %v15084_v23 = vld [vmem:[%s17272_s7 + $0xa8] ss:$16 sps:$4 sm:$0xff]   ;;  %v15085_v24 = vld [vmem:[%s17272_s7 + $0xc4] ss:$16 sps:$4 sm:$0xff]   ;;  %v15087_v25 = vld [vmem:[%s17272_s7 + $0xcc] ss:$16 sps:$4 sm:$0xff]  }
  0x3d   : > { %v15089_v26 = vld [vmem:[%s17272_s7 + $0xc0] ss:$16 sps:$4 sm:$0xff]   ;;  %v15090_v27 = vld [vmem:[%s17272_s7 + $0xc8] ss:$16 sps:$4 sm:$0xff]   ;;  %v15091_v28 = vld [vmem:[%s17272_s7 + $0xe4] ss:$16 sps:$4 sm:$0xff]  }
  0x3e   : > { %8393 = vmatpush1.bf16.msra.mxu0 %v15065_v10  ;;  %10314 = vmatpush1.bf16.msra.mxu1 %v15066_v11  ;;  %v15093_v29 = vld [vmem:[%s17272_s7 + $0xec] ss:$16 sps:$4 sm:$0xff]   ;;  %v15095_v30 = vld [vmem:[%s17272_s7 + $0xe0] ss:$16 sps:$4 sm:$0xff]   ;;  %v15096_v31 = vld [vmem:[%s17272_s7 + $0xe8] ss:$16 sps:$4 sm:$0xff]  }
  0x3f   : > { %8394 = vmatprep.subr.bf16.mxu0 %v15067_v12  ;;  %10315 = vmatprep.subr.bf16.mxu1 %v15069_v13  ;;  %v15097_v32 = vld [vmem:[%s17272_s7 + $0x104] ss:$16 sps:$4 sm:$0xff]   ;;  %v15099_v33 = vld [vmem:[%s17272_s7 + $0x10c] ss:$16 sps:$4 sm:$0xff]   ;;  %v15101_v34 = vld [vmem:[%s17272_s7 + $0x100] ss:$16 sps:$4 sm:$0xff]  }
  0x40   : > { %v15102_v35 = vld [vmem:[%s17272_s7 + $0x108] ss:$16 sps:$4 sm:$0xff]   ;;  %v15103_v36 = vld [vmem:[%s17272_s7 + $0x124] ss:$16 sps:$4 sm:$0xff]   ;;  %v15105_v37 = vld [vmem:[%s17272_s7 + $0x12c] ss:$16 sps:$4 sm:$0xff]  }
  0x41   : > { %v15107_v38 = vld [vmem:[%s17272_s7 + $0x120] ss:$16 sps:$4 sm:$0xff]   ;;  %v15108_v39 = vld [vmem:[%s17272_s7 + $0x128] ss:$16 sps:$4 sm:$0xff]   ;;  %v15109_v40 = vld [vmem:[%s17272_s7 + $0x144] ss:$16 sps:$4 sm:$0xff]  }
  0x42   : > { %8395 = vmatpush1.bf16.msra.mxu0 %v15071_v14  ;;  %10316 = vmatpush1.bf16.msra.mxu1 %v15072_v15  ;;  %v15111_v41 = vld [vmem:[%s17272_s7 + $0x14c] ss:$16 sps:$4 sm:$0xff]   ;;  %v15113_v42 = vld [vmem:[%s17272_s7 + $0x140] ss:$16 sps:$4 sm:$0xff]   ;;  %v15114_v43 = vld [vmem:[%s17272_s7 + $0x148] ss:$16 sps:$4 sm:$0xff]  }
  0x43   : > { %8396 = vmatprep.subr.bf16.mxu0 %v15073_v16  ;;  %10317 = vmatprep.subr.bf16.mxu1 %v15075_v17  ;;  %v15115_v44 = vld [vmem:[%s17272_s7 + $0x164] ss:$16 sps:$4 sm:$0xff]   ;;  %v15117_v45 = vld [vmem:[%s17272_s7 + $0x16c] ss:$16 sps:$4 sm:$0xff]   ;;  %v15119_v46 = vld [vmem:[%s17272_s7 + $0x160] ss:$16 sps:$4 sm:$0xff]  }
  0x44   : > { %v15120_v47 = vld [vmem:[%s17272_s7 + $0x168] ss:$16 sps:$4 sm:$0xff]   ;;  %v15147_v48 = vld [vmem:[%s19418_s0 + $0x4] ss:$136 sps:$4 sm:$0xff]   ;;  %v15125_v51 = vld [vmem:[%s17272_s7 + $0x180] ss:$16 sps:$4 sm:$0xff]  }
  0x45   : > { %v15121_v49 = vld [vmem:[%s17272_s7 + $0x184] ss:$16 sps:$4 sm:$0xff]   ;;  %v15123_v50 = vld [vmem:[%s17272_s7 + $0x18c] ss:$16 sps:$4 sm:$0xff]   ;;  %8420 = vmatprep.mubr.bf16.mxu0 %v15147_v48  ;;  %10341 = vmatprep.mubr.bf16.mxu1 %v15147_v48  ;;  %v15126_v52 = vld [vmem:[%s17272_s7 + $0x188] ss:$16 sps:$4 sm:$0xff]  }
  0x46   : > { %8397 = vmatpush1.bf16.msra.mxu0 %v15077_v18  ;;  %10318 = vmatpush1.bf16.msra.mxu1 %v15078_v19  ;;  %v15127_v53 = vld [vmem:[%s17272_s7 + $0x1a4] ss:$16 sps:$4 sm:$0xff]   ;;  %v15129_v54 = vld [vmem:[%s17272_s7 + $0x1ac] ss:$16 sps:$4 sm:$0xff]   ;;  %v15131_v55 = vld [vmem:[%s17272_s7 + $0x1a0] ss:$16 sps:$4 sm:$0xff]  }
  0x47   : > { %8398 = vmatprep.subr.bf16.mxu0 %v15079_v20  ;;  %10319 = vmatprep.subr.bf16.mxu1 %v15081_v21  ;;  %v15132_v56 = vld [vmem:[%s17272_s7 + $0x1a8] ss:$16 sps:$4 sm:$0xff]   ;;  %v15133_v57 = vld [vmem:[%s17272_s7 + $0x1c4] ss:$16 sps:$4 sm:$0xff]   ;;  %v15135_v58 = vld [vmem:[%s17272_s7 + $0x1cc] ss:$16 sps:$4 sm:$0xff]  }
  0x48   : > { %v15137_v59 = vld [vmem:[%s17272_s7 + $0x1c0] ss:$16 sps:$4 sm:$0xff]   ;;  %v15138_v60 = vld [vmem:[%s17272_s7 + $0x1c8] ss:$16 sps:$4 sm:$0xff]   ;;  %v15139_v61 = vld [vmem:[%s17272_s7 + $0x1e4] ss:$16 sps:$4 sm:$0xff]  }
  0x49   : > { %v15141_v62 = vld [vmem:[%s17272_s7 + $0x1ec] ss:$16 sps:$4 sm:$0xff]   ;;  %v15143_v63 = vld [vmem:[%s17272_s7 + $0x1e0] ss:$16 sps:$4 sm:$0xff]   ;;  %v15144_v0 = vld [vmem:[%s17272_s7 + $0x1e8] ss:$16 sps:$4 sm:$0xff]  }
  0x4a   : > { %8399 = vmatpush1.bf16.msra.mxu0 %v15083_v22  ;;  %10320 = vmatpush1.bf16.msra.mxu1 %v15084_v23  ;;  %v15150_v1 = vld [vmem:[%s17272_s7 + $0x204] ss:$16 sps:$4 sm:$0xff]   ;;  %v15153_v2 = vld [vmem:[%s17272_s7 + $0x20c] ss:$16 sps:$4 sm:$0xff]   ;;  %v15145_v3 = vld [vmem:[%s19418_s0] ss:$136 sps:$4 sm:$0xff]  }
  0x4b   : > { %8400 = vmatprep.subr.bf16.mxu0 %v15085_v24  ;;  %10321 = vmatprep.subr.bf16.mxu1 %v15087_v25  ;;  %v15148_v4 = vld [vmem:[%s17272_s7 + $0x200] ss:$16 sps:$4 sm:$0xff]   ;;  %v15151_v5 = vld [vmem:[%s17272_s7 + $0x208] ss:$16 sps:$4 sm:$0xff]   ;;  %v15156_v6 = vld [vmem:[%s17272_s7 + $0x224] ss:$16 sps:$4 sm:$0xff]  }
  0x4c   : > { %v15159_v7 = vld [vmem:[%s17272_s7 + $0x22c] ss:$16 sps:$4 sm:$0xff]   ;;  %v15154_v9 = vld [vmem:[%s17272_s7 + $0x220] ss:$16 sps:$4 sm:$0xff]   ;;  %v15157_v10 = vld [vmem:[%s17272_s7 + $0x228] ss:$16 sps:$4 sm:$0xff]  }
  0x4d   : > { %v15160_v8 = vld [vmem:[%s19418_s0 + $0x114] ss:$136 sps:$4 sm:$0xff]   ;;  %v15162_v13 = vld [vmem:[%s19418_s0 + $0x110] ss:$136 sps:$4 sm:$0xff]   ;;  %v15175_v18 = vld [vmem:[%s19418_s0 + $0x224] ss:$136 sps:$4 sm:$0xff]  }
  0x4e   : > { %8401 = vmatpush1.bf16.msra.mxu0 %v15089_v26  ;;  %10322 = vmatpush1.bf16.msra.mxu1 %v15090_v27  ;;  %v15165_v11 = vld [vmem:[%s17272_s7 + $0x244] ss:$16 sps:$4 sm:$0xff]   ;;  %v15168_v12 = vld [vmem:[%s17272_s7 + $0x24c] ss:$16 sps:$4 sm:$0xff]   ;;  %v15163_v14 = vld [vmem:[%s17272_s7 + $0x240] ss:$16 sps:$4 sm:$0xff]  }
  0x4f   : > { %8402 = vmatprep.subr.bf16.mxu0 %v15091_v28  ;;  %10323 = vmatprep.subr.bf16.mxu1 %v15093_v29  ;;  %v15166_v15 = vld [vmem:[%s17272_s7 + $0x248] ss:$16 sps:$4 sm:$0xff]   ;;  %v15171_v16 = vld [vmem:[%s17272_s7 + $0x264] ss:$16 sps:$4 sm:$0xff]   ;;  %v15174_v17 = vld [vmem:[%s17272_s7 + $0x26c] ss:$16 sps:$4 sm:$0xff]  }
  0x50   : > { %v15169_v19 = vld [vmem:[%s17272_s7 + $0x260] ss:$16 sps:$4 sm:$0xff]   ;;  %v15172_v20 = vld [vmem:[%s17272_s7 + $0x268] ss:$16 sps:$4 sm:$0xff]   ;;  %v15180_v21 = vld [vmem:[%s17272_s7 + $0x284] ss:$16 sps:$4 sm:$0xff]  }
  0x51   : > { %v15183_v22 = vld [vmem:[%s17272_s7 + $0x28c] ss:$16 sps:$4 sm:$0xff]   ;;  %v15177_v23 = vld [vmem:[%s19418_s0 + $0x220] ss:$136 sps:$4 sm:$0xff]   ;;  %v15186_v26 = vld [vmem:[%s17272_s7 + $0x2a4] ss:$16 sps:$4 sm:$0xff]  }
  0x52   : > { %8403 = vmatpush1.bf16.msra.mxu0 %v15095_v30  ;;  %10324 = vmatpush1.bf16.msra.mxu1 %v15096_v31  ;;  %v15178_v24 = vld [vmem:[%s17272_s7 + $0x280] ss:$16 sps:$4 sm:$0xff]   ;;  %v15181_v25 = vld [vmem:[%s17272_s7 + $0x288] ss:$16 sps:$4 sm:$0xff]   ;;  %v15189_v27 = vld [vmem:[%s17272_s7 + $0x2ac] ss:$16 sps:$4 sm:$0xff]  }
  0x53   : > { %8404 = vmatprep.subr.bf16.mxu0 %v15097_v32  ;;  %10325 = vmatprep.subr.bf16.mxu1 %v15099_v33  ;;  %v15190_v28 = vld [vmem:[%s19418_s0 + $0x334] ss:$136 sps:$4 sm:$0xff]   ;;  %v15184_v29 = vld [vmem:[%s17272_s7 + $0x2a0] ss:$16 sps:$4 sm:$0xff]   ;;  %v15187_v30 = vld [vmem:[%s17272_s7 + $0x2a8] ss:$16 sps:$4 sm:$0xff]  }
  0x54   : > { %v15195_v31 = vld [vmem:[%s17272_s7 + $0x2c4] ss:$16 sps:$4 sm:$0xff]   ;;  %v15198_v32 = vld [vmem:[%s17272_s7 + $0x2cc] ss:$16 sps:$4 sm:$0xff]   ;;  %v15192_v33 = vld [vmem:[%s19418_s0 + $0x330] ss:$136 sps:$4 sm:$0xff]  }
  0x55   : > { %v15220_v48 = vld [vmem:[%s19418_s0 + $0x554] ss:$136 sps:$4 sm:$0xff]   ;;  %p201_p7 = scmp.lt.s32.totalorder %s12533_s12, 7  ;;  %s12532_s24 = sshll.u32 %s17268_s28, 6 }
  0x56   : > { %8405 = vmatpush1.bf16.msra.mxu0 %v15101_v34  ;;  %10326 = vmatpush1.bf16.msra.mxu1 %v15102_v35  ;;  %v15193_v34 = vld [vmem:[%s17272_s7 + $0x2c0] ss:$16 sps:$4 sm:$0xff]   ;;  %v15196_v35 = vld [vmem:[%s17272_s7 + $0x2c8] ss:$16 sps:$4 sm:$0xff]   ;;  %s19369_s25 = scalar_lea.vmem [#allocation4], %s12532_s24  ;;  %p19425_p9 = scmp.ne.s32.totalorder %s19423_s22, 0 }
  0x57   : > { %8406 = vmatprep.subr.bf16.mxu0 %v15103_v36  ;;  %10327 = vmatprep.subr.bf16.mxu1 %v15105_v37  ;;  %v15201_v36 = vld [vmem:[%s17272_s7 + $0x2e4] ss:$16 sps:$4 sm:$0xff]   ;;  %v15204_v37 = vld [vmem:[%s17272_s7 + $0x2ec] ss:$16 sps:$4 sm:$0xff]   ;;  %s19431_s12 = smov (!%p201_p7, %s12533_s12), 7  ;;  %s13916_s28 = sshll.u32 (%p19425_p9), %s17198_s16, 4 }
  0x58   : > { %s203_s23 = scalar_lea.vmem %s19420_s2, %s19431_s12  ;;  %s12423_s6 = scalar_lea.vmem (%p19425_p9), %s19421_s3, %s13916_s28 }
  0x5a   : > { %8407 = vmatpush1.bf16.msra.mxu0 %v15107_v38  ;;  %10328 = vmatpush1.bf16.msra.mxu1 %v15108_v39  ;;  %v15205_v38 = vld [vmem:[%s19418_s0 + $0x444] ss:$136 sps:$4 sm:$0xff]   ;;  %v15199_v39 = vld [vmem:[%s17272_s7 + $0x2e0] ss:$16 sps:$4 sm:$0xff]  }
  0x5b   : > { %8408 = vmatprep.subr.bf16.mxu0 %v15109_v40  ;;  %10329 = vmatprep.subr.bf16.mxu1 %v15111_v41  ;;  %v15202_v40 = vld [vmem:[%s17272_s7 + $0x2e8] ss:$16 sps:$4 sm:$0xff]   ;;  %v15210_v41 = vld [vmem:[%s17272_s7 + $0x304] ss:$16 sps:$4 sm:$0xff]  }
  0x5e   : > { %8409 = vmatpush1.bf16.msra.mxu0 %v15113_v42  ;;  %10330 = vmatpush1.bf16.msra.mxu1 %v15114_v43  ;;  %v15213_v42 = vld [vmem:[%s17272_s7 + $0x30c] ss:$16 sps:$4 sm:$0xff]   ;;  %v15207_v43 = vld [vmem:[%s19418_s0 + $0x440] ss:$136 sps:$4 sm:$0xff]  }
  0x5f   : > { %8410 = vmatprep.subr.bf16.mxu0 %v15115_v44  ;;  %10331 = vmatprep.subr.bf16.mxu1 %v15117_v45  ;;  %v15208_v44 = vld [vmem:[%s17272_s7 + $0x300] ss:$16 sps:$4 sm:$0xff]   ;;  %v15211_v45 = vld [vmem:[%s17272_s7 + $0x308] ss:$16 sps:$4 sm:$0xff]  }
  0x62   : > { %8411 = vmatpush1.bf16.msra.mxu0 %v15119_v46  ;;  %10332 = vmatpush1.bf16.msra.mxu1 %v15120_v47  ;;  %v15216_v46 = vld [vmem:[%s17272_s7 + $0x324] ss:$16 sps:$4 sm:$0xff]   ;;  %v15219_v47 = vld [vmem:[%s17272_s7 + $0x32c] ss:$16 sps:$4 sm:$0xff]  }
  0x63   : > { %8412 = vmatprep.subr.bf16.mxu0 %v15121_v49  ;;  %10333 = vmatprep.subr.bf16.mxu1 %v15123_v50  ;;  %v15214_v49 = vld [vmem:[%s17272_s7 + $0x320] ss:$16 sps:$4 sm:$0xff]   ;;  %v15217_v50 = vld [vmem:[%s17272_s7 + $0x328] ss:$16 sps:$4 sm:$0xff]  }
  0x66   : > { %8413 = vmatpush1.bf16.msra.mxu0 %v15125_v51  ;;  %10334 = vmatpush1.bf16.msra.mxu1 %v15126_v52  ;;  %v15225_v51 = vld [vmem:[%s17272_s7 + $0x344] ss:$16 sps:$4 sm:$0xff]   ;;  %v15228_v52 = vld [vmem:[%s17272_s7 + $0x34c] ss:$16 sps:$4 sm:$0xff]  }
  0x67   : > { %8414 = vmatprep.subr.bf16.mxu0 %v15127_v53  ;;  %10335 = vmatprep.subr.bf16.mxu1 %v15129_v54  ;;  %v15222_v53 = vld [vmem:[%s19418_s0 + $0x550] ss:$136 sps:$4 sm:$0xff]  }
  0x68   : > { %v15223_v54 = vld [vmem:[%s17272_s7 + $0x340] ss:$16 sps:$4 sm:$0xff]  }
  0x6a   : > { %8415 = vmatpush1.bf16.msra.mxu0 %v15131_v55  ;;  %10336 = vmatpush1.bf16.msra.mxu1 %v15132_v56  ;;  %v15226_v55 = vld [vmem:[%s17272_s7 + $0x348] ss:$16 sps:$4 sm:$0xff]   ;;  %v15231_v56 = vld [vmem:[%s17272_s7 + $0x364] ss:$16 sps:$4 sm:$0xff]  }
  0x6b   : > { %8416 = vmatprep.subr.bf16.mxu0 %v15133_v57  ;;  %10337 = vmatprep.subr.bf16.mxu1 %v15135_v58  ;;  %v15234_v57 = vld [vmem:[%s17272_s7 + $0x36c] ss:$16 sps:$4 sm:$0xff]  }
  0x6c   : > { %v15235_v58 = vld [vmem:[%s19418_s0 + $0x664] ss:$136 sps:$4 sm:$0xff]  }
  0x6e   : > { %8417 = vmatpush1.bf16.msra.mxu0 %v15137_v59  ;;  %10338 = vmatpush1.bf16.msra.mxu1 %v15138_v60  ;;  %v15229_v59 = vld [vmem:[%s17272_s7 + $0x360] ss:$16 sps:$4 sm:$0xff]   ;;  %v15232_v60 = vld [vmem:[%s17272_s7 + $0x368] ss:$16 sps:$4 sm:$0xff]  }
  0x6f   : > { %8418 = vmatprep.subr.bf16.mxu0 %v15139_v61  ;;  %10339 = vmatprep.subr.bf16.mxu1 %v15141_v62  ;;  %v15240_v61 = vld [vmem:[%s17272_s7 + $0x384] ss:$16 sps:$4 sm:$0xff]   ;;  %v15243_v62 = vld [vmem:[%s17272_s7 + $0x38c] ss:$16 sps:$4 sm:$0xff]  }
  0x72   : > { %8419 = vmatpush1.bf16.msra.mxu0 %v15143_v63  ;;  %10340 = vmatpush1.bf16.msra.mxu1 %v15144_v0  ;;  %v15237_v63 = vld [vmem:[%s19418_s0 + $0x660] ss:$136 sps:$4 sm:$0xff]  }
  0x73   : > { %8501 = vmatprep.subr.bf16.mxu0 %v15150_v1  ;;  %10422 = vmatprep.subr.bf16.mxu1 %v15153_v2  ;;  %v15238_v0 = vld [vmem:[%s17272_s7 + $0x380] ss:$16 sps:$4 sm:$0xff]   ;;  %v15241_v1 = vld [vmem:[%s17272_s7 + $0x388] ss:$16 sps:$4 sm:$0xff]   ;;  %v15246_v2 = vld [vmem:[%s17272_s7 + $0x3a4] ss:$16 sps:$4 sm:$0xff]  }
  0x75   : > { %8421 = vmatmul.mubr.bf16.vlgmr.msra.gmra.mrb[0].mxu0 %v15145_v3  ;;  %10342 = vmatmul.mubr.bf16.vlgmr.msra.gmra.mrb[0].mxu1 %v15145_v3  ;;  %v15249_v3 = vld [vmem:[%s17272_s7 + $0x3ac] ss:$16 sps:$4 sm:$0xff]  }
  0x76   : > { %8502 = vmatpush1.bf16.msra.mxu0 %v15148_v4  ;;  %10423 = vmatpush1.bf16.msra.mxu1 %v15151_v5  ;;  %v15250_v4 = vld [vmem:[%s19418_s0 + $0x774] ss:$136 sps:$4 sm:$0xff]   ;;  %v15244_v5 = vld [vmem:[%s17272_s7 + $0x3a0] ss:$16 sps:$4 sm:$0xff]  }
  0x77   : > { %8503 = vmatprep.subr.bf16.mxu0 %v15156_v6  ;;  %10424 = vmatprep.subr.bf16.mxu1 %v15159_v7  ;;  %v15247_v6 = vld [vmem:[%s17272_s7 + $0x3a8] ss:$16 sps:$4 sm:$0xff]   ;;  %v15255_v7 = vld [vmem:[%s17272_s7 + $0x3c4] ss:$16 sps:$4 sm:$0xff]  }
  0x78   : > { %8430 = vmatprep.mubr.bf16.mxu0 %v15160_v8  ;;  %10351 = vmatprep.mubr.bf16.mxu1 %v15160_v8  ;;  %v15258_v8 = vld [vmem:[%s17272_s7 + $0x3cc] ss:$16 sps:$4 sm:$0xff]  }
  0x7a   : > { %8504 = vmatpush1.bf16.msra.mxu0 %v15154_v9  ;;  %10425 = vmatpush1.bf16.msra.mxu1 %v15157_v10  ;;  %v15252_v9 = vld [vmem:[%s19418_s0 + $0x770] ss:$136 sps:$4 sm:$0xff]  }
  0x7b   : > { %8505 = vmatprep.subr.bf16.mxu0 %v15165_v11  ;;  %10426 = vmatprep.subr.bf16.mxu1 %v15168_v12  ;;  %v15253_v10 = vld [vmem:[%s17272_s7 + $0x3c0] ss:$16 sps:$4 sm:$0xff]   ;;  %v15256_v11 = vld [vmem:[%s17272_s7 + $0x3c8] ss:$16 sps:$4 sm:$0xff]   ;;  %v15261_v12 = vld [vmem:[%s17272_s7 + $0x3e4] ss:$16 sps:$4 sm:$0xff]  }
  0x7d   : > { %8431 = vmatmul.mubr.bf16.gmra.mrb[4].mxu0 %v15162_v13  ;;  %10352 = vmatmul.mubr.bf16.gmra.mrb[4].mxu1 %v15162_v13  ;;  %v15264_v13 = vld [vmem:[%s17272_s7 + $0x3ec] ss:$16 sps:$4 sm:$0xff]  }
  0x7e   : > { %8506 = vmatpush1.bf16.msra.mxu0 %v15163_v14  ;;  %10427 = vmatpush1.bf16.msra.mxu1 %v15166_v15  ;;  %v15267_v14 = vld [vmem:[%s19418_s0 + $0xc] ss:$136 sps:$4 sm:$0xff]   ;;  %v15259_v15 = vld [vmem:[%s17272_s7 + $0x3e0] ss:$16 sps:$4 sm:$0xff]  }
  0x7f   : > { %8507 = vmatprep.subr.bf16.mxu0 %v15171_v16  ;;  %10428 = vmatprep.subr.bf16.mxu1 %v15174_v17  ;;  %v15262_v16 = vld [vmem:[%s17272_s7 + $0x3e8] ss:$16 sps:$4 sm:$0xff]   ;;  %v15270_v17 = vld [vmem:[%s17272_s7 + $0x404] ss:$16 sps:$4 sm:$0xff]  }
  0x80   : > { %8440 = vmatprep.mubr.bf16.mxu0 %v15175_v18  ;;  %10361 = vmatprep.mubr.bf16.mxu1 %v15175_v18  ;;  %v15273_v18 = vld [vmem:[%s17272_s7 + $0x40c] ss:$16 sps:$4 sm:$0xff]  }
  0x82   : > { %8508 = vmatpush1.bf16.msra.mxu0 %v15169_v19  ;;  %10429 = vmatpush1.bf16.msra.mxu1 %v15172_v20  ;;  %v15265_v19 = vld [vmem:[%s19418_s0 + $0x8] ss:$136 sps:$4 sm:$0xff]  }
  0x83   : > { %8509 = vmatprep.subr.bf16.mxu0 %v15180_v21  ;;  %10430 = vmatprep.subr.bf16.mxu1 %v15183_v22  ;;  %v15268_v20 = vld [vmem:[%s17272_s7 + $0x400] ss:$16 sps:$4 sm:$0xff]   ;;  %v15271_v21 = vld [vmem:[%s17272_s7 + $0x408] ss:$16 sps:$4 sm:$0xff]   ;;  %v15276_v22 = vld [vmem:[%s17272_s7 + $0x424] ss:$16 sps:$4 sm:$0xff]  }
  0x85   : > { %8441 = vmatmul.mubr.bf16.gmra.mrb[8].mxu0 %v15177_v23  ;;  %10362 = vmatmul.mubr.bf16.gmra.mrb[8].mxu1 %v15177_v23  ;;  %v15279_v23 = vld [vmem:[%s17272_s7 + $0x42c] ss:$16 sps:$4 sm:$0xff]  }
  0x86   : > { %8510 = vmatpush1.bf16.msra.mxu0 %v15178_v24  ;;  %10431 = vmatpush1.bf16.msra.mxu1 %v15181_v25  ;;  %v15280_v24 = vld [vmem:[%s19418_s0 + $0x11c] ss:$136 sps:$4 sm:$0xff]   ;;  %v15274_v25 = vld [vmem:[%s17272_s7 + $0x420] ss:$16 sps:$4 sm:$0xff]  }
  0x87   : > { %8511 = vmatprep.subr.bf16.mxu0 %v15186_v26  ;;  %10432 = vmatprep.subr.bf16.mxu1 %v15189_v27  ;;  %v15277_v26 = vld [vmem:[%s17272_s7 + $0x428] ss:$16 sps:$4 sm:$0xff]   ;;  %v15285_v27 = vld [vmem:[%s17272_s7 + $0x444] ss:$16 sps:$4 sm:$0xff]  }
  0x88   : > { %8450 = vmatprep.mubr.bf16.mxu0 %v15190_v28  ;;  %10371 = vmatprep.mubr.bf16.mxu1 %v15190_v28  ;;  %v15288_v28 = vld [vmem:[%s17272_s7 + $0x44c] ss:$16 sps:$4 sm:$0xff]  }
  0x8a   : > { %8512 = vmatpush1.bf16.msra.mxu0 %v15184_v29  ;;  %10433 = vmatpush1.bf16.msra.mxu1 %v15187_v30  ;;  %v15282_v29 = vld [vmem:[%s19418_s0 + $0x118] ss:$136 sps:$4 sm:$0xff]  }
  0x8b   : > { %8513 = vmatprep.subr.bf16.mxu0 %v15195_v31  ;;  %10434 = vmatprep.subr.bf16.mxu1 %v15198_v32  ;;  %v15283_v30 = vld [vmem:[%s17272_s7 + $0x440] ss:$16 sps:$4 sm:$0xff]   ;;  %v15286_v31 = vld [vmem:[%s17272_s7 + $0x448] ss:$16 sps:$4 sm:$0xff]   ;;  %v15291_v32 = vld [vmem:[%s17272_s7 + $0x464] ss:$16 sps:$4 sm:$0xff]  }
  0x8d   : > { %8451 = vmatmul.mubr.bf16.gmra.mrb[12].mxu0 %v15192_v33  ;;  %10372 = vmatmul.mubr.bf16.gmra.mrb[12].mxu1 %v15192_v33  ;;  %v15294_v33 = vld [vmem:[%s17272_s7 + $0x46c] ss:$16 sps:$4 sm:$0xff]  }
  0x8e   : > { %8514 = vmatpush1.bf16.msra.mxu0 %v15193_v34  ;;  %10435 = vmatpush1.bf16.msra.mxu1 %v15196_v35  ;;  %v15295_v34 = vld [vmem:[%s19418_s0 + $0x22c] ss:$136 sps:$4 sm:$0xff]   ;;  %v15289_v35 = vld [vmem:[%s17272_s7 + $0x460] ss:$16 sps:$4 sm:$0xff]  }
  0x8f   : > { %8515 = vmatprep.subr.bf16.mxu0 %v15201_v36  ;;  %10436 = vmatprep.subr.bf16.mxu1 %v15204_v37  ;;  %v15292_v36 = vld [vmem:[%s17272_s7 + $0x468] ss:$16 sps:$4 sm:$0xff]   ;;  %v15300_v37 = vld [vmem:[%s17272_s7 + $0x484] ss:$16 sps:$4 sm:$0xff]  }
  0x90   : > { %8460 = vmatprep.mubr.bf16.mxu0 %v15205_v38  ;;  %10381 = vmatprep.mubr.bf16.mxu1 %v15205_v38  ;;  %v15303_v38 = vld [vmem:[%s17272_s7 + $0x48c] ss:$16 sps:$4 sm:$0xff]  }
  0x92   : > { %8516 = vmatpush1.bf16.msra.mxu0 %v15199_v39  ;;  %10437 = vmatpush1.bf16.msra.mxu1 %v15202_v40  ;;  %v15297_v39 = vld [vmem:[%s19418_s0 + $0x228] ss:$136 sps:$4 sm:$0xff]  }
  0x93   : > { %8517 = vmatprep.subr.bf16.mxu0 %v15210_v41  ;;  %10438 = vmatprep.subr.bf16.mxu1 %v15213_v42  ;;  %v15298_v40 = vld [vmem:[%s17272_s7 + $0x480] ss:$16 sps:$4 sm:$0xff]   ;;  %v15301_v41 = vld [vmem:[%s17272_s7 + $0x488] ss:$16 sps:$4 sm:$0xff]   ;;  %v15306_v42 = vld [vmem:[%s17272_s7 + $0x4a4] ss:$16 sps:$4 sm:$0xff]  }
  0x95   : > { %8461 = vmatmul.mubr.bf16.gmra.mrb[16].mxu0 %v15207_v43  ;;  %10382 = vmatmul.mubr.bf16.gmra.mrb[16].mxu1 %v15207_v43  ;;  %v15309_v43 = vld [vmem:[%s17272_s7 + $0x4ac] ss:$16 sps:$4 sm:$0xff]  }
  0x96   : > { %8518 = vmatpush1.bf16.msra.mxu0 %v15208_v44  ;;  %10439 = vmatpush1.bf16.msra.mxu1 %v15211_v45  ;;  %v15310_v44 = vld [vmem:[%s19418_s0 + $0x33c] ss:$136 sps:$4 sm:$0xff]   ;;  %v15304_v45 = vld [vmem:[%s17272_s7 + $0x4a0] ss:$16 sps:$4 sm:$0xff]  }
  0x97   : > { %8519 = vmatprep.subr.bf16.mxu0 %v15216_v46  ;;  %10440 = vmatprep.subr.bf16.mxu1 %v15219_v47  ;;  %v15307_v46 = vld [vmem:[%s17272_s7 + $0x4a8] ss:$16 sps:$4 sm:$0xff]   ;;  %v15315_v47 = vld [vmem:[%s17272_s7 + $0x4c4] ss:$16 sps:$4 sm:$0xff]  }
  0x98   : > { %8470 = vmatprep.mubr.bf16.mxu0 %v15220_v48  ;;  %10391 = vmatprep.mubr.bf16.mxu1 %v15220_v48  ;;  %v15318_v48 = vld [vmem:[%s17272_s7 + $0x4cc] ss:$16 sps:$4 sm:$0xff]  }
  0x9a   : > { %8520 = vmatpush1.bf16.msra.mxu0 %v15214_v49  ;;  %10441 = vmatpush1.bf16.msra.mxu1 %v15217_v50  ;;  %v15312_v49 = vld [vmem:[%s19418_s0 + $0x338] ss:$136 sps:$4 sm:$0xff]  }
  0x9b   : > { %8521 = vmatprep.subr.bf16.mxu0 %v15225_v51  ;;  %10442 = vmatprep.subr.bf16.mxu1 %v15228_v52  ;;  %v15313_v50 = vld [vmem:[%s17272_s7 + $0x4c0] ss:$16 sps:$4 sm:$0xff]   ;;  %v15316_v51 = vld [vmem:[%s17272_s7 + $0x4c8] ss:$16 sps:$4 sm:$0xff]   ;;  %v15321_v52 = vld [vmem:[%s17272_s7 + $0x4e4] ss:$16 sps:$4 sm:$0xff]  }
  0x9d   : > { %8471 = vmatmul.mubr.bf16.gmra.mrb[20].mxu0 %v15222_v53  ;;  %10392 = vmatmul.mubr.bf16.gmra.mrb[20].mxu1 %v15222_v53  ;;  %v15324_v53 = vld [vmem:[%s17272_s7 + $0x4ec] ss:$16 sps:$4 sm:$0xff]  }
  0x9e   : > { %8522 = vmatpush1.bf16.msra.mxu0 %v15223_v54  ;;  %10443 = vmatpush1.bf16.msra.mxu1 %v15226_v55  ;;  %v15325_v54 = vld [vmem:[%s19418_s0 + $0x44c] ss:$136 sps:$4 sm:$0xff]   ;;  %v15319_v55 = vld [vmem:[%s17272_s7 + $0x4e0] ss:$16 sps:$4 sm:$0xff]  }
  0x9f   : > { %8523 = vmatprep.subr.bf16.mxu0 %v15231_v56  ;;  %10444 = vmatprep.subr.bf16.mxu1 %v15234_v57  ;;  %v15322_v56 = vld [vmem:[%s17272_s7 + $0x4e8] ss:$16 sps:$4 sm:$0xff]   ;;  %v15330_v57 = vld [vmem:[%s17272_s7 + $0x504] ss:$16 sps:$4 sm:$0xff]  }
  0xa0   : > { %8480 = vmatprep.mubr.bf16.mxu0 %v15235_v58  ;;  %10401 = vmatprep.mubr.bf16.mxu1 %v15235_v58  ;;  %v15333_v58 = vld [vmem:[%s17272_s7 + $0x50c] ss:$16 sps:$4 sm:$0xff]  }
  0xa2   : > { %8524 = vmatpush1.bf16.msra.mxu0 %v15229_v59  ;;  %10445 = vmatpush1.bf16.msra.mxu1 %v15232_v60  ;;  %v15327_v59 = vld [vmem:[%s19418_s0 + $0x448] ss:$136 sps:$4 sm:$0xff]  }
  0xa3   : > { %8525 = vmatprep.subr.bf16.mxu0 %v15240_v61  ;;  %10446 = vmatprep.subr.bf16.mxu1 %v15243_v62  ;;  %v15328_v60 = vld [vmem:[%s17272_s7 + $0x500] ss:$16 sps:$4 sm:$0xff]   ;;  %v15331_v61 = vld [vmem:[%s17272_s7 + $0x508] ss:$16 sps:$4 sm:$0xff]   ;;  %v15336_v62 = vld [vmem:[%s17272_s7 + $0x524] ss:$16 sps:$4 sm:$0xff]  }
  0xa5   : > { %8481 = vmatmul.mubr.bf16.gmra.mrb[24].mxu0 %v15237_v63  ;;  %10402 = vmatmul.mubr.bf16.gmra.mrb[24].mxu1 %v15237_v63  ;;  %v15339_v63 = vld [vmem:[%s17272_s7 + $0x52c] ss:$16 sps:$4 sm:$0xff]  }
  0xa6   : > { %8526 = vmatpush1.bf16.msra.mxu0 %v15238_v0  ;;  %10447 = vmatpush1.bf16.msra.mxu1 %v15241_v1  ;;  %v15340_v0 = vld [vmem:[%s19418_s0 + $0x55c] ss:$136 sps:$4 sm:$0xff]   ;;  %v15334_v1 = vld [vmem:[%s17272_s7 + $0x520] ss:$16 sps:$4 sm:$0xff]  }
  0xa7   : > { %8527 = vmatprep.subr.bf16.mxu0 %v15246_v2  ;;  %10448 = vmatprep.subr.bf16.mxu1 %v15249_v3  ;;  %v15337_v2 = vld [vmem:[%s17272_s7 + $0x528] ss:$16 sps:$4 sm:$0xff]   ;;  %v15345_v3 = vld [vmem:[%s17272_s7 + $0x544] ss:$16 sps:$4 sm:$0xff]  }
  0xa8   : > { %8490 = vmatprep.mubr.bf16.mxu0 %v15250_v4  ;;  %10411 = vmatprep.mubr.bf16.mxu1 %v15250_v4  ;;  %v15348_v4 = vld [vmem:[%s17272_s7 + $0x54c] ss:$16 sps:$4 sm:$0xff]  }
  0xaa   : > { %8528 = vmatpush1.bf16.msra.mxu0 %v15244_v5  ;;  %10449 = vmatpush1.bf16.msra.mxu1 %v15247_v6  ;;  %v15342_v5 = vld [vmem:[%s19418_s0 + $0x558] ss:$136 sps:$4 sm:$0xff]  }
  0xab   : > { %8529 = vmatprep.subr.bf16.mxu0 %v15255_v7  ;;  %10450 = vmatprep.subr.bf16.mxu1 %v15258_v8  ;;  %v15343_v6 = vld [vmem:[%s17272_s7 + $0x540] ss:$16 sps:$4 sm:$0xff]   ;;  %v15346_v7 = vld [vmem:[%s17272_s7 + $0x548] ss:$16 sps:$4 sm:$0xff]   ;;  %v15351_v8 = vld [vmem:[%s17272_s7 + $0x564] ss:$16 sps:$4 sm:$0xff]  }
  0xad   : > { %8491 = vmatmul.mubr.bf16.gmra.mrb[28].mxu0 %v15252_v9  ;;  %10412 = vmatmul.mubr.bf16.gmra.mrb[28].mxu1 %v15252_v9  ;;  %v15354_v9 = vld [vmem:[%s17272_s7 + $0x56c] ss:$16 sps:$4 sm:$0xff]  }
  0xae   : > { %8530 = vmatpush1.bf16.msra.mxu0 %v15253_v10  ;;  %10451 = vmatpush1.bf16.msra.mxu1 %v15256_v11  ;;  %v15355_v10 = vld [vmem:[%s19418_s0 + $0x66c] ss:$136 sps:$4 sm:$0xff]   ;;  %v15349_v11 = vld [vmem:[%s17272_s7 + $0x560] ss:$16 sps:$4 sm:$0xff]  }
  0xaf   : > { %8531 = vmatprep.subr.bf16.mxu0 %v15261_v12  ;;  %10452 = vmatprep.subr.bf16.mxu1 %v15264_v13  ;;  %v15352_v12 = vld [vmem:[%s17272_s7 + $0x568] ss:$16 sps:$4 sm:$0xff]   ;;  %v15360_v13 = vld [vmem:[%s17272_s7 + $0x584] ss:$16 sps:$4 sm:$0xff]  }
  0xb0   : > { %8533 = vmatprep.mubr.bf16.mxu0 %v15267_v14  ;;  %10454 = vmatprep.mubr.bf16.mxu1 %v15267_v14  ;;  %v15363_v14 = vld [vmem:[%s17272_s7 + $0x58c] ss:$16 sps:$4 sm:$0xff]  }
  0xb2   : > { %8532 = vmatpush1.bf16.msra.mxu0 %v15259_v15  ;;  %10453 = vmatpush1.bf16.msra.mxu1 %v15262_v16  ;;  %v15357_v15 = vld [vmem:[%s19418_s0 + $0x668] ss:$136 sps:$4 sm:$0xff]  }
  0xb3   : > { %8614 = vmatprep.subr.bf16.mxu0 %v15270_v17  ;;  %10535 = vmatprep.subr.bf16.mxu1 %v15273_v18  ;;  %v15358_v16 = vld [vmem:[%s17272_s7 + $0x580] ss:$16 sps:$4 sm:$0xff]   ;;  %v15361_v17 = vld [vmem:[%s17272_s7 + $0x588] ss:$16 sps:$4 sm:$0xff]   ;;  %v15366_v18 = vld [vmem:[%s17272_s7 + $0x5a4] ss:$16 sps:$4 sm:$0xff]  }
  0xb5   : > { %8534 = vmatmul.mubr.bf16.vlgmr.msra.gmra.mrb[0].mxu0 %v15265_v19  ;;  %10455 = vmatmul.mubr.bf16.vlgmr.msra.gmra.mrb[0].mxu1 %v15265_v19  ;;  %v15369_v19 = vld [vmem:[%s17272_s7 + $0x5ac] ss:$16 sps:$4 sm:$0xff]  }
  0xb6   : > { %8615 = vmatpush1.bf16.msra.mxu0 %v15268_v20  ;;  %10536 = vmatpush1.bf16.msra.mxu1 %v15271_v21  ;;  %v15370_v20 = vld [vmem:[%s19418_s0 + $0x77c] ss:$136 sps:$4 sm:$0xff]   ;;  %v15364_v21 = vld [vmem:[%s17272_s7 + $0x5a0] ss:$16 sps:$4 sm:$0xff]  }
  0xb7   : > { %8616 = vmatprep.subr.bf16.mxu0 %v15276_v22  ;;  %10537 = vmatprep.subr.bf16.mxu1 %v15279_v23  ;;  %v15367_v22 = vld [vmem:[%s17272_s7 + $0x5a8] ss:$16 sps:$4 sm:$0xff]   ;;  %v15375_v23 = vld [vmem:[%s17272_s7 + $0x5c4] ss:$16 sps:$4 sm:$0xff]  }
  0xb8   : > { %8543 = vmatprep.mubr.bf16.mxu0 %v15280_v24  ;;  %10464 = vmatprep.mubr.bf16.mxu1 %v15280_v24  ;;  %v15378_v24 = vld [vmem:[%s17272_s7 + $0x5cc] ss:$16 sps:$4 sm:$0xff]  }
  0xba   : > { %8617 = vmatpush1.bf16.msra.mxu0 %v15274_v25  ;;  %10538 = vmatpush1.bf16.msra.mxu1 %v15277_v26  ;;  %v15372_v25 = vld [vmem:[%s19418_s0 + $0x778] ss:$136 sps:$4 sm:$0xff]  }
  0xbb   : > { %8618 = vmatprep.subr.bf16.mxu0 %v15285_v27  ;;  %10539 = vmatprep.subr.bf16.mxu1 %v15288_v28  ;;  %v15373_v26 = vld [vmem:[%s17272_s7 + $0x5c0] ss:$16 sps:$4 sm:$0xff]   ;;  %v15376_v27 = vld [vmem:[%s17272_s7 + $0x5c8] ss:$16 sps:$4 sm:$0xff]   ;;  %v15381_v28 = vld [vmem:[%s17272_s7 + $0x5e4] ss:$16 sps:$4 sm:$0xff]  }
  0xbd   : > { %8544 = vmatmul.mubr.bf16.gmra.mrb[4].mxu0 %v15282_v29  ;;  %10465 = vmatmul.mubr.bf16.gmra.mrb[4].mxu1 %v15282_v29  ;;  %v15384_v29 = vld [vmem:[%s17272_s7 + $0x5ec] ss:$16 sps:$4 sm:$0xff]  }
  0xbe   : > { %8619 = vmatpush1.bf16.msra.mxu0 %v15283_v30  ;;  %10540 = vmatpush1.bf16.msra.mxu1 %v15286_v31  ;;  %v15387_v30 = vld [vmem:[%s19418_s0 + $0x14] ss:$136 sps:$4 sm:$0xff]   ;;  %v15379_v31 = vld [vmem:[%s17272_s7 + $0x5e0] ss:$16 sps:$4 sm:$0xff]  }
  0xbf   : > { %8620 = vmatprep.subr.bf16.mxu0 %v15291_v32  ;;  %10541 = vmatprep.subr.bf16.mxu1 %v15294_v33  ;;  %v15382_v32 = vld [vmem:[%s17272_s7 + $0x5e8] ss:$16 sps:$4 sm:$0xff]   ;;  %v15390_v33 = vld [vmem:[%s17272_s7 + $0x604] ss:$16 sps:$4 sm:$0xff]  }
  0xc0   : > { %8553 = vmatprep.mubr.bf16.mxu0 %v15295_v34  ;;  %10474 = vmatprep.mubr.bf16.mxu1 %v15295_v34  ;;  %v15393_v34 = vld [vmem:[%s17272_s7 + $0x60c] ss:$16 sps:$4 sm:$0xff]  }
  0xc2   : > { %8621 = vmatpush1.bf16.msra.mxu0 %v15289_v35  ;;  %10542 = vmatpush1.bf16.msra.mxu1 %v15292_v36  ;;  %v15385_v35 = vld [vmem:[%s19418_s0 + $0x10] ss:$136 sps:$4 sm:$0xff]  }
  0xc3   : > { %8622 = vmatprep.subr.bf16.mxu0 %v15300_v37  ;;  %10543 = vmatprep.subr.bf16.mxu1 %v15303_v38  ;;  %v15388_v36 = vld [vmem:[%s17272_s7 + $0x600] ss:$16 sps:$4 sm:$0xff]   ;;  %v15391_v37 = vld [vmem:[%s17272_s7 + $0x608] ss:$16 sps:$4 sm:$0xff]   ;;  %v15396_v38 = vld [vmem:[%s17272_s7 + $0x624] ss:$16 sps:$4 sm:$0xff]  }
  0xc5   : > { %8554 = vmatmul.mubr.bf16.gmra.mrb[8].mxu0 %v15297_v39  ;;  %10475 = vmatmul.mubr.bf16.gmra.mrb[8].mxu1 %v15297_v39  ;;  %v15399_v39 = vld [vmem:[%s17272_s7 + $0x62c] ss:$16 sps:$4 sm:$0xff]  }
  0xc6   : > { %8623 = vmatpush1.bf16.msra.mxu0 %v15298_v40  ;;  %10544 = vmatpush1.bf16.msra.mxu1 %v15301_v41  ;;  %v15400_v40 = vld [vmem:[%s19418_s0 + $0x124] ss:$136 sps:$4 sm:$0xff]   ;;  %v15394_v41 = vld [vmem:[%s17272_s7 + $0x620] ss:$16 sps:$4 sm:$0xff]  }
  0xc7   : > { %8624 = vmatprep.subr.bf16.mxu0 %v15306_v42  ;;  %10545 = vmatprep.subr.bf16.mxu1 %v15309_v43  ;;  %v15397_v42 = vld [vmem:[%s17272_s7 + $0x628] ss:$16 sps:$4 sm:$0xff]   ;;  %v15405_v43 = vld [vmem:[%s17272_s7 + $0x644] ss:$16 sps:$4 sm:$0xff]  }
  0xc8   : > { %8563 = vmatprep.mubr.bf16.mxu0 %v15310_v44  ;;  %10484 = vmatprep.mubr.bf16.mxu1 %v15310_v44  ;;  %v15408_v44 = vld [vmem:[%s17272_s7 + $0x64c] ss:$16 sps:$4 sm:$0xff]  }
  0xca   : > { %8625 = vmatpush1.bf16.msra.mxu0 %v15304_v45  ;;  %10546 = vmatpush1.bf16.msra.mxu1 %v15307_v46  ;;  %v15402_v45 = vld [vmem:[%s19418_s0 + $0x120] ss:$136 sps:$4 sm:$0xff]  }
  0xcb   : > { %8626 = vmatprep.subr.bf16.mxu0 %v15315_v47  ;;  %10547 = vmatprep.subr.bf16.mxu1 %v15318_v48  ;;  %v15403_v46 = vld [vmem:[%s17272_s7 + $0x640] ss:$16 sps:$4 sm:$0xff]   ;;  %v15406_v47 = vld [vmem:[%s17272_s7 + $0x648] ss:$16 sps:$4 sm:$0xff]   ;;  %v15411_v48 = vld [vmem:[%s17272_s7 + $0x664] ss:$16 sps:$4 sm:$0xff]  }
  0xcd   : > { %8564 = vmatmul.mubr.bf16.gmra.mrb[12].mxu0 %v15312_v49  ;;  %10485 = vmatmul.mubr.bf16.gmra.mrb[12].mxu1 %v15312_v49  ;;  %v15414_v49 = vld [vmem:[%s17272_s7 + $0x66c] ss:$16 sps:$4 sm:$0xff]  }
  0xce   : > { %8627 = vmatpush1.bf16.msra.mxu0 %v15313_v50  ;;  %10548 = vmatpush1.bf16.msra.mxu1 %v15316_v51  ;;  %v15415_v50 = vld [vmem:[%s19418_s0 + $0x234] ss:$136 sps:$4 sm:$0xff]   ;;  %v15409_v51 = vld [vmem:[%s17272_s7 + $0x660] ss:$16 sps:$4 sm:$0xff]  }
  0xcf   : > { %8628 = vmatprep.subr.bf16.mxu0 %v15321_v52  ;;  %10549 = vmatprep.subr.bf16.mxu1 %v15324_v53  ;;  %v15412_v52 = vld [vmem:[%s17272_s7 + $0x668] ss:$16 sps:$4 sm:$0xff]   ;;  %v15420_v53 = vld [vmem:[%s17272_s7 + $0x684] ss:$16 sps:$4 sm:$0xff]  }
  0xd0   : > { %8573 = vmatprep.mubr.bf16.mxu0 %v15325_v54  ;;  %10494 = vmatprep.mubr.bf16.mxu1 %v15325_v54  ;;  %v15423_v54 = vld [vmem:[%s17272_s7 + $0x68c] ss:$16 sps:$4 sm:$0xff]  }
  0xd2   : > { %8629 = vmatpush1.bf16.msra.mxu0 %v15319_v55  ;;  %10550 = vmatpush1.bf16.msra.mxu1 %v15322_v56  ;;  %v15417_v55 = vld [vmem:[%s19418_s0 + $0x230] ss:$136 sps:$4 sm:$0xff]  }
  0xd3   : > { %8630 = vmatprep.subr.bf16.mxu0 %v15330_v57  ;;  %10551 = vmatprep.subr.bf16.mxu1 %v15333_v58  ;;  %v15418_v56 = vld [vmem:[%s17272_s7 + $0x680] ss:$16 sps:$4 sm:$0xff]   ;;  %v15421_v57 = vld [vmem:[%s17272_s7 + $0x688] ss:$16 sps:$4 sm:$0xff]   ;;  %v15426_v58 = vld [vmem:[%s17272_s7 + $0x6a4] ss:$16 sps:$4 sm:$0xff]  }
  0xd5   : > { %8574 = vmatmul.mubr.bf16.gmra.mrb[16].mxu0 %v15327_v59  ;;  %10495 = vmatmul.mubr.bf16.gmra.mrb[16].mxu1 %v15327_v59  ;;  %v15429_v59 = vld [vmem:[%s17272_s7 + $0x6ac] ss:$16 sps:$4 sm:$0xff]  }
  0xd6   : > { %8631 = vmatpush1.bf16.msra.mxu0 %v15328_v60  ;;  %10552 = vmatpush1.bf16.msra.mxu1 %v15331_v61  ;;  %v15430_v60 = vld [vmem:[%s19418_s0 + $0x344] ss:$136 sps:$4 sm:$0xff]   ;;  %v15424_v61 = vld [vmem:[%s17272_s7 + $0x6a0] ss:$16 sps:$4 sm:$0xff]  }
  0xd7   : > { %8632 = vmatprep.subr.bf16.mxu0 %v15336_v62  ;;  %10553 = vmatprep.subr.bf16.mxu1 %v15339_v63  ;;  %v15427_v62 = vld [vmem:[%s17272_s7 + $0x6a8] ss:$16 sps:$4 sm:$0xff]   ;;  %v15435_v63 = vld [vmem:[%s17272_s7 + $0x6c4] ss:$16 sps:$4 sm:$0xff]  }
  0xd8   : > { %8583 = vmatprep.mubr.bf16.mxu0 %v15340_v0  ;;  %10504 = vmatprep.mubr.bf16.mxu1 %v15340_v0  ;;  %v15438_v0 = vld [vmem:[%s17272_s7 + $0x6cc] ss:$16 sps:$4 sm:$0xff]  }
  0xda   : > { %8633 = vmatpush1.bf16.msra.mxu0 %v15334_v1  ;;  %10554 = vmatpush1.bf16.msra.mxu1 %v15337_v2  ;;  %v15432_v1 = vld [vmem:[%s19418_s0 + $0x340] ss:$136 sps:$4 sm:$0xff]  }
  0xdb   : > { %8634 = vmatprep.subr.bf16.mxu0 %v15345_v3  ;;  %10555 = vmatprep.subr.bf16.mxu1 %v15348_v4  ;;  %v15433_v2 = vld [vmem:[%s17272_s7 + $0x6c0] ss:$16 sps:$4 sm:$0xff]   ;;  %v15436_v3 = vld [vmem:[%s17272_s7 + $0x6c8] ss:$16 sps:$4 sm:$0xff]   ;;  %v15441_v4 = vld [vmem:[%s17272_s7 + $0x6e4] ss:$16 sps:$4 sm:$0xff]  }
  0xdd   : > { %8584 = vmatmul.mubr.bf16.gmra.mrb[20].mxu0 %v15342_v5  ;;  %10505 = vmatmul.mubr.bf16.gmra.mrb[20].mxu1 %v15342_v5  ;;  %v15444_v5 = vld [vmem:[%s17272_s7 + $0x6ec] ss:$16 sps:$4 sm:$0xff]  }
  0xde   : > { %8635 = vmatpush1.bf16.msra.mxu0 %v15343_v6  ;;  %10556 = vmatpush1.bf16.msra.mxu1 %v15346_v7  ;;  %v15445_v6 = vld [vmem:[%s19418_s0 + $0x454] ss:$136 sps:$4 sm:$0xff]   ;;  %v15439_v7 = vld [vmem:[%s17272_s7 + $0x6e0] ss:$16 sps:$4 sm:$0xff]  }
  0xdf   : > { %8636 = vmatprep.subr.bf16.mxu0 %v15351_v8  ;;  %10557 = vmatprep.subr.bf16.mxu1 %v15354_v9  ;;  %v15442_v8 = vld [vmem:[%s17272_s7 + $0x6e8] ss:$16 sps:$4 sm:$0xff]   ;;  %v15450_v9 = vld [vmem:[%s17272_s7 + $0x704] ss:$16 sps:$4 sm:$0xff]  }
  0xe0   : > { %8593 = vmatprep.mubr.bf16.mxu0 %v15355_v10  ;;  %10514 = vmatprep.mubr.bf16.mxu1 %v15355_v10  ;;  %v15453_v10 = vld [vmem:[%s17272_s7 + $0x70c] ss:$16 sps:$4 sm:$0xff]  }
  0xe2   : > { %8637 = vmatpush1.bf16.msra.mxu0 %v15349_v11  ;;  %10558 = vmatpush1.bf16.msra.mxu1 %v15352_v12  ;;  %v15447_v11 = vld [vmem:[%s19418_s0 + $0x450] ss:$136 sps:$4 sm:$0xff]  }
  0xe3   : > { %8638 = vmatprep.subr.bf16.mxu0 %v15360_v13  ;;  %10559 = vmatprep.subr.bf16.mxu1 %v15363_v14  ;;  %v15448_v12 = vld [vmem:[%s17272_s7 + $0x700] ss:$16 sps:$4 sm:$0xff]   ;;  %v15451_v13 = vld [vmem:[%s17272_s7 + $0x708] ss:$16 sps:$4 sm:$0xff]   ;;  %v15456_v14 = vld [vmem:[%s17272_s7 + $0x724] ss:$16 sps:$4 sm:$0xff]  }
  0xe5   : > { %8594 = vmatmul.mubr.bf16.gmra.mrb[24].mxu0 %v15357_v15  ;;  %10515 = vmatmul.mubr.bf16.gmra.mrb[24].mxu1 %v15357_v15  ;;  %v15459_v15 = vld [vmem:[%s17272_s7 + $0x72c] ss:$16 sps:$4 sm:$0xff]  }
  0xe6   : > { %8639 = vmatpush1.bf16.msra.mxu0 %v15358_v16  ;;  %10560 = vmatpush1.bf16.msra.mxu1 %v15361_v17  ;;  %v15460_v16 = vld [vmem:[%s19418_s0 + $0x564] ss:$136 sps:$4 sm:$0xff]   ;;  %v15454_v17 = vld [vmem:[%s17272_s7 + $0x720] ss:$16 sps:$4 sm:$0xff]  }
  0xe7   : > { %8640 = vmatprep.subr.bf16.mxu0 %v15366_v18  ;;  %10561 = vmatprep.subr.bf16.mxu1 %v15369_v19  ;;  %v15457_v18 = vld [vmem:[%s17272_s7 + $0x728] ss:$16 sps:$4 sm:$0xff]   ;;  %v15465_v19 = vld [vmem:[%s17272_s7 + $0x744] ss:$16 sps:$4 sm:$0xff]  }
  0xe8   : > { %8603 = vmatprep.mubr.bf16.mxu0 %v15370_v20  ;;  %10524 = vmatprep.mubr.bf16.mxu1 %v15370_v20  ;;  %v15468_v20 = vld [vmem:[%s17272_s7 + $0x74c] ss:$16 sps:$4 sm:$0xff]  }
  0xea   : > { %8641 = vmatpush1.bf16.msra.mxu0 %v15364_v21  ;;  %10562 = vmatpush1.bf16.msra.mxu1 %v15367_v22  ;;  %v15462_v21 = vld [vmem:[%s19418_s0 + $0x560] ss:$136 sps:$4 sm:$0xff]  }
  0xeb   : > { %8642 = vmatprep.subr.bf16.mxu0 %v15375_v23  ;;  %10563 = vmatprep.subr.bf16.mxu1 %v15378_v24  ;;  %v15463_v22 = vld [vmem:[%s17272_s7 + $0x740] ss:$16 sps:$4 sm:$0xff]   ;;  %v15466_v23 = vld [vmem:[%s17272_s7 + $0x748] ss:$16 sps:$4 sm:$0xff]   ;;  %v15471_v24 = vld [vmem:[%s17272_s7 + $0x764] ss:$16 sps:$4 sm:$0xff]  }
  0xed   : > { %8604 = vmatmul.mubr.bf16.gmra.mrb[28].mxu0 %v15372_v25  ;;  %10525 = vmatmul.mubr.bf16.gmra.mrb[28].mxu1 %v15372_v25  ;;  %v15474_v25 = vld [vmem:[%s17272_s7 + $0x76c] ss:$16 sps:$4 sm:$0xff]  }
  0xee   : > { %8643 = vmatpush1.bf16.msra.mxu0 %v15373_v26  ;;  %10564 = vmatpush1.bf16.msra.mxu1 %v15376_v27  ;;  %v15475_v26 = vld [vmem:[%s19418_s0 + $0x674] ss:$136 sps:$4 sm:$0xff]   ;;  %v15469_v27 = vld [vmem:[%s17272_s7 + $0x760] ss:$16 sps:$4 sm:$0xff]  }
  0xef   : > { %8644 = vmatprep.subr.bf16.mxu0 %v15381_v28  ;;  %10565 = vmatprep.subr.bf16.mxu1 %v15384_v29  ;;  %v15472_v28 = vld [vmem:[%s17272_s7 + $0x768] ss:$16 sps:$4 sm:$0xff]   ;;  %v15480_v29 = vld [vmem:[%s17272_s7 + $0x784] ss:$16 sps:$4 sm:$0xff]  }
  0xf0   : > { %8646 = vmatprep.mubr.bf16.mxu0 %v15387_v30  ;;  %10567 = vmatprep.mubr.bf16.mxu1 %v15387_v30  ;;  %v15483_v30 = vld [vmem:[%s17272_s7 + $0x78c] ss:$16 sps:$4 sm:$0xff]  }
  0xf2   : > { %8645 = vmatpush1.bf16.msra.mxu0 %v15379_v31  ;;  %10566 = vmatpush1.bf16.msra.mxu1 %v15382_v32  ;;  %v15477_v31 = vld [vmem:[%s19418_s0 + $0x670] ss:$136 sps:$4 sm:$0xff]  }
  0xf3   : > { %8727 = vmatprep.subr.bf16.mxu0 %v15390_v33  ;;  %10648 = vmatprep.subr.bf16.mxu1 %v15393_v34  ;;  %v15478_v32 = vld [vmem:[%s17272_s7 + $0x780] ss:$16 sps:$4 sm:$0xff]   ;;  %v15481_v33 = vld [vmem:[%s17272_s7 + $0x788] ss:$16 sps:$4 sm:$0xff]   ;;  %v15486_v34 = vld [vmem:[%s17272_s7 + $0x7a4] ss:$16 sps:$4 sm:$0xff]  }
  0xf5   : > { %8647 = vmatmul.mubr.bf16.vlgmr.msra.gmra.mrb[0].mxu0 %v15385_v35  ;;  %10568 = vmatmul.mubr.bf16.vlgmr.msra.gmra.mrb[0].mxu1 %v15385_v35  ;;  %v15489_v35 = vld [vmem:[%s17272_s7 + $0x7ac] ss:$16 sps:$4 sm:$0xff]  }
  0xf6   : > { %8728 = vmatpush1.bf16.msra.mxu0 %v15388_v36  ;;  %10649 = vmatpush1.bf16.msra.mxu1 %v15391_v37  ;;  %v15490_v36 = vld [vmem:[%s19418_s0 + $0x784] ss:$136 sps:$4 sm:$0xff]   ;;  %v15484_v37 = vld [vmem:[%s17272_s7 + $0x7a0] ss:$16 sps:$4 sm:$0xff]  }
  0xf7   : > { %8729 = vmatprep.subr.bf16.mxu0 %v15396_v38  ;;  %10650 = vmatprep.subr.bf16.mxu1 %v15399_v39  ;;  %v15487_v38 = vld [vmem:[%s17272_s7 + $0x7a8] ss:$16 sps:$4 sm:$0xff]   ;;  %v15495_v39 = vld [vmem:[%s17272_s7 + $0x7c4] ss:$16 sps:$4 sm:$0xff]  }
  0xf8   : > { %8656 = vmatprep.mubr.bf16.mxu0 %v15400_v40  ;;  %10577 = vmatprep.mubr.bf16.mxu1 %v15400_v40  ;;  %v15498_v40 = vld [vmem:[%s17272_s7 + $0x7cc] ss:$16 sps:$4 sm:$0xff]  }
  0xfa   : > { %8730 = vmatpush1.bf16.msra.mxu0 %v15394_v41  ;;  %10651 = vmatpush1.bf16.msra.mxu1 %v15397_v42  ;;  %v15492_v41 = vld [vmem:[%s19418_s0 + $0x780] ss:$136 sps:$4 sm:$0xff]  }
  0xfb   : > { %8731 = vmatprep.subr.bf16.mxu0 %v15405_v43  ;;  %10652 = vmatprep.subr.bf16.mxu1 %v15408_v44  ;;  %v15493_v42 = vld [vmem:[%s17272_s7 + $0x7c0] ss:$16 sps:$4 sm:$0xff]   ;;  %v15496_v43 = vld [vmem:[%s17272_s7 + $0x7c8] ss:$16 sps:$4 sm:$0xff]   ;;  %v15501_v44 = vld [vmem:[%s17272_s7 + $0x7e4] ss:$16 sps:$4 sm:$0xff]  }
  0xfd   : > { %8657 = vmatmul.mubr.bf16.gmra.mrb[4].mxu0 %v15402_v45  ;;  %10578 = vmatmul.mubr.bf16.gmra.mrb[4].mxu1 %v15402_v45  ;;  %v15504_v45 = vld [vmem:[%s17272_s7 + $0x7ec] ss:$16 sps:$4 sm:$0xff]  }
  0xfe   : > { %8732 = vmatpush1.bf16.msra.mxu0 %v15403_v46  ;;  %10653 = vmatpush1.bf16.msra.mxu1 %v15406_v47  ;;  %v15507_v46 = vld [vmem:[%s19418_s0 + $0x1c] ss:$136 sps:$4 sm:$0xff]   ;;  %v15499_v47 = vld [vmem:[%s17272_s7 + $0x7e0] ss:$16 sps:$4 sm:$0xff]  }
  0xff   : > { %8733 = vmatprep.subr.bf16.mxu0 %v15411_v48  ;;  %10654 = vmatprep.subr.bf16.mxu1 %v15414_v49  ;;  %v15502_v48 = vld [vmem:[%s17272_s7 + $0x7e8] ss:$16 sps:$4 sm:$0xff]   ;;  %v15510_v49 = vld [vmem:[%s17272_s7 + $0x804] ss:$16 sps:$4 sm:$0xff]  }
 0x100   : > { %8666 = vmatprep.mubr.bf16.mxu0 %v15415_v50  ;;  %10587 = vmatprep.mubr.bf16.mxu1 %v15415_v50  ;;  %v15513_v50 = vld [vmem:[%s17272_s7 + $0x80c] ss:$16 sps:$4 sm:$0xff]  }
 0x102   : > { %8734 = vmatpush1.bf16.msra.mxu0 %v15409_v51  ;;  %10655 = vmatpush1.bf16.msra.mxu1 %v15412_v52  ;;  %v15505_v51 = vld [vmem:[%s19418_s0 + $0x18] ss:$136 sps:$4 sm:$0xff]  }
 0x103   : > { %8735 = vmatprep.subr.bf16.mxu0 %v15420_v53  ;;  %10656 = vmatprep.subr.bf16.mxu1 %v15423_v54  ;;  %v15508_v52 = vld [vmem:[%s17272_s7 + $0x800] ss:$16 sps:$4 sm:$0xff]   ;;  %v15511_v53 = vld [vmem:[%s17272_s7 + $0x808] ss:$16 sps:$4 sm:$0xff]   ;;  %v15516_v54 = vld [vmem:[%s17272_s7 + $0x824] ss:$16 sps:$4 sm:$0xff]  }
 0x105   : > { %8667 = vmatmul.mubr.bf16.gmra.mrb[8].mxu0 %v15417_v55  ;;  %10588 = vmatmul.mubr.bf16.gmra.mrb[8].mxu1 %v15417_v55  ;;  %v15519_v55 = vld [vmem:[%s17272_s7 + $0x82c] ss:$16 sps:$4 sm:$0xff]  }
 0x106   : > { %8736 = vmatpush1.bf16.msra.mxu0 %v15418_v56  ;;  %10657 = vmatpush1.bf16.msra.mxu1 %v15421_v57  ;;  %v15520_v56 = vld [vmem:[%s19418_s0 + $0x12c] ss:$136 sps:$4 sm:$0xff]   ;;  %v15514_v57 = vld [vmem:[%s17272_s7 + $0x820] ss:$16 sps:$4 sm:$0xff]  }
 0x107   : > { %8737 = vmatprep.subr.bf16.mxu0 %v15426_v58  ;;  %10658 = vmatprep.subr.bf16.mxu1 %v15429_v59  ;;  %v15517_v58 = vld [vmem:[%s17272_s7 + $0x828] ss:$16 sps:$4 sm:$0xff]   ;;  %v15525_v59 = vld [vmem:[%s17272_s7 + $0x844] ss:$16 sps:$4 sm:$0xff]  }
 0x108   : > { %8676 = vmatprep.mubr.bf16.mxu0 %v15430_v60  ;;  %10597 = vmatprep.mubr.bf16.mxu1 %v15430_v60  ;;  %v15528_v60 = vld [vmem:[%s17272_s7 + $0x84c] ss:$16 sps:$4 sm:$0xff]  }
 0x10a   : > { %8738 = vmatpush1.bf16.msra.mxu0 %v15424_v61  ;;  %10659 = vmatpush1.bf16.msra.mxu1 %v15427_v62  ;;  %v15522_v61 = vld [vmem:[%s19418_s0 + $0x128] ss:$136 sps:$4 sm:$0xff]  }
 0x10b   : > { %8739 = vmatprep.subr.bf16.mxu0 %v15435_v63  ;;  %10660 = vmatprep.subr.bf16.mxu1 %v15438_v0  ;;  %v15523_v62 = vld [vmem:[%s17272_s7 + $0x840] ss:$16 sps:$4 sm:$0xff]   ;;  %v15526_v63 = vld [vmem:[%s17272_s7 + $0x848] ss:$16 sps:$4 sm:$0xff]   ;;  %v15531_v0 = vld [vmem:[%s17272_s7 + $0x864] ss:$16 sps:$4 sm:$0xff]  }
 0x10d   : > { %8677 = vmatmul.mubr.bf16.gmra.mrb[12].mxu0 %v15432_v1  ;;  %10598 = vmatmul.mubr.bf16.gmra.mrb[12].mxu1 %v15432_v1  ;;  %v15534_v1 = vld [vmem:[%s17272_s7 + $0x86c] ss:$16 sps:$4 sm:$0xff]  }
 0x10e   : > { %8740 = vmatpush1.bf16.msra.mxu0 %v15433_v2  ;;  %10661 = vmatpush1.bf16.msra.mxu1 %v15436_v3  ;;  %v15535_v2 = vld [vmem:[%s19418_s0 + $0x23c] ss:$136 sps:$4 sm:$0xff]   ;;  %v15529_v3 = vld [vmem:[%s17272_s7 + $0x860] ss:$16 sps:$4 sm:$0xff]  }
 0x10f   : > { %8741 = vmatprep.subr.bf16.mxu0 %v15441_v4  ;;  %10662 = vmatprep.subr.bf16.mxu1 %v15444_v5  ;;  %v15532_v4 = vld [vmem:[%s17272_s7 + $0x868] ss:$16 sps:$4 sm:$0xff]   ;;  %v15540_v5 = vld [vmem:[%s17272_s7 + $0x884] ss:$16 sps:$4 sm:$0xff]  }
 0x110   : > { %8686 = vmatprep.mubr.bf16.mxu0 %v15445_v6  ;;  %10607 = vmatprep.mubr.bf16.mxu1 %v15445_v6  ;;  %v15543_v6 = vld [vmem:[%s17272_s7 + $0x88c] ss:$16 sps:$4 sm:$0xff]  }
 0x112   : > { %8742 = vmatpush1.bf16.msra.mxu0 %v15439_v7  ;;  %10663 = vmatpush1.bf16.msra.mxu1 %v15442_v8  ;;  %v15537_v7 = vld [vmem:[%s19418_s0 + $0x238] ss:$136 sps:$4 sm:$0xff]  }
 0x113   : > { %8743 = vmatprep.subr.bf16.mxu0 %v15450_v9  ;;  %10664 = vmatprep.subr.bf16.mxu1 %v15453_v10  ;;  %v15538_v8 = vld [vmem:[%s17272_s7 + $0x880] ss:$16 sps:$4 sm:$0xff]   ;;  %v15541_v9 = vld [vmem:[%s17272_s7 + $0x888] ss:$16 sps:$4 sm:$0xff]   ;;  %v15546_v10 = vld [vmem:[%s17272_s7 + $0x8a4] ss:$16 sps:$4 sm:$0xff]  }
 0x115   : > { %8687 = vmatmul.mubr.bf16.gmra.mrb[16].mxu0 %v15447_v11  ;;  %10608 = vmatmul.mubr.bf16.gmra.mrb[16].mxu1 %v15447_v11  ;;  %v15549_v11 = vld [vmem:[%s17272_s7 + $0x8ac] ss:$16 sps:$4 sm:$0xff]  }
 0x116   : > { %8744 = vmatpush1.bf16.msra.mxu0 %v15448_v12  ;;  %10665 = vmatpush1.bf16.msra.mxu1 %v15451_v13  ;;  %v15550_v12 = vld [vmem:[%s19418_s0 + $0x34c] ss:$136 sps:$4 sm:$0xff]   ;;  %v15544_v13 = vld [vmem:[%s17272_s7 + $0x8a0] ss:$16 sps:$4 sm:$0xff]  }
 0x117   : > { %8745 = vmatprep.subr.bf16.mxu0 %v15456_v14  ;;  %10666 = vmatprep.subr.bf16.mxu1 %v15459_v15  ;;  %v15547_v14 = vld [vmem:[%s17272_s7 + $0x8a8] ss:$16 sps:$4 sm:$0xff]   ;;  %v15555_v15 = vld [vmem:[%s17272_s7 + $0x8c4] ss:$16 sps:$4 sm:$0xff]  }
 0x118   : > { %8696 = vmatprep.mubr.bf16.mxu0 %v15460_v16  ;;  %10617 = vmatprep.mubr.bf16.mxu1 %v15460_v16  ;;  %v15558_v16 = vld [vmem:[%s17272_s7 + $0x8cc] ss:$16 sps:$4 sm:$0xff]  }
 0x11a   : > { %8746 = vmatpush1.bf16.msra.mxu0 %v15454_v17  ;;  %10667 = vmatpush1.bf16.msra.mxu1 %v15457_v18  ;;  %v15552_v17 = vld [vmem:[%s19418_s0 + $0x348] ss:$136 sps:$4 sm:$0xff]  }
 0x11b   : > { %8747 = vmatprep.subr.bf16.mxu0 %v15465_v19  ;;  %10668 = vmatprep.subr.bf16.mxu1 %v15468_v20  ;;  %v15553_v18 = vld [vmem:[%s17272_s7 + $0x8c0] ss:$16 sps:$4 sm:$0xff]   ;;  %v15556_v19 = vld [vmem:[%s17272_s7 + $0x8c8] ss:$16 sps:$4 sm:$0xff]   ;;  %v15561_v20 = vld [vmem:[%s17272_s7 + $0x8e4] ss:$16 sps:$4 sm:$0xff]  }
 0x11d   : > { %8697 = vmatmul.mubr.bf16.gmra.mrb[20].mxu0 %v15462_v21  ;;  %10618 = vmatmul.mubr.bf16.gmra.mrb[20].mxu1 %v15462_v21  ;;  %v15564_v21 = vld [vmem:[%s17272_s7 + $0x8ec] ss:$16 sps:$4 sm:$0xff]  }
 0x11e   : > { %8748 = vmatpush1.bf16.msra.mxu0 %v15463_v22  ;;  %10669 = vmatpush1.bf16.msra.mxu1 %v15466_v23  ;;  %v15565_v22 = vld [vmem:[%s19418_s0 + $0x45c] ss:$136 sps:$4 sm:$0xff]   ;;  %v15559_v23 = vld [vmem:[%s17272_s7 + $0x8e0] ss:$16 sps:$4 sm:$0xff]  }
 0x11f   : > { %8749 = vmatprep.subr.bf16.mxu0 %v15471_v24  ;;  %10670 = vmatprep.subr.bf16.mxu1 %v15474_v25  ;;  %v15562_v24 = vld [vmem:[%s17272_s7 + $0x8e8] ss:$16 sps:$4 sm:$0xff]   ;;  %v15570_v25 = vld [vmem:[%s17272_s7 + $0x904] ss:$16 sps:$4 sm:$0xff]  }
 0x120   : > { %8706 = vmatprep.mubr.bf16.mxu0 %v15475_v26  ;;  %10627 = vmatprep.mubr.bf16.mxu1 %v15475_v26  ;;  %v15573_v26 = vld [vmem:[%s17272_s7 + $0x90c] ss:$16 sps:$4 sm:$0xff]  }
 0x122   : > { %8750 = vmatpush1.bf16.msra.mxu0 %v15469_v27  ;;  %10671 = vmatpush1.bf16.msra.mxu1 %v15472_v28  ;;  %v15567_v27 = vld [vmem:[%s19418_s0 + $0x458] ss:$136 sps:$4 sm:$0xff]  }
 0x123   : > { %8751 = vmatprep.subr.bf16.mxu0 %v15480_v29  ;;  %10672 = vmatprep.subr.bf16.mxu1 %v15483_v30  ;;  %v15568_v28 = vld [vmem:[%s17272_s7 + $0x900] ss:$16 sps:$4 sm:$0xff]   ;;  %v15571_v29 = vld [vmem:[%s17272_s7 + $0x908] ss:$16 sps:$4 sm:$0xff]   ;;  %v15576_v30 = vld [vmem:[%s17272_s7 + $0x924] ss:$16 sps:$4 sm:$0xff]  }
 0x125   : > { %8707 = vmatmul.mubr.bf16.gmra.mrb[24].mxu0 %v15477_v31  ;;  %10628 = vmatmul.mubr.bf16.gmra.mrb[24].mxu1 %v15477_v31  ;;  %v15579_v31 = vld [vmem:[%s17272_s7 + $0x92c] ss:$16 sps:$4 sm:$0xff]  }
 0x126   : > { %8752 = vmatpush1.bf16.msra.mxu0 %v15478_v32  ;;  %10673 = vmatpush1.bf16.msra.mxu1 %v15481_v33  ;;  %v15580_v32 = vld [vmem:[%s19418_s0 + $0x56c] ss:$136 sps:$4 sm:$0xff]   ;;  %v15574_v33 = vld [vmem:[%s17272_s7 + $0x920] ss:$16 sps:$4 sm:$0xff]  }
 0x127   : > { %8753 = vmatprep.subr.bf16.mxu0 %v15486_v34  ;;  %10674 = vmatprep.subr.bf16.mxu1 %v15489_v35  ;;  %v15577_v34 = vld [vmem:[%s17272_s7 + $0x928] ss:$16 sps:$4 sm:$0xff]   ;;  %v15585_v35 = vld [vmem:[%s17272_s7 + $0x944] ss:$16 sps:$4 sm:$0xff]  }
 0x128   : > { %8716 = vmatprep.mubr.bf16.mxu0 %v15490_v36  ;;  %10637 = vmatprep.mubr.bf16.mxu1 %v15490_v36  ;;  %v15588_v36 = vld [vmem:[%s17272_s7 + $0x94c] ss:$16 sps:$4 sm:$0xff]  }
 0x12a   : > { %8754 = vmatpush1.bf16.msra.mxu0 %v15484_v37  ;;  %10675 = vmatpush1.bf16.msra.mxu1 %v15487_v38  ;;  %v15582_v37 = vld [vmem:[%s19418_s0 + $0x568] ss:$136 sps:$4 sm:$0xff]  }
 0x12b   : > { %8755 = vmatprep.subr.bf16.mxu0 %v15495_v39  ;;  %10676 = vmatprep.subr.bf16.mxu1 %v15498_v40  ;;  %v15583_v38 = vld [vmem:[%s17272_s7 + $0x940] ss:$16 sps:$4 sm:$0xff]   ;;  %v15586_v39 = vld [vmem:[%s17272_s7 + $0x948] ss:$16 sps:$4 sm:$0xff]   ;;  %v15591_v40 = vld [vmem:[%s17272_s7 + $0x964] ss:$16 sps:$4 sm:$0xff]  }
 0x12d   : > { %8717 = vmatmul.mubr.bf16.gmra.mrb[28].mxu0 %v15492_v41  ;;  %10638 = vmatmul.mubr.bf16.gmra.mrb[28].mxu1 %v15492_v41  ;;  %v15594_v41 = vld [vmem:[%s17272_s7 + $0x96c] ss:$16 sps:$4 sm:$0xff]  }
 0x12e   : > { %8756 = vmatpush1.bf16.msra.mxu0 %v15493_v42  ;;  %10677 = vmatpush1.bf16.msra.mxu1 %v15496_v43  ;;  %v15595_v42 = vld [vmem:[%s19418_s0 + $0x67c] ss:$136 sps:$4 sm:$0xff]   ;;  %v15589_v43 = vld [vmem:[%s17272_s7 + $0x960] ss:$16 sps:$4 sm:$0xff]  }
 0x12f   : > { %8757 = vmatprep.subr.bf16.mxu0 %v15501_v44  ;;  %10678 = vmatprep.subr.bf16.mxu1 %v15504_v45  ;;  %v15592_v44 = vld [vmem:[%s17272_s7 + $0x968] ss:$16 sps:$4 sm:$0xff]   ;;  %v15600_v45 = vld [vmem:[%s17272_s7 + $0x984] ss:$16 sps:$4 sm:$0xff]  }
 0x130   : > { %8759 = vmatprep.mubr.bf16.mxu0 %v15507_v46  ;;  %10680 = vmatprep.mubr.bf16.mxu1 %v15507_v46  ;;  %v15603_v46 = vld [vmem:[%s17272_s7 + $0x98c] ss:$16 sps:$4 sm:$0xff]  }
 0x132   : > { %8758 = vmatpush1.bf16.msra.mxu0 %v15499_v47  ;;  %10679 = vmatpush1.bf16.msra.mxu1 %v15502_v48  ;;  %v15597_v47 = vld [vmem:[%s19418_s0 + $0x678] ss:$136 sps:$4 sm:$0xff]  }
 0x133   : > { %8840 = vmatprep.subr.bf16.mxu0 %v15510_v49  ;;  %10761 = vmatprep.subr.bf16.mxu1 %v15513_v50  ;;  %v15598_v48 = vld [vmem:[%s17272_s7 + $0x980] ss:$16 sps:$4 sm:$0xff]   ;;  %v15601_v49 = vld [vmem:[%s17272_s7 + $0x988] ss:$16 sps:$4 sm:$0xff]   ;;  %v15606_v50 = vld [vmem:[%s17272_s7 + $0x9a4] ss:$16 sps:$4 sm:$0xff]  }
 0x135   : > { %8760 = vmatmul.mubr.bf16.vlgmr.msra.gmra.mrb[0].mxu0 %v15505_v51  ;;  %10681 = vmatmul.mubr.bf16.vlgmr.msra.gmra.mrb[0].mxu1 %v15505_v51  ;;  %v15609_v51 = vld [vmem:[%s17272_s7 + $0x9ac] ss:$16 sps:$4 sm:$0xff]  }
 0x136   : > { %8841 = vmatpush1.bf16.msra.mxu0 %v15508_v52  ;;  %10762 = vmatpush1.bf16.msra.mxu1 %v15511_v53  ;;  %v15610_v52 = vld [vmem:[%s19418_s0 + $0x78c] ss:$136 sps:$4 sm:$0xff]   ;;  %v15604_v53 = vld [vmem:[%s17272_s7 + $0x9a0] ss:$16 sps:$4 sm:$0xff]  }
 0x137   : > { %8842 = vmatprep.subr.bf16.mxu0 %v15516_v54  ;;  %10763 = vmatprep.subr.bf16.mxu1 %v15519_v55  ;;  %v15607_v54 = vld [vmem:[%s17272_s7 + $0x9a8] ss:$16 sps:$4 sm:$0xff]   ;;  %v15615_v55 = vld [vmem:[%s17272_s7 + $0x9c4] ss:$16 sps:$4 sm:$0xff]  }
 0x138   : > { %8769 = vmatprep.mubr.bf16.mxu0 %v15520_v56  ;;  %10690 = vmatprep.mubr.bf16.mxu1 %v15520_v56  ;;  %v15618_v56 = vld [vmem:[%s17272_s7 + $0x9cc] ss:$16 sps:$4 sm:$0xff]  }
 0x13a   : > { %8843 = vmatpush1.bf16.msra.mxu0 %v15514_v57  ;;  %10764 = vmatpush1.bf16.msra.mxu1 %v15517_v58  ;;  %v15612_v57 = vld [vmem:[%s19418_s0 + $0x788] ss:$136 sps:$4 sm:$0xff]  }
 0x13b   : > { %8844 = vmatprep.subr.bf16.mxu0 %v15525_v59  ;;  %10765 = vmatprep.subr.bf16.mxu1 %v15528_v60  ;;  %v15613_v58 = vld [vmem:[%s17272_s7 + $0x9c0] ss:$16 sps:$4 sm:$0xff]   ;;  %v15616_v59 = vld [vmem:[%s17272_s7 + $0x9c8] ss:$16 sps:$4 sm:$0xff]   ;;  %v15621_v60 = vld [vmem:[%s17272_s7 + $0x9e4] ss:$16 sps:$4 sm:$0xff]  }
 0x13d   : > { %8770 = vmatmul.mubr.bf16.gmra.mrb[4].mxu0 %v15522_v61  ;;  %10691 = vmatmul.mubr.bf16.gmra.mrb[4].mxu1 %v15522_v61  ;;  %v15624_v61 = vld [vmem:[%s17272_s7 + $0x9ec] ss:$16 sps:$4 sm:$0xff]  }
 0x13e   : > { %8845 = vmatpush1.bf16.msra.mxu0 %v15523_v62  ;;  %10766 = vmatpush1.bf16.msra.mxu1 %v15526_v63  ;;  %v15627_v62 = vld [vmem:[%s19418_s0 + $0x24] ss:$136 sps:$4 sm:$0xff]   ;;  %v15619_v63 = vld [vmem:[%s17272_s7 + $0x9e0] ss:$16 sps:$4 sm:$0xff]  }
 0x13f   : > { %8846 = vmatprep.subr.bf16.mxu0 %v15531_v0  ;;  %10767 = vmatprep.subr.bf16.mxu1 %v15534_v1  ;;  %v15622_v0 = vld [vmem:[%s17272_s7 + $0x9e8] ss:$16 sps:$4 sm:$0xff]   ;;  %v15630_v1 = vld [vmem:[%s17272_s7 + $0xa04] ss:$16 sps:$4 sm:$0xff]  }
 0x140   : > { %8779 = vmatprep.mubr.bf16.mxu0 %v15535_v2  ;;  %10700 = vmatprep.mubr.bf16.mxu1 %v15535_v2  ;;  %v15633_v2 = vld [vmem:[%s17272_s7 + $0xa0c] ss:$16 sps:$4 sm:$0xff]  }
 0x142   : > { %8847 = vmatpush1.bf16.msra.mxu0 %v15529_v3  ;;  %10768 = vmatpush1.bf16.msra.mxu1 %v15532_v4  ;;  %v15625_v3 = vld [vmem:[%s19418_s0 + $0x20] ss:$136 sps:$4 sm:$0xff]  }
 0x143   : > { %8848 = vmatprep.subr.bf16.mxu0 %v15540_v5  ;;  %10769 = vmatprep.subr.bf16.mxu1 %v15543_v6  ;;  %v15628_v4 = vld [vmem:[%s17272_s7 + $0xa00] ss:$16 sps:$4 sm:$0xff]   ;;  %v15631_v5 = vld [vmem:[%s17272_s7 + $0xa08] ss:$16 sps:$4 sm:$0xff]   ;;  %v15636_v6 = vld [vmem:[%s17272_s7 + $0xa24] ss:$16 sps:$4 sm:$0xff]  }
 0x145   : > { %8780 = vmatmul.mubr.bf16.gmra.mrb[8].mxu0 %v15537_v7  ;;  %10701 = vmatmul.mubr.bf16.gmra.mrb[8].mxu1 %v15537_v7  ;;  %v15639_v7 = vld [vmem:[%s17272_s7 + $0xa2c] ss:$16 sps:$4 sm:$0xff]  }
 0x146   : > { %8849 = vmatpush1.bf16.msra.mxu0 %v15538_v8  ;;  %10770 = vmatpush1.bf16.msra.mxu1 %v15541_v9  ;;  %v15640_v8 = vld [vmem:[%s19418_s0 + $0x134] ss:$136 sps:$4 sm:$0xff]   ;;  %v15634_v9 = vld [vmem:[%s17272_s7 + $0xa20] ss:$16 sps:$4 sm:$0xff]  }
 0x147   : > { %8850 = vmatprep.subr.bf16.mxu0 %v15546_v10  ;;  %10771 = vmatprep.subr.bf16.mxu1 %v15549_v11  ;;  %v15637_v10 = vld [vmem:[%s17272_s7 + $0xa28] ss:$16 sps:$4 sm:$0xff]   ;;  %v15645_v11 = vld [vmem:[%s17272_s7 + $0xa44] ss:$16 sps:$4 sm:$0xff]  }
 0x148   : > { %8789 = vmatprep.mubr.bf16.mxu0 %v15550_v12  ;;  %10710 = vmatprep.mubr.bf16.mxu1 %v15550_v12  ;;  %v15648_v12 = vld [vmem:[%s17272_s7 + $0xa4c] ss:$16 sps:$4 sm:$0xff]  }
 0x14a   : > { %8851 = vmatpush1.bf16.msra.mxu0 %v15544_v13  ;;  %10772 = vmatpush1.bf16.msra.mxu1 %v15547_v14  ;;  %v15642_v13 = vld [vmem:[%s19418_s0 + $0x130] ss:$136 sps:$4 sm:$0xff]  }
 0x14b   : > { %8852 = vmatprep.subr.bf16.mxu0 %v15555_v15  ;;  %10773 = vmatprep.subr.bf16.mxu1 %v15558_v16  ;;  %v15643_v14 = vld [vmem:[%s17272_s7 + $0xa40] ss:$16 sps:$4 sm:$0xff]   ;;  %v15646_v15 = vld [vmem:[%s17272_s7 + $0xa48] ss:$16 sps:$4 sm:$0xff]   ;;  %v15651_v16 = vld [vmem:[%s17272_s7 + $0xa64] ss:$16 sps:$4 sm:$0xff]  }
 0x14d   : > { %8790 = vmatmul.mubr.bf16.gmra.mrb[12].mxu0 %v15552_v17  ;;  %10711 = vmatmul.mubr.bf16.gmra.mrb[12].mxu1 %v15552_v17  ;;  %v15654_v17 = vld [vmem:[%s17272_s7 + $0xa6c] ss:$16 sps:$4 sm:$0xff]  }
 0x14e   : > { %8853 = vmatpush1.bf16.msra.mxu0 %v15553_v18  ;;  %10774 = vmatpush1.bf16.msra.mxu1 %v15556_v19  ;;  %v15655_v18 = vld [vmem:[%s19418_s0 + $0x244] ss:$136 sps:$4 sm:$0xff]   ;;  %v15649_v19 = vld [vmem:[%s17272_s7 + $0xa60] ss:$16 sps:$4 sm:$0xff]  }
 0x14f   : > { %8854 = vmatprep.subr.bf16.mxu0 %v15561_v20  ;;  %10775 = vmatprep.subr.bf16.mxu1 %v15564_v21  ;;  %v15652_v20 = vld [vmem:[%s17272_s7 + $0xa68] ss:$16 sps:$4 sm:$0xff]   ;;  %v15660_v21 = vld [vmem:[%s17272_s7 + $0xa84] ss:$16 sps:$4 sm:$0xff]  }
 0x150   : > { %8799 = vmatprep.mubr.bf16.mxu0 %v15565_v22  ;;  %10720 = vmatprep.mubr.bf16.mxu1 %v15565_v22  ;;  %v15663_v22 = vld [vmem:[%s17272_s7 + $0xa8c] ss:$16 sps:$4 sm:$0xff]  }
 0x152   : > { %8855 = vmatpush1.bf16.msra.mxu0 %v15559_v23  ;;  %10776 = vmatpush1.bf16.msra.mxu1 %v15562_v24  ;;  %v15657_v23 = vld [vmem:[%s19418_s0 + $0x240] ss:$136 sps:$4 sm:$0xff]  }
 0x153   : > { %8856 = vmatprep.subr.bf16.mxu0 %v15570_v25  ;;  %10777 = vmatprep.subr.bf16.mxu1 %v15573_v26  ;;  %v15658_v24 = vld [vmem:[%s17272_s7 + $0xa80] ss:$16 sps:$4 sm:$0xff]   ;;  %v15661_v25 = vld [vmem:[%s17272_s7 + $0xa88] ss:$16 sps:$4 sm:$0xff]   ;;  %v15666_v26 = vld [vmem:[%s17272_s7 + $0xaa4] ss:$16 sps:$4 sm:$0xff]  }
 0x155   : > { %8800 = vmatmul.mubr.bf16.gmra.mrb[16].mxu0 %v15567_v27  ;;  %10721 = vmatmul.mubr.bf16.gmra.mrb[16].mxu1 %v15567_v27  ;;  %v15669_v27 = vld [vmem:[%s17272_s7 + $0xaac] ss:$16 sps:$4 sm:$0xff]  }
 0x156   : > { %8857 = vmatpush1.bf16.msra.mxu0 %v15568_v28  ;;  %10778 = vmatpush1.bf16.msra.mxu1 %v15571_v29  ;;  %v15670_v28 = vld [vmem:[%s19418_s0 + $0x354] ss:$136 sps:$4 sm:$0xff]   ;;  %v15664_v29 = vld [vmem:[%s17272_s7 + $0xaa0] ss:$16 sps:$4 sm:$0xff]  }
 0x157   : > { %8858 = vmatprep.subr.bf16.mxu0 %v15576_v30  ;;  %10779 = vmatprep.subr.bf16.mxu1 %v15579_v31  ;;  %v15667_v30 = vld [vmem:[%s17272_s7 + $0xaa8] ss:$16 sps:$4 sm:$0xff]   ;;  %v15675_v31 = vld [vmem:[%s17272_s7 + $0xac4] ss:$16 sps:$4 sm:$0xff]  }
 0x158   : > { %8809 = vmatprep.mubr.bf16.mxu0 %v15580_v32  ;;  %10730 = vmatprep.mubr.bf16.mxu1 %v15580_v32  ;;  %v15678_v32 = vld [vmem:[%s17272_s7 + $0xacc] ss:$16 sps:$4 sm:$0xff]  }
 0x15a   : > { %8859 = vmatpush1.bf16.msra.mxu0 %v15574_v33  ;;  %10780 = vmatpush1.bf16.msra.mxu1 %v15577_v34  ;;  %v15672_v33 = vld [vmem:[%s19418_s0 + $0x350] ss:$136 sps:$4 sm:$0xff]  }
 0x15b   : > { %8860 = vmatprep.subr.bf16.mxu0 %v15585_v35  ;;  %10781 = vmatprep.subr.bf16.mxu1 %v15588_v36  ;;  %v15673_v34 = vld [vmem:[%s17272_s7 + $0xac0] ss:$16 sps:$4 sm:$0xff]   ;;  %v15676_v35 = vld [vmem:[%s17272_s7 + $0xac8] ss:$16 sps:$4 sm:$0xff]   ;;  %v15681_v36 = vld [vmem:[%s17272_s7 + $0xae4] ss:$16 sps:$4 sm:$0xff]  }
 0x15d   : > { %8810 = vmatmul.mubr.bf16.gmra.mrb[20].mxu0 %v15582_v37  ;;  %10731 = vmatmul.mubr.bf16.gmra.mrb[20].mxu1 %v15582_v37  ;;  %v15684_v37 = vld [vmem:[%s17272_s7 + $0xaec] ss:$16 sps:$4 sm:$0xff]  }
 0x15e   : > { %8861 = vmatpush1.bf16.msra.mxu0 %v15583_v38  ;;  %10782 = vmatpush1.bf16.msra.mxu1 %v15586_v39  ;;  %v15685_v38 = vld [vmem:[%s19418_s0 + $0x464] ss:$136 sps:$4 sm:$0xff]   ;;  %v15679_v39 = vld [vmem:[%s17272_s7 + $0xae0] ss:$16 sps:$4 sm:$0xff]  }
 0x15f   : > { %8862 = vmatprep.subr.bf16.mxu0 %v15591_v40  ;;  %10783 = vmatprep.subr.bf16.mxu1 %v15594_v41  ;;  %v15682_v40 = vld [vmem:[%s17272_s7 + $0xae8] ss:$16 sps:$4 sm:$0xff]   ;;  %v15690_v41 = vld [vmem:[%s17272_s7 + $0xb04] ss:$16 sps:$4 sm:$0xff]  }
 0x160   : > { %8819 = vmatprep.mubr.bf16.mxu0 %v15595_v42  ;;  %10740 = vmatprep.mubr.bf16.mxu1 %v15595_v42  ;;  %v15693_v42 = vld [vmem:[%s17272_s7 + $0xb0c] ss:$16 sps:$4 sm:$0xff]  }
 0x162   : > { %8863 = vmatpush1.bf16.msra.mxu0 %v15589_v43  ;;  %10784 = vmatpush1.bf16.msra.mxu1 %v15592_v44  ;;  %v15687_v43 = vld [vmem:[%s19418_s0 + $0x460] ss:$136 sps:$4 sm:$0xff]  }
 0x163   : > { %8864 = vmatprep.subr.bf16.mxu0 %v15600_v45  ;;  %10785 = vmatprep.subr.bf16.mxu1 %v15603_v46  ;;  %v15688_v44 = vld [vmem:[%s17272_s7 + $0xb00] ss:$16 sps:$4 sm:$0xff]   ;;  %v15691_v45 = vld [vmem:[%s17272_s7 + $0xb08] ss:$16 sps:$4 sm:$0xff]   ;;  %v15696_v46 = vld [vmem:[%s17272_s7 + $0xb24] ss:$16 sps:$4 sm:$0xff]  }
 0x165   : > { %8820 = vmatmul.mubr.bf16.gmra.mrb[24].mxu0 %v15597_v47  ;;  %10741 = vmatmul.mubr.bf16.gmra.mrb[24].mxu1 %v15597_v47  ;;  %v15699_v47 = vld [vmem:[%s17272_s7 + $0xb2c] ss:$16 sps:$4 sm:$0xff]  }
 0x166   : > { %8865 = vmatpush1.bf16.msra.mxu0 %v15598_v48  ;;  %10786 = vmatpush1.bf16.msra.mxu1 %v15601_v49  ;;  %v15700_v48 = vld [vmem:[%s19418_s0 + $0x574] ss:$136 sps:$4 sm:$0xff]   ;;  %v15694_v49 = vld [vmem:[%s17272_s7 + $0xb20] ss:$16 sps:$4 sm:$0xff]  }
 0x167   : > { %8866 = vmatprep.subr.bf16.mxu0 %v15606_v50  ;;  %10787 = vmatprep.subr.bf16.mxu1 %v15609_v51  ;;  %v15697_v50 = vld [vmem:[%s17272_s7 + $0xb28] ss:$16 sps:$4 sm:$0xff]   ;;  %v15705_v51 = vld [vmem:[%s17272_s7 + $0xb44] ss:$16 sps:$4 sm:$0xff]  }
 0x168   : > { %8829 = vmatprep.mubr.bf16.mxu0 %v15610_v52  ;;  %10750 = vmatprep.mubr.bf16.mxu1 %v15610_v52  ;;  %v15708_v52 = vld [vmem:[%s17272_s7 + $0xb4c] ss:$16 sps:$4 sm:$0xff]  }
 0x16a   : > { %8867 = vmatpush1.bf16.msra.mxu0 %v15604_v53  ;;  %10788 = vmatpush1.bf16.msra.mxu1 %v15607_v54  ;;  %v15702_v53 = vld [vmem:[%s19418_s0 + $0x570] ss:$136 sps:$4 sm:$0xff]  }
 0x16b   : > { %8868 = vmatprep.subr.bf16.mxu0 %v15615_v55  ;;  %10789 = vmatprep.subr.bf16.mxu1 %v15618_v56  ;;  %v15703_v54 = vld [vmem:[%s17272_s7 + $0xb40] ss:$16 sps:$4 sm:$0xff]   ;;  %v15706_v55 = vld [vmem:[%s17272_s7 + $0xb48] ss:$16 sps:$4 sm:$0xff]   ;;  %v15711_v56 = vld [vmem:[%s17272_s7 + $0xb64] ss:$16 sps:$4 sm:$0xff]  }
 0x16d   : > { %8830 = vmatmul.mubr.bf16.gmra.mrb[28].mxu0 %v15612_v57  ;;  %10751 = vmatmul.mubr.bf16.gmra.mrb[28].mxu1 %v15612_v57  ;;  %v15714_v57 = vld [vmem:[%s17272_s7 + $0xb6c] ss:$16 sps:$4 sm:$0xff]  }
 0x16e   : > { %8869 = vmatpush1.bf16.msra.mxu0 %v15613_v58  ;;  %10790 = vmatpush1.bf16.msra.mxu1 %v15616_v59  ;;  %v15715_v58 = vld [vmem:[%s19418_s0 + $0x684] ss:$136 sps:$4 sm:$0xff]   ;;  %v15709_v59 = vld [vmem:[%s17272_s7 + $0xb60] ss:$16 sps:$4 sm:$0xff]  }
 0x16f   : > { %8870 = vmatprep.subr.bf16.mxu0 %v15621_v60  ;;  %10791 = vmatprep.subr.bf16.mxu1 %v15624_v61  ;;  %v15712_v60 = vld [vmem:[%s17272_s7 + $0xb68] ss:$16 sps:$4 sm:$0xff]   ;;  %v15720_v61 = vld [vmem:[%s17272_s7 + $0xb84] ss:$16 sps:$4 sm:$0xff]  }
 0x170   : > { %8872 = vmatprep.mubr.bf16.mxu0 %v15627_v62  ;;  %10793 = vmatprep.mubr.bf16.mxu1 %v15627_v62  ;;  %v15723_v62 = vld [vmem:[%s17272_s7 + $0xb8c] ss:$16 sps:$4 sm:$0xff]  }
 0x172   : > { %8871 = vmatpush1.bf16.msra.mxu0 %v15619_v63  ;;  %10792 = vmatpush1.bf16.msra.mxu1 %v15622_v0  ;;  %v15717_v63 = vld [vmem:[%s19418_s0 + $0x680] ss:$136 sps:$4 sm:$0xff]  }
 0x173   : > { %8953 = vmatprep.subr.bf16.mxu0 %v15630_v1  ;;  %10874 = vmatprep.subr.bf16.mxu1 %v15633_v2  ;;  %v15718_v0 = vld [vmem:[%s17272_s7 + $0xb80] ss:$16 sps:$4 sm:$0xff]   ;;  %v15721_v1 = vld [vmem:[%s17272_s7 + $0xb88] ss:$16 sps:$4 sm:$0xff]   ;;  %v15726_v2 = vld [vmem:[%s17272_s7 + $0xba4] ss:$16 sps:$4 sm:$0xff]  }
 0x175   : > { %8873 = vmatmul.mubr.bf16.vlgmr.msra.gmra.mrb[0].mxu0 %v15625_v3  ;;  %10794 = vmatmul.mubr.bf16.vlgmr.msra.gmra.mrb[0].mxu1 %v15625_v3  ;;  %v15729_v3 = vld [vmem:[%s17272_s7 + $0xbac] ss:$16 sps:$4 sm:$0xff]  }
 0x176   : > { %8954 = vmatpush1.bf16.msra.mxu0 %v15628_v4  ;;  %10875 = vmatpush1.bf16.msra.mxu1 %v15631_v5  ;;  %v15730_v4 = vld [vmem:[%s19418_s0 + $0x794] ss:$136 sps:$4 sm:$0xff]   ;;  %v15724_v5 = vld [vmem:[%s17272_s7 + $0xba0] ss:$16 sps:$4 sm:$0xff]  }
 0x177   : > { %8955 = vmatprep.subr.bf16.mxu0 %v15636_v6  ;;  %10876 = vmatprep.subr.bf16.mxu1 %v15639_v7  ;;  %v15727_v6 = vld [vmem:[%s17272_s7 + $0xba8] ss:$16 sps:$4 sm:$0xff]   ;;  %v15735_v7 = vld [vmem:[%s17272_s7 + $0xbc4] ss:$16 sps:$4 sm:$0xff]  }
 0x178   : > { %8882 = vmatprep.mubr.bf16.mxu0 %v15640_v8  ;;  %10803 = vmatprep.mubr.bf16.mxu1 %v15640_v8  ;;  %v15738_v8 = vld [vmem:[%s17272_s7 + $0xbcc] ss:$16 sps:$4 sm:$0xff]  }
 0x17a   : > { %8956 = vmatpush1.bf16.msra.mxu0 %v15634_v9  ;;  %10877 = vmatpush1.bf16.msra.mxu1 %v15637_v10  ;;  %v15732_v9 = vld [vmem:[%s19418_s0 + $0x790] ss:$136 sps:$4 sm:$0xff]  }
 0x17b   : > { %8957 = vmatprep.subr.bf16.mxu0 %v15645_v11  ;;  %10878 = vmatprep.subr.bf16.mxu1 %v15648_v12  ;;  %v15733_v10 = vld [vmem:[%s17272_s7 + $0xbc0] ss:$16 sps:$4 sm:$0xff]   ;;  %v15736_v11 = vld [vmem:[%s17272_s7 + $0xbc8] ss:$16 sps:$4 sm:$0xff]   ;;  %v15741_v12 = vld [vmem:[%s17272_s7 + $0xbe4] ss:$16 sps:$4 sm:$0xff]  }
 0x17d   : > { %8883 = vmatmul.mubr.bf16.gmra.mrb[4].mxu0 %v15642_v13  ;;  %10804 = vmatmul.mubr.bf16.gmra.mrb[4].mxu1 %v15642_v13  ;;  %v15744_v13 = vld [vmem:[%s17272_s7 + $0xbec] ss:$16 sps:$4 sm:$0xff]  }
 0x17e   : > { %8958 = vmatpush1.bf16.msra.mxu0 %v15643_v14  ;;  %10879 = vmatpush1.bf16.msra.mxu1 %v15646_v15  ;;  %v15747_v14 = vld [vmem:[%s19418_s0 + $0x2c] ss:$136 sps:$4 sm:$0xff]   ;;  %v15739_v15 = vld [vmem:[%s17272_s7 + $0xbe0] ss:$16 sps:$4 sm:$0xff]  }
 0x17f   : > { %8959 = vmatprep.subr.bf16.mxu0 %v15651_v16  ;;  %10880 = vmatprep.subr.bf16.mxu1 %v15654_v17  ;;  %v15742_v16 = vld [vmem:[%s17272_s7 + $0xbe8] ss:$16 sps:$4 sm:$0xff]   ;;  %v15750_v17 = vld [vmem:[%s17272_s7 + $0xc04] ss:$16 sps:$4 sm:$0xff]  }
 0x180   : > { %8892 = vmatprep.mubr.bf16.mxu0 %v15655_v18  ;;  %10813 = vmatprep.mubr.bf16.mxu1 %v15655_v18  ;;  %v15753_v18 = vld [vmem:[%s17272_s7 + $0xc0c] ss:$16 sps:$4 sm:$0xff]  }
 0x182   : > { %8960 = vmatpush1.bf16.msra.mxu0 %v15649_v19  ;;  %10881 = vmatpush1.bf16.msra.mxu1 %v15652_v20  ;;  %v15745_v19 = vld [vmem:[%s19418_s0 + $0x28] ss:$136 sps:$4 sm:$0xff]  }
 0x183   : > { %8961 = vmatprep.subr.bf16.mxu0 %v15660_v21  ;;  %10882 = vmatprep.subr.bf16.mxu1 %v15663_v22  ;;  %v15748_v20 = vld [vmem:[%s17272_s7 + $0xc00] ss:$16 sps:$4 sm:$0xff]   ;;  %v15751_v21 = vld [vmem:[%s17272_s7 + $0xc08] ss:$16 sps:$4 sm:$0xff]   ;;  %v15756_v22 = vld [vmem:[%s17272_s7 + $0xc24] ss:$16 sps:$4 sm:$0xff]  }
 0x185   : > { %8893 = vmatmul.mubr.bf16.gmra.mrb[8].mxu0 %v15657_v23  ;;  %10814 = vmatmul.mubr.bf16.gmra.mrb[8].mxu1 %v15657_v23  ;;  %v15759_v23 = vld [vmem:[%s17272_s7 + $0xc2c] ss:$16 sps:$4 sm:$0xff]  }
 0x186   : > { %8962 = vmatpush1.bf16.msra.mxu0 %v15658_v24  ;;  %10883 = vmatpush1.bf16.msra.mxu1 %v15661_v25  ;;  %v15760_v24 = vld [vmem:[%s19418_s0 + $0x13c] ss:$136 sps:$4 sm:$0xff]   ;;  %v15754_v25 = vld [vmem:[%s17272_s7 + $0xc20] ss:$16 sps:$4 sm:$0xff]  }
 0x187   : > { %8963 = vmatprep.subr.bf16.mxu0 %v15666_v26  ;;  %10884 = vmatprep.subr.bf16.mxu1 %v15669_v27  ;;  %v15757_v26 = vld [vmem:[%s17272_s7 + $0xc28] ss:$16 sps:$4 sm:$0xff]   ;;  %v15765_v27 = vld [vmem:[%s17272_s7 + $0xc44] ss:$16 sps:$4 sm:$0xff]  }
 0x188   : > { %8902 = vmatprep.mubr.bf16.mxu0 %v15670_v28  ;;  %10823 = vmatprep.mubr.bf16.mxu1 %v15670_v28  ;;  %v15768_v28 = vld [vmem:[%s17272_s7 + $0xc4c] ss:$16 sps:$4 sm:$0xff]  }
 0x18a   : > { %8964 = vmatpush1.bf16.msra.mxu0 %v15664_v29  ;;  %10885 = vmatpush1.bf16.msra.mxu1 %v15667_v30  ;;  %v15762_v29 = vld [vmem:[%s19418_s0 + $0x138] ss:$136 sps:$4 sm:$0xff]  }
 0x18b   : > { %8965 = vmatprep.subr.bf16.mxu0 %v15675_v31  ;;  %10886 = vmatprep.subr.bf16.mxu1 %v15678_v32  ;;  %v15763_v30 = vld [vmem:[%s17272_s7 + $0xc40] ss:$16 sps:$4 sm:$0xff]   ;;  %v15766_v31 = vld [vmem:[%s17272_s7 + $0xc48] ss:$16 sps:$4 sm:$0xff]   ;;  %v15771_v32 = vld [vmem:[%s17272_s7 + $0xc64] ss:$16 sps:$4 sm:$0xff]  }
 0x18d   : > { %8903 = vmatmul.mubr.bf16.gmra.mrb[12].mxu0 %v15672_v33  ;;  %10824 = vmatmul.mubr.bf16.gmra.mrb[12].mxu1 %v15672_v33  ;;  %v15774_v33 = vld [vmem:[%s17272_s7 + $0xc6c] ss:$16 sps:$4 sm:$0xff]  }
 0x18e   : > { %8966 = vmatpush1.bf16.msra.mxu0 %v15673_v34  ;;  %10887 = vmatpush1.bf16.msra.mxu1 %v15676_v35  ;;  %v15775_v34 = vld [vmem:[%s19418_s0 + $0x24c] ss:$136 sps:$4 sm:$0xff]   ;;  %v15769_v35 = vld [vmem:[%s17272_s7 + $0xc60] ss:$16 sps:$4 sm:$0xff]  }
 0x18f   : > { %8967 = vmatprep.subr.bf16.mxu0 %v15681_v36  ;;  %10888 = vmatprep.subr.bf16.mxu1 %v15684_v37  ;;  %v15772_v36 = vld [vmem:[%s17272_s7 + $0xc68] ss:$16 sps:$4 sm:$0xff]   ;;  %v15780_v37 = vld [vmem:[%s17272_s7 + $0xc84] ss:$16 sps:$4 sm:$0xff]  }
 0x190   : > { %8912 = vmatprep.mubr.bf16.mxu0 %v15685_v38  ;;  %10833 = vmatprep.mubr.bf16.mxu1 %v15685_v38  ;;  %v15783_v38 = vld [vmem:[%s17272_s7 + $0xc8c] ss:$16 sps:$4 sm:$0xff]  }
 0x192   : > { %8968 = vmatpush1.bf16.msra.mxu0 %v15679_v39  ;;  %10889 = vmatpush1.bf16.msra.mxu1 %v15682_v40  ;;  %v15777_v39 = vld [vmem:[%s19418_s0 + $0x248] ss:$136 sps:$4 sm:$0xff]  }
 0x193   : > { %8969 = vmatprep.subr.bf16.mxu0 %v15690_v41  ;;  %10890 = vmatprep.subr.bf16.mxu1 %v15693_v42  ;;  %v15778_v40 = vld [vmem:[%s17272_s7 + $0xc80] ss:$16 sps:$4 sm:$0xff]   ;;  %v15781_v41 = vld [vmem:[%s17272_s7 + $0xc88] ss:$16 sps:$4 sm:$0xff]   ;;  %v15786_v42 = vld [vmem:[%s17272_s7 + $0xca4] ss:$16 sps:$4 sm:$0xff]  }
 0x195   : > { %8913 = vmatmul.mubr.bf16.gmra.mrb[16].mxu0 %v15687_v43  ;;  %10834 = vmatmul.mubr.bf16.gmra.mrb[16].mxu1 %v15687_v43  ;;  %v15789_v43 = vld [vmem:[%s17272_s7 + $0xcac] ss:$16 sps:$4 sm:$0xff]  }
 0x196   : > { %8970 = vmatpush1.bf16.msra.mxu0 %v15688_v44  ;;  %10891 = vmatpush1.bf16.msra.mxu1 %v15691_v45  ;;  %v15790_v44 = vld [vmem:[%s19418_s0 + $0x35c] ss:$136 sps:$4 sm:$0xff]   ;;  %v15784_v45 = vld [vmem:[%s17272_s7 + $0xca0] ss:$16 sps:$4 sm:$0xff]  }
 0x197   : > { %8971 = vmatprep.subr.bf16.mxu0 %v15696_v46  ;;  %10892 = vmatprep.subr.bf16.mxu1 %v15699_v47  ;;  %v15787_v46 = vld [vmem:[%s17272_s7 + $0xca8] ss:$16 sps:$4 sm:$0xff]   ;;  %v15795_v47 = vld [vmem:[%s17272_s7 + $0xcc4] ss:$16 sps:$4 sm:$0xff]  }
 0x198   : > { %8922 = vmatprep.mubr.bf16.mxu0 %v15700_v48  ;;  %10843 = vmatprep.mubr.bf16.mxu1 %v15700_v48  ;;  %v15798_v48 = vld [vmem:[%s17272_s7 + $0xccc] ss:$16 sps:$4 sm:$0xff]  }
 0x19a   : > { %8972 = vmatpush1.bf16.msra.mxu0 %v15694_v49  ;;  %10893 = vmatpush1.bf16.msra.mxu1 %v15697_v50  ;;  %v15792_v49 = vld [vmem:[%s19418_s0 + $0x358] ss:$136 sps:$4 sm:$0xff]  }
 0x19b   : > { %8973 = vmatprep.subr.bf16.mxu0 %v15705_v51  ;;  %10894 = vmatprep.subr.bf16.mxu1 %v15708_v52  ;;  %v15793_v50 = vld [vmem:[%s17272_s7 + $0xcc0] ss:$16 sps:$4 sm:$0xff]   ;;  %v15796_v51 = vld [vmem:[%s17272_s7 + $0xcc8] ss:$16 sps:$4 sm:$0xff]   ;;  %v15801_v52 = vld [vmem:[%s17272_s7 + $0xce4] ss:$16 sps:$4 sm:$0xff]  }
 0x19d   : > { %8923 = vmatmul.mubr.bf16.gmra.mrb[20].mxu0 %v15702_v53  ;;  %10844 = vmatmul.mubr.bf16.gmra.mrb[20].mxu1 %v15702_v53  ;;  %v15804_v53 = vld [vmem:[%s17272_s7 + $0xcec] ss:$16 sps:$4 sm:$0xff]  }
 0x19e   : > { %8974 = vmatpush1.bf16.msra.mxu0 %v15703_v54  ;;  %10895 = vmatpush1.bf16.msra.mxu1 %v15706_v55  ;;  %v15805_v54 = vld [vmem:[%s19418_s0 + $0x46c] ss:$136 sps:$4 sm:$0xff]   ;;  %v15799_v55 = vld [vmem:[%s17272_s7 + $0xce0] ss:$16 sps:$4 sm:$0xff]  }
 0x19f   : > { %8975 = vmatprep.subr.bf16.mxu0 %v15711_v56  ;;  %10896 = vmatprep.subr.bf16.mxu1 %v15714_v57  ;;  %v15802_v56 = vld [vmem:[%s17272_s7 + $0xce8] ss:$16 sps:$4 sm:$0xff]   ;;  %v15810_v57 = vld [vmem:[%s17272_s7 + $0xd04] ss:$16 sps:$4 sm:$0xff]  }
 0x1a0   : > { %8932 = vmatprep.mubr.bf16.mxu0 %v15715_v58  ;;  %10853 = vmatprep.mubr.bf16.mxu1 %v15715_v58  ;;  %v15813_v58 = vld [vmem:[%s17272_s7 + $0xd0c] ss:$16 sps:$4 sm:$0xff]  }
 0x1a2   : > { %8976 = vmatpush1.bf16.msra.mxu0 %v15709_v59  ;;  %10897 = vmatpush1.bf16.msra.mxu1 %v15712_v60  ;;  %v15807_v59 = vld [vmem:[%s19418_s0 + $0x468] ss:$136 sps:$4 sm:$0xff]  }
 0x1a3   : > { %8977 = vmatprep.subr.bf16.mxu0 %v15720_v61  ;;  %10898 = vmatprep.subr.bf16.mxu1 %v15723_v62  ;;  %v15808_v60 = vld [vmem:[%s17272_s7 + $0xd00] ss:$16 sps:$4 sm:$0xff]   ;;  %v15811_v61 = vld [vmem:[%s17272_s7 + $0xd08] ss:$16 sps:$4 sm:$0xff]   ;;  %v15816_v62 = vld [vmem:[%s17272_s7 + $0xd24] ss:$16 sps:$4 sm:$0xff]  }
 0x1a5   : > { %8933 = vmatmul.mubr.bf16.gmra.mrb[24].mxu0 %v15717_v63  ;;  %10854 = vmatmul.mubr.bf16.gmra.mrb[24].mxu1 %v15717_v63  ;;  %v15819_v63 = vld [vmem:[%s17272_s7 + $0xd2c] ss:$16 sps:$4 sm:$0xff]  }
 0x1a6   : > { %8978 = vmatpush1.bf16.msra.mxu0 %v15718_v0  ;;  %10899 = vmatpush1.bf16.msra.mxu1 %v15721_v1  ;;  %v15820_v0 = vld [vmem:[%s19418_s0 + $0x57c] ss:$136 sps:$4 sm:$0xff]   ;;  %v15814_v1 = vld [vmem:[%s17272_s7 + $0xd20] ss:$16 sps:$4 sm:$0xff]  }
 0x1a7   : > { %8979 = vmatprep.subr.bf16.mxu0 %v15726_v2  ;;  %10900 = vmatprep.subr.bf16.mxu1 %v15729_v3  ;;  %v15817_v2 = vld [vmem:[%s17272_s7 + $0xd28] ss:$16 sps:$4 sm:$0xff]   ;;  %v15825_v3 = vld [vmem:[%s17272_s7 + $0xd44] ss:$16 sps:$4 sm:$0xff]  }
 0x1a8   : > { %8942 = vmatprep.mubr.bf16.mxu0 %v15730_v4  ;;  %10863 = vmatprep.mubr.bf16.mxu1 %v15730_v4  ;;  %v15828_v4 = vld [vmem:[%s17272_s7 + $0xd4c] ss:$16 sps:$4 sm:$0xff]  }
 0x1aa   : > { %8980 = vmatpush1.bf16.msra.mxu0 %v15724_v5  ;;  %10901 = vmatpush1.bf16.msra.mxu1 %v15727_v6  ;;  %v15822_v5 = vld [vmem:[%s19418_s0 + $0x578] ss:$136 sps:$4 sm:$0xff]  }
 0x1ab   : > { %8981 = vmatprep.subr.bf16.mxu0 %v15735_v7  ;;  %10902 = vmatprep.subr.bf16.mxu1 %v15738_v8  ;;  %v15823_v6 = vld [vmem:[%s17272_s7 + $0xd40] ss:$16 sps:$4 sm:$0xff]   ;;  %v15826_v7 = vld [vmem:[%s17272_s7 + $0xd48] ss:$16 sps:$4 sm:$0xff]   ;;  %v15831_v8 = vld [vmem:[%s17272_s7 + $0xd64] ss:$16 sps:$4 sm:$0xff]  }
 0x1ad   : > { %8943 = vmatmul.mubr.bf16.gmra.mrb[28].mxu0 %v15732_v9  ;;  %10864 = vmatmul.mubr.bf16.gmra.mrb[28].mxu1 %v15732_v9  ;;  %v15834_v9 = vld [vmem:[%s17272_s7 + $0xd6c] ss:$16 sps:$4 sm:$0xff]  }
 0x1ae   : > { %8982 = vmatpush1.bf16.msra.mxu0 %v15733_v10  ;;  %10903 = vmatpush1.bf16.msra.mxu1 %v15736_v11  ;;  %v15835_v10 = vld [vmem:[%s19418_s0 + $0x68c] ss:$136 sps:$4 sm:$0xff]   ;;  %v15829_v11 = vld [vmem:[%s17272_s7 + $0xd60] ss:$16 sps:$4 sm:$0xff]  }
 0x1af   : > { %8983 = vmatprep.subr.bf16.mxu0 %v15741_v12  ;;  %10904 = vmatprep.subr.bf16.mxu1 %v15744_v13  ;;  %v15832_v12 = vld [vmem:[%s17272_s7 + $0xd68] ss:$16 sps:$4 sm:$0xff]   ;;  %v15840_v13 = vld [vmem:[%s17272_s7 + $0xd84] ss:$16 sps:$4 sm:$0xff]  }
 0x1b0   : > { %8985 = vmatprep.mubr.bf16.mxu0 %v15747_v14  ;;  %10906 = vmatprep.mubr.bf16.mxu1 %v15747_v14  ;;  %v15843_v14 = vld [vmem:[%s17272_s7 + $0xd8c] ss:$16 sps:$4 sm:$0xff]  }
 0x1b2   : > { %8984 = vmatpush1.bf16.msra.mxu0 %v15739_v15  ;;  %10905 = vmatpush1.bf16.msra.mxu1 %v15742_v16  ;;  %v15837_v15 = vld [vmem:[%s19418_s0 + $0x688] ss:$136 sps:$4 sm:$0xff]  }
 0x1b3   : > { %9066 = vmatprep.subr.bf16.mxu0 %v15750_v17  ;;  %10987 = vmatprep.subr.bf16.mxu1 %v15753_v18  ;;  %v15838_v16 = vld [vmem:[%s17272_s7 + $0xd80] ss:$16 sps:$4 sm:$0xff]   ;;  %v15841_v17 = vld [vmem:[%s17272_s7 + $0xd88] ss:$16 sps:$4 sm:$0xff]   ;;  %v15846_v18 = vld [vmem:[%s17272_s7 + $0xda4] ss:$16 sps:$4 sm:$0xff]  }
 0x1b5   : > { %8986 = vmatmul.mubr.bf16.vlgmr.msra.gmra.mrb[0].mxu0 %v15745_v19  ;;  %10907 = vmatmul.mubr.bf16.vlgmr.msra.gmra.mrb[0].mxu1 %v15745_v19  ;;  %v15849_v19 = vld [vmem:[%s17272_s7 + $0xdac] ss:$16 sps:$4 sm:$0xff]  }
 0x1b6   : > { %9067 = vmatpush1.bf16.msra.mxu0 %v15748_v20  ;;  %10988 = vmatpush1.bf16.msra.mxu1 %v15751_v21  ;;  %v15850_v20 = vld [vmem:[%s19418_s0 + $0x79c] ss:$136 sps:$4 sm:$0xff]   ;;  %v15844_v21 = vld [vmem:[%s17272_s7 + $0xda0] ss:$16 sps:$4 sm:$0xff]  }
 0x1b7   : > { %9068 = vmatprep.subr.bf16.mxu0 %v15756_v22  ;;  %10989 = vmatprep.subr.bf16.mxu1 %v15759_v23  ;;  %v15847_v22 = vld [vmem:[%s17272_s7 + $0xda8] ss:$16 sps:$4 sm:$0xff]   ;;  %v15855_v23 = vld [vmem:[%s17272_s7 + $0xdc4] ss:$16 sps:$4 sm:$0xff]  }
 0x1b8   : > { %8995 = vmatprep.mubr.bf16.mxu0 %v15760_v24  ;;  %10916 = vmatprep.mubr.bf16.mxu1 %v15760_v24  ;;  %v15858_v24 = vld [vmem:[%s17272_s7 + $0xdcc] ss:$16 sps:$4 sm:$0xff]  }
 0x1ba   : > { %9069 = vmatpush1.bf16.msra.mxu0 %v15754_v25  ;;  %10990 = vmatpush1.bf16.msra.mxu1 %v15757_v26  ;;  %v15852_v25 = vld [vmem:[%s19418_s0 + $0x798] ss:$136 sps:$4 sm:$0xff]  }
 0x1bb   : > { %9070 = vmatprep.subr.bf16.mxu0 %v15765_v27  ;;  %10991 = vmatprep.subr.bf16.mxu1 %v15768_v28  ;;  %v15853_v26 = vld [vmem:[%s17272_s7 + $0xdc0] ss:$16 sps:$4 sm:$0xff]   ;;  %v15856_v27 = vld [vmem:[%s17272_s7 + $0xdc8] ss:$16 sps:$4 sm:$0xff]   ;;  %v15861_v28 = vld [vmem:[%s17272_s7 + $0xde4] ss:$16 sps:$4 sm:$0xff]  }
 0x1bd   : > { %8996 = vmatmul.mubr.bf16.gmra.mrb[4].mxu0 %v15762_v29  ;;  %10917 = vmatmul.mubr.bf16.gmra.mrb[4].mxu1 %v15762_v29  ;;  %v15864_v29 = vld [vmem:[%s17272_s7 + $0xdec] ss:$16 sps:$4 sm:$0xff]  }
 0x1be   : > { %9071 = vmatpush1.bf16.msra.mxu0 %v15763_v30  ;;  %10992 = vmatpush1.bf16.msra.mxu1 %v15766_v31  ;;  %v15867_v30 = vld [vmem:[%s19418_s0 + $0x34] ss:$136 sps:$4 sm:$0xff]   ;;  %v15859_v31 = vld [vmem:[%s17272_s7 + $0xde0] ss:$16 sps:$4 sm:$0xff]  }
 0x1bf   : > { %9072 = vmatprep.subr.bf16.mxu0 %v15771_v32  ;;  %10993 = vmatprep.subr.bf16.mxu1 %v15774_v33  ;;  %v15862_v32 = vld [vmem:[%s17272_s7 + $0xde8] ss:$16 sps:$4 sm:$0xff]   ;;  %v15870_v33 = vld [vmem:[%s17272_s7 + $0xe04] ss:$16 sps:$4 sm:$0xff]  }
 0x1c0   : > { %9005 = vmatprep.mubr.bf16.mxu0 %v15775_v34  ;;  %10926 = vmatprep.mubr.bf16.mxu1 %v15775_v34  ;;  %v15873_v34 = vld [vmem:[%s17272_s7 + $0xe0c] ss:$16 sps:$4 sm:$0xff]  }
 0x1c2   : > { %9073 = vmatpush1.bf16.msra.mxu0 %v15769_v35  ;;  %10994 = vmatpush1.bf16.msra.mxu1 %v15772_v36  ;;  %v15865_v35 = vld [vmem:[%s19418_s0 + $0x30] ss:$136 sps:$4 sm:$0xff]  }
 0x1c3   : > { %9074 = vmatprep.subr.bf16.mxu0 %v15780_v37  ;;  %10995 = vmatprep.subr.bf16.mxu1 %v15783_v38  ;;  %v15868_v36 = vld [vmem:[%s17272_s7 + $0xe00] ss:$16 sps:$4 sm:$0xff]   ;;  %v15871_v37 = vld [vmem:[%s17272_s7 + $0xe08] ss:$16 sps:$4 sm:$0xff]   ;;  %v15876_v38 = vld [vmem:[%s17272_s7 + $0xe24] ss:$16 sps:$4 sm:$0xff]  }
 0x1c5   : > { %9006 = vmatmul.mubr.bf16.gmra.mrb[8].mxu0 %v15777_v39  ;;  %10927 = vmatmul.mubr.bf16.gmra.mrb[8].mxu1 %v15777_v39  ;;  %v15879_v39 = vld [vmem:[%s17272_s7 + $0xe2c] ss:$16 sps:$4 sm:$0xff]  }
 0x1c6   : > { %9075 = vmatpush1.bf16.msra.mxu0 %v15778_v40  ;;  %10996 = vmatpush1.bf16.msra.mxu1 %v15781_v41  ;;  %v15880_v40 = vld [vmem:[%s19418_s0 + $0x144] ss:$136 sps:$4 sm:$0xff]   ;;  %v15874_v41 = vld [vmem:[%s17272_s7 + $0xe20] ss:$16 sps:$4 sm:$0xff]  }
 0x1c7   : > { %9076 = vmatprep.subr.bf16.mxu0 %v15786_v42  ;;  %10997 = vmatprep.subr.bf16.mxu1 %v15789_v43  ;;  %v15877_v42 = vld [vmem:[%s17272_s7 + $0xe28] ss:$16 sps:$4 sm:$0xff]   ;;  %v15885_v43 = vld [vmem:[%s17272_s7 + $0xe44] ss:$16 sps:$4 sm:$0xff]  }
 0x1c8   : > { %9015 = vmatprep.mubr.bf16.mxu0 %v15790_v44  ;;  %10936 = vmatprep.mubr.bf16.mxu1 %v15790_v44  ;;  %v15888_v44 = vld [vmem:[%s17272_s7 + $0xe4c] ss:$16 sps:$4 sm:$0xff]  }
 0x1ca   : > { %9077 = vmatpush1.bf16.msra.mxu0 %v15784_v45  ;;  %10998 = vmatpush1.bf16.msra.mxu1 %v15787_v46  ;;  %v15882_v45 = vld [vmem:[%s19418_s0 + $0x140] ss:$136 sps:$4 sm:$0xff]  }
 0x1cb   : > { %9078 = vmatprep.subr.bf16.mxu0 %v15795_v47  ;;  %10999 = vmatprep.subr.bf16.mxu1 %v15798_v48  ;;  %v15883_v46 = vld [vmem:[%s17272_s7 + $0xe40] ss:$16 sps:$4 sm:$0xff]   ;;  %v15886_v47 = vld [vmem:[%s17272_s7 + $0xe48] ss:$16 sps:$4 sm:$0xff]   ;;  %v15891_v48 = vld [vmem:[%s17272_s7 + $0xe64] ss:$16 sps:$4 sm:$0xff]  }
 0x1cd   : > { %9016 = vmatmul.mubr.bf16.gmra.mrb[12].mxu0 %v15792_v49  ;;  %10937 = vmatmul.mubr.bf16.gmra.mrb[12].mxu1 %v15792_v49  ;;  %v15894_v49 = vld [vmem:[%s17272_s7 + $0xe6c] ss:$16 sps:$4 sm:$0xff]  }
 0x1ce   : > { %9079 = vmatpush1.bf16.msra.mxu0 %v15793_v50  ;;  %11000 = vmatpush1.bf16.msra.mxu1 %v15796_v51  ;;  %v15895_v50 = vld [vmem:[%s19418_s0 + $0x254] ss:$136 sps:$4 sm:$0xff]   ;;  %v15889_v51 = vld [vmem:[%s17272_s7 + $0xe60] ss:$16 sps:$4 sm:$0xff]  }
 0x1cf   : > { %9080 = vmatprep.subr.bf16.mxu0 %v15801_v52  ;;  %11001 = vmatprep.subr.bf16.mxu1 %v15804_v53  ;;  %v15892_v52 = vld [vmem:[%s17272_s7 + $0xe68] ss:$16 sps:$4 sm:$0xff]   ;;  %v15900_v53 = vld [vmem:[%s17272_s7 + $0xe84] ss:$16 sps:$4 sm:$0xff]  }
 0x1d0   : > { %9025 = vmatprep.mubr.bf16.mxu0 %v15805_v54  ;;  %10946 = vmatprep.mubr.bf16.mxu1 %v15805_v54  ;;  %v15903_v54 = vld [vmem:[%s17272_s7 + $0xe8c] ss:$16 sps:$4 sm:$0xff]  }
 0x1d2   : > { %9081 = vmatpush1.bf16.msra.mxu0 %v15799_v55  ;;  %11002 = vmatpush1.bf16.msra.mxu1 %v15802_v56  ;;  %v15897_v55 = vld [vmem:[%s19418_s0 + $0x250] ss:$136 sps:$4 sm:$0xff]  }
 0x1d3   : > { %9082 = vmatprep.subr.bf16.mxu0 %v15810_v57  ;;  %11003 = vmatprep.subr.bf16.mxu1 %v15813_v58  ;;  %v15898_v56 = vld [vmem:[%s17272_s7 + $0xe80] ss:$16 sps:$4 sm:$0xff]   ;;  %v15901_v57 = vld [vmem:[%s17272_s7 + $0xe88] ss:$16 sps:$4 sm:$0xff]   ;;  %v15906_v58 = vld [vmem:[%s17272_s7 + $0xea4] ss:$16 sps:$4 sm:$0xff]  }
 0x1d5   : > { %9026 = vmatmul.mubr.bf16.gmra.mrb[16].mxu0 %v15807_v59  ;;  %10947 = vmatmul.mubr.bf16.gmra.mrb[16].mxu1 %v15807_v59  ;;  %v15909_v59 = vld [vmem:[%s17272_s7 + $0xeac] ss:$16 sps:$4 sm:$0xff]  }
 0x1d6   : > { %9083 = vmatpush1.bf16.msra.mxu0 %v15808_v60  ;;  %11004 = vmatpush1.bf16.msra.mxu1 %v15811_v61  ;;  %v15910_v60 = vld [vmem:[%s19418_s0 + $0x364] ss:$136 sps:$4 sm:$0xff]   ;;  %v15904_v61 = vld [vmem:[%s17272_s7 + $0xea0] ss:$16 sps:$4 sm:$0xff]  }
 0x1d7   : > { %9084 = vmatprep.subr.bf16.mxu0 %v15816_v62  ;;  %11005 = vmatprep.subr.bf16.mxu1 %v15819_v63  ;;  %v15907_v62 = vld [vmem:[%s17272_s7 + $0xea8] ss:$16 sps:$4 sm:$0xff]   ;;  %v15915_v63 = vld [vmem:[%s17272_s7 + $0xec4] ss:$16 sps:$4 sm:$0xff]  }
 0x1d8   : > { %9035 = vmatprep.mubr.bf16.mxu0 %v15820_v0  ;;  %10956 = vmatprep.mubr.bf16.mxu1 %v15820_v0  ;;  %v15918_v0 = vld [vmem:[%s17272_s7 + $0xecc] ss:$16 sps:$4 sm:$0xff]  }
 0x1da   : > { %9085 = vmatpush1.bf16.msra.mxu0 %v15814_v1  ;;  %11006 = vmatpush1.bf16.msra.mxu1 %v15817_v2  ;;  %v15912_v1 = vld [vmem:[%s19418_s0 + $0x360] ss:$136 sps:$4 sm:$0xff]  }
 0x1db   : > { %9086 = vmatprep.subr.bf16.mxu0 %v15825_v3  ;;  %11007 = vmatprep.subr.bf16.mxu1 %v15828_v4  ;;  %v15913_v2 = vld [vmem:[%s17272_s7 + $0xec0] ss:$16 sps:$4 sm:$0xff]   ;;  %v15916_v3 = vld [vmem:[%s17272_s7 + $0xec8] ss:$16 sps:$4 sm:$0xff]   ;;  %v15921_v4 = vld [vmem:[%s17272_s7 + $0xee4] ss:$16 sps:$4 sm:$0xff]  }
 0x1dd   : > { %9036 = vmatmul.mubr.bf16.gmra.mrb[20].mxu0 %v15822_v5  ;;  %10957 = vmatmul.mubr.bf16.gmra.mrb[20].mxu1 %v15822_v5  ;;  %v15924_v5 = vld [vmem:[%s17272_s7 + $0xeec] ss:$16 sps:$4 sm:$0xff]  }
 0x1de   : > { %9087 = vmatpush1.bf16.msra.mxu0 %v15823_v6  ;;  %11008 = vmatpush1.bf16.msra.mxu1 %v15826_v7  ;;  %v15925_v6 = vld [vmem:[%s19418_s0 + $0x474] ss:$136 sps:$4 sm:$0xff]   ;;  %v15919_v7 = vld [vmem:[%s17272_s7 + $0xee0] ss:$16 sps:$4 sm:$0xff]  }
 0x1df   : > { %9088 = vmatprep.subr.bf16.mxu0 %v15831_v8  ;;  %11009 = vmatprep.subr.bf16.mxu1 %v15834_v9  ;;  %v15922_v8 = vld [vmem:[%s17272_s7 + $0xee8] ss:$16 sps:$4 sm:$0xff]   ;;  %v15930_v9 = vld [vmem:[%s17272_s7 + $0xf04] ss:$16 sps:$4 sm:$0xff]  }
 0x1e0   : > { %9045 = vmatprep.mubr.bf16.mxu0 %v15835_v10  ;;  %10966 = vmatprep.mubr.bf16.mxu1 %v15835_v10  ;;  %v15933_v10 = vld [vmem:[%s17272_s7 + $0xf0c] ss:$16 sps:$4 sm:$0xff]  }
 0x1e2   : > { %9089 = vmatpush1.bf16.msra.mxu0 %v15829_v11  ;;  %11010 = vmatpush1.bf16.msra.mxu1 %v15832_v12  ;;  %v15927_v11 = vld [vmem:[%s19418_s0 + $0x470] ss:$136 sps:$4 sm:$0xff]  }
 0x1e3   : > { %9090 = vmatprep.subr.bf16.mxu0 %v15840_v13  ;;  %11011 = vmatprep.subr.bf16.mxu1 %v15843_v14  ;;  %v15928_v12 = vld [vmem:[%s17272_s7 + $0xf00] ss:$16 sps:$4 sm:$0xff]   ;;  %v15931_v13 = vld [vmem:[%s17272_s7 + $0xf08] ss:$16 sps:$4 sm:$0xff]   ;;  %v15936_v14 = vld [vmem:[%s17272_s7 + $0xf24] ss:$16 sps:$4 sm:$0xff]  }
 0x1e5   : > { %9046 = vmatmul.mubr.bf16.gmra.mrb[24].mxu0 %v15837_v15  ;;  %10967 = vmatmul.mubr.bf16.gmra.mrb[24].mxu1 %v15837_v15  ;;  %v15939_v15 = vld [vmem:[%s17272_s7 + $0xf2c] ss:$16 sps:$4 sm:$0xff]  }
 0x1e6   : > { %9091 = vmatpush1.bf16.msra.mxu0 %v15838_v16  ;;  %11012 = vmatpush1.bf16.msra.mxu1 %v15841_v17  ;;  %v15940_v16 = vld [vmem:[%s19418_s0 + $0x584] ss:$136 sps:$4 sm:$0xff]   ;;  %v15934_v17 = vld [vmem:[%s17272_s7 + $0xf20] ss:$16 sps:$4 sm:$0xff]  }
 0x1e7   : > { %9092 = vmatprep.subr.bf16.mxu0 %v15846_v18  ;;  %11013 = vmatprep.subr.bf16.mxu1 %v15849_v19  ;;  %v15937_v18 = vld [vmem:[%s17272_s7 + $0xf28] ss:$16 sps:$4 sm:$0xff]   ;;  %v15945_v19 = vld [vmem:[%s17272_s7 + $0xf44] ss:$16 sps:$4 sm:$0xff]  }
 0x1e8   : > { %9055 = vmatprep.mubr.bf16.mxu0 %v15850_v20  ;;  %10976 = vmatprep.mubr.bf16.mxu1 %v15850_v20  ;;  %v15948_v20 = vld [vmem:[%s17272_s7 + $0xf4c] ss:$16 sps:$4 sm:$0xff]  }
 0x1ea   : > { %9093 = vmatpush1.bf16.msra.mxu0 %v15844_v21  ;;  %11014 = vmatpush1.bf16.msra.mxu1 %v15847_v22  ;;  %v15942_v21 = vld [vmem:[%s19418_s0 + $0x580] ss:$136 sps:$4 sm:$0xff]  }
 0x1eb   : > { %9094 = vmatprep.subr.bf16.mxu0 %v15855_v23  ;;  %11015 = vmatprep.subr.bf16.mxu1 %v15858_v24  ;;  %v15943_v22 = vld [vmem:[%s17272_s7 + $0xf40] ss:$16 sps:$4 sm:$0xff]   ;;  %v15946_v23 = vld [vmem:[%s17272_s7 + $0xf48] ss:$16 sps:$4 sm:$0xff]   ;;  %v15951_v24 = vld [vmem:[%s17272_s7 + $0xf64] ss:$16 sps:$4 sm:$0xff]  }
 0x1ed   : > { %9056 = vmatmul.mubr.bf16.gmra.mrb[28].mxu0 %v15852_v25  ;;  %10977 = vmatmul.mubr.bf16.gmra.mrb[28].mxu1 %v15852_v25  ;;  %v15954_v25 = vld [vmem:[%s17272_s7 + $0xf6c] ss:$16 sps:$4 sm:$0xff]  }
 0x1ee   : > { %9095 = vmatpush1.bf16.msra.mxu0 %v15853_v26  ;;  %11016 = vmatpush1.bf16.msra.mxu1 %v15856_v27  ;;  %v15955_v26 = vld [vmem:[%s19418_s0 + $0x694] ss:$136 sps:$4 sm:$0xff]   ;;  %v15949_v27 = vld [vmem:[%s17272_s7 + $0xf60] ss:$16 sps:$4 sm:$0xff]  }
 0x1ef   : > { %9096 = vmatprep.subr.bf16.mxu0 %v15861_v28  ;;  %11017 = vmatprep.subr.bf16.mxu1 %v15864_v29  ;;  %v15952_v28 = vld [vmem:[%s17272_s7 + $0xf68] ss:$16 sps:$4 sm:$0xff]   ;;  %v15960_v29 = vld [vmem:[%s17272_s7 + $0xf84] ss:$16 sps:$4 sm:$0xff]  }
 0x1f0   : > { %9098 = vmatprep.mubr.bf16.mxu0 %v15867_v30  ;;  %11019 = vmatprep.mubr.bf16.mxu1 %v15867_v30  ;;  %v15963_v30 = vld [vmem:[%s17272_s7 + $0xf8c] ss:$16 sps:$4 sm:$0xff]  }
 0x1f2   : > { %9097 = vmatpush1.bf16.msra.mxu0 %v15859_v31  ;;  %11018 = vmatpush1.bf16.msra.mxu1 %v15862_v32  ;;  %v15957_v31 = vld [vmem:[%s19418_s0 + $0x690] ss:$136 sps:$4 sm:$0xff]  }
 0x1f3   : > { %9179 = vmatprep.subr.bf16.mxu0 %v15870_v33  ;;  %11100 = vmatprep.subr.bf16.mxu1 %v15873_v34  ;;  %v15958_v32 = vld [vmem:[%s17272_s7 + $0xf80] ss:$16 sps:$4 sm:$0xff]   ;;  %v15961_v33 = vld [vmem:[%s17272_s7 + $0xf88] ss:$16 sps:$4 sm:$0xff]   ;;  %v15966_v34 = vld [vmem:[%s17272_s7 + $0xfa4] ss:$16 sps:$4 sm:$0xff]  }
 0x1f5   : > { %9099 = vmatmul.mubr.bf16.vlgmr.msra.gmra.mrb[0].mxu0 %v15865_v35  ;;  %11020 = vmatmul.mubr.bf16.vlgmr.msra.gmra.mrb[0].mxu1 %v15865_v35  ;;  %v15969_v35 = vld [vmem:[%s17272_s7 + $0xfac] ss:$16 sps:$4 sm:$0xff]  }
 0x1f6   : > { %9180 = vmatpush1.bf16.msra.mxu0 %v15868_v36  ;;  %11101 = vmatpush1.bf16.msra.mxu1 %v15871_v37  ;;  %v15970_v36 = vld [vmem:[%s19418_s0 + $0x7a4] ss:$136 sps:$4 sm:$0xff]   ;;  %v15964_v37 = vld [vmem:[%s17272_s7 + $0xfa0] ss:$16 sps:$4 sm:$0xff]  }
 0x1f7   : > { %9181 = vmatprep.subr.bf16.mxu0 %v15876_v38  ;;  %11102 = vmatprep.subr.bf16.mxu1 %v15879_v39  ;;  %v15967_v38 = vld [vmem:[%s17272_s7 + $0xfa8] ss:$16 sps:$4 sm:$0xff]   ;;  %v15975_v39 = vld [vmem:[%s17272_s7 + $0xfc4] ss:$16 sps:$4 sm:$0xff]  }
 0x1f8   : > { %9108 = vmatprep.mubr.bf16.mxu0 %v15880_v40  ;;  %11029 = vmatprep.mubr.bf16.mxu1 %v15880_v40  ;;  %v15978_v40 = vld [vmem:[%s17272_s7 + $0xfcc] ss:$16 sps:$4 sm:$0xff]  }
 0x1fa   : > { %9182 = vmatpush1.bf16.msra.mxu0 %v15874_v41  ;;  %11103 = vmatpush1.bf16.msra.mxu1 %v15877_v42  ;;  %v15972_v41 = vld [vmem:[%s19418_s0 + $0x7a0] ss:$136 sps:$4 sm:$0xff]  }
 0x1fb   : > { %9183 = vmatprep.subr.bf16.mxu0 %v15885_v43  ;;  %11104 = vmatprep.subr.bf16.mxu1 %v15888_v44  ;;  %v15973_v42 = vld [vmem:[%s17272_s7 + $0xfc0] ss:$16 sps:$4 sm:$0xff]   ;;  %v15976_v43 = vld [vmem:[%s17272_s7 + $0xfc8] ss:$16 sps:$4 sm:$0xff]   ;;  %v15981_v44 = vld [vmem:[%s17272_s7 + $0xfe4] ss:$16 sps:$4 sm:$0xff]  }
 0x1fd   : > { %9109 = vmatmul.mubr.bf16.gmra.mrb[4].mxu0 %v15882_v45  ;;  %11030 = vmatmul.mubr.bf16.gmra.mrb[4].mxu1 %v15882_v45  ;;  %v15984_v45 = vld [vmem:[%s17272_s7 + $0xfec] ss:$16 sps:$4 sm:$0xff]  }
 0x1fe   : > { %9184 = vmatpush1.bf16.msra.mxu0 %v15883_v46  ;;  %11105 = vmatpush1.bf16.msra.mxu1 %v15886_v47  ;;  %v15987_v46 = vld [vmem:[%s19418_s0 + $0x3c] ss:$136 sps:$4 sm:$0xff]   ;;  %v15979_v47 = vld [vmem:[%s17272_s7 + $0xfe0] ss:$16 sps:$4 sm:$0xff]  }
 0x1ff   : > { %9185 = vmatprep.subr.bf16.mxu0 %v15891_v48  ;;  %11106 = vmatprep.subr.bf16.mxu1 %v15894_v49  ;;  %v15982_v48 = vld [vmem:[%s17272_s7 + $0xfe8] ss:$16 sps:$4 sm:$0xff]   ;;  %v15990_v49 = vld [vmem:[%s17272_s7 + $0x1004] ss:$16 sps:$4 sm:$0xff]  }
 0x200   : > { %9118 = vmatprep.mubr.bf16.mxu0 %v15895_v50  ;;  %11039 = vmatprep.mubr.bf16.mxu1 %v15895_v50  ;;  %v15993_v50 = vld [vmem:[%s17272_s7 + $0x100c] ss:$16 sps:$4 sm:$0xff]  }
 0x202   : > { %9186 = vmatpush1.bf16.msra.mxu0 %v15889_v51  ;;  %11107 = vmatpush1.bf16.msra.mxu1 %v15892_v52  ;;  %v15985_v51 = vld [vmem:[%s19418_s0 + $0x38] ss:$136 sps:$4 sm:$0xff]  }
 0x203   : > { %9187 = vmatprep.subr.bf16.mxu0 %v15900_v53  ;;  %11108 = vmatprep.subr.bf16.mxu1 %v15903_v54  ;;  %v15988_v52 = vld [vmem:[%s17272_s7 + $0x1000] ss:$16 sps:$4 sm:$0xff]   ;;  %v15991_v53 = vld [vmem:[%s17272_s7 + $0x1008] ss:$16 sps:$4 sm:$0xff]   ;;  %v15996_v54 = vld [vmem:[%s17272_s7 + $0x1024] ss:$16 sps:$4 sm:$0xff]  }
 0x205   : > { %9119 = vmatmul.mubr.bf16.gmra.mrb[8].mxu0 %v15897_v55  ;;  %11040 = vmatmul.mubr.bf16.gmra.mrb[8].mxu1 %v15897_v55  ;;  %v15999_v55 = vld [vmem:[%s17272_s7 + $0x102c] ss:$16 sps:$4 sm:$0xff]  }
 0x206   : > { %9188 = vmatpush1.bf16.msra.mxu0 %v15898_v56  ;;  %11109 = vmatpush1.bf16.msra.mxu1 %v15901_v57  ;;  %v16000_v56 = vld [vmem:[%s19418_s0 + $0x14c] ss:$136 sps:$4 sm:$0xff]   ;;  %v15994_v57 = vld [vmem:[%s17272_s7 + $0x1020] ss:$16 sps:$4 sm:$0xff]  }
 0x207   : > { %9189 = vmatprep.subr.bf16.mxu0 %v15906_v58  ;;  %11110 = vmatprep.subr.bf16.mxu1 %v15909_v59  ;;  %v15997_v58 = vld [vmem:[%s17272_s7 + $0x1028] ss:$16 sps:$4 sm:$0xff]   ;;  %v16005_v59 = vld [vmem:[%s17272_s7 + $0x1044] ss:$16 sps:$4 sm:$0xff]  }
 0x208   : > { %9128 = vmatprep.mubr.bf16.mxu0 %v15910_v60  ;;  %11049 = vmatprep.mubr.bf16.mxu1 %v15910_v60  ;;  %v16008_v60 = vld [vmem:[%s17272_s7 + $0x104c] ss:$16 sps:$4 sm:$0xff]  }
 0x20a   : > { %9190 = vmatpush1.bf16.msra.mxu0 %v15904_v61  ;;  %11111 = vmatpush1.bf16.msra.mxu1 %v15907_v62  ;;  %v16002_v61 = vld [vmem:[%s19418_s0 + $0x148] ss:$136 sps:$4 sm:$0xff]  }
 0x20b   : > { %9191 = vmatprep.subr.bf16.mxu0 %v15915_v63  ;;  %11112 = vmatprep.subr.bf16.mxu1 %v15918_v0  ;;  %v16003_v62 = vld [vmem:[%s17272_s7 + $0x1040] ss:$16 sps:$4 sm:$0xff]   ;;  %v16006_v63 = vld [vmem:[%s17272_s7 + $0x1048] ss:$16 sps:$4 sm:$0xff]   ;;  %v16011_v0 = vld [vmem:[%s17272_s7 + $0x1064] ss:$16 sps:$4 sm:$0xff]  }
 0x20d   : > { %9129 = vmatmul.mubr.bf16.gmra.mrb[12].mxu0 %v15912_v1  ;;  %11050 = vmatmul.mubr.bf16.gmra.mrb[12].mxu1 %v15912_v1  ;;  %v16014_v1 = vld [vmem:[%s17272_s7 + $0x106c] ss:$16 sps:$4 sm:$0xff]  }
 0x20e   : > { %9192 = vmatpush1.bf16.msra.mxu0 %v15913_v2  ;;  %11113 = vmatpush1.bf16.msra.mxu1 %v15916_v3  ;;  %v16015_v2 = vld [vmem:[%s19418_s0 + $0x25c] ss:$136 sps:$4 sm:$0xff]   ;;  %v16009_v3 = vld [vmem:[%s17272_s7 + $0x1060] ss:$16 sps:$4 sm:$0xff]  }
 0x20f   : > { %9193 = vmatprep.subr.bf16.mxu0 %v15921_v4  ;;  %11114 = vmatprep.subr.bf16.mxu1 %v15924_v5  ;;  %v16012_v4 = vld [vmem:[%s17272_s7 + $0x1068] ss:$16 sps:$4 sm:$0xff]   ;;  %v16020_v5 = vld [vmem:[%s17272_s7 + $0x1084] ss:$16 sps:$4 sm:$0xff]  }
 0x210   : > { %9138 = vmatprep.mubr.bf16.mxu0 %v15925_v6  ;;  %11059 = vmatprep.mubr.bf16.mxu1 %v15925_v6  ;;  %v16023_v6 = vld [vmem:[%s17272_s7 + $0x108c] ss:$16 sps:$4 sm:$0xff]  }
 0x212   : > { %9194 = vmatpush1.bf16.msra.mxu0 %v15919_v7  ;;  %11115 = vmatpush1.bf16.msra.mxu1 %v15922_v8  ;;  %v16017_v7 = vld [vmem:[%s19418_s0 + $0x258] ss:$136 sps:$4 sm:$0xff]  }
 0x213   : > { %9195 = vmatprep.subr.bf16.mxu0 %v15930_v9  ;;  %11116 = vmatprep.subr.bf16.mxu1 %v15933_v10  ;;  %v16018_v8 = vld [vmem:[%s17272_s7 + $0x1080] ss:$16 sps:$4 sm:$0xff]   ;;  %v16021_v9 = vld [vmem:[%s17272_s7 + $0x1088] ss:$16 sps:$4 sm:$0xff]   ;;  %v16026_v10 = vld [vmem:[%s17272_s7 + $0x10a4] ss:$16 sps:$4 sm:$0xff]  }
 0x215   : > { %9139 = vmatmul.mubr.bf16.gmra.mrb[16].mxu0 %v15927_v11  ;;  %11060 = vmatmul.mubr.bf16.gmra.mrb[16].mxu1 %v15927_v11  ;;  %v16029_v11 = vld [vmem:[%s17272_s7 + $0x10ac] ss:$16 sps:$4 sm:$0xff]  }
 0x216   : > { %9196 = vmatpush1.bf16.msra.mxu0 %v15928_v12  ;;  %11117 = vmatpush1.bf16.msra.mxu1 %v15931_v13  ;;  %v16030_v12 = vld [vmem:[%s19418_s0 + $0x36c] ss:$136 sps:$4 sm:$0xff]   ;;  %v16024_v13 = vld [vmem:[%s17272_s7 + $0x10a0] ss:$16 sps:$4 sm:$0xff]  }
 0x217   : > { %9197 = vmatprep.subr.bf16.mxu0 %v15936_v14  ;;  %11118 = vmatprep.subr.bf16.mxu1 %v15939_v15  ;;  %v16027_v14 = vld [vmem:[%s17272_s7 + $0x10a8] ss:$16 sps:$4 sm:$0xff]   ;;  %v16035_v15 = vld [vmem:[%s17272_s7 + $0x10c4] ss:$16 sps:$4 sm:$0xff]  }
 0x218   : > { %9148 = vmatprep.mubr.bf16.mxu0 %v15940_v16  ;;  %11069 = vmatprep.mubr.bf16.mxu1 %v15940_v16  ;;  %v16038_v16 = vld [vmem:[%s17272_s7 + $0x10cc] ss:$16 sps:$4 sm:$0xff]  }
 0x21a   : > { %9198 = vmatpush1.bf16.msra.mxu0 %v15934_v17  ;;  %11119 = vmatpush1.bf16.msra.mxu1 %v15937_v18  ;;  %v16032_v17 = vld [vmem:[%s19418_s0 + $0x368] ss:$136 sps:$4 sm:$0xff]  }
 0x21b   : > { %9199 = vmatprep.subr.bf16.mxu0 %v15945_v19  ;;  %11120 = vmatprep.subr.bf16.mxu1 %v15948_v20  ;;  %v16033_v18 = vld [vmem:[%s17272_s7 + $0x10c0] ss:$16 sps:$4 sm:$0xff]   ;;  %v16036_v19 = vld [vmem:[%s17272_s7 + $0x10c8] ss:$16 sps:$4 sm:$0xff]   ;;  %v16041_v20 = vld [vmem:[%s17272_s7 + $0x10e4] ss:$16 sps:$4 sm:$0xff]  }
 0x21d   : > { %9149 = vmatmul.mubr.bf16.gmra.mrb[20].mxu0 %v15942_v21  ;;  %11070 = vmatmul.mubr.bf16.gmra.mrb[20].mxu1 %v15942_v21  ;;  %v16044_v21 = vld [vmem:[%s17272_s7 + $0x10ec] ss:$16 sps:$4 sm:$0xff]  }
 0x21e   : > { %9200 = vmatpush1.bf16.msra.mxu0 %v15943_v22  ;;  %11121 = vmatpush1.bf16.msra.mxu1 %v15946_v23  ;;  %v16045_v22 = vld [vmem:[%s19418_s0 + $0x47c] ss:$136 sps:$4 sm:$0xff]   ;;  %v16039_v23 = vld [vmem:[%s17272_s7 + $0x10e0] ss:$16 sps:$4 sm:$0xff]  }
 0x21f   : > { %9201 = vmatprep.subr.bf16.mxu0 %v15951_v24  ;;  %11122 = vmatprep.subr.bf16.mxu1 %v15954_v25  ;;  %v16042_v24 = vld [vmem:[%s17272_s7 + $0x10e8] ss:$16 sps:$4 sm:$0xff]   ;;  %v16050_v25 = vld [vmem:[%s17272_s7 + $0x1104] ss:$16 sps:$4 sm:$0xff]  }
 0x220   : > { %9158 = vmatprep.mubr.bf16.mxu0 %v15955_v26  ;;  %11079 = vmatprep.mubr.bf16.mxu1 %v15955_v26  ;;  %v16053_v26 = vld [vmem:[%s17272_s7 + $0x110c] ss:$16 sps:$4 sm:$0xff]  }
 0x222   : > { %9202 = vmatpush1.bf16.msra.mxu0 %v15949_v27  ;;  %11123 = vmatpush1.bf16.msra.mxu1 %v15952_v28  ;;  %v16047_v27 = vld [vmem:[%s19418_s0 + $0x478] ss:$136 sps:$4 sm:$0xff]  }
 0x223   : > { %9203 = vmatprep.subr.bf16.mxu0 %v15960_v29  ;;  %11124 = vmatprep.subr.bf16.mxu1 %v15963_v30  ;;  %v16048_v28 = vld [vmem:[%s17272_s7 + $0x1100] ss:$16 sps:$4 sm:$0xff]   ;;  %v16051_v29 = vld [vmem:[%s17272_s7 + $0x1108] ss:$16 sps:$4 sm:$0xff]   ;;  %v16056_v30 = vld [vmem:[%s17272_s7 + $0x1124] ss:$16 sps:$4 sm:$0xff]  }
 0x225   : > { %9159 = vmatmul.mubr.bf16.gmra.mrb[24].mxu0 %v15957_v31  ;;  %11080 = vmatmul.mubr.bf16.gmra.mrb[24].mxu1 %v15957_v31  ;;  %v16059_v31 = vld [vmem:[%s17272_s7 + $0x112c] ss:$16 sps:$4 sm:$0xff]  }
 0x226   : > { %9204 = vmatpush1.bf16.msra.mxu0 %v15958_v32  ;;  %11125 = vmatpush1.bf16.msra.mxu1 %v15961_v33  ;;  %v16060_v32 = vld [vmem:[%s19418_s0 + $0x58c] ss:$136 sps:$4 sm:$0xff]   ;;  %v16054_v33 = vld [vmem:[%s17272_s7 + $0x1120] ss:$16 sps:$4 sm:$0xff]  }
 0x227   : > { %9205 = vmatprep.subr.bf16.mxu0 %v15966_v34  ;;  %11126 = vmatprep.subr.bf16.mxu1 %v15969_v35  ;;  %v16057_v34 = vld [vmem:[%s17272_s7 + $0x1128] ss:$16 sps:$4 sm:$0xff]   ;;  %v16065_v35 = vld [vmem:[%s17272_s7 + $0x1144] ss:$16 sps:$4 sm:$0xff]  }
 0x228   : > { %9168 = vmatprep.mubr.bf16.mxu0 %v15970_v36  ;;  %11089 = vmatprep.mubr.bf16.mxu1 %v15970_v36  ;;  %v16068_v36 = vld [vmem:[%s17272_s7 + $0x114c] ss:$16 sps:$4 sm:$0xff]  }
 0x22a   : > { %9206 = vmatpush1.bf16.msra.mxu0 %v15964_v37  ;;  %11127 = vmatpush1.bf16.msra.mxu1 %v15967_v38  ;;  %v16062_v37 = vld [vmem:[%s19418_s0 + $0x588] ss:$136 sps:$4 sm:$0xff]  }
 0x22b   : > { %9207 = vmatprep.subr.bf16.mxu0 %v15975_v39  ;;  %11128 = vmatprep.subr.bf16.mxu1 %v15978_v40  ;;  %v16063_v38 = vld [vmem:[%s17272_s7 + $0x1140] ss:$16 sps:$4 sm:$0xff]   ;;  %v16066_v39 = vld [vmem:[%s17272_s7 + $0x1148] ss:$16 sps:$4 sm:$0xff]   ;;  %v16071_v40 = vld [vmem:[%s17272_s7 + $0x1164] ss:$16 sps:$4 sm:$0xff]  }
 0x22d   : > { %9169 = vmatmul.mubr.bf16.gmra.mrb[28].mxu0 %v15972_v41  ;;  %11090 = vmatmul.mubr.bf16.gmra.mrb[28].mxu1 %v15972_v41  ;;  %v16074_v41 = vld [vmem:[%s17272_s7 + $0x116c] ss:$16 sps:$4 sm:$0xff]  }
 0x22e   : > { %9208 = vmatpush1.bf16.msra.mxu0 %v15973_v42  ;;  %11129 = vmatpush1.bf16.msra.mxu1 %v15976_v43  ;;  %v16075_v42 = vld [vmem:[%s19418_s0 + $0x69c] ss:$136 sps:$4 sm:$0xff]   ;;  %v16069_v43 = vld [vmem:[%s17272_s7 + $0x1160] ss:$16 sps:$4 sm:$0xff]  }
 0x22f   : > { %9209 = vmatprep.subr.bf16.mxu0 %v15981_v44  ;;  %11130 = vmatprep.subr.bf16.mxu1 %v15984_v45  ;;  %v16072_v44 = vld [vmem:[%s17272_s7 + $0x1168] ss:$16 sps:$4 sm:$0xff]   ;;  %v16080_v45 = vld [vmem:[%s17272_s7 + $0x1184] ss:$16 sps:$4 sm:$0xff]  }
 0x230   : > { %9211 = vmatprep.mubr.bf16.mxu0 %v15987_v46  ;;  %11132 = vmatprep.mubr.bf16.mxu1 %v15987_v46  ;;  %v16083_v46 = vld [vmem:[%s17272_s7 + $0x118c] ss:$16 sps:$4 sm:$0xff]  }
 0x232   : > { %9210 = vmatpush1.bf16.msra.mxu0 %v15979_v47  ;;  %11131 = vmatpush1.bf16.msra.mxu1 %v15982_v48  ;;  %v16077_v47 = vld [vmem:[%s19418_s0 + $0x698] ss:$136 sps:$4 sm:$0xff]  }
 0x233   : > { %9292 = vmatprep.subr.bf16.mxu0 %v15990_v49  ;;  %11213 = vmatprep.subr.bf16.mxu1 %v15993_v50  ;;  %v16078_v48 = vld [vmem:[%s17272_s7 + $0x1180] ss:$16 sps:$4 sm:$0xff]   ;;  %v16081_v49 = vld [vmem:[%s17272_s7 + $0x1188] ss:$16 sps:$4 sm:$0xff]   ;;  %v16086_v50 = vld [vmem:[%s17272_s7 + $0x11a4] ss:$16 sps:$4 sm:$0xff]  }
 0x235   : > { %9212 = vmatmul.mubr.bf16.vlgmr.msra.gmra.mrb[0].mxu0 %v15985_v51  ;;  %11133 = vmatmul.mubr.bf16.vlgmr.msra.gmra.mrb[0].mxu1 %v15985_v51  ;;  %v16089_v51 = vld [vmem:[%s17272_s7 + $0x11ac] ss:$16 sps:$4 sm:$0xff]  }
 0x236   : > { %9293 = vmatpush1.bf16.msra.mxu0 %v15988_v52  ;;  %11214 = vmatpush1.bf16.msra.mxu1 %v15991_v53  ;;  %v16090_v52 = vld [vmem:[%s19418_s0 + $0x7ac] ss:$136 sps:$4 sm:$0xff]   ;;  %v16084_v53 = vld [vmem:[%s17272_s7 + $0x11a0] ss:$16 sps:$4 sm:$0xff]  }
 0x237   : > { %9294 = vmatprep.subr.bf16.mxu0 %v15996_v54  ;;  %11215 = vmatprep.subr.bf16.mxu1 %v15999_v55  ;;  %v16087_v54 = vld [vmem:[%s17272_s7 + $0x11a8] ss:$16 sps:$4 sm:$0xff]   ;;  %v16095_v55 = vld [vmem:[%s17272_s7 + $0x11c4] ss:$16 sps:$4 sm:$0xff]  }
 0x238   : > { %9221 = vmatprep.mubr.bf16.mxu0 %v16000_v56  ;;  %11142 = vmatprep.mubr.bf16.mxu1 %v16000_v56  ;;  %v16098_v56 = vld [vmem:[%s17272_s7 + $0x11cc] ss:$16 sps:$4 sm:$0xff]  }
 0x23a   : > { %9295 = vmatpush1.bf16.msra.mxu0 %v15994_v57  ;;  %11216 = vmatpush1.bf16.msra.mxu1 %v15997_v58  ;;  %v16092_v57 = vld [vmem:[%s19418_s0 + $0x7a8] ss:$136 sps:$4 sm:$0xff]  }
 0x23b   : > { %9296 = vmatprep.subr.bf16.mxu0 %v16005_v59  ;;  %11217 = vmatprep.subr.bf16.mxu1 %v16008_v60  ;;  %v16093_v58 = vld [vmem:[%s17272_s7 + $0x11c0] ss:$16 sps:$4 sm:$0xff]   ;;  %v16096_v59 = vld [vmem:[%s17272_s7 + $0x11c8] ss:$16 sps:$4 sm:$0xff]   ;;  %v16101_v60 = vld [vmem:[%s17272_s7 + $0x11e4] ss:$16 sps:$4 sm:$0xff]  }
 0x23d   : > { %9222 = vmatmul.mubr.bf16.gmra.mrb[4].mxu0 %v16002_v61  ;;  %11143 = vmatmul.mubr.bf16.gmra.mrb[4].mxu1 %v16002_v61  ;;  %v16104_v61 = vld [vmem:[%s17272_s7 + $0x11ec] ss:$16 sps:$4 sm:$0xff]  }
 0x23e   : > { %9297 = vmatpush1.bf16.msra.mxu0 %v16003_v62  ;;  %11218 = vmatpush1.bf16.msra.mxu1 %v16006_v63  ;;  %v16107_v62 = vld [vmem:[%s19418_s0 + $0x44] ss:$136 sps:$4 sm:$0xff]   ;;  %v16099_v63 = vld [vmem:[%s17272_s7 + $0x11e0] ss:$16 sps:$4 sm:$0xff]  }
 0x23f   : > { %9298 = vmatprep.subr.bf16.mxu0 %v16011_v0  ;;  %11219 = vmatprep.subr.bf16.mxu1 %v16014_v1  ;;  %v16102_v0 = vld [vmem:[%s17272_s7 + $0x11e8] ss:$16 sps:$4 sm:$0xff]   ;;  %v16110_v1 = vld [vmem:[%s17272_s7 + $0x1204] ss:$16 sps:$4 sm:$0xff]  }
 0x240   : > { %9231 = vmatprep.mubr.bf16.mxu0 %v16015_v2  ;;  %11152 = vmatprep.mubr.bf16.mxu1 %v16015_v2  ;;  %v16113_v2 = vld [vmem:[%s17272_s7 + $0x120c] ss:$16 sps:$4 sm:$0xff]  }
 0x242   : > { %9299 = vmatpush1.bf16.msra.mxu0 %v16009_v3  ;;  %11220 = vmatpush1.bf16.msra.mxu1 %v16012_v4  ;;  %v16105_v3 = vld [vmem:[%s19418_s0 + $0x40] ss:$136 sps:$4 sm:$0xff]  }
 0x243   : > { %9300 = vmatprep.subr.bf16.mxu0 %v16020_v5  ;;  %11221 = vmatprep.subr.bf16.mxu1 %v16023_v6  ;;  %v16108_v4 = vld [vmem:[%s17272_s7 + $0x1200] ss:$16 sps:$4 sm:$0xff]   ;;  %v16111_v5 = vld [vmem:[%s17272_s7 + $0x1208] ss:$16 sps:$4 sm:$0xff]   ;;  %v16116_v6 = vld [vmem:[%s17272_s7 + $0x1224] ss:$16 sps:$4 sm:$0xff]  }
 0x245   : > { %9232 = vmatmul.mubr.bf16.gmra.mrb[8].mxu0 %v16017_v7  ;;  %11153 = vmatmul.mubr.bf16.gmra.mrb[8].mxu1 %v16017_v7  ;;  %v16119_v7 = vld [vmem:[%s17272_s7 + $0x122c] ss:$16 sps:$4 sm:$0xff]  }
 0x246   : > { %9301 = vmatpush1.bf16.msra.mxu0 %v16018_v8  ;;  %11222 = vmatpush1.bf16.msra.mxu1 %v16021_v9  ;;  %v16120_v8 = vld [vmem:[%s19418_s0 + $0x154] ss:$136 sps:$4 sm:$0xff]   ;;  %v16114_v9 = vld [vmem:[%s17272_s7 + $0x1220] ss:$16 sps:$4 sm:$0xff]  }
 0x247   : > { %9302 = vmatprep.subr.bf16.mxu0 %v16026_v10  ;;  %11223 = vmatprep.subr.bf16.mxu1 %v16029_v11  ;;  %v16117_v10 = vld [vmem:[%s17272_s7 + $0x1228] ss:$16 sps:$4 sm:$0xff]   ;;  %v16125_v11 = vld [vmem:[%s17272_s7 + $0x1244] ss:$16 sps:$4 sm:$0xff]  }
 0x248   : > { %9241 = vmatprep.mubr.bf16.mxu0 %v16030_v12  ;;  %11162 = vmatprep.mubr.bf16.mxu1 %v16030_v12  ;;  %v16128_v12 = vld [vmem:[%s17272_s7 + $0x124c] ss:$16 sps:$4 sm:$0xff]  }
 0x24a   : > { %9303 = vmatpush1.bf16.msra.mxu0 %v16024_v13  ;;  %11224 = vmatpush1.bf16.msra.mxu1 %v16027_v14  ;;  %v16122_v13 = vld [vmem:[%s19418_s0 + $0x150] ss:$136 sps:$4 sm:$0xff]  }
 0x24b   : > { %9304 = vmatprep.subr.bf16.mxu0 %v16035_v15  ;;  %11225 = vmatprep.subr.bf16.mxu1 %v16038_v16  ;;  %v16123_v14 = vld [vmem:[%s17272_s7 + $0x1240] ss:$16 sps:$4 sm:$0xff]   ;;  %v16126_v15 = vld [vmem:[%s17272_s7 + $0x1248] ss:$16 sps:$4 sm:$0xff]   ;;  %v16131_v16 = vld [vmem:[%s17272_s7 + $0x1264] ss:$16 sps:$4 sm:$0xff]  }
 0x24d   : > { %9242 = vmatmul.mubr.bf16.gmra.mrb[12].mxu0 %v16032_v17  ;;  %11163 = vmatmul.mubr.bf16.gmra.mrb[12].mxu1 %v16032_v17  ;;  %v16134_v17 = vld [vmem:[%s17272_s7 + $0x126c] ss:$16 sps:$4 sm:$0xff]  }
 0x24e   : > { %9305 = vmatpush1.bf16.msra.mxu0 %v16033_v18  ;;  %11226 = vmatpush1.bf16.msra.mxu1 %v16036_v19  ;;  %v16135_v18 = vld [vmem:[%s19418_s0 + $0x264] ss:$136 sps:$4 sm:$0xff]   ;;  %v16129_v19 = vld [vmem:[%s17272_s7 + $0x1260] ss:$16 sps:$4 sm:$0xff]  }
 0x24f   : > { %9306 = vmatprep.subr.bf16.mxu0 %v16041_v20  ;;  %11227 = vmatprep.subr.bf16.mxu1 %v16044_v21  ;;  %v16132_v20 = vld [vmem:[%s17272_s7 + $0x1268] ss:$16 sps:$4 sm:$0xff]  }
 0x250   : > { %9251 = vmatprep.mubr.bf16.mxu0 %v16045_v22  ;;  %11172 = vmatprep.mubr.bf16.mxu1 %v16045_v22  ;;  %v16137_v21 = vld [vmem:[%s19418_s0 + $0x260] ss:$136 sps:$4 sm:$0xff]   ;;  %v16140_v22 = vld [vmem:[%s17272_s7 + $0x1284] ss:$16 sps:$4 sm:$0xff]  }
 0x252   : > { %9307 = vmatpush1.bf16.msra.mxu0 %v16039_v23  ;;  %11228 = vmatpush1.bf16.msra.mxu1 %v16042_v24  ;;  %v16143_v23 = vld [vmem:[%s17272_s7 + $0x128c] ss:$16 sps:$4 sm:$0xff]   ;;  %v16138_v24 = vld [vmem:[%s17272_s7 + $0x1280] ss:$16 sps:$4 sm:$0xff]  }
 0x253   : > { %9308 = vmatprep.subr.bf16.mxu0 %v16050_v25  ;;  %11229 = vmatprep.subr.bf16.mxu1 %v16053_v26  ;;  %v16141_v25 = vld [vmem:[%s17272_s7 + $0x1288] ss:$16 sps:$4 sm:$0xff]   ;;  %v16146_v26 = vld [vmem:[%s17272_s7 + $0x12a4] ss:$16 sps:$4 sm:$0xff]  }
 0x255   : > { %9252 = vmatmul.mubr.bf16.gmra.mrb[16].mxu0 %v16047_v27  ;;  %11173 = vmatmul.mubr.bf16.gmra.mrb[16].mxu1 %v16047_v27  ;;  %v16149_v27 = vld [vmem:[%s17272_s7 + $0x12ac] ss:$16 sps:$4 sm:$0xff]  }
 0x256   : > { %9309 = vmatpush1.bf16.msra.mxu0 %v16048_v28  ;;  %11230 = vmatpush1.bf16.msra.mxu1 %v16051_v29  ;;  %v16150_v28 = vld [vmem:[%s19418_s0 + $0x374] ss:$136 sps:$4 sm:$0xff]   ;;  %v16144_v29 = vld [vmem:[%s17272_s7 + $0x12a0] ss:$16 sps:$4 sm:$0xff]  }
 0x257   : > { %9310 = vmatprep.subr.bf16.mxu0 %v16056_v30  ;;  %11231 = vmatprep.subr.bf16.mxu1 %v16059_v31  ;;  %v16147_v30 = vld [vmem:[%s17272_s7 + $0x12a8] ss:$16 sps:$4 sm:$0xff]  }
 0x258   : > { %9261 = vmatprep.mubr.bf16.mxu0 %v16060_v32  ;;  %11182 = vmatprep.mubr.bf16.mxu1 %v16060_v32  ;;  %v16152_v31 = vld [vmem:[%s19418_s0 + $0x370] ss:$136 sps:$4 sm:$0xff]   ;;  %v16155_v32 = vld [vmem:[%s17272_s7 + $0x12c4] ss:$16 sps:$4 sm:$0xff]  }
 0x25a   : > { %9311 = vmatpush1.bf16.msra.mxu0 %v16054_v33  ;;  %11232 = vmatpush1.bf16.msra.mxu1 %v16057_v34  ;;  %v16158_v33 = vld [vmem:[%s17272_s7 + $0x12cc] ss:$16 sps:$4 sm:$0xff]   ;;  %v16153_v34 = vld [vmem:[%s17272_s7 + $0x12c0] ss:$16 sps:$4 sm:$0xff]  }
 0x25b   : > { %9312 = vmatprep.subr.bf16.mxu0 %v16065_v35  ;;  %11233 = vmatprep.subr.bf16.mxu1 %v16068_v36  ;;  %v16156_v35 = vld [vmem:[%s17272_s7 + $0x12c8] ss:$16 sps:$4 sm:$0xff]   ;;  %v16161_v36 = vld [vmem:[%s17272_s7 + $0x12e4] ss:$16 sps:$4 sm:$0xff]  }
 0x25d   : > { %9262 = vmatmul.mubr.bf16.gmra.mrb[20].mxu0 %v16062_v37  ;;  %11183 = vmatmul.mubr.bf16.gmra.mrb[20].mxu1 %v16062_v37  ;;  %v16164_v37 = vld [vmem:[%s17272_s7 + $0x12ec] ss:$16 sps:$4 sm:$0xff]  }
 0x25e   : > { %9313 = vmatpush1.bf16.msra.mxu0 %v16063_v38  ;;  %11234 = vmatpush1.bf16.msra.mxu1 %v16066_v39  ;;  %v16165_v38 = vld [vmem:[%s19418_s0 + $0x484] ss:$136 sps:$4 sm:$0xff]   ;;  %v16159_v39 = vld [vmem:[%s17272_s7 + $0x12e0] ss:$16 sps:$4 sm:$0xff]  }
 0x25f   : > { %9314 = vmatprep.subr.bf16.mxu0 %v16071_v40  ;;  %11235 = vmatprep.subr.bf16.mxu1 %v16074_v41  ;;  %v16162_v40 = vld [vmem:[%s17272_s7 + $0x12e8] ss:$16 sps:$4 sm:$0xff]  }
 0x260   : > { %9271 = vmatprep.mubr.bf16.mxu0 %v16075_v42  ;;  %11192 = vmatprep.mubr.bf16.mxu1 %v16075_v42  ;;  %v16167_v41 = vld [vmem:[%s19418_s0 + $0x480] ss:$136 sps:$4 sm:$0xff]   ;;  %v16170_v42 = vld [vmem:[%s17272_s7 + $0x1304] ss:$16 sps:$4 sm:$0xff]  }
 0x262   : > { %9315 = vmatpush1.bf16.msra.mxu0 %v16069_v43  ;;  %11236 = vmatpush1.bf16.msra.mxu1 %v16072_v44  ;;  %v16173_v43 = vld [vmem:[%s17272_s7 + $0x130c] ss:$16 sps:$4 sm:$0xff]   ;;  %v16168_v44 = vld [vmem:[%s17272_s7 + $0x1300] ss:$16 sps:$4 sm:$0xff]  }
 0x263   : > { %9316 = vmatprep.subr.bf16.mxu0 %v16080_v45  ;;  %11237 = vmatprep.subr.bf16.mxu1 %v16083_v46  ;;  %v16171_v45 = vld [vmem:[%s17272_s7 + $0x1308] ss:$16 sps:$4 sm:$0xff]   ;;  %v16176_v46 = vld [vmem:[%s17272_s7 + $0x1324] ss:$16 sps:$4 sm:$0xff]  }
 0x265   : > { %9272 = vmatmul.mubr.bf16.gmra.mrb[24].mxu0 %v16077_v47  ;;  %11193 = vmatmul.mubr.bf16.gmra.mrb[24].mxu1 %v16077_v47  ;;  %v16179_v47 = vld [vmem:[%s17272_s7 + $0x132c] ss:$16 sps:$4 sm:$0xff]  }
 0x266   : > { %9317 = vmatpush1.bf16.msra.mxu0 %v16078_v48  ;;  %11238 = vmatpush1.bf16.msra.mxu1 %v16081_v49  ;;  %v16180_v48 = vld [vmem:[%s19418_s0 + $0x594] ss:$136 sps:$4 sm:$0xff]   ;;  %v16174_v49 = vld [vmem:[%s17272_s7 + $0x1320] ss:$16 sps:$4 sm:$0xff]  }
 0x267   : > { %9318 = vmatprep.subr.bf16.mxu0 %v16086_v50  ;;  %11239 = vmatprep.subr.bf16.mxu1 %v16089_v51  ;;  %v16177_v50 = vld [vmem:[%s17272_s7 + $0x1328] ss:$16 sps:$4 sm:$0xff]  }
 0x268   : > { %9281 = vmatprep.mubr.bf16.mxu0 %v16090_v52  ;;  %11202 = vmatprep.mubr.bf16.mxu1 %v16090_v52  ;;  %v16182_v51 = vld [vmem:[%s19418_s0 + $0x590] ss:$136 sps:$4 sm:$0xff]   ;;  %v16185_v52 = vld [vmem:[%s17272_s7 + $0x1344] ss:$16 sps:$4 sm:$0xff]  }
 0x26a   : > { %9319 = vmatpush1.bf16.msra.mxu0 %v16084_v53  ;;  %11240 = vmatpush1.bf16.msra.mxu1 %v16087_v54  ;;  %v16188_v53 = vld [vmem:[%s17272_s7 + $0x134c] ss:$16 sps:$4 sm:$0xff]   ;;  %v16183_v54 = vld [vmem:[%s17272_s7 + $0x1340] ss:$16 sps:$4 sm:$0xff]  }
 0x26b   : > { %9320 = vmatprep.subr.bf16.mxu0 %v16095_v55  ;;  %11241 = vmatprep.subr.bf16.mxu1 %v16098_v56  ;;  %v16186_v55 = vld [vmem:[%s17272_s7 + $0x1348] ss:$16 sps:$4 sm:$0xff]   ;;  %v16191_v56 = vld [vmem:[%s17272_s7 + $0x1364] ss:$16 sps:$4 sm:$0xff]  }
 0x26d   : > { %9282 = vmatmul.mubr.bf16.gmra.mrb[28].mxu0 %v16092_v57  ;;  %11203 = vmatmul.mubr.bf16.gmra.mrb[28].mxu1 %v16092_v57  ;;  %v16194_v57 = vld [vmem:[%s17272_s7 + $0x136c] ss:$16 sps:$4 sm:$0xff]  }
 0x26e   : > { %9321 = vmatpush1.bf16.msra.mxu0 %v16093_v58  ;;  %11242 = vmatpush1.bf16.msra.mxu1 %v16096_v59  ;;  %v16195_v58 = vld [vmem:[%s19418_s0 + $0x6a4] ss:$136 sps:$4 sm:$0xff]   ;;  %v16189_v59 = vld [vmem:[%s17272_s7 + $0x1360] ss:$16 sps:$4 sm:$0xff]  }
 0x26f   : > { %9322 = vmatprep.subr.bf16.mxu0 %v16101_v60  ;;  %11243 = vmatprep.subr.bf16.mxu1 %v16104_v61  ;;  %v16192_v60 = vld [vmem:[%s17272_s7 + $0x1368] ss:$16 sps:$4 sm:$0xff]  }
 0x270   : > { %9324 = vmatprep.mubr.bf16.mxu0 %v16107_v62  ;;  %11245 = vmatprep.mubr.bf16.mxu1 %v16107_v62  ;;  %v16197_v61 = vld [vmem:[%s19418_s0 + $0x6a0] ss:$136 sps:$4 sm:$0xff]   ;;  %v16200_v62 = vld [vmem:[%s17272_s7 + $0x1384] ss:$16 sps:$4 sm:$0xff]  }
 0x272   : > { %9323 = vmatpush1.bf16.msra.mxu0 %v16099_v63  ;;  %11244 = vmatpush1.bf16.msra.mxu1 %v16102_v0  ;;  %v16203_v63 = vld [vmem:[%s17272_s7 + $0x138c] ss:$16 sps:$4 sm:$0xff]   ;;  %v16198_v0 = vld [vmem:[%s17272_s7 + $0x1380] ss:$16 sps:$4 sm:$0xff]  }
 0x273   : > { %9405 = vmatprep.subr.bf16.mxu0 %v16110_v1  ;;  %11326 = vmatprep.subr.bf16.mxu1 %v16113_v2  ;;  %v16201_v1 = vld [vmem:[%s17272_s7 + $0x1388] ss:$16 sps:$4 sm:$0xff]   ;;  %v16206_v2 = vld [vmem:[%s17272_s7 + $0x13a4] ss:$16 sps:$4 sm:$0xff]  }
 0x275   : > { %9325 = vmatmul.mubr.bf16.vlgmr.msra.gmra.mrb[0].mxu0 %v16105_v3  ;;  %11246 = vmatmul.mubr.bf16.vlgmr.msra.gmra.mrb[0].mxu1 %v16105_v3  ;;  %v16209_v3 = vld [vmem:[%s17272_s7 + $0x13ac] ss:$16 sps:$4 sm:$0xff]  }
 0x276   : > { %9406 = vmatpush1.bf16.msra.mxu0 %v16108_v4  ;;  %11327 = vmatpush1.bf16.msra.mxu1 %v16111_v5  ;;  %v16210_v4 = vld [vmem:[%s19418_s0 + $0x7b4] ss:$136 sps:$4 sm:$0xff]   ;;  %v16204_v5 = vld [vmem:[%s17272_s7 + $0x13a0] ss:$16 sps:$4 sm:$0xff]  }
 0x277   : > { %9407 = vmatprep.subr.bf16.mxu0 %v16116_v6  ;;  %11328 = vmatprep.subr.bf16.mxu1 %v16119_v7  ;;  %v16207_v6 = vld [vmem:[%s17272_s7 + $0x13a8] ss:$16 sps:$4 sm:$0xff]  }
 0x278   : > { %9334 = vmatprep.mubr.bf16.mxu0 %v16120_v8  ;;  %11255 = vmatprep.mubr.bf16.mxu1 %v16120_v8  ;;  %v16212_v7 = vld [vmem:[%s19418_s0 + $0x7b0] ss:$136 sps:$4 sm:$0xff]   ;;  %v16215_v8 = vld [vmem:[%s17272_s7 + $0x13c4] ss:$16 sps:$4 sm:$0xff]  }
 0x27a   : > { %9408 = vmatpush1.bf16.msra.mxu0 %v16114_v9  ;;  %11329 = vmatpush1.bf16.msra.mxu1 %v16117_v10  ;;  %v16218_v9 = vld [vmem:[%s17272_s7 + $0x13cc] ss:$16 sps:$4 sm:$0xff]   ;;  %v16213_v10 = vld [vmem:[%s17272_s7 + $0x13c0] ss:$16 sps:$4 sm:$0xff]  }
 0x27b   : > { %9409 = vmatprep.subr.bf16.mxu0 %v16125_v11  ;;  %11330 = vmatprep.subr.bf16.mxu1 %v16128_v12  ;;  %v16216_v11 = vld [vmem:[%s17272_s7 + $0x13c8] ss:$16 sps:$4 sm:$0xff]   ;;  %v16221_v12 = vld [vmem:[%s17272_s7 + $0x13e4] ss:$16 sps:$4 sm:$0xff]  }
 0x27d   : > { %9335 = vmatmul.mubr.bf16.gmra.mrb[4].mxu0 %v16122_v13  ;;  %11256 = vmatmul.mubr.bf16.gmra.mrb[4].mxu1 %v16122_v13  ;;  %v16224_v13 = vld [vmem:[%s17272_s7 + $0x13ec] ss:$16 sps:$4 sm:$0xff]  }
 0x27e   : > { %9410 = vmatpush1.bf16.msra.mxu0 %v16123_v14  ;;  %11331 = vmatpush1.bf16.msra.mxu1 %v16126_v15  ;;  %v16227_v14 = vld [vmem:[%s19418_s0 + $0x4c] ss:$136 sps:$4 sm:$0xff]   ;;  %v16219_v15 = vld [vmem:[%s17272_s7 + $0x13e0] ss:$16 sps:$4 sm:$0xff]  }
 0x27f   : > { %9411 = vmatprep.subr.bf16.mxu0 %v16131_v16  ;;  %11332 = vmatprep.subr.bf16.mxu1 %v16134_v17  ;;  %v16222_v16 = vld [vmem:[%s17272_s7 + $0x13e8] ss:$16 sps:$4 sm:$0xff]  }
 0x280   : > { %9344 = vmatprep.mubr.bf16.mxu0 %v16135_v18  ;;  %11265 = vmatprep.mubr.bf16.mxu1 %v16135_v18  ;;  %v16225_v17 = vld [vmem:[%s19418_s0 + $0x48] ss:$136 sps:$4 sm:$0xff]   ;;  %v16230_v18 = vld [vmem:[%s17272_s7 + $0x1404] ss:$16 sps:$4 sm:$0xff]  }
 0x282   : > { %9412 = vmatpush1.bf16.msra.mxu0 %v16129_v19  ;;  %11333 = vmatpush1.bf16.msra.mxu1 %v16132_v20  ;;  %v16233_v19 = vld [vmem:[%s17272_s7 + $0x140c] ss:$16 sps:$4 sm:$0xff]   ;;  %v16228_v20 = vld [vmem:[%s17272_s7 + $0x1400] ss:$16 sps:$4 sm:$0xff]  }
 0x283   : > { %9413 = vmatprep.subr.bf16.mxu0 %v16140_v22  ;;  %11334 = vmatprep.subr.bf16.mxu1 %v16143_v23  ;;  %v16236_v22 = vld [vmem:[%s17272_s7 + $0x1424] ss:$16 sps:$4 sm:$0xff]   ;;  %v16239_v23 = vld [vmem:[%s17272_s7 + $0x142c] ss:$16 sps:$4 sm:$0xff]  }
 0x285   : > { %9345 = vmatmul.mubr.bf16.gmra.mrb[8].mxu0 %v16137_v21  ;;  %11266 = vmatmul.mubr.bf16.gmra.mrb[8].mxu1 %v16137_v21  ;;  %v16231_v21 = vld [vmem:[%s17272_s7 + $0x1408] ss:$16 sps:$4 sm:$0xff]  }
 0x286   : > { %9414 = vmatpush1.bf16.msra.mxu0 %v16138_v24  ;;  %11335 = vmatpush1.bf16.msra.mxu1 %v16141_v25  ;;  %v16240_v24 = vld [vmem:[%s19418_s0 + $0x15c] ss:$136 sps:$4 sm:$0xff]   ;;  %v16234_v25 = vld [vmem:[%s17272_s7 + $0x1420] ss:$16 sps:$4 sm:$0xff]  }
 0x287   : > { %9415 = vmatprep.subr.bf16.mxu0 %v16146_v26  ;;  %11336 = vmatprep.subr.bf16.mxu1 %v16149_v27  ;;  %v16237_v26 = vld [vmem:[%s17272_s7 + $0x1428] ss:$16 sps:$4 sm:$0xff]  }
 0x288   : > { %9354 = vmatprep.mubr.bf16.mxu0 %v16150_v28  ;;  %11275 = vmatprep.mubr.bf16.mxu1 %v16150_v28  ;;  %v16242_v27 = vld [vmem:[%s19418_s0 + $0x158] ss:$136 sps:$4 sm:$0xff]   ;;  %v16245_v28 = vld [vmem:[%s17272_s7 + $0x1444] ss:$16 sps:$4 sm:$0xff]  }
 0x28a   : > { %9416 = vmatpush1.bf16.msra.mxu0 %v16144_v29  ;;  %11337 = vmatpush1.bf16.msra.mxu1 %v16147_v30  ;;  %v16248_v29 = vld [vmem:[%s17272_s7 + $0x144c] ss:$16 sps:$4 sm:$0xff]   ;;  %v16243_v30 = vld [vmem:[%s17272_s7 + $0x1440] ss:$16 sps:$4 sm:$0xff]  }
 0x28b   : > { %9417 = vmatprep.subr.bf16.mxu0 %v16155_v32  ;;  %11338 = vmatprep.subr.bf16.mxu1 %v16158_v33  ;;  %v16251_v32 = vld [vmem:[%s17272_s7 + $0x1464] ss:$16 sps:$4 sm:$0xff]   ;;  %v16254_v33 = vld [vmem:[%s17272_s7 + $0x146c] ss:$16 sps:$4 sm:$0xff]  }
 0x28d   : > { %9355 = vmatmul.mubr.bf16.gmra.mrb[12].mxu0 %v16152_v31  ;;  %11276 = vmatmul.mubr.bf16.gmra.mrb[12].mxu1 %v16152_v31  ;;  %v16246_v31 = vld [vmem:[%s17272_s7 + $0x1448] ss:$16 sps:$4 sm:$0xff]  }
 0x28e   : > { %9418 = vmatpush1.bf16.msra.mxu0 %v16153_v34  ;;  %11339 = vmatpush1.bf16.msra.mxu1 %v16156_v35  ;;  %v16255_v34 = vld [vmem:[%s19418_s0 + $0x26c] ss:$136 sps:$4 sm:$0xff]   ;;  %v16249_v35 = vld [vmem:[%s17272_s7 + $0x1460] ss:$16 sps:$4 sm:$0xff]  }
 0x28f   : > { %9419 = vmatprep.subr.bf16.mxu0 %v16161_v36  ;;  %11340 = vmatprep.subr.bf16.mxu1 %v16164_v37  ;;  %v16252_v36 = vld [vmem:[%s17272_s7 + $0x1468] ss:$16 sps:$4 sm:$0xff]  }
 0x290   : > { %9364 = vmatprep.mubr.bf16.mxu0 %v16165_v38  ;;  %11285 = vmatprep.mubr.bf16.mxu1 %v16165_v38  ;;  %v16257_v37 = vld [vmem:[%s19418_s0 + $0x268] ss:$136 sps:$4 sm:$0xff]   ;;  %v16260_v38 = vld [vmem:[%s17272_s7 + $0x1484] ss:$16 sps:$4 sm:$0xff]  }
 0x292   : > { %9420 = vmatpush1.bf16.msra.mxu0 %v16159_v39  ;;  %11341 = vmatpush1.bf16.msra.mxu1 %v16162_v40  ;;  %v16263_v39 = vld [vmem:[%s17272_s7 + $0x148c] ss:$16 sps:$4 sm:$0xff]   ;;  %v16258_v40 = vld [vmem:[%s17272_s7 + $0x1480] ss:$16 sps:$4 sm:$0xff]  }
 0x293   : > { %9421 = vmatprep.subr.bf16.mxu0 %v16170_v42  ;;  %11342 = vmatprep.subr.bf16.mxu1 %v16173_v43  ;;  %v16266_v42 = vld [vmem:[%s17272_s7 + $0x14a4] ss:$16 sps:$4 sm:$0xff]   ;;  %v16269_v43 = vld [vmem:[%s17272_s7 + $0x14ac] ss:$16 sps:$4 sm:$0xff]  }
 0x295   : > { %9365 = vmatmul.mubr.bf16.gmra.mrb[16].mxu0 %v16167_v41  ;;  %11286 = vmatmul.mubr.bf16.gmra.mrb[16].mxu1 %v16167_v41  ;;  %v16261_v41 = vld [vmem:[%s17272_s7 + $0x1488] ss:$16 sps:$4 sm:$0xff]  }
 0x296   : > { %9422 = vmatpush1.bf16.msra.mxu0 %v16168_v44  ;;  %11343 = vmatpush1.bf16.msra.mxu1 %v16171_v45  ;;  %v16270_v44 = vld [vmem:[%s19418_s0 + $0x37c] ss:$136 sps:$4 sm:$0xff]   ;;  %v16264_v45 = vld [vmem:[%s17272_s7 + $0x14a0] ss:$16 sps:$4 sm:$0xff]  }
 0x297   : > { %9423 = vmatprep.subr.bf16.mxu0 %v16176_v46  ;;  %11344 = vmatprep.subr.bf16.mxu1 %v16179_v47  ;;  %v16267_v46 = vld [vmem:[%s17272_s7 + $0x14a8] ss:$16 sps:$4 sm:$0xff]  }
 0x298   : > { %9374 = vmatprep.mubr.bf16.mxu0 %v16180_v48  ;;  %11295 = vmatprep.mubr.bf16.mxu1 %v16180_v48  ;;  %v16272_v47 = vld [vmem:[%s19418_s0 + $0x378] ss:$136 sps:$4 sm:$0xff]   ;;  %v16275_v48 = vld [vmem:[%s17272_s7 + $0x14c4] ss:$16 sps:$4 sm:$0xff]  }
 0x29a   : > { %9424 = vmatpush1.bf16.msra.mxu0 %v16174_v49  ;;  %11345 = vmatpush1.bf16.msra.mxu1 %v16177_v50  ;;  %v16278_v49 = vld [vmem:[%s17272_s7 + $0x14cc] ss:$16 sps:$4 sm:$0xff]   ;;  %v16273_v50 = vld [vmem:[%s17272_s7 + $0x14c0] ss:$16 sps:$4 sm:$0xff]  }
 0x29b   : > { %9425 = vmatprep.subr.bf16.mxu0 %v16185_v52  ;;  %11346 = vmatprep.subr.bf16.mxu1 %v16188_v53  ;;  %v16281_v52 = vld [vmem:[%s17272_s7 + $0x14e4] ss:$16 sps:$4 sm:$0xff]   ;;  %v16284_v53 = vld [vmem:[%s17272_s7 + $0x14ec] ss:$16 sps:$4 sm:$0xff]  }
 0x29d   : > { %9375 = vmatmul.mubr.bf16.gmra.mrb[20].mxu0 %v16182_v51  ;;  %11296 = vmatmul.mubr.bf16.gmra.mrb[20].mxu1 %v16182_v51  ;;  %v16276_v51 = vld [vmem:[%s17272_s7 + $0x14c8] ss:$16 sps:$4 sm:$0xff]  }
 0x29e   : > { %9426 = vmatpush1.bf16.msra.mxu0 %v16183_v54  ;;  %11347 = vmatpush1.bf16.msra.mxu1 %v16186_v55  ;;  %v16285_v54 = vld [vmem:[%s19418_s0 + $0x48c] ss:$136 sps:$4 sm:$0xff]   ;;  %v16279_v55 = vld [vmem:[%s17272_s7 + $0x14e0] ss:$16 sps:$4 sm:$0xff]  }
 0x29f   : > { %9427 = vmatprep.subr.bf16.mxu0 %v16191_v56  ;;  %11348 = vmatprep.subr.bf16.mxu1 %v16194_v57  ;;  %v16282_v56 = vld [vmem:[%s17272_s7 + $0x14e8] ss:$16 sps:$4 sm:$0xff]  }
 0x2a0   : > { %9384 = vmatprep.mubr.bf16.mxu0 %v16195_v58  ;;  %11305 = vmatprep.mubr.bf16.mxu1 %v16195_v58  ;;  %v16287_v57 = vld [vmem:[%s19418_s0 + $0x488] ss:$136 sps:$4 sm:$0xff]   ;;  %v16290_v58 = vld [vmem:[%s17272_s7 + $0x1504] ss:$16 sps:$4 sm:$0xff]  }
 0x2a2   : > { %9428 = vmatpush1.bf16.msra.mxu0 %v16189_v59  ;;  %11349 = vmatpush1.bf16.msra.mxu1 %v16192_v60  ;;  %v16293_v59 = vld [vmem:[%s17272_s7 + $0x150c] ss:$16 sps:$4 sm:$0xff]   ;;  %v16288_v60 = vld [vmem:[%s17272_s7 + $0x1500] ss:$16 sps:$4 sm:$0xff]  }
 0x2a3   : > { %9429 = vmatprep.subr.bf16.mxu0 %v16200_v62  ;;  %11350 = vmatprep.subr.bf16.mxu1 %v16203_v63  ;;  %v16296_v62 = vld [vmem:[%s17272_s7 + $0x1524] ss:$16 sps:$4 sm:$0xff]   ;;  %v16299_v63 = vld [vmem:[%s17272_s7 + $0x152c] ss:$16 sps:$4 sm:$0xff]  }
 0x2a5   : > { %9385 = vmatmul.mubr.bf16.gmra.mrb[24].mxu0 %v16197_v61  ;;  %11306 = vmatmul.mubr.bf16.gmra.mrb[24].mxu1 %v16197_v61  ;;  %v16291_v61 = vld [vmem:[%s17272_s7 + $0x1508] ss:$16 sps:$4 sm:$0xff]  }
 0x2a6   : > { %9430 = vmatpush1.bf16.msra.mxu0 %v16198_v0  ;;  %11351 = vmatpush1.bf16.msra.mxu1 %v16201_v1  ;;  %v16300_v0 = vld [vmem:[%s19418_s0 + $0x59c] ss:$136 sps:$4 sm:$0xff]   ;;  %v16294_v1 = vld [vmem:[%s17272_s7 + $0x1520] ss:$16 sps:$4 sm:$0xff]  }
 0x2a7   : > { %9431 = vmatprep.subr.bf16.mxu0 %v16206_v2  ;;  %11352 = vmatprep.subr.bf16.mxu1 %v16209_v3  ;;  %v16297_v2 = vld [vmem:[%s17272_s7 + $0x1528] ss:$16 sps:$4 sm:$0xff]  }
 0x2a8   : > { %9394 = vmatprep.mubr.bf16.mxu0 %v16210_v4  ;;  %11315 = vmatprep.mubr.bf16.mxu1 %v16210_v4  ;;  %v16302_v3 = vld [vmem:[%s19418_s0 + $0x598] ss:$136 sps:$4 sm:$0xff]   ;;  %v16305_v4 = vld [vmem:[%s17272_s7 + $0x1544] ss:$16 sps:$4 sm:$0xff]  }
 0x2aa   : > { %9432 = vmatpush1.bf16.msra.mxu0 %v16204_v5  ;;  %11353 = vmatpush1.bf16.msra.mxu1 %v16207_v6  ;;  %v16308_v5 = vld [vmem:[%s17272_s7 + $0x154c] ss:$16 sps:$4 sm:$0xff]   ;;  %v16303_v6 = vld [vmem:[%s17272_s7 + $0x1540] ss:$16 sps:$4 sm:$0xff]  }
 0x2ab   : > { %9433 = vmatprep.subr.bf16.mxu0 %v16215_v8  ;;  %11354 = vmatprep.subr.bf16.mxu1 %v16218_v9  ;;  %v16311_v8 = vld [vmem:[%s17272_s7 + $0x1564] ss:$16 sps:$4 sm:$0xff]   ;;  %v16314_v9 = vld [vmem:[%s17272_s7 + $0x156c] ss:$16 sps:$4 sm:$0xff]  }
 0x2ad   : > { %9395 = vmatmul.mubr.bf16.gmra.mrb[28].mxu0 %v16212_v7  ;;  %11316 = vmatmul.mubr.bf16.gmra.mrb[28].mxu1 %v16212_v7  ;;  %v16306_v7 = vld [vmem:[%s17272_s7 + $0x1548] ss:$16 sps:$4 sm:$0xff]  }
 0x2ae   : > { %9434 = vmatpush1.bf16.msra.mxu0 %v16213_v10  ;;  %11355 = vmatpush1.bf16.msra.mxu1 %v16216_v11  ;;  %v16315_v10 = vld [vmem:[%s19418_s0 + $0x6ac] ss:$136 sps:$4 sm:$0xff]   ;;  %v16309_v11 = vld [vmem:[%s17272_s7 + $0x1560] ss:$16 sps:$4 sm:$0xff]  }
 0x2af   : > { %9435 = vmatprep.subr.bf16.mxu0 %v16221_v12  ;;  %11356 = vmatprep.subr.bf16.mxu1 %v16224_v13  ;;  %v16312_v12 = vld [vmem:[%s17272_s7 + $0x1568] ss:$16 sps:$4 sm:$0xff]  }
 0x2b0   : > { %9437 = vmatprep.mubr.bf16.mxu0 %v16227_v14  ;;  %11358 = vmatprep.mubr.bf16.mxu1 %v16227_v14  ;;  %v16317_v13 = vld [vmem:[%s19418_s0 + $0x6a8] ss:$136 sps:$4 sm:$0xff]   ;;  %v16320_v14 = vld [vmem:[%s17272_s7 + $0x1584] ss:$16 sps:$4 sm:$0xff]  }
 0x2b2   : > { %9436 = vmatpush1.bf16.msra.mxu0 %v16219_v15  ;;  %11357 = vmatpush1.bf16.msra.mxu1 %v16222_v16  ;;  %v16323_v15 = vld [vmem:[%s17272_s7 + $0x158c] ss:$16 sps:$4 sm:$0xff]   ;;  %v16318_v16 = vld [vmem:[%s17272_s7 + $0x1580] ss:$16 sps:$4 sm:$0xff]  }
 0x2b3   : > { %9518 = vmatprep.subr.bf16.mxu0 %v16230_v18  ;;  %11439 = vmatprep.subr.bf16.mxu1 %v16233_v19  ;;  %v16326_v18 = vld [vmem:[%s17272_s7 + $0x15a4] ss:$16 sps:$4 sm:$0xff]   ;;  %v16329_v19 = vld [vmem:[%s17272_s7 + $0x15ac] ss:$16 sps:$4 sm:$0xff]  }
 0x2b5   : > { %9438 = vmatmul.mubr.bf16.vlgmr.msra.gmra.mrb[0].mxu0 %v16225_v17  ;;  %11359 = vmatmul.mubr.bf16.vlgmr.msra.gmra.mrb[0].mxu1 %v16225_v17  ;;  %v16321_v17 = vld [vmem:[%s17272_s7 + $0x1588] ss:$16 sps:$4 sm:$0xff]  }
 0x2b6   : > { %9519 = vmatpush1.bf16.msra.mxu0 %v16228_v20  ;;  %11440 = vmatpush1.bf16.msra.mxu1 %v16231_v21  ;;  %v16330_v20 = vld [vmem:[%s19418_s0 + $0x7bc] ss:$136 sps:$4 sm:$0xff]   ;;  %v16324_v21 = vld [vmem:[%s17272_s7 + $0x15a0] ss:$16 sps:$4 sm:$0xff]  }
 0x2b7   : > { %9520 = vmatprep.subr.bf16.mxu0 %v16236_v22  ;;  %11441 = vmatprep.subr.bf16.mxu1 %v16239_v23  ;;  %v16327_v22 = vld [vmem:[%s17272_s7 + $0x15a8] ss:$16 sps:$4 sm:$0xff]  }
 0x2b8   : > { %9447 = vmatprep.mubr.bf16.mxu0 %v16240_v24  ;;  %11368 = vmatprep.mubr.bf16.mxu1 %v16240_v24  ;;  %v16332_v23 = vld [vmem:[%s19418_s0 + $0x7b8] ss:$136 sps:$4 sm:$0xff]   ;;  %v16335_v24 = vld [vmem:[%s17272_s7 + $0x15c4] ss:$16 sps:$4 sm:$0xff]  }
 0x2ba   : > { %9521 = vmatpush1.bf16.msra.mxu0 %v16234_v25  ;;  %11442 = vmatpush1.bf16.msra.mxu1 %v16237_v26  ;;  %v16338_v25 = vld [vmem:[%s17272_s7 + $0x15cc] ss:$16 sps:$4 sm:$0xff]   ;;  %v16333_v26 = vld [vmem:[%s17272_s7 + $0x15c0] ss:$16 sps:$4 sm:$0xff]  }
 0x2bb   : > { %9522 = vmatprep.subr.bf16.mxu0 %v16245_v28  ;;  %11443 = vmatprep.subr.bf16.mxu1 %v16248_v29  ;;  %v16341_v28 = vld [vmem:[%s17272_s7 + $0x15e4] ss:$16 sps:$4 sm:$0xff]   ;;  %v16344_v29 = vld [vmem:[%s17272_s7 + $0x15ec] ss:$16 sps:$4 sm:$0xff]  }
 0x2bd   : > { %9448 = vmatmul.mubr.bf16.gmra.mrb[4].mxu0 %v16242_v27  ;;  %11369 = vmatmul.mubr.bf16.gmra.mrb[4].mxu1 %v16242_v27  ;;  %v16336_v27 = vld [vmem:[%s17272_s7 + $0x15c8] ss:$16 sps:$4 sm:$0xff]  }
 0x2be   : > { %9523 = vmatpush1.bf16.msra.mxu0 %v16243_v30  ;;  %11444 = vmatpush1.bf16.msra.mxu1 %v16246_v31  ;;  %v16347_v30 = vld [vmem:[%s19418_s0 + $0x54] ss:$136 sps:$4 sm:$0xff]   ;;  %v16339_v31 = vld [vmem:[%s17272_s7 + $0x15e0] ss:$16 sps:$4 sm:$0xff]  }
 0x2bf   : > { %9524 = vmatprep.subr.bf16.mxu0 %v16251_v32  ;;  %11445 = vmatprep.subr.bf16.mxu1 %v16254_v33  ;;  %v16342_v32 = vld [vmem:[%s17272_s7 + $0x15e8] ss:$16 sps:$4 sm:$0xff]  }
 0x2c0   : > { %9457 = vmatprep.mubr.bf16.mxu0 %v16255_v34  ;;  %11378 = vmatprep.mubr.bf16.mxu1 %v16255_v34  ;;  %v16345_v33 = vld [vmem:[%s19418_s0 + $0x50] ss:$136 sps:$4 sm:$0xff]   ;;  %v16350_v34 = vld [vmem:[%s17272_s7 + $0x1604] ss:$16 sps:$4 sm:$0xff]  }
 0x2c2   : > { %9525 = vmatpush1.bf16.msra.mxu0 %v16249_v35  ;;  %11446 = vmatpush1.bf16.msra.mxu1 %v16252_v36  ;;  %v16353_v35 = vld [vmem:[%s17272_s7 + $0x160c] ss:$16 sps:$4 sm:$0xff]   ;;  %v16348_v36 = vld [vmem:[%s17272_s7 + $0x1600] ss:$16 sps:$4 sm:$0xff]  }
 0x2c3   : > { %9526 = vmatprep.subr.bf16.mxu0 %v16260_v38  ;;  %11447 = vmatprep.subr.bf16.mxu1 %v16263_v39  ;;  %v16356_v38 = vld [vmem:[%s17272_s7 + $0x1624] ss:$16 sps:$4 sm:$0xff]   ;;  %v16359_v39 = vld [vmem:[%s17272_s7 + $0x162c] ss:$16 sps:$4 sm:$0xff]  }
 0x2c5   : > { %9458 = vmatmul.mubr.bf16.gmra.mrb[8].mxu0 %v16257_v37  ;;  %11379 = vmatmul.mubr.bf16.gmra.mrb[8].mxu1 %v16257_v37  ;;  %v16351_v37 = vld [vmem:[%s17272_s7 + $0x1608] ss:$16 sps:$4 sm:$0xff]  }
 0x2c6   : > { %9527 = vmatpush1.bf16.msra.mxu0 %v16258_v40  ;;  %11448 = vmatpush1.bf16.msra.mxu1 %v16261_v41  ;;  %v16360_v40 = vld [vmem:[%s19418_s0 + $0x164] ss:$136 sps:$4 sm:$0xff]   ;;  %v16354_v41 = vld [vmem:[%s17272_s7 + $0x1620] ss:$16 sps:$4 sm:$0xff]  }
 0x2c7   : > { %9528 = vmatprep.subr.bf16.mxu0 %v16266_v42  ;;  %11449 = vmatprep.subr.bf16.mxu1 %v16269_v43  ;;  %v16357_v42 = vld [vmem:[%s17272_s7 + $0x1628] ss:$16 sps:$4 sm:$0xff]  }
 0x2c8   : > { %9467 = vmatprep.mubr.bf16.mxu0 %v16270_v44  ;;  %11388 = vmatprep.mubr.bf16.mxu1 %v16270_v44  ;;  %v16362_v43 = vld [vmem:[%s19418_s0 + $0x160] ss:$136 sps:$4 sm:$0xff]   ;;  %v16365_v44 = vld [vmem:[%s17272_s7 + $0x1644] ss:$16 sps:$4 sm:$0xff]  }
 0x2ca   : > { %9529 = vmatpush1.bf16.msra.mxu0 %v16264_v45  ;;  %11450 = vmatpush1.bf16.msra.mxu1 %v16267_v46  ;;  %v16368_v45 = vld [vmem:[%s17272_s7 + $0x164c] ss:$16 sps:$4 sm:$0xff]   ;;  %v16363_v46 = vld [vmem:[%s17272_s7 + $0x1640] ss:$16 sps:$4 sm:$0xff]  }
 0x2cb   : > { %9530 = vmatprep.subr.bf16.mxu0 %v16275_v48  ;;  %11451 = vmatprep.subr.bf16.mxu1 %v16278_v49  ;;  %v16371_v48 = vld [vmem:[%s17272_s7 + $0x1664] ss:$16 sps:$4 sm:$0xff]   ;;  %v16374_v49 = vld [vmem:[%s17272_s7 + $0x166c] ss:$16 sps:$4 sm:$0xff]  }
 0x2cd   : > { %9468 = vmatmul.mubr.bf16.gmra.mrb[12].mxu0 %v16272_v47  ;;  %11389 = vmatmul.mubr.bf16.gmra.mrb[12].mxu1 %v16272_v47  ;;  %v16366_v47 = vld [vmem:[%s17272_s7 + $0x1648] ss:$16 sps:$4 sm:$0xff]  }
 0x2ce   : > { %9531 = vmatpush1.bf16.msra.mxu0 %v16273_v50  ;;  %11452 = vmatpush1.bf16.msra.mxu1 %v16276_v51  ;;  %v16375_v50 = vld [vmem:[%s19418_s0 + $0x274] ss:$136 sps:$4 sm:$0xff]   ;;  %v16369_v51 = vld [vmem:[%s17272_s7 + $0x1660] ss:$16 sps:$4 sm:$0xff]  }
 0x2cf   : > { %9532 = vmatprep.subr.bf16.mxu0 %v16281_v52  ;;  %11453 = vmatprep.subr.bf16.mxu1 %v16284_v53  ;;  %v16372_v52 = vld [vmem:[%s17272_s7 + $0x1668] ss:$16 sps:$4 sm:$0xff]  }
 0x2d0   : > { %9477 = vmatprep.mubr.bf16.mxu0 %v16285_v54  ;;  %11398 = vmatprep.mubr.bf16.mxu1 %v16285_v54  ;;  %v16377_v53 = vld [vmem:[%s19418_s0 + $0x270] ss:$136 sps:$4 sm:$0xff]   ;;  %v16380_v54 = vld [vmem:[%s17272_s7 + $0x1684] ss:$16 sps:$4 sm:$0xff]  }
 0x2d2   : > { %9533 = vmatpush1.bf16.msra.mxu0 %v16279_v55  ;;  %11454 = vmatpush1.bf16.msra.mxu1 %v16282_v56  ;;  %v16383_v55 = vld [vmem:[%s17272_s7 + $0x168c] ss:$16 sps:$4 sm:$0xff]   ;;  %v16378_v56 = vld [vmem:[%s17272_s7 + $0x1680] ss:$16 sps:$4 sm:$0xff]  }
 0x2d3   : > { %9534 = vmatprep.subr.bf16.mxu0 %v16290_v58  ;;  %11455 = vmatprep.subr.bf16.mxu1 %v16293_v59  ;;  %v16386_v58 = vld [vmem:[%s17272_s7 + $0x16a4] ss:$16 sps:$4 sm:$0xff]   ;;  %v16389_v59 = vld [vmem:[%s17272_s7 + $0x16ac] ss:$16 sps:$4 sm:$0xff]  }
 0x2d5   : > { %9478 = vmatmul.mubr.bf16.gmra.mrb[16].mxu0 %v16287_v57  ;;  %11399 = vmatmul.mubr.bf16.gmra.mrb[16].mxu1 %v16287_v57  ;;  %v16381_v57 = vld [vmem:[%s17272_s7 + $0x1688] ss:$16 sps:$4 sm:$0xff]  }
 0x2d6   : > { %9535 = vmatpush1.bf16.msra.mxu0 %v16288_v60  ;;  %11456 = vmatpush1.bf16.msra.mxu1 %v16291_v61  ;;  %v16390_v60 = vld [vmem:[%s19418_s0 + $0x384] ss:$136 sps:$4 sm:$0xff]   ;;  %v16384_v61 = vld [vmem:[%s17272_s7 + $0x16a0] ss:$16 sps:$4 sm:$0xff]  }
 0x2d7   : > { %9536 = vmatprep.subr.bf16.mxu0 %v16296_v62  ;;  %11457 = vmatprep.subr.bf16.mxu1 %v16299_v63  ;;  %v16387_v62 = vld [vmem:[%s17272_s7 + $0x16a8] ss:$16 sps:$4 sm:$0xff]  }
 0x2d8   : > { %9487 = vmatprep.mubr.bf16.mxu0 %v16300_v0  ;;  %11408 = vmatprep.mubr.bf16.mxu1 %v16300_v0  ;;  %v16392_v63 = vld [vmem:[%s19418_s0 + $0x380] ss:$136 sps:$4 sm:$0xff]   ;;  %v16395_v0 = vld [vmem:[%s17272_s7 + $0x16c4] ss:$16 sps:$4 sm:$0xff]  }
 0x2da   : > { %9537 = vmatpush1.bf16.msra.mxu0 %v16294_v1  ;;  %11458 = vmatpush1.bf16.msra.mxu1 %v16297_v2  ;;  %v16398_v1 = vld [vmem:[%s17272_s7 + $0x16cc] ss:$16 sps:$4 sm:$0xff]   ;;  %v16393_v2 = vld [vmem:[%s17272_s7 + $0x16c0] ss:$16 sps:$4 sm:$0xff]  }
 0x2db   : > { %9538 = vmatprep.subr.bf16.mxu0 %v16305_v4  ;;  %11459 = vmatprep.subr.bf16.mxu1 %v16308_v5  ;;  %v16401_v4 = vld [vmem:[%s17272_s7 + $0x16e4] ss:$16 sps:$4 sm:$0xff]   ;;  %v16404_v5 = vld [vmem:[%s17272_s7 + $0x16ec] ss:$16 sps:$4 sm:$0xff]  }
 0x2dd   : > { %9488 = vmatmul.mubr.bf16.gmra.mrb[20].mxu0 %v16302_v3  ;;  %11409 = vmatmul.mubr.bf16.gmra.mrb[20].mxu1 %v16302_v3  ;;  %v16396_v3 = vld [vmem:[%s17272_s7 + $0x16c8] ss:$16 sps:$4 sm:$0xff]  }
 0x2de   : > { %9539 = vmatpush1.bf16.msra.mxu0 %v16303_v6  ;;  %11460 = vmatpush1.bf16.msra.mxu1 %v16306_v7  ;;  %v16405_v6 = vld [vmem:[%s19418_s0 + $0x494] ss:$136 sps:$4 sm:$0xff]   ;;  %v16399_v7 = vld [vmem:[%s17272_s7 + $0x16e0] ss:$16 sps:$4 sm:$0xff]  }
 0x2df   : > { %9540 = vmatprep.subr.bf16.mxu0 %v16311_v8  ;;  %11461 = vmatprep.subr.bf16.mxu1 %v16314_v9  ;;  %v16402_v8 = vld [vmem:[%s17272_s7 + $0x16e8] ss:$16 sps:$4 sm:$0xff]  }
 0x2e0   : > { %9497 = vmatprep.mubr.bf16.mxu0 %v16315_v10  ;;  %11418 = vmatprep.mubr.bf16.mxu1 %v16315_v10  ;;  %v16407_v9 = vld [vmem:[%s19418_s0 + $0x490] ss:$136 sps:$4 sm:$0xff]   ;;  %v16410_v10 = vld [vmem:[%s17272_s7 + $0x1704] ss:$16 sps:$4 sm:$0xff]  }
 0x2e2   : > { %9541 = vmatpush1.bf16.msra.mxu0 %v16309_v11  ;;  %11462 = vmatpush1.bf16.msra.mxu1 %v16312_v12  ;;  %v16413_v11 = vld [vmem:[%s17272_s7 + $0x170c] ss:$16 sps:$4 sm:$0xff]   ;;  %v16408_v12 = vld [vmem:[%s17272_s7 + $0x1700] ss:$16 sps:$4 sm:$0xff]  }
 0x2e3   : > { %9542 = vmatprep.subr.bf16.mxu0 %v16320_v14  ;;  %11463 = vmatprep.subr.bf16.mxu1 %v16323_v15  ;;  %v16416_v14 = vld [vmem:[%s17272_s7 + $0x1724] ss:$16 sps:$4 sm:$0xff]   ;;  %v16419_v15 = vld [vmem:[%s17272_s7 + $0x172c] ss:$16 sps:$4 sm:$0xff]  }
 0x2e5   : > { %9498 = vmatmul.mubr.bf16.gmra.mrb[24].mxu0 %v16317_v13  ;;  %11419 = vmatmul.mubr.bf16.gmra.mrb[24].mxu1 %v16317_v13  ;;  %v16411_v13 = vld [vmem:[%s17272_s7 + $0x1708] ss:$16 sps:$4 sm:$0xff]  }
 0x2e6   : > { %9543 = vmatpush1.bf16.msra.mxu0 %v16318_v16  ;;  %11464 = vmatpush1.bf16.msra.mxu1 %v16321_v17  ;;  %v16420_v16 = vld [vmem:[%s19418_s0 + $0x5a4] ss:$136 sps:$4 sm:$0xff]   ;;  %v16414_v17 = vld [vmem:[%s17272_s7 + $0x1720] ss:$16 sps:$4 sm:$0xff]  }
 0x2e7   : > { %9544 = vmatprep.subr.bf16.mxu0 %v16326_v18  ;;  %11465 = vmatprep.subr.bf16.mxu1 %v16329_v19  ;;  %v16417_v18 = vld [vmem:[%s17272_s7 + $0x1728] ss:$16 sps:$4 sm:$0xff]  }
 0x2e8   : > { %9507 = vmatprep.mubr.bf16.mxu0 %v16330_v20  ;;  %11428 = vmatprep.mubr.bf16.mxu1 %v16330_v20  ;;  %v16422_v19 = vld [vmem:[%s19418_s0 + $0x5a0] ss:$136 sps:$4 sm:$0xff]   ;;  %v16425_v20 = vld [vmem:[%s17272_s7 + $0x1744] ss:$16 sps:$4 sm:$0xff]  }
 0x2ea   : > { %9545 = vmatpush1.bf16.msra.mxu0 %v16324_v21  ;;  %11466 = vmatpush1.bf16.msra.mxu1 %v16327_v22  ;;  %v16428_v21 = vld [vmem:[%s17272_s7 + $0x174c] ss:$16 sps:$4 sm:$0xff]   ;;  %v16423_v22 = vld [vmem:[%s17272_s7 + $0x1740] ss:$16 sps:$4 sm:$0xff]  }
 0x2eb   : > { %9546 = vmatprep.subr.bf16.mxu0 %v16335_v24  ;;  %11467 = vmatprep.subr.bf16.mxu1 %v16338_v25  ;;  %v16431_v24 = vld [vmem:[%s17272_s7 + $0x1764] ss:$16 sps:$4 sm:$0xff]   ;;  %v16434_v25 = vld [vmem:[%s17272_s7 + $0x176c] ss:$16 sps:$4 sm:$0xff]  }
 0x2ed   : > { %9508 = vmatmul.mubr.bf16.gmra.mrb[28].mxu0 %v16332_v23  ;;  %11429 = vmatmul.mubr.bf16.gmra.mrb[28].mxu1 %v16332_v23  ;;  %v16426_v23 = vld [vmem:[%s17272_s7 + $0x1748] ss:$16 sps:$4 sm:$0xff]  }
 0x2ee   : > { %9547 = vmatpush1.bf16.msra.mxu0 %v16333_v26  ;;  %11468 = vmatpush1.bf16.msra.mxu1 %v16336_v27  ;;  %v16435_v26 = vld [vmem:[%s19418_s0 + $0x6b4] ss:$136 sps:$4 sm:$0xff]   ;;  %v16429_v27 = vld [vmem:[%s17272_s7 + $0x1760] ss:$16 sps:$4 sm:$0xff]  }
 0x2ef   : > { %9548 = vmatprep.subr.bf16.mxu0 %v16341_v28  ;;  %11469 = vmatprep.subr.bf16.mxu1 %v16344_v29  ;;  %v16432_v28 = vld [vmem:[%s17272_s7 + $0x1768] ss:$16 sps:$4 sm:$0xff]  }
 0x2f0   : > { %9550 = vmatprep.mubr.bf16.mxu0 %v16347_v30  ;;  %11471 = vmatprep.mubr.bf16.mxu1 %v16347_v30  ;;  %v16437_v29 = vld [vmem:[%s19418_s0 + $0x6b0] ss:$136 sps:$4 sm:$0xff]   ;;  %v16440_v30 = vld [vmem:[%s17272_s7 + $0x1784] ss:$16 sps:$4 sm:$0xff]  }
 0x2f2   : > { %9549 = vmatpush1.bf16.msra.mxu0 %v16339_v31  ;;  %11470 = vmatpush1.bf16.msra.mxu1 %v16342_v32  ;;  %v16443_v31 = vld [vmem:[%s17272_s7 + $0x178c] ss:$16 sps:$4 sm:$0xff]   ;;  %v16438_v32 = vld [vmem:[%s17272_s7 + $0x1780] ss:$16 sps:$4 sm:$0xff]  }
 0x2f3   : > { %9631 = vmatprep.subr.bf16.mxu0 %v16350_v34  ;;  %11552 = vmatprep.subr.bf16.mxu1 %v16353_v35  ;;  %v16446_v34 = vld [vmem:[%s17272_s7 + $0x17a4] ss:$16 sps:$4 sm:$0xff]   ;;  %v16449_v35 = vld [vmem:[%s17272_s7 + $0x17ac] ss:$16 sps:$4 sm:$0xff]  }
 0x2f5   : > { %9551 = vmatmul.mubr.bf16.vlgmr.msra.gmra.mrb[0].mxu0 %v16345_v33  ;;  %11472 = vmatmul.mubr.bf16.vlgmr.msra.gmra.mrb[0].mxu1 %v16345_v33  ;;  %v16441_v33 = vld [vmem:[%s17272_s7 + $0x1788] ss:$16 sps:$4 sm:$0xff]  }
 0x2f6   : > { %9632 = vmatpush1.bf16.msra.mxu0 %v16348_v36  ;;  %11553 = vmatpush1.bf16.msra.mxu1 %v16351_v37  ;;  %v16450_v36 = vld [vmem:[%s19418_s0 + $0x7c4] ss:$136 sps:$4 sm:$0xff]   ;;  %v16444_v37 = vld [vmem:[%s17272_s7 + $0x17a0] ss:$16 sps:$4 sm:$0xff]  }
 0x2f7   : > { %9633 = vmatprep.subr.bf16.mxu0 %v16356_v38  ;;  %11554 = vmatprep.subr.bf16.mxu1 %v16359_v39  ;;  %v16447_v38 = vld [vmem:[%s17272_s7 + $0x17a8] ss:$16 sps:$4 sm:$0xff]  }
 0x2f8   : > { %9560 = vmatprep.mubr.bf16.mxu0 %v16360_v40  ;;  %11481 = vmatprep.mubr.bf16.mxu1 %v16360_v40  ;;  %v16452_v39 = vld [vmem:[%s19418_s0 + $0x7c0] ss:$136 sps:$4 sm:$0xff]   ;;  %v16455_v40 = vld [vmem:[%s17272_s7 + $0x17c4] ss:$16 sps:$4 sm:$0xff]  }
 0x2fa   : > { %9634 = vmatpush1.bf16.msra.mxu0 %v16354_v41  ;;  %11555 = vmatpush1.bf16.msra.mxu1 %v16357_v42  ;;  %v16458_v41 = vld [vmem:[%s17272_s7 + $0x17cc] ss:$16 sps:$4 sm:$0xff]   ;;  %v16453_v42 = vld [vmem:[%s17272_s7 + $0x17c0] ss:$16 sps:$4 sm:$0xff]  }
 0x2fb   : > { %9635 = vmatprep.subr.bf16.mxu0 %v16365_v44  ;;  %11556 = vmatprep.subr.bf16.mxu1 %v16368_v45  ;;  %v16461_v44 = vld [vmem:[%s17272_s7 + $0x17e4] ss:$16 sps:$4 sm:$0xff]   ;;  %v16464_v45 = vld [vmem:[%s17272_s7 + $0x17ec] ss:$16 sps:$4 sm:$0xff]  }
 0x2fd   : > { %9561 = vmatmul.mubr.bf16.gmra.mrb[4].mxu0 %v16362_v43  ;;  %11482 = vmatmul.mubr.bf16.gmra.mrb[4].mxu1 %v16362_v43  ;;  %v16456_v43 = vld [vmem:[%s17272_s7 + $0x17c8] ss:$16 sps:$4 sm:$0xff]  }
 0x2fe   : > { %9636 = vmatpush1.bf16.msra.mxu0 %v16363_v46  ;;  %11557 = vmatpush1.bf16.msra.mxu1 %v16366_v47  ;;  %v16467_v46 = vld [vmem:[%s19418_s0 + $0x5c] ss:$136 sps:$4 sm:$0xff]   ;;  %v16459_v47 = vld [vmem:[%s17272_s7 + $0x17e0] ss:$16 sps:$4 sm:$0xff]  }
 0x2ff   : > { %9637 = vmatprep.subr.bf16.mxu0 %v16371_v48  ;;  %11558 = vmatprep.subr.bf16.mxu1 %v16374_v49  ;;  %v16462_v48 = vld [vmem:[%s17272_s7 + $0x17e8] ss:$16 sps:$4 sm:$0xff]  }
 0x300   : > { %9570 = vmatprep.mubr.bf16.mxu0 %v16375_v50  ;;  %11491 = vmatprep.mubr.bf16.mxu1 %v16375_v50  ;;  %v16465_v49 = vld [vmem:[%s19418_s0 + $0x58] ss:$136 sps:$4 sm:$0xff]   ;;  %v16470_v50 = vld [vmem:[%s17272_s7 + $0x1804] ss:$16 sps:$4 sm:$0xff]  }
 0x302   : > { %9638 = vmatpush1.bf16.msra.mxu0 %v16369_v51  ;;  %11559 = vmatpush1.bf16.msra.mxu1 %v16372_v52  ;;  %v16473_v51 = vld [vmem:[%s17272_s7 + $0x180c] ss:$16 sps:$4 sm:$0xff]   ;;  %v16468_v52 = vld [vmem:[%s17272_s7 + $0x1800] ss:$16 sps:$4 sm:$0xff]  }
 0x303   : > { %9639 = vmatprep.subr.bf16.mxu0 %v16380_v54  ;;  %11560 = vmatprep.subr.bf16.mxu1 %v16383_v55  ;;  %v16476_v54 = vld [vmem:[%s17272_s7 + $0x1824] ss:$16 sps:$4 sm:$0xff]   ;;  %v16479_v55 = vld [vmem:[%s17272_s7 + $0x182c] ss:$16 sps:$4 sm:$0xff]  }
 0x305   : > { %9571 = vmatmul.mubr.bf16.gmra.mrb[8].mxu0 %v16377_v53  ;;  %11492 = vmatmul.mubr.bf16.gmra.mrb[8].mxu1 %v16377_v53  ;;  %v16471_v53 = vld [vmem:[%s17272_s7 + $0x1808] ss:$16 sps:$4 sm:$0xff]  }
 0x306   : > { %9640 = vmatpush1.bf16.msra.mxu0 %v16378_v56  ;;  %11561 = vmatpush1.bf16.msra.mxu1 %v16381_v57  ;;  %v16480_v56 = vld [vmem:[%s19418_s0 + $0x16c] ss:$136 sps:$4 sm:$0xff]   ;;  %v16474_v57 = vld [vmem:[%s17272_s7 + $0x1820] ss:$16 sps:$4 sm:$0xff]  }
 0x307   : > { %9641 = vmatprep.subr.bf16.mxu0 %v16386_v58  ;;  %11562 = vmatprep.subr.bf16.mxu1 %v16389_v59  ;;  %v16477_v58 = vld [vmem:[%s17272_s7 + $0x1828] ss:$16 sps:$4 sm:$0xff]  }
 0x308   : > { %9580 = vmatprep.mubr.bf16.mxu0 %v16390_v60  ;;  %11501 = vmatprep.mubr.bf16.mxu1 %v16390_v60  ;;  %v16482_v59 = vld [vmem:[%s19418_s0 + $0x168] ss:$136 sps:$4 sm:$0xff]   ;;  %v16485_v60 = vld [vmem:[%s17272_s7 + $0x1844] ss:$16 sps:$4 sm:$0xff]  }
 0x30a   : > { %9642 = vmatpush1.bf16.msra.mxu0 %v16384_v61  ;;  %11563 = vmatpush1.bf16.msra.mxu1 %v16387_v62  ;;  %v16488_v61 = vld [vmem:[%s17272_s7 + $0x184c] ss:$16 sps:$4 sm:$0xff]   ;;  %v16483_v62 = vld [vmem:[%s17272_s7 + $0x1840] ss:$16 sps:$4 sm:$0xff]  }
 0x30b   : > { %9643 = vmatprep.subr.bf16.mxu0 %v16395_v0  ;;  %11564 = vmatprep.subr.bf16.mxu1 %v16398_v1  ;;  %v16491_v0 = vld [vmem:[%s17272_s7 + $0x1864] ss:$16 sps:$4 sm:$0xff]   ;;  %v16494_v1 = vld [vmem:[%s17272_s7 + $0x186c] ss:$16 sps:$4 sm:$0xff]  }
 0x30d   : > { %9581 = vmatmul.mubr.bf16.gmra.mrb[12].mxu0 %v16392_v63  ;;  %11502 = vmatmul.mubr.bf16.gmra.mrb[12].mxu1 %v16392_v63  ;;  %v16486_v63 = vld [vmem:[%s17272_s7 + $0x1848] ss:$16 sps:$4 sm:$0xff]  }
 0x30e   : > { %9644 = vmatpush1.bf16.msra.mxu0 %v16393_v2  ;;  %11565 = vmatpush1.bf16.msra.mxu1 %v16396_v3  ;;  %v16495_v2 = vld [vmem:[%s19418_s0 + $0x27c] ss:$136 sps:$4 sm:$0xff]   ;;  %v16489_v3 = vld [vmem:[%s17272_s7 + $0x1860] ss:$16 sps:$4 sm:$0xff]  }
 0x30f   : > { %9645 = vmatprep.subr.bf16.mxu0 %v16401_v4  ;;  %11566 = vmatprep.subr.bf16.mxu1 %v16404_v5  ;;  %v16492_v4 = vld [vmem:[%s17272_s7 + $0x1868] ss:$16 sps:$4 sm:$0xff]  }
 0x310   : > { %9590 = vmatprep.mubr.bf16.mxu0 %v16405_v6  ;;  %11511 = vmatprep.mubr.bf16.mxu1 %v16405_v6  ;;  %v16497_v5 = vld [vmem:[%s19418_s0 + $0x278] ss:$136 sps:$4 sm:$0xff]   ;;  %v16500_v6 = vld [vmem:[%s17272_s7 + $0x1884] ss:$16 sps:$4 sm:$0xff]  }
 0x312   : > { %9646 = vmatpush1.bf16.msra.mxu0 %v16399_v7  ;;  %11567 = vmatpush1.bf16.msra.mxu1 %v16402_v8  ;;  %v16503_v7 = vld [vmem:[%s17272_s7 + $0x188c] ss:$16 sps:$4 sm:$0xff]   ;;  %v16498_v8 = vld [vmem:[%s17272_s7 + $0x1880] ss:$16 sps:$4 sm:$0xff]  }
 0x313   : > { %9647 = vmatprep.subr.bf16.mxu0 %v16410_v10  ;;  %11568 = vmatprep.subr.bf16.mxu1 %v16413_v11  ;;  %v16506_v10 = vld [vmem:[%s17272_s7 + $0x18a4] ss:$16 sps:$4 sm:$0xff]   ;;  %v16509_v11 = vld [vmem:[%s17272_s7 + $0x18ac] ss:$16 sps:$4 sm:$0xff]  }
 0x315   : > { %9591 = vmatmul.mubr.bf16.gmra.mrb[16].mxu0 %v16407_v9  ;;  %11512 = vmatmul.mubr.bf16.gmra.mrb[16].mxu1 %v16407_v9  ;;  %v16501_v9 = vld [vmem:[%s17272_s7 + $0x1888] ss:$16 sps:$4 sm:$0xff]  }
 0x316   : > { %9648 = vmatpush1.bf16.msra.mxu0 %v16408_v12  ;;  %11569 = vmatpush1.bf16.msra.mxu1 %v16411_v13  ;;  %v16510_v12 = vld [vmem:[%s19418_s0 + $0x38c] ss:$136 sps:$4 sm:$0xff]   ;;  %v16504_v13 = vld [vmem:[%s17272_s7 + $0x18a0] ss:$16 sps:$4 sm:$0xff]  }
 0x317   : > { %9649 = vmatprep.subr.bf16.mxu0 %v16416_v14  ;;  %11570 = vmatprep.subr.bf16.mxu1 %v16419_v15  ;;  %v16507_v14 = vld [vmem:[%s17272_s7 + $0x18a8] ss:$16 sps:$4 sm:$0xff]  }
 0x318   : > { %9600 = vmatprep.mubr.bf16.mxu0 %v16420_v16  ;;  %11521 = vmatprep.mubr.bf16.mxu1 %v16420_v16  ;;  %v16512_v15 = vld [vmem:[%s19418_s0 + $0x388] ss:$136 sps:$4 sm:$0xff]   ;;  %v16515_v16 = vld [vmem:[%s17272_s7 + $0x18c4] ss:$16 sps:$4 sm:$0xff]  }
 0x31a   : > { %9650 = vmatpush1.bf16.msra.mxu0 %v16414_v17  ;;  %11571 = vmatpush1.bf16.msra.mxu1 %v16417_v18  ;;  %v16518_v17 = vld [vmem:[%s17272_s7 + $0x18cc] ss:$16 sps:$4 sm:$0xff]   ;;  %v16513_v18 = vld [vmem:[%s17272_s7 + $0x18c0] ss:$16 sps:$4 sm:$0xff]  }
 0x31b   : > { %9651 = vmatprep.subr.bf16.mxu0 %v16425_v20  ;;  %11572 = vmatprep.subr.bf16.mxu1 %v16428_v21  ;;  %v16521_v20 = vld [vmem:[%s17272_s7 + $0x18e4] ss:$16 sps:$4 sm:$0xff]   ;;  %v16524_v21 = vld [vmem:[%s17272_s7 + $0x18ec] ss:$16 sps:$4 sm:$0xff]  }
 0x31d   : > { %9601 = vmatmul.mubr.bf16.gmra.mrb[20].mxu0 %v16422_v19  ;;  %11522 = vmatmul.mubr.bf16.gmra.mrb[20].mxu1 %v16422_v19  ;;  %v16516_v19 = vld [vmem:[%s17272_s7 + $0x18c8] ss:$16 sps:$4 sm:$0xff]  }
 0x31e   : > { %9652 = vmatpush1.bf16.msra.mxu0 %v16423_v22  ;;  %11573 = vmatpush1.bf16.msra.mxu1 %v16426_v23  ;;  %v16525_v22 = vld [vmem:[%s19418_s0 + $0x49c] ss:$136 sps:$4 sm:$0xff]   ;;  %v16519_v23 = vld [vmem:[%s17272_s7 + $0x18e0] ss:$16 sps:$4 sm:$0xff]  }
 0x31f   : > { %9653 = vmatprep.subr.bf16.mxu0 %v16431_v24  ;;  %11574 = vmatprep.subr.bf16.mxu1 %v16434_v25  ;;  %v16522_v24 = vld [vmem:[%s17272_s7 + $0x18e8] ss:$16 sps:$4 sm:$0xff]  }
 0x320   : > { %9610 = vmatprep.mubr.bf16.mxu0 %v16435_v26  ;;  %11531 = vmatprep.mubr.bf16.mxu1 %v16435_v26  ;;  %v16527_v25 = vld [vmem:[%s19418_s0 + $0x498] ss:$136 sps:$4 sm:$0xff]   ;;  %v16530_v26 = vld [vmem:[%s17272_s7 + $0x1904] ss:$16 sps:$4 sm:$0xff]  }
 0x322   : > { %9654 = vmatpush1.bf16.msra.mxu0 %v16429_v27  ;;  %11575 = vmatpush1.bf16.msra.mxu1 %v16432_v28  ;;  %v16533_v27 = vld [vmem:[%s17272_s7 + $0x190c] ss:$16 sps:$4 sm:$0xff]   ;;  %v16528_v28 = vld [vmem:[%s17272_s7 + $0x1900] ss:$16 sps:$4 sm:$0xff]  }
 0x323   : > { %9655 = vmatprep.subr.bf16.mxu0 %v16440_v30  ;;  %11576 = vmatprep.subr.bf16.mxu1 %v16443_v31  ;;  %v16536_v30 = vld [vmem:[%s17272_s7 + $0x1924] ss:$16 sps:$4 sm:$0xff]   ;;  %v16539_v31 = vld [vmem:[%s17272_s7 + $0x192c] ss:$16 sps:$4 sm:$0xff]  }
 0x325   : > { %9611 = vmatmul.mubr.bf16.gmra.mrb[24].mxu0 %v16437_v29  ;;  %11532 = vmatmul.mubr.bf16.gmra.mrb[24].mxu1 %v16437_v29  ;;  %v16531_v29 = vld [vmem:[%s17272_s7 + $0x1908] ss:$16 sps:$4 sm:$0xff]  }
 0x326   : > { %9656 = vmatpush1.bf16.msra.mxu0 %v16438_v32  ;;  %11577 = vmatpush1.bf16.msra.mxu1 %v16441_v33  ;;  %v16540_v32 = vld [vmem:[%s19418_s0 + $0x5ac] ss:$136 sps:$4 sm:$0xff]   ;;  %v16534_v33 = vld [vmem:[%s17272_s7 + $0x1920] ss:$16 sps:$4 sm:$0xff]  }
 0x327   : > { %9657 = vmatprep.subr.bf16.mxu0 %v16446_v34  ;;  %11578 = vmatprep.subr.bf16.mxu1 %v16449_v35  ;;  %v16537_v34 = vld [vmem:[%s17272_s7 + $0x1928] ss:$16 sps:$4 sm:$0xff]  }
 0x328   : > { %9620 = vmatprep.mubr.bf16.mxu0 %v16450_v36  ;;  %11541 = vmatprep.mubr.bf16.mxu1 %v16450_v36  ;;  %v16542_v35 = vld [vmem:[%s19418_s0 + $0x5a8] ss:$136 sps:$4 sm:$0xff]   ;;  %v16545_v36 = vld [vmem:[%s17272_s7 + $0x1944] ss:$16 sps:$4 sm:$0xff]  }
 0x32a   : > { %9658 = vmatpush1.bf16.msra.mxu0 %v16444_v37  ;;  %11579 = vmatpush1.bf16.msra.mxu1 %v16447_v38  ;;  %v16548_v37 = vld [vmem:[%s17272_s7 + $0x194c] ss:$16 sps:$4 sm:$0xff]   ;;  %v16543_v38 = vld [vmem:[%s17272_s7 + $0x1940] ss:$16 sps:$4 sm:$0xff]  }
 0x32b   : > { %9659 = vmatprep.subr.bf16.mxu0 %v16455_v40  ;;  %11580 = vmatprep.subr.bf16.mxu1 %v16458_v41  ;;  %v16551_v40 = vld [vmem:[%s17272_s7 + $0x1964] ss:$16 sps:$4 sm:$0xff]   ;;  %v16554_v41 = vld [vmem:[%s17272_s7 + $0x196c] ss:$16 sps:$4 sm:$0xff]  }
 0x32d   : > { %9621 = vmatmul.mubr.bf16.gmra.mrb[28].mxu0 %v16452_v39  ;;  %11542 = vmatmul.mubr.bf16.gmra.mrb[28].mxu1 %v16452_v39  ;;  %v16546_v39 = vld [vmem:[%s17272_s7 + $0x1948] ss:$16 sps:$4 sm:$0xff]  }
 0x32e   : > { %9660 = vmatpush1.bf16.msra.mxu0 %v16453_v42  ;;  %11581 = vmatpush1.bf16.msra.mxu1 %v16456_v43  ;;  %v16555_v42 = vld [vmem:[%s19418_s0 + $0x6bc] ss:$136 sps:$4 sm:$0xff]   ;;  %v16549_v43 = vld [vmem:[%s17272_s7 + $0x1960] ss:$16 sps:$4 sm:$0xff]  }
 0x32f   : > { %9661 = vmatprep.subr.bf16.mxu0 %v16461_v44  ;;  %11582 = vmatprep.subr.bf16.mxu1 %v16464_v45  ;;  %v16552_v44 = vld [vmem:[%s17272_s7 + $0x1968] ss:$16 sps:$4 sm:$0xff]  }
 0x330   : > { %9663 = vmatprep.mubr.bf16.mxu0 %v16467_v46  ;;  %11584 = vmatprep.mubr.bf16.mxu1 %v16467_v46  ;;  %v16557_v45 = vld [vmem:[%s19418_s0 + $0x6b8] ss:$136 sps:$4 sm:$0xff]   ;;  %v16560_v46 = vld [vmem:[%s17272_s7 + $0x1984] ss:$16 sps:$4 sm:$0xff]  }
 0x332   : > { %9662 = vmatpush1.bf16.msra.mxu0 %v16459_v47  ;;  %11583 = vmatpush1.bf16.msra.mxu1 %v16462_v48  ;;  %v16563_v47 = vld [vmem:[%s17272_s7 + $0x198c] ss:$16 sps:$4 sm:$0xff]   ;;  %v16558_v48 = vld [vmem:[%s17272_s7 + $0x1980] ss:$16 sps:$4 sm:$0xff]  }
 0x333   : > { %9744 = vmatprep.subr.bf16.mxu0 %v16470_v50  ;;  %11665 = vmatprep.subr.bf16.mxu1 %v16473_v51  ;;  %v16566_v50 = vld [vmem:[%s17272_s7 + $0x19a4] ss:$16 sps:$4 sm:$0xff]   ;;  %v16569_v51 = vld [vmem:[%s17272_s7 + $0x19ac] ss:$16 sps:$4 sm:$0xff]  }
 0x335   : > { %9664 = vmatmul.mubr.bf16.vlgmr.msra.gmra.mrb[0].mxu0 %v16465_v49  ;;  %11585 = vmatmul.mubr.bf16.vlgmr.msra.gmra.mrb[0].mxu1 %v16465_v49  ;;  %v16561_v49 = vld [vmem:[%s17272_s7 + $0x1988] ss:$16 sps:$4 sm:$0xff]  }
 0x336   : > { %9745 = vmatpush1.bf16.msra.mxu0 %v16468_v52  ;;  %11666 = vmatpush1.bf16.msra.mxu1 %v16471_v53  ;;  %v16570_v52 = vld [vmem:[%s19418_s0 + $0x7cc] ss:$136 sps:$4 sm:$0xff]   ;;  %v16564_v53 = vld [vmem:[%s17272_s7 + $0x19a0] ss:$16 sps:$4 sm:$0xff]  }
 0x337   : > { %9746 = vmatprep.subr.bf16.mxu0 %v16476_v54  ;;  %11667 = vmatprep.subr.bf16.mxu1 %v16479_v55  ;;  %v16567_v54 = vld [vmem:[%s17272_s7 + $0x19a8] ss:$16 sps:$4 sm:$0xff]  }
 0x338   : > { %9673 = vmatprep.mubr.bf16.mxu0 %v16480_v56  ;;  %11594 = vmatprep.mubr.bf16.mxu1 %v16480_v56  ;;  %v16572_v55 = vld [vmem:[%s19418_s0 + $0x7c8] ss:$136 sps:$4 sm:$0xff]   ;;  %v16575_v56 = vld [vmem:[%s17272_s7 + $0x19c4] ss:$16 sps:$4 sm:$0xff]  }
 0x33a   : > { %9747 = vmatpush1.bf16.msra.mxu0 %v16474_v57  ;;  %11668 = vmatpush1.bf16.msra.mxu1 %v16477_v58  ;;  %v16578_v57 = vld [vmem:[%s17272_s7 + $0x19cc] ss:$16 sps:$4 sm:$0xff]   ;;  %v16573_v58 = vld [vmem:[%s17272_s7 + $0x19c0] ss:$16 sps:$4 sm:$0xff]  }
 0x33b   : > { %9748 = vmatprep.subr.bf16.mxu0 %v16485_v60  ;;  %11669 = vmatprep.subr.bf16.mxu1 %v16488_v61  ;;  %v16581_v60 = vld [vmem:[%s17272_s7 + $0x19e4] ss:$16 sps:$4 sm:$0xff]   ;;  %v16584_v61 = vld [vmem:[%s17272_s7 + $0x19ec] ss:$16 sps:$4 sm:$0xff]  }
 0x33d   : > { %9674 = vmatmul.mubr.bf16.gmra.mrb[4].mxu0 %v16482_v59  ;;  %11595 = vmatmul.mubr.bf16.gmra.mrb[4].mxu1 %v16482_v59  ;;  %v16576_v59 = vld [vmem:[%s17272_s7 + $0x19c8] ss:$16 sps:$4 sm:$0xff]  }
 0x33e   : > { %9749 = vmatpush1.bf16.msra.mxu0 %v16483_v62  ;;  %11670 = vmatpush1.bf16.msra.mxu1 %v16486_v63  ;;  %v16587_v62 = vld [vmem:[%s19418_s0 + $0x64] ss:$136 sps:$4 sm:$0xff]   ;;  %v16579_v63 = vld [vmem:[%s17272_s7 + $0x19e0] ss:$16 sps:$4 sm:$0xff]  }
 0x33f   : > { %9750 = vmatprep.subr.bf16.mxu0 %v16491_v0  ;;  %11671 = vmatprep.subr.bf16.mxu1 %v16494_v1  ;;  %v16582_v0 = vld [vmem:[%s17272_s7 + $0x19e8] ss:$16 sps:$4 sm:$0xff]  }
 0x340   : > { %9683 = vmatprep.mubr.bf16.mxu0 %v16495_v2  ;;  %11604 = vmatprep.mubr.bf16.mxu1 %v16495_v2  ;;  %v16585_v1 = vld [vmem:[%s19418_s0 + $0x60] ss:$136 sps:$4 sm:$0xff]   ;;  %v16590_v2 = vld [vmem:[%s17272_s7 + $0x1a04] ss:$16 sps:$4 sm:$0xff]  }
 0x342   : > { %9751 = vmatpush1.bf16.msra.mxu0 %v16489_v3  ;;  %11672 = vmatpush1.bf16.msra.mxu1 %v16492_v4  ;;  %v16593_v3 = vld [vmem:[%s17272_s7 + $0x1a0c] ss:$16 sps:$4 sm:$0xff]   ;;  %v16588_v4 = vld [vmem:[%s17272_s7 + $0x1a00] ss:$16 sps:$4 sm:$0xff]  }
 0x343   : > { %9752 = vmatprep.subr.bf16.mxu0 %v16500_v6  ;;  %11673 = vmatprep.subr.bf16.mxu1 %v16503_v7  ;;  %v16596_v6 = vld [vmem:[%s17272_s7 + $0x1a24] ss:$16 sps:$4 sm:$0xff]   ;;  %v16599_v7 = vld [vmem:[%s17272_s7 + $0x1a2c] ss:$16 sps:$4 sm:$0xff]  }
 0x345   : > { %9684 = vmatmul.mubr.bf16.gmra.mrb[8].mxu0 %v16497_v5  ;;  %11605 = vmatmul.mubr.bf16.gmra.mrb[8].mxu1 %v16497_v5  ;;  %v16591_v5 = vld [vmem:[%s17272_s7 + $0x1a08] ss:$16 sps:$4 sm:$0xff]  }
 0x346   : > { %9753 = vmatpush1.bf16.msra.mxu0 %v16498_v8  ;;  %11674 = vmatpush1.bf16.msra.mxu1 %v16501_v9  ;;  %v16600_v8 = vld [vmem:[%s19418_s0 + $0x174] ss:$136 sps:$4 sm:$0xff]   ;;  %v16594_v9 = vld [vmem:[%s17272_s7 + $0x1a20] ss:$16 sps:$4 sm:$0xff]  }
 0x347   : > { %9754 = vmatprep.subr.bf16.mxu0 %v16506_v10  ;;  %11675 = vmatprep.subr.bf16.mxu1 %v16509_v11  ;;  %v16597_v10 = vld [vmem:[%s17272_s7 + $0x1a28] ss:$16 sps:$4 sm:$0xff]  }
 0x348   : > { %9693 = vmatprep.mubr.bf16.mxu0 %v16510_v12  ;;  %11614 = vmatprep.mubr.bf16.mxu1 %v16510_v12  ;;  %v16602_v11 = vld [vmem:[%s19418_s0 + $0x170] ss:$136 sps:$4 sm:$0xff]   ;;  %v16605_v12 = vld [vmem:[%s17272_s7 + $0x1a44] ss:$16 sps:$4 sm:$0xff]  }
 0x34a   : > { %9755 = vmatpush1.bf16.msra.mxu0 %v16504_v13  ;;  %11676 = vmatpush1.bf16.msra.mxu1 %v16507_v14  ;;  %v16608_v13 = vld [vmem:[%s17272_s7 + $0x1a4c] ss:$16 sps:$4 sm:$0xff]   ;;  %v16603_v14 = vld [vmem:[%s17272_s7 + $0x1a40] ss:$16 sps:$4 sm:$0xff]  }
 0x34b   : > { %9756 = vmatprep.subr.bf16.mxu0 %v16515_v16  ;;  %11677 = vmatprep.subr.bf16.mxu1 %v16518_v17  ;;  %v16611_v16 = vld [vmem:[%s17272_s7 + $0x1a64] ss:$16 sps:$4 sm:$0xff]   ;;  %v16614_v17 = vld [vmem:[%s17272_s7 + $0x1a6c] ss:$16 sps:$4 sm:$0xff]  }
 0x34d   : > { %9694 = vmatmul.mubr.bf16.gmra.mrb[12].mxu0 %v16512_v15  ;;  %11615 = vmatmul.mubr.bf16.gmra.mrb[12].mxu1 %v16512_v15  ;;  %v16606_v15 = vld [vmem:[%s17272_s7 + $0x1a48] ss:$16 sps:$4 sm:$0xff]  }
 0x34e   : > { %9757 = vmatpush1.bf16.msra.mxu0 %v16513_v18  ;;  %11678 = vmatpush1.bf16.msra.mxu1 %v16516_v19  ;;  %v16615_v18 = vld [vmem:[%s19418_s0 + $0x284] ss:$136 sps:$4 sm:$0xff]   ;;  %v16609_v19 = vld [vmem:[%s17272_s7 + $0x1a60] ss:$16 sps:$4 sm:$0xff]  }
 0x34f   : > { %9758 = vmatprep.subr.bf16.mxu0 %v16521_v20  ;;  %11679 = vmatprep.subr.bf16.mxu1 %v16524_v21  ;;  %v16612_v20 = vld [vmem:[%s17272_s7 + $0x1a68] ss:$16 sps:$4 sm:$0xff]  }
 0x350   : > { %9703 = vmatprep.mubr.bf16.mxu0 %v16525_v22  ;;  %11624 = vmatprep.mubr.bf16.mxu1 %v16525_v22  ;;  %v16617_v21 = vld [vmem:[%s19418_s0 + $0x280] ss:$136 sps:$4 sm:$0xff]   ;;  %v16620_v22 = vld [vmem:[%s17272_s7 + $0x1a84] ss:$16 sps:$4 sm:$0xff]  }
 0x352   : > { %9759 = vmatpush1.bf16.msra.mxu0 %v16519_v23  ;;  %11680 = vmatpush1.bf16.msra.mxu1 %v16522_v24  ;;  %v16623_v23 = vld [vmem:[%s17272_s7 + $0x1a8c] ss:$16 sps:$4 sm:$0xff]   ;;  %v16618_v24 = vld [vmem:[%s17272_s7 + $0x1a80] ss:$16 sps:$4 sm:$0xff]  }
 0x353   : > { %9760 = vmatprep.subr.bf16.mxu0 %v16530_v26  ;;  %11681 = vmatprep.subr.bf16.mxu1 %v16533_v27  ;;  %v16626_v26 = vld [vmem:[%s17272_s7 + $0x1aa4] ss:$16 sps:$4 sm:$0xff]   ;;  %v16629_v27 = vld [vmem:[%s17272_s7 + $0x1aac] ss:$16 sps:$4 sm:$0xff]  }
 0x355   : > { %9704 = vmatmul.mubr.bf16.gmra.mrb[16].mxu0 %v16527_v25  ;;  %11625 = vmatmul.mubr.bf16.gmra.mrb[16].mxu1 %v16527_v25  ;;  %v16621_v25 = vld [vmem:[%s17272_s7 + $0x1a88] ss:$16 sps:$4 sm:$0xff]  }
 0x356   : > { %9761 = vmatpush1.bf16.msra.mxu0 %v16528_v28  ;;  %11682 = vmatpush1.bf16.msra.mxu1 %v16531_v29  ;;  %v16630_v28 = vld [vmem:[%s19418_s0 + $0x394] ss:$136 sps:$4 sm:$0xff]   ;;  %v16624_v29 = vld [vmem:[%s17272_s7 + $0x1aa0] ss:$16 sps:$4 sm:$0xff]  }
 0x357   : > { %9762 = vmatprep.subr.bf16.mxu0 %v16536_v30  ;;  %11683 = vmatprep.subr.bf16.mxu1 %v16539_v31  ;;  %v16627_v30 = vld [vmem:[%s17272_s7 + $0x1aa8] ss:$16 sps:$4 sm:$0xff]  }
 0x358   : > { %9713 = vmatprep.mubr.bf16.mxu0 %v16540_v32  ;;  %11634 = vmatprep.mubr.bf16.mxu1 %v16540_v32  ;;  %v16632_v31 = vld [vmem:[%s19418_s0 + $0x390] ss:$136 sps:$4 sm:$0xff]   ;;  %v16635_v32 = vld [vmem:[%s17272_s7 + $0x1ac4] ss:$16 sps:$4 sm:$0xff]  }
 0x35a   : > { %9763 = vmatpush1.bf16.msra.mxu0 %v16534_v33  ;;  %11684 = vmatpush1.bf16.msra.mxu1 %v16537_v34  ;;  %v16638_v33 = vld [vmem:[%s17272_s7 + $0x1acc] ss:$16 sps:$4 sm:$0xff]   ;;  %v16633_v34 = vld [vmem:[%s17272_s7 + $0x1ac0] ss:$16 sps:$4 sm:$0xff]  }
 0x35b   : > { %9764 = vmatprep.subr.bf16.mxu0 %v16545_v36  ;;  %11685 = vmatprep.subr.bf16.mxu1 %v16548_v37  ;;  %v16641_v36 = vld [vmem:[%s17272_s7 + $0x1ae4] ss:$16 sps:$4 sm:$0xff]   ;;  %v16644_v37 = vld [vmem:[%s17272_s7 + $0x1aec] ss:$16 sps:$4 sm:$0xff]  }
 0x35d   : > { %9714 = vmatmul.mubr.bf16.gmra.mrb[20].mxu0 %v16542_v35  ;;  %11635 = vmatmul.mubr.bf16.gmra.mrb[20].mxu1 %v16542_v35  ;;  %v16636_v35 = vld [vmem:[%s17272_s7 + $0x1ac8] ss:$16 sps:$4 sm:$0xff]  }
 0x35e   : > { %9765 = vmatpush1.bf16.msra.mxu0 %v16543_v38  ;;  %11686 = vmatpush1.bf16.msra.mxu1 %v16546_v39  ;;  %v16645_v38 = vld [vmem:[%s19418_s0 + $0x4a4] ss:$136 sps:$4 sm:$0xff]   ;;  %v16639_v39 = vld [vmem:[%s17272_s7 + $0x1ae0] ss:$16 sps:$4 sm:$0xff]  }
 0x35f   : > { %9766 = vmatprep.subr.bf16.mxu0 %v16551_v40  ;;  %11687 = vmatprep.subr.bf16.mxu1 %v16554_v41  ;;  %v16642_v40 = vld [vmem:[%s17272_s7 + $0x1ae8] ss:$16 sps:$4 sm:$0xff]   ;;  %v16650_v41 = vld [vmem:[%s17272_s7 + $0x1b04] ss:$16 sps:$4 sm:$0xff]  }
 0x360   : > { %9723 = vmatprep.mubr.bf16.mxu0 %v16555_v42  ;;  %11644 = vmatprep.mubr.bf16.mxu1 %v16555_v42  ;;  %v16653_v42 = vld [vmem:[%s17272_s7 + $0x1b0c] ss:$16 sps:$4 sm:$0xff]  }
 0x362   : > { %9767 = vmatpush1.bf16.msra.mxu0 %v16549_v43  ;;  %11688 = vmatpush1.bf16.msra.mxu1 %v16552_v44  ;;  %v16647_v43 = vld [vmem:[%s19418_s0 + $0x4a0] ss:$136 sps:$4 sm:$0xff]  }
 0x363   : > { %9768 = vmatprep.subr.bf16.mxu0 %v16560_v46  ;;  %11689 = vmatprep.subr.bf16.mxu1 %v16563_v47  ;;  %v16648_v44 = vld [vmem:[%s17272_s7 + $0x1b00] ss:$16 sps:$4 sm:$0xff]   ;;  %v16656_v46 = vld [vmem:[%s17272_s7 + $0x1b24] ss:$16 sps:$4 sm:$0xff]   ;;  %v16659_v47 = vld [vmem:[%s17272_s7 + $0x1b2c] ss:$16 sps:$4 sm:$0xff]  }
 0x365   : > { %9724 = vmatmul.mubr.bf16.gmra.mrb[24].mxu0 %v16557_v45  ;;  %11645 = vmatmul.mubr.bf16.gmra.mrb[24].mxu1 %v16557_v45  ;;  %v16651_v45 = vld [vmem:[%s17272_s7 + $0x1b08] ss:$16 sps:$4 sm:$0xff]  }
 0x366   : > { %9769 = vmatpush1.bf16.msra.mxu0 %v16558_v48  ;;  %11690 = vmatpush1.bf16.msra.mxu1 %v16561_v49  ;;  %v16660_v48 = vld [vmem:[%s19418_s0 + $0x5b4] ss:$136 sps:$4 sm:$0xff]   ;;  %v16654_v49 = vld [vmem:[%s17272_s7 + $0x1b20] ss:$16 sps:$4 sm:$0xff]  }
 0x367   : > { %9770 = vmatprep.subr.bf16.mxu0 %v16566_v50  ;;  %11691 = vmatprep.subr.bf16.mxu1 %v16569_v51  ;;  %v16657_v50 = vld [vmem:[%s17272_s7 + $0x1b28] ss:$16 sps:$4 sm:$0xff]   ;;  %v16665_v51 = vld [vmem:[%s17272_s7 + $0x1b44] ss:$16 sps:$4 sm:$0xff]  }
 0x368   : > { %9733 = vmatprep.mubr.bf16.mxu0 %v16570_v52  ;;  %11654 = vmatprep.mubr.bf16.mxu1 %v16570_v52  ;;  %v16668_v52 = vld [vmem:[%s17272_s7 + $0x1b4c] ss:$16 sps:$4 sm:$0xff]  }
 0x36a   : > { %9771 = vmatpush1.bf16.msra.mxu0 %v16564_v53  ;;  %11692 = vmatpush1.bf16.msra.mxu1 %v16567_v54  ;;  %v16662_v53 = vld [vmem:[%s19418_s0 + $0x5b0] ss:$136 sps:$4 sm:$0xff]  }
 0x36b   : > { %9772 = vmatprep.subr.bf16.mxu0 %v16575_v56  ;;  %11693 = vmatprep.subr.bf16.mxu1 %v16578_v57  ;;  %v16663_v54 = vld [vmem:[%s17272_s7 + $0x1b40] ss:$16 sps:$4 sm:$0xff]   ;;  %v16671_v56 = vld [vmem:[%s17272_s7 + $0x1b64] ss:$16 sps:$4 sm:$0xff]   ;;  %v16674_v57 = vld [vmem:[%s17272_s7 + $0x1b6c] ss:$16 sps:$4 sm:$0xff]  }
 0x36d   : > { %9734 = vmatmul.mubr.bf16.gmra.mrb[28].mxu0 %v16572_v55  ;;  %11655 = vmatmul.mubr.bf16.gmra.mrb[28].mxu1 %v16572_v55  ;;  %v16666_v55 = vld [vmem:[%s17272_s7 + $0x1b48] ss:$16 sps:$4 sm:$0xff]  }
 0x36e   : > { %9773 = vmatpush1.bf16.msra.mxu0 %v16573_v58  ;;  %11694 = vmatpush1.bf16.msra.mxu1 %v16576_v59  ;;  %v16675_v58 = vld [vmem:[%s19418_s0 + $0x6c4] ss:$136 sps:$4 sm:$0xff]   ;;  %v16669_v59 = vld [vmem:[%s17272_s7 + $0x1b60] ss:$16 sps:$4 sm:$0xff]  }
 0x36f   : > { %9774 = vmatprep.subr.bf16.mxu0 %v16581_v60  ;;  %11695 = vmatprep.subr.bf16.mxu1 %v16584_v61  ;;  %v16672_v60 = vld [vmem:[%s17272_s7 + $0x1b68] ss:$16 sps:$4 sm:$0xff]   ;;  %v16680_v61 = vld [vmem:[%s17272_s7 + $0x1b84] ss:$16 sps:$4 sm:$0xff]  }
 0x370   : > { %9776 = vmatprep.mubr.bf16.mxu0 %v16587_v62  ;;  %11697 = vmatprep.mubr.bf16.mxu1 %v16587_v62  ;;  %v16683_v62 = vld [vmem:[%s17272_s7 + $0x1b8c] ss:$16 sps:$4 sm:$0xff]  }
 0x372   : > { %9775 = vmatpush1.bf16.msra.mxu0 %v16579_v63  ;;  %11696 = vmatpush1.bf16.msra.mxu1 %v16582_v0  ;;  %v16677_v63 = vld [vmem:[%s19418_s0 + $0x6c0] ss:$136 sps:$4 sm:$0xff]  }
 0x373   : > { %9857 = vmatprep.subr.bf16.mxu0 %v16590_v2  ;;  %11778 = vmatprep.subr.bf16.mxu1 %v16593_v3  ;;  %v16678_v0 = vld [vmem:[%s17272_s7 + $0x1b80] ss:$16 sps:$4 sm:$0xff]   ;;  %v16686_v2 = vld [vmem:[%s17272_s7 + $0x1ba4] ss:$16 sps:$4 sm:$0xff]   ;;  %v16689_v3 = vld [vmem:[%s17272_s7 + $0x1bac] ss:$16 sps:$4 sm:$0xff]  }
 0x375   : > { %9777 = vmatmul.mubr.bf16.vlgmr.msra.gmra.mrb[0].mxu0 %v16585_v1  ;;  %11698 = vmatmul.mubr.bf16.vlgmr.msra.gmra.mrb[0].mxu1 %v16585_v1  ;;  %v16681_v1 = vld [vmem:[%s17272_s7 + $0x1b88] ss:$16 sps:$4 sm:$0xff]  }
 0x376   : > { %9858 = vmatpush1.bf16.msra.mxu0 %v16588_v4  ;;  %11779 = vmatpush1.bf16.msra.mxu1 %v16591_v5  ;;  %v16690_v4 = vld [vmem:[%s19418_s0 + $0x7d4] ss:$136 sps:$4 sm:$0xff]   ;;  %v16684_v5 = vld [vmem:[%s17272_s7 + $0x1ba0] ss:$16 sps:$4 sm:$0xff]  }
 0x377   : > { %9859 = vmatprep.subr.bf16.mxu0 %v16596_v6  ;;  %11780 = vmatprep.subr.bf16.mxu1 %v16599_v7  ;;  %v16687_v6 = vld [vmem:[%s17272_s7 + $0x1ba8] ss:$16 sps:$4 sm:$0xff]   ;;  %v16695_v7 = vld [vmem:[%s17272_s7 + $0x1bc4] ss:$16 sps:$4 sm:$0xff]  }
 0x378   : > { %9786 = vmatprep.mubr.bf16.mxu0 %v16600_v8  ;;  %11707 = vmatprep.mubr.bf16.mxu1 %v16600_v8  ;;  %v16698_v8 = vld [vmem:[%s17272_s7 + $0x1bcc] ss:$16 sps:$4 sm:$0xff]  }
 0x37a   : > { %9860 = vmatpush1.bf16.msra.mxu0 %v16594_v9  ;;  %11781 = vmatpush1.bf16.msra.mxu1 %v16597_v10  ;;  %v16692_v9 = vld [vmem:[%s19418_s0 + $0x7d0] ss:$136 sps:$4 sm:$0xff]  }
 0x37b   : > { %9861 = vmatprep.subr.bf16.mxu0 %v16605_v12  ;;  %11782 = vmatprep.subr.bf16.mxu1 %v16608_v13  ;;  %v16693_v10 = vld [vmem:[%s17272_s7 + $0x1bc0] ss:$16 sps:$4 sm:$0xff]   ;;  %v16701_v12 = vld [vmem:[%s17272_s7 + $0x1be4] ss:$16 sps:$4 sm:$0xff]   ;;  %v16704_v13 = vld [vmem:[%s17272_s7 + $0x1bec] ss:$16 sps:$4 sm:$0xff]  }
 0x37d   : > { %9787 = vmatmul.mubr.bf16.gmra.mrb[4].mxu0 %v16602_v11  ;;  %11708 = vmatmul.mubr.bf16.gmra.mrb[4].mxu1 %v16602_v11  ;;  %v16696_v11 = vld [vmem:[%s17272_s7 + $0x1bc8] ss:$16 sps:$4 sm:$0xff]  }
 0x37e   : > { %9862 = vmatpush1.bf16.msra.mxu0 %v16603_v14  ;;  %11783 = vmatpush1.bf16.msra.mxu1 %v16606_v15  ;;  %v16707_v14 = vld [vmem:[%s19418_s0 + $0x6c] ss:$136 sps:$4 sm:$0xff]   ;;  %v16699_v15 = vld [vmem:[%s17272_s7 + $0x1be0] ss:$16 sps:$4 sm:$0xff]  }
 0x37f   : > { %9863 = vmatprep.subr.bf16.mxu0 %v16611_v16  ;;  %11784 = vmatprep.subr.bf16.mxu1 %v16614_v17  ;;  %v16702_v16 = vld [vmem:[%s17272_s7 + $0x1be8] ss:$16 sps:$4 sm:$0xff]   ;;  %v16710_v17 = vld [vmem:[%s17272_s7 + $0x1c04] ss:$16 sps:$4 sm:$0xff]  }
 0x380   : > { %9796 = vmatprep.mubr.bf16.mxu0 %v16615_v18  ;;  %11717 = vmatprep.mubr.bf16.mxu1 %v16615_v18  ;;  %v16713_v18 = vld [vmem:[%s17272_s7 + $0x1c0c] ss:$16 sps:$4 sm:$0xff]  }
 0x382   : > { %9864 = vmatpush1.bf16.msra.mxu0 %v16609_v19  ;;  %11785 = vmatpush1.bf16.msra.mxu1 %v16612_v20  ;;  %v16705_v19 = vld [vmem:[%s19418_s0 + $0x68] ss:$136 sps:$4 sm:$0xff]  }
 0x383   : > { %9865 = vmatprep.subr.bf16.mxu0 %v16620_v22  ;;  %11786 = vmatprep.subr.bf16.mxu1 %v16623_v23  ;;  %v16708_v20 = vld [vmem:[%s17272_s7 + $0x1c00] ss:$16 sps:$4 sm:$0xff]   ;;  %v16716_v22 = vld [vmem:[%s17272_s7 + $0x1c24] ss:$16 sps:$4 sm:$0xff]   ;;  %v16719_v23 = vld [vmem:[%s17272_s7 + $0x1c2c] ss:$16 sps:$4 sm:$0xff]  }
 0x385   : > { %9797 = vmatmul.mubr.bf16.gmra.mrb[8].mxu0 %v16617_v21  ;;  %11718 = vmatmul.mubr.bf16.gmra.mrb[8].mxu1 %v16617_v21  ;;  %v16711_v21 = vld [vmem:[%s17272_s7 + $0x1c08] ss:$16 sps:$4 sm:$0xff]  }
 0x386   : > { %9866 = vmatpush1.bf16.msra.mxu0 %v16618_v24  ;;  %11787 = vmatpush1.bf16.msra.mxu1 %v16621_v25  ;;  %v16720_v24 = vld [vmem:[%s19418_s0 + $0x17c] ss:$136 sps:$4 sm:$0xff]   ;;  %v16714_v25 = vld [vmem:[%s17272_s7 + $0x1c20] ss:$16 sps:$4 sm:$0xff]  }
 0x387   : > { %9867 = vmatprep.subr.bf16.mxu0 %v16626_v26  ;;  %11788 = vmatprep.subr.bf16.mxu1 %v16629_v27  ;;  %v16717_v26 = vld [vmem:[%s17272_s7 + $0x1c28] ss:$16 sps:$4 sm:$0xff]   ;;  %v16725_v27 = vld [vmem:[%s17272_s7 + $0x1c44] ss:$16 sps:$4 sm:$0xff]  }
 0x388   : > { %9806 = vmatprep.mubr.bf16.mxu0 %v16630_v28  ;;  %11727 = vmatprep.mubr.bf16.mxu1 %v16630_v28  ;;  %v16728_v28 = vld [vmem:[%s17272_s7 + $0x1c4c] ss:$16 sps:$4 sm:$0xff]  }
 0x38a   : > { %9868 = vmatpush1.bf16.msra.mxu0 %v16624_v29  ;;  %11789 = vmatpush1.bf16.msra.mxu1 %v16627_v30  ;;  %v16722_v29 = vld [vmem:[%s19418_s0 + $0x178] ss:$136 sps:$4 sm:$0xff]  }
 0x38b   : > { %9869 = vmatprep.subr.bf16.mxu0 %v16635_v32  ;;  %11790 = vmatprep.subr.bf16.mxu1 %v16638_v33  ;;  %v16723_v30 = vld [vmem:[%s17272_s7 + $0x1c40] ss:$16 sps:$4 sm:$0xff]   ;;  %v16731_v32 = vld [vmem:[%s17272_s7 + $0x1c64] ss:$16 sps:$4 sm:$0xff]   ;;  %v16734_v33 = vld [vmem:[%s17272_s7 + $0x1c6c] ss:$16 sps:$4 sm:$0xff]  }
 0x38d   : > { %9807 = vmatmul.mubr.bf16.gmra.mrb[12].mxu0 %v16632_v31  ;;  %11728 = vmatmul.mubr.bf16.gmra.mrb[12].mxu1 %v16632_v31  ;;  %v16726_v31 = vld [vmem:[%s17272_s7 + $0x1c48] ss:$16 sps:$4 sm:$0xff]  }
 0x38e   : > { %9870 = vmatpush1.bf16.msra.mxu0 %v16633_v34  ;;  %11791 = vmatpush1.bf16.msra.mxu1 %v16636_v35  ;;  %v16735_v34 = vld [vmem:[%s19418_s0 + $0x28c] ss:$136 sps:$4 sm:$0xff]   ;;  %v16729_v35 = vld [vmem:[%s17272_s7 + $0x1c60] ss:$16 sps:$4 sm:$0xff]  }
 0x38f   : > { %9871 = vmatprep.subr.bf16.mxu0 %v16641_v36  ;;  %11792 = vmatprep.subr.bf16.mxu1 %v16644_v37  ;;  %v16732_v36 = vld [vmem:[%s17272_s7 + $0x1c68] ss:$16 sps:$4 sm:$0xff]   ;;  %v16740_v37 = vld [vmem:[%s17272_s7 + $0x1c84] ss:$16 sps:$4 sm:$0xff]  }
 0x390   : > { %9816 = vmatprep.mubr.bf16.mxu0 %v16645_v38  ;;  %11737 = vmatprep.mubr.bf16.mxu1 %v16645_v38  ;;  %v16743_v38 = vld [vmem:[%s17272_s7 + $0x1c8c] ss:$16 sps:$4 sm:$0xff]  }
 0x392   : > { %9872 = vmatpush1.bf16.msra.mxu0 %v16639_v39  ;;  %11793 = vmatpush1.bf16.msra.mxu1 %v16642_v40  ;;  %v16737_v39 = vld [vmem:[%s19418_s0 + $0x288] ss:$136 sps:$4 sm:$0xff]  }
 0x393   : > { %9873 = vmatprep.subr.bf16.mxu0 %v16650_v41  ;;  %11794 = vmatprep.subr.bf16.mxu1 %v16653_v42  ;;  %v16738_v40 = vld [vmem:[%s17272_s7 + $0x1c80] ss:$16 sps:$4 sm:$0xff]   ;;  %v16741_v41 = vld [vmem:[%s17272_s7 + $0x1c88] ss:$16 sps:$4 sm:$0xff]   ;;  %v16746_v42 = vld [vmem:[%s17272_s7 + $0x1ca4] ss:$16 sps:$4 sm:$0xff]  }
 0x395   : > { %9817 = vmatmul.mubr.bf16.gmra.mrb[16].mxu0 %v16647_v43  ;;  %11738 = vmatmul.mubr.bf16.gmra.mrb[16].mxu1 %v16647_v43  ;;  %v16749_v43 = vld [vmem:[%s17272_s7 + $0x1cac] ss:$16 sps:$4 sm:$0xff]  }
 0x396   : > { %9874 = vmatpush1.bf16.msra.mxu0 %v16648_v44  ;;  %11795 = vmatpush1.bf16.msra.mxu1 %v16651_v45  ;;  %v16750_v44 = vld [vmem:[%s19418_s0 + $0x39c] ss:$136 sps:$4 sm:$0xff]   ;;  %v16744_v45 = vld [vmem:[%s17272_s7 + $0x1ca0] ss:$16 sps:$4 sm:$0xff]  }
 0x397   : > { %9875 = vmatprep.subr.bf16.mxu0 %v16656_v46  ;;  %11796 = vmatprep.subr.bf16.mxu1 %v16659_v47  ;;  %v16747_v46 = vld [vmem:[%s17272_s7 + $0x1ca8] ss:$16 sps:$4 sm:$0xff]   ;;  %v16755_v47 = vld [vmem:[%s17272_s7 + $0x1cc4] ss:$16 sps:$4 sm:$0xff]  }
 0x398   : > { %9826 = vmatprep.mubr.bf16.mxu0 %v16660_v48  ;;  %11747 = vmatprep.mubr.bf16.mxu1 %v16660_v48  ;;  %v16758_v48 = vld [vmem:[%s17272_s7 + $0x1ccc] ss:$16 sps:$4 sm:$0xff]  }
 0x39a   : > { %9876 = vmatpush1.bf16.msra.mxu0 %v16654_v49  ;;  %11797 = vmatpush1.bf16.msra.mxu1 %v16657_v50  ;;  %v16752_v49 = vld [vmem:[%s19418_s0 + $0x398] ss:$136 sps:$4 sm:$0xff]  }
 0x39b   : > { %9877 = vmatprep.subr.bf16.mxu0 %v16665_v51  ;;  %11798 = vmatprep.subr.bf16.mxu1 %v16668_v52  ;;  %v16753_v50 = vld [vmem:[%s17272_s7 + $0x1cc0] ss:$16 sps:$4 sm:$0xff]   ;;  %v16756_v51 = vld [vmem:[%s17272_s7 + $0x1cc8] ss:$16 sps:$4 sm:$0xff]   ;;  %v16761_v52 = vld [vmem:[%s17272_s7 + $0x1ce4] ss:$16 sps:$4 sm:$0xff]  }
 0x39d   : > { %9827 = vmatmul.mubr.bf16.gmra.mrb[20].mxu0 %v16662_v53  ;;  %11748 = vmatmul.mubr.bf16.gmra.mrb[20].mxu1 %v16662_v53  ;;  %v16764_v53 = vld [vmem:[%s17272_s7 + $0x1cec] ss:$16 sps:$4 sm:$0xff]  }
 0x39e   : > { %9878 = vmatpush1.bf16.msra.mxu0 %v16663_v54  ;;  %11799 = vmatpush1.bf16.msra.mxu1 %v16666_v55  ;;  %v16765_v54 = vld [vmem:[%s19418_s0 + $0x4ac] ss:$136 sps:$4 sm:$0xff]   ;;  %v16759_v55 = vld [vmem:[%s17272_s7 + $0x1ce0] ss:$16 sps:$4 sm:$0xff]  }
 0x39f   : > { %9879 = vmatprep.subr.bf16.mxu0 %v16671_v56  ;;  %11800 = vmatprep.subr.bf16.mxu1 %v16674_v57  ;;  %v16762_v56 = vld [vmem:[%s17272_s7 + $0x1ce8] ss:$16 sps:$4 sm:$0xff]   ;;  %v16770_v57 = vld [vmem:[%s17272_s7 + $0x1d04] ss:$16 sps:$4 sm:$0xff]  }
 0x3a0   : > { %9836 = vmatprep.mubr.bf16.mxu0 %v16675_v58  ;;  %11757 = vmatprep.mubr.bf16.mxu1 %v16675_v58  ;;  %v16773_v58 = vld [vmem:[%s17272_s7 + $0x1d0c] ss:$16 sps:$4 sm:$0xff]  }
 0x3a2   : > { %9880 = vmatpush1.bf16.msra.mxu0 %v16669_v59  ;;  %11801 = vmatpush1.bf16.msra.mxu1 %v16672_v60  ;;  %v16767_v59 = vld [vmem:[%s19418_s0 + $0x4a8] ss:$136 sps:$4 sm:$0xff]  }
 0x3a3   : > { %9881 = vmatprep.subr.bf16.mxu0 %v16680_v61  ;;  %11802 = vmatprep.subr.bf16.mxu1 %v16683_v62  ;;  %v16768_v60 = vld [vmem:[%s17272_s7 + $0x1d00] ss:$16 sps:$4 sm:$0xff]   ;;  %v16771_v61 = vld [vmem:[%s17272_s7 + $0x1d08] ss:$16 sps:$4 sm:$0xff]   ;;  %v16776_v62 = vld [vmem:[%s17272_s7 + $0x1d24] ss:$16 sps:$4 sm:$0xff]  }
 0x3a5   : > { %9837 = vmatmul.mubr.bf16.gmra.mrb[24].mxu0 %v16677_v63  ;;  %11758 = vmatmul.mubr.bf16.gmra.mrb[24].mxu1 %v16677_v63  ;;  %v16779_v63 = vld [vmem:[%s17272_s7 + $0x1d2c] ss:$16 sps:$4 sm:$0xff]  }
 0x3a6   : > { %9882 = vmatpush1.bf16.msra.mxu0 %v16678_v0  ;;  %11803 = vmatpush1.bf16.msra.mxu1 %v16681_v1  ;;  %v16780_v0 = vld [vmem:[%s19418_s0 + $0x5bc] ss:$136 sps:$4 sm:$0xff]   ;;  %v16774_v1 = vld [vmem:[%s17272_s7 + $0x1d20] ss:$16 sps:$4 sm:$0xff]  }
 0x3a7   : > { %9883 = vmatprep.subr.bf16.mxu0 %v16686_v2  ;;  %11804 = vmatprep.subr.bf16.mxu1 %v16689_v3  ;;  %v16777_v2 = vld [vmem:[%s17272_s7 + $0x1d28] ss:$16 sps:$4 sm:$0xff]   ;;  %v16785_v3 = vld [vmem:[%s17272_s7 + $0x1d44] ss:$16 sps:$4 sm:$0xff]  }
 0x3a8   : > { %9846 = vmatprep.mubr.bf16.mxu0 %v16690_v4  ;;  %11767 = vmatprep.mubr.bf16.mxu1 %v16690_v4  ;;  %v16788_v4 = vld [vmem:[%s17272_s7 + $0x1d4c] ss:$16 sps:$4 sm:$0xff]  }
 0x3aa   : > { %9884 = vmatpush1.bf16.msra.mxu0 %v16684_v5  ;;  %11805 = vmatpush1.bf16.msra.mxu1 %v16687_v6  ;;  %v16782_v5 = vld [vmem:[%s19418_s0 + $0x5b8] ss:$136 sps:$4 sm:$0xff]  }
 0x3ab   : > { %9885 = vmatprep.subr.bf16.mxu0 %v16695_v7  ;;  %11806 = vmatprep.subr.bf16.mxu1 %v16698_v8  ;;  %v16783_v6 = vld [vmem:[%s17272_s7 + $0x1d40] ss:$16 sps:$4 sm:$0xff]   ;;  %v16786_v7 = vld [vmem:[%s17272_s7 + $0x1d48] ss:$16 sps:$4 sm:$0xff]   ;;  %v16791_v8 = vld [vmem:[%s17272_s7 + $0x1d64] ss:$16 sps:$4 sm:$0xff]  }
 0x3ad   : > { %9847 = vmatmul.mubr.bf16.gmra.mrb[28].mxu0 %v16692_v9  ;;  %11768 = vmatmul.mubr.bf16.gmra.mrb[28].mxu1 %v16692_v9  ;;  %v16794_v9 = vld [vmem:[%s17272_s7 + $0x1d6c] ss:$16 sps:$4 sm:$0xff]  }
 0x3ae   : > { %9886 = vmatpush1.bf16.msra.mxu0 %v16693_v10  ;;  %11807 = vmatpush1.bf16.msra.mxu1 %v16696_v11  ;;  %v16795_v10 = vld [vmem:[%s19418_s0 + $0x6cc] ss:$136 sps:$4 sm:$0xff]   ;;  %v16789_v11 = vld [vmem:[%s17272_s7 + $0x1d60] ss:$16 sps:$4 sm:$0xff]  }
 0x3af   : > { %9887 = vmatprep.subr.bf16.mxu0 %v16701_v12  ;;  %11808 = vmatprep.subr.bf16.mxu1 %v16704_v13  ;;  %v16792_v12 = vld [vmem:[%s17272_s7 + $0x1d68] ss:$16 sps:$4 sm:$0xff]   ;;  %v16800_v13 = vld [vmem:[%s17272_s7 + $0x1d84] ss:$16 sps:$4 sm:$0xff]  }
 0x3b0   : > { %9889 = vmatprep.mubr.bf16.mxu0 %v16707_v14  ;;  %11810 = vmatprep.mubr.bf16.mxu1 %v16707_v14  ;;  %v16803_v14 = vld [vmem:[%s17272_s7 + $0x1d8c] ss:$16 sps:$4 sm:$0xff]  }
 0x3b2   : > { %9888 = vmatpush1.bf16.msra.mxu0 %v16699_v15  ;;  %11809 = vmatpush1.bf16.msra.mxu1 %v16702_v16  ;;  %v16797_v15 = vld [vmem:[%s19418_s0 + $0x6c8] ss:$136 sps:$4 sm:$0xff]  }
 0x3b3   : > { %9970 = vmatprep.subr.bf16.mxu0 %v16710_v17  ;;  %11891 = vmatprep.subr.bf16.mxu1 %v16713_v18  ;;  %v16798_v16 = vld [vmem:[%s17272_s7 + $0x1d80] ss:$16 sps:$4 sm:$0xff]   ;;  %v16801_v17 = vld [vmem:[%s17272_s7 + $0x1d88] ss:$16 sps:$4 sm:$0xff]   ;;  %v16806_v18 = vld [vmem:[%s17272_s7 + $0x1da4] ss:$16 sps:$4 sm:$0xff]  }
 0x3b5   : > { %9890 = vmatmul.mubr.bf16.vlgmr.msra.gmra.mrb[0].mxu0 %v16705_v19  ;;  %11811 = vmatmul.mubr.bf16.vlgmr.msra.gmra.mrb[0].mxu1 %v16705_v19  ;;  %v16809_v19 = vld [vmem:[%s17272_s7 + $0x1dac] ss:$16 sps:$4 sm:$0xff]  }
 0x3b6   : > { %9971 = vmatpush1.bf16.msra.mxu0 %v16708_v20  ;;  %11892 = vmatpush1.bf16.msra.mxu1 %v16711_v21  ;;  %v16810_v20 = vld [vmem:[%s19418_s0 + $0x7dc] ss:$136 sps:$4 sm:$0xff]   ;;  %v16804_v21 = vld [vmem:[%s17272_s7 + $0x1da0] ss:$16 sps:$4 sm:$0xff]  }
 0x3b7   : > { %9972 = vmatprep.subr.bf16.mxu0 %v16716_v22  ;;  %11893 = vmatprep.subr.bf16.mxu1 %v16719_v23  ;;  %v16807_v22 = vld [vmem:[%s17272_s7 + $0x1da8] ss:$16 sps:$4 sm:$0xff]   ;;  %v16815_v23 = vld [vmem:[%s17272_s7 + $0x1dc4] ss:$16 sps:$4 sm:$0xff]  }
 0x3b8   : > { %9899 = vmatprep.mubr.bf16.mxu0 %v16720_v24  ;;  %11820 = vmatprep.mubr.bf16.mxu1 %v16720_v24  ;;  %v16818_v24 = vld [vmem:[%s17272_s7 + $0x1dcc] ss:$16 sps:$4 sm:$0xff]  }
 0x3ba   : > { %9973 = vmatpush1.bf16.msra.mxu0 %v16714_v25  ;;  %11894 = vmatpush1.bf16.msra.mxu1 %v16717_v26  ;;  %v16812_v25 = vld [vmem:[%s19418_s0 + $0x7d8] ss:$136 sps:$4 sm:$0xff]  }
 0x3bb   : > { %9974 = vmatprep.subr.bf16.mxu0 %v16725_v27  ;;  %11895 = vmatprep.subr.bf16.mxu1 %v16728_v28  ;;  %v16813_v26 = vld [vmem:[%s17272_s7 + $0x1dc0] ss:$16 sps:$4 sm:$0xff]   ;;  %v16816_v27 = vld [vmem:[%s17272_s7 + $0x1dc8] ss:$16 sps:$4 sm:$0xff]   ;;  %v16821_v28 = vld [vmem:[%s17272_s7 + $0x1de4] ss:$16 sps:$4 sm:$0xff]  }
 0x3bd   : > { %9900 = vmatmul.mubr.bf16.gmra.mrb[4].mxu0 %v16722_v29  ;;  %11821 = vmatmul.mubr.bf16.gmra.mrb[4].mxu1 %v16722_v29  ;;  %v16824_v29 = vld [vmem:[%s17272_s7 + $0x1dec] ss:$16 sps:$4 sm:$0xff]  }
 0x3be   : > { %9975 = vmatpush1.bf16.msra.mxu0 %v16723_v30  ;;  %11896 = vmatpush1.bf16.msra.mxu1 %v16726_v31  ;;  %v16827_v30 = vld [vmem:[%s19418_s0 + $0x74] ss:$136 sps:$4 sm:$0xff]   ;;  %v16819_v31 = vld [vmem:[%s17272_s7 + $0x1de0] ss:$16 sps:$4 sm:$0xff]  }
 0x3bf   : > { %9976 = vmatprep.subr.bf16.mxu0 %v16731_v32  ;;  %11897 = vmatprep.subr.bf16.mxu1 %v16734_v33  ;;  %v16822_v32 = vld [vmem:[%s17272_s7 + $0x1de8] ss:$16 sps:$4 sm:$0xff]   ;;  %v16830_v33 = vld [vmem:[%s17272_s7 + $0x1e04] ss:$16 sps:$4 sm:$0xff]  }
 0x3c0   : > { %9909 = vmatprep.mubr.bf16.mxu0 %v16735_v34  ;;  %11830 = vmatprep.mubr.bf16.mxu1 %v16735_v34  ;;  %v16833_v34 = vld [vmem:[%s17272_s7 + $0x1e0c] ss:$16 sps:$4 sm:$0xff]  }
 0x3c2   : > { %9977 = vmatpush1.bf16.msra.mxu0 %v16729_v35  ;;  %11898 = vmatpush1.bf16.msra.mxu1 %v16732_v36  ;;  %v16825_v35 = vld [vmem:[%s19418_s0 + $0x70] ss:$136 sps:$4 sm:$0xff]  }
 0x3c3   : > { %9978 = vmatprep.subr.bf16.mxu0 %v16740_v37  ;;  %11899 = vmatprep.subr.bf16.mxu1 %v16743_v38  ;;  %v16828_v36 = vld [vmem:[%s17272_s7 + $0x1e00] ss:$16 sps:$4 sm:$0xff]   ;;  %v16831_v37 = vld [vmem:[%s17272_s7 + $0x1e08] ss:$16 sps:$4 sm:$0xff]   ;;  %v16836_v38 = vld [vmem:[%s17272_s7 + $0x1e24] ss:$16 sps:$4 sm:$0xff]  }
 0x3c5   : > { %9910 = vmatmul.mubr.bf16.gmra.mrb[8].mxu0 %v16737_v39  ;;  %11831 = vmatmul.mubr.bf16.gmra.mrb[8].mxu1 %v16737_v39  ;;  %v16839_v39 = vld [vmem:[%s17272_s7 + $0x1e2c] ss:$16 sps:$4 sm:$0xff]  }
 0x3c6   : > { %9979 = vmatpush1.bf16.msra.mxu0 %v16738_v40  ;;  %11900 = vmatpush1.bf16.msra.mxu1 %v16741_v41  ;;  %v16840_v40 = vld [vmem:[%s19418_s0 + $0x184] ss:$136 sps:$4 sm:$0xff]   ;;  %v16834_v41 = vld [vmem:[%s17272_s7 + $0x1e20] ss:$16 sps:$4 sm:$0xff]  }
 0x3c7   : > { %9980 = vmatprep.subr.bf16.mxu0 %v16746_v42  ;;  %11901 = vmatprep.subr.bf16.mxu1 %v16749_v43  ;;  %v16837_v42 = vld [vmem:[%s17272_s7 + $0x1e28] ss:$16 sps:$4 sm:$0xff]   ;;  %v16845_v43 = vld [vmem:[%s17272_s7 + $0x1e44] ss:$16 sps:$4 sm:$0xff]  }
 0x3c8   : > { %9919 = vmatprep.mubr.bf16.mxu0 %v16750_v44  ;;  %11840 = vmatprep.mubr.bf16.mxu1 %v16750_v44  ;;  %v16848_v44 = vld [vmem:[%s17272_s7 + $0x1e4c] ss:$16 sps:$4 sm:$0xff]  }
 0x3ca   : > { %9981 = vmatpush1.bf16.msra.mxu0 %v16744_v45  ;;  %11902 = vmatpush1.bf16.msra.mxu1 %v16747_v46  ;;  %v16842_v45 = vld [vmem:[%s19418_s0 + $0x180] ss:$136 sps:$4 sm:$0xff]  }
 0x3cb   : > { %9982 = vmatprep.subr.bf16.mxu0 %v16755_v47  ;;  %11903 = vmatprep.subr.bf16.mxu1 %v16758_v48  ;;  %v16843_v46 = vld [vmem:[%s17272_s7 + $0x1e40] ss:$16 sps:$4 sm:$0xff]   ;;  %v16846_v47 = vld [vmem:[%s17272_s7 + $0x1e48] ss:$16 sps:$4 sm:$0xff]   ;;  %v16851_v48 = vld [vmem:[%s17272_s7 + $0x1e64] ss:$16 sps:$4 sm:$0xff]  }
 0x3cd   : > { %9920 = vmatmul.mubr.bf16.gmra.mrb[12].mxu0 %v16752_v49  ;;  %11841 = vmatmul.mubr.bf16.gmra.mrb[12].mxu1 %v16752_v49  ;;  %v16854_v49 = vld [vmem:[%s17272_s7 + $0x1e6c] ss:$16 sps:$4 sm:$0xff]  }
 0x3ce   : > { %9983 = vmatpush1.bf16.msra.mxu0 %v16753_v50  ;;  %11904 = vmatpush1.bf16.msra.mxu1 %v16756_v51  ;;  %v16855_v50 = vld [vmem:[%s19418_s0 + $0x294] ss:$136 sps:$4 sm:$0xff]   ;;  %v16849_v51 = vld [vmem:[%s17272_s7 + $0x1e60] ss:$16 sps:$4 sm:$0xff]  }
 0x3cf   : > { %9984 = vmatprep.subr.bf16.mxu0 %v16761_v52  ;;  %11905 = vmatprep.subr.bf16.mxu1 %v16764_v53  ;;  %v16852_v52 = vld [vmem:[%s17272_s7 + $0x1e68] ss:$16 sps:$4 sm:$0xff]   ;;  %v16860_v53 = vld [vmem:[%s17272_s7 + $0x1e84] ss:$16 sps:$4 sm:$0xff]  }
 0x3d0   : > { %9929 = vmatprep.mubr.bf16.mxu0 %v16765_v54  ;;  %11850 = vmatprep.mubr.bf16.mxu1 %v16765_v54  ;;  %v16863_v54 = vld [vmem:[%s17272_s7 + $0x1e8c] ss:$16 sps:$4 sm:$0xff]  }
 0x3d2   : > { %9985 = vmatpush1.bf16.msra.mxu0 %v16759_v55  ;;  %11906 = vmatpush1.bf16.msra.mxu1 %v16762_v56  ;;  %v16857_v55 = vld [vmem:[%s19418_s0 + $0x290] ss:$136 sps:$4 sm:$0xff]  }
 0x3d3   : > { %9986 = vmatprep.subr.bf16.mxu0 %v16770_v57  ;;  %11907 = vmatprep.subr.bf16.mxu1 %v16773_v58  ;;  %v16858_v56 = vld [vmem:[%s17272_s7 + $0x1e80] ss:$16 sps:$4 sm:$0xff]   ;;  %v16861_v57 = vld [vmem:[%s17272_s7 + $0x1e88] ss:$16 sps:$4 sm:$0xff]   ;;  %v16866_v58 = vld [vmem:[%s17272_s7 + $0x1ea4] ss:$16 sps:$4 sm:$0xff]  }
 0x3d5   : > { %9930 = vmatmul.mubr.bf16.gmra.mrb[16].mxu0 %v16767_v59  ;;  %11851 = vmatmul.mubr.bf16.gmra.mrb[16].mxu1 %v16767_v59  ;;  %v16869_v59 = vld [vmem:[%s17272_s7 + $0x1eac] ss:$16 sps:$4 sm:$0xff]  }
 0x3d6   : > { %9987 = vmatpush1.bf16.msra.mxu0 %v16768_v60  ;;  %11908 = vmatpush1.bf16.msra.mxu1 %v16771_v61  ;;  %v16870_v60 = vld [vmem:[%s19418_s0 + $0x3a4] ss:$136 sps:$4 sm:$0xff]   ;;  %v16864_v61 = vld [vmem:[%s17272_s7 + $0x1ea0] ss:$16 sps:$4 sm:$0xff]  }
 0x3d7   : > { %9988 = vmatprep.subr.bf16.mxu0 %v16776_v62  ;;  %11909 = vmatprep.subr.bf16.mxu1 %v16779_v63  ;;  %v16867_v62 = vld [vmem:[%s17272_s7 + $0x1ea8] ss:$16 sps:$4 sm:$0xff]   ;;  %v16875_v63 = vld [vmem:[%s17272_s7 + $0x1ec4] ss:$16 sps:$4 sm:$0xff]  }
 0x3d8   : > { %9939 = vmatprep.mubr.bf16.mxu0 %v16780_v0  ;;  %11860 = vmatprep.mubr.bf16.mxu1 %v16780_v0  ;;  %v16878_v0 = vld [vmem:[%s17272_s7 + $0x1ecc] ss:$16 sps:$4 sm:$0xff]  }
 0x3da   : > { %9989 = vmatpush1.bf16.msra.mxu0 %v16774_v1  ;;  %11910 = vmatpush1.bf16.msra.mxu1 %v16777_v2  ;;  %v16872_v1 = vld [vmem:[%s19418_s0 + $0x3a0] ss:$136 sps:$4 sm:$0xff]  }
 0x3db   : > { %9990 = vmatprep.subr.bf16.mxu0 %v16785_v3  ;;  %11911 = vmatprep.subr.bf16.mxu1 %v16788_v4  ;;  %v16873_v2 = vld [vmem:[%s17272_s7 + $0x1ec0] ss:$16 sps:$4 sm:$0xff]   ;;  %v16876_v3 = vld [vmem:[%s17272_s7 + $0x1ec8] ss:$16 sps:$4 sm:$0xff]   ;;  %v16881_v4 = vld [vmem:[%s17272_s7 + $0x1ee4] ss:$16 sps:$4 sm:$0xff]  }
 0x3dd   : > { %9940 = vmatmul.mubr.bf16.gmra.mrb[20].mxu0 %v16782_v5  ;;  %11861 = vmatmul.mubr.bf16.gmra.mrb[20].mxu1 %v16782_v5  ;;  %v16884_v5 = vld [vmem:[%s17272_s7 + $0x1eec] ss:$16 sps:$4 sm:$0xff]  }
 0x3de   : > { %9991 = vmatpush1.bf16.msra.mxu0 %v16783_v6  ;;  %11912 = vmatpush1.bf16.msra.mxu1 %v16786_v7  ;;  %v16885_v6 = vld [vmem:[%s19418_s0 + $0x4b4] ss:$136 sps:$4 sm:$0xff]   ;;  %v16879_v7 = vld [vmem:[%s17272_s7 + $0x1ee0] ss:$16 sps:$4 sm:$0xff]  }
 0x3df   : > { %9992 = vmatprep.subr.bf16.mxu0 %v16791_v8  ;;  %11913 = vmatprep.subr.bf16.mxu1 %v16794_v9  ;;  %v16882_v8 = vld [vmem:[%s17272_s7 + $0x1ee8] ss:$16 sps:$4 sm:$0xff]   ;;  %v16890_v9 = vld [vmem:[%s17272_s7 + $0x1f04] ss:$16 sps:$4 sm:$0xff]  }
 0x3e0   : > { %9949 = vmatprep.mubr.bf16.mxu0 %v16795_v10  ;;  %11870 = vmatprep.mubr.bf16.mxu1 %v16795_v10  ;;  %v16893_v10 = vld [vmem:[%s17272_s7 + $0x1f0c] ss:$16 sps:$4 sm:$0xff]  }
 0x3e2   : > { %9993 = vmatpush1.bf16.msra.mxu0 %v16789_v11  ;;  %11914 = vmatpush1.bf16.msra.mxu1 %v16792_v12  ;;  %v16887_v11 = vld [vmem:[%s19418_s0 + $0x4b0] ss:$136 sps:$4 sm:$0xff]  }
 0x3e3   : > { %9994 = vmatprep.subr.bf16.mxu0 %v16800_v13  ;;  %11915 = vmatprep.subr.bf16.mxu1 %v16803_v14  ;;  %v16888_v12 = vld [vmem:[%s17272_s7 + $0x1f00] ss:$16 sps:$4 sm:$0xff]   ;;  %v16891_v13 = vld [vmem:[%s17272_s7 + $0x1f08] ss:$16 sps:$4 sm:$0xff]   ;;  %v16896_v14 = vld [vmem:[%s17272_s7 + $0x1f24] ss:$16 sps:$4 sm:$0xff]  }
 0x3e5   : > { %9950 = vmatmul.mubr.bf16.gmra.mrb[24].mxu0 %v16797_v15  ;;  %11871 = vmatmul.mubr.bf16.gmra.mrb[24].mxu1 %v16797_v15  ;;  %v16899_v15 = vld [vmem:[%s17272_s7 + $0x1f2c] ss:$16 sps:$4 sm:$0xff]  }
 0x3e6   : > { %9995 = vmatpush1.bf16.msra.mxu0 %v16798_v16  ;;  %11916 = vmatpush1.bf16.msra.mxu1 %v16801_v17  ;;  %v16900_v16 = vld [vmem:[%s19418_s0 + $0x5c4] ss:$136 sps:$4 sm:$0xff]   ;;  %v16894_v17 = vld [vmem:[%s17272_s7 + $0x1f20] ss:$16 sps:$4 sm:$0xff]  }
 0x3e7   : > { %9996 = vmatprep.subr.bf16.mxu0 %v16806_v18  ;;  %11917 = vmatprep.subr.bf16.mxu1 %v16809_v19  ;;  %v16897_v18 = vld [vmem:[%s17272_s7 + $0x1f28] ss:$16 sps:$4 sm:$0xff]   ;;  %v16905_v19 = vld [vmem:[%s17272_s7 + $0x1f44] ss:$16 sps:$4 sm:$0xff]  }
 0x3e8   : > { %9959 = vmatprep.mubr.bf16.mxu0 %v16810_v20  ;;  %11880 = vmatprep.mubr.bf16.mxu1 %v16810_v20  ;;  %v16908_v20 = vld [vmem:[%s17272_s7 + $0x1f4c] ss:$16 sps:$4 sm:$0xff]  }
 0x3ea   : > { %9997 = vmatpush1.bf16.msra.mxu0 %v16804_v21  ;;  %11918 = vmatpush1.bf16.msra.mxu1 %v16807_v22  ;;  %v16902_v21 = vld [vmem:[%s19418_s0 + $0x5c0] ss:$136 sps:$4 sm:$0xff]  }
 0x3eb   : > { %9998 = vmatprep.subr.bf16.mxu0 %v16815_v23  ;;  %11919 = vmatprep.subr.bf16.mxu1 %v16818_v24  ;;  %v16903_v22 = vld [vmem:[%s17272_s7 + $0x1f40] ss:$16 sps:$4 sm:$0xff]   ;;  %v16906_v23 = vld [vmem:[%s17272_s7 + $0x1f48] ss:$16 sps:$4 sm:$0xff]   ;;  %v16911_v24 = vld [vmem:[%s17272_s7 + $0x1f64] ss:$16 sps:$4 sm:$0xff]  }
 0x3ed   : > { %9960 = vmatmul.mubr.bf16.gmra.mrb[28].mxu0 %v16812_v25  ;;  %11881 = vmatmul.mubr.bf16.gmra.mrb[28].mxu1 %v16812_v25  ;;  %v16914_v25 = vld [vmem:[%s17272_s7 + $0x1f6c] ss:$16 sps:$4 sm:$0xff]  }
 0x3ee   : > { %9999 = vmatpush1.bf16.msra.mxu0 %v16813_v26  ;;  %11920 = vmatpush1.bf16.msra.mxu1 %v16816_v27  ;;  %v16915_v26 = vld [vmem:[%s19418_s0 + $0x6d4] ss:$136 sps:$4 sm:$0xff]   ;;  %v16909_v27 = vld [vmem:[%s17272_s7 + $0x1f60] ss:$16 sps:$4 sm:$0xff]  }
 0x3ef   : > { %10000 = vmatprep.subr.bf16.mxu0 %v16821_v28  ;;  %11921 = vmatprep.subr.bf16.mxu1 %v16824_v29  ;;  %v16912_v28 = vld [vmem:[%s17272_s7 + $0x1f68] ss:$16 sps:$4 sm:$0xff]   ;;  %v16920_v29 = vld [vmem:[%s17272_s7 + $0x1f84] ss:$16 sps:$4 sm:$0xff]  }
 0x3f0   : > { %10002 = vmatprep.mubr.bf16.mxu0 %v16827_v30  ;;  %11923 = vmatprep.mubr.bf16.mxu1 %v16827_v30  ;;  %v16923_v30 = vld [vmem:[%s17272_s7 + $0x1f8c] ss:$16 sps:$4 sm:$0xff]  }
 0x3f2   : > { %10001 = vmatpush1.bf16.msra.mxu0 %v16819_v31  ;;  %11922 = vmatpush1.bf16.msra.mxu1 %v16822_v32  ;;  %v16917_v31 = vld [vmem:[%s19418_s0 + $0x6d0] ss:$136 sps:$4 sm:$0xff]  }
 0x3f3   : > { %10083 = vmatprep.subr.bf16.mxu0 %v16830_v33  ;;  %12004 = vmatprep.subr.bf16.mxu1 %v16833_v34  ;;  %v16918_v32 = vld [vmem:[%s17272_s7 + $0x1f80] ss:$16 sps:$4 sm:$0xff]   ;;  %v16921_v33 = vld [vmem:[%s17272_s7 + $0x1f88] ss:$16 sps:$4 sm:$0xff]   ;;  %v16926_v34 = vld [vmem:[%s17272_s7 + $0x1fa4] ss:$16 sps:$4 sm:$0xff]  }
 0x3f5   : > { %10003 = vmatmul.mubr.bf16.vlgmr.msra.gmra.mrb[0].mxu0 %v16825_v35  ;;  %11924 = vmatmul.mubr.bf16.vlgmr.msra.gmra.mrb[0].mxu1 %v16825_v35  ;;  %v16929_v35 = vld [vmem:[%s17272_s7 + $0x1fac] ss:$16 sps:$4 sm:$0xff]  }
 0x3f6   : > { %10084 = vmatpush1.bf16.msra.mxu0 %v16828_v36  ;;  %12005 = vmatpush1.bf16.msra.mxu1 %v16831_v37  ;;  %v16930_v36 = vld [vmem:[%s19418_s0 + $0x7e4] ss:$136 sps:$4 sm:$0xff]   ;;  %v16924_v37 = vld [vmem:[%s17272_s7 + $0x1fa0] ss:$16 sps:$4 sm:$0xff]  }
 0x3f7   : > { %10085 = vmatprep.subr.bf16.mxu0 %v16836_v38  ;;  %12006 = vmatprep.subr.bf16.mxu1 %v16839_v39  ;;  %v16927_v38 = vld [vmem:[%s17272_s7 + $0x1fa8] ss:$16 sps:$4 sm:$0xff]   ;;  %v16935_v39 = vld [vmem:[%s17272_s7 + $0x1fc4] ss:$16 sps:$4 sm:$0xff]  }
 0x3f8   : > { %10012 = vmatprep.mubr.bf16.mxu0 %v16840_v40  ;;  %11933 = vmatprep.mubr.bf16.mxu1 %v16840_v40  ;;  %v16938_v40 = vld [vmem:[%s17272_s7 + $0x1fcc] ss:$16 sps:$4 sm:$0xff]  }
 0x3fa   : > { %10086 = vmatpush1.bf16.msra.mxu0 %v16834_v41  ;;  %12007 = vmatpush1.bf16.msra.mxu1 %v16837_v42  ;;  %v16932_v41 = vld [vmem:[%s19418_s0 + $0x7e0] ss:$136 sps:$4 sm:$0xff]  }
 0x3fb   : > { %10087 = vmatprep.subr.bf16.mxu0 %v16845_v43  ;;  %12008 = vmatprep.subr.bf16.mxu1 %v16848_v44  ;;  %v16933_v42 = vld [vmem:[%s17272_s7 + $0x1fc0] ss:$16 sps:$4 sm:$0xff]   ;;  %v16936_v43 = vld [vmem:[%s17272_s7 + $0x1fc8] ss:$16 sps:$4 sm:$0xff]   ;;  %v16941_v44 = vld [vmem:[%s17272_s7 + $0x1fe4] ss:$16 sps:$4 sm:$0xff]  }
 0x3fd   : > { %10013 = vmatmul.mubr.bf16.gmra.mrb[4].mxu0 %v16842_v45  ;;  %11934 = vmatmul.mubr.bf16.gmra.mrb[4].mxu1 %v16842_v45  ;;  %v16944_v45 = vld [vmem:[%s17272_s7 + $0x1fec] ss:$16 sps:$4 sm:$0xff]  }
 0x3fe   : > { %10088 = vmatpush1.bf16.msra.mxu0 %v16843_v46  ;;  %12009 = vmatpush1.bf16.msra.mxu1 %v16846_v47  ;;  %v16947_v46 = vld [vmem:[%s19418_s0 + $0x7c] ss:$136 sps:$4 sm:$0xff]   ;;  %v16939_v47 = vld [vmem:[%s17272_s7 + $0x1fe0] ss:$16 sps:$4 sm:$0xff]  }
 0x3ff   : > { %10089 = vmatprep.subr.bf16.mxu0 %v16851_v48  ;;  %12010 = vmatprep.subr.bf16.mxu1 %v16854_v49  ;;  %v16942_v48 = vld [vmem:[%s17272_s7 + $0x1fe8] ss:$16 sps:$4 sm:$0xff]   ;;  %v16950_v49 = vld [vmem:[%s17272_s7 + $0x2004] ss:$16 sps:$4 sm:$0xff]  }
 0x400   : > { %10022 = vmatprep.mubr.bf16.mxu0 %v16855_v50  ;;  %11943 = vmatprep.mubr.bf16.mxu1 %v16855_v50  ;;  %v16953_v50 = vld [vmem:[%s17272_s7 + $0x200c] ss:$16 sps:$4 sm:$0xff]  }
 0x402   : > { %10090 = vmatpush1.bf16.msra.mxu0 %v16849_v51  ;;  %12011 = vmatpush1.bf16.msra.mxu1 %v16852_v52  ;;  %v16945_v51 = vld [vmem:[%s19418_s0 + $0x78] ss:$136 sps:$4 sm:$0xff]  }
 0x403   : > { %10091 = vmatprep.subr.bf16.mxu0 %v16860_v53  ;;  %12012 = vmatprep.subr.bf16.mxu1 %v16863_v54  ;;  %v16948_v52 = vld [vmem:[%s17272_s7 + $0x2000] ss:$16 sps:$4 sm:$0xff]   ;;  %v16951_v53 = vld [vmem:[%s17272_s7 + $0x2008] ss:$16 sps:$4 sm:$0xff]   ;;  %v16956_v54 = vld [vmem:[%s17272_s7 + $0x2024] ss:$16 sps:$4 sm:$0xff]  }
 0x405   : > { %10023 = vmatmul.mubr.bf16.gmra.mrb[8].mxu0 %v16857_v55  ;;  %11944 = vmatmul.mubr.bf16.gmra.mrb[8].mxu1 %v16857_v55  ;;  %v16959_v55 = vld [vmem:[%s17272_s7 + $0x202c] ss:$16 sps:$4 sm:$0xff]  }
 0x406   : > { %10092 = vmatpush1.bf16.msra.mxu0 %v16858_v56  ;;  %12013 = vmatpush1.bf16.msra.mxu1 %v16861_v57  ;;  %v16960_v56 = vld [vmem:[%s19418_s0 + $0x18c] ss:$136 sps:$4 sm:$0xff]   ;;  %v16954_v57 = vld [vmem:[%s17272_s7 + $0x2020] ss:$16 sps:$4 sm:$0xff]  }
 0x407   : > { %10093 = vmatprep.subr.bf16.mxu0 %v16866_v58  ;;  %12014 = vmatprep.subr.bf16.mxu1 %v16869_v59  ;;  %v16957_v58 = vld [vmem:[%s17272_s7 + $0x2028] ss:$16 sps:$4 sm:$0xff]   ;;  %v16965_v59 = vld [vmem:[%s17272_s7 + $0x2044] ss:$16 sps:$4 sm:$0xff]  }
 0x408   : > { %10032 = vmatprep.mubr.bf16.mxu0 %v16870_v60  ;;  %11953 = vmatprep.mubr.bf16.mxu1 %v16870_v60  ;;  %v16968_v60 = vld [vmem:[%s17272_s7 + $0x204c] ss:$16 sps:$4 sm:$0xff]  }
 0x40a   : > { %10094 = vmatpush1.bf16.msra.mxu0 %v16864_v61  ;;  %12015 = vmatpush1.bf16.msra.mxu1 %v16867_v62  ;;  %v16962_v61 = vld [vmem:[%s19418_s0 + $0x188] ss:$136 sps:$4 sm:$0xff]  }
 0x40b   : > { %10095 = vmatprep.subr.bf16.mxu0 %v16875_v63  ;;  %12016 = vmatprep.subr.bf16.mxu1 %v16878_v0  ;;  %v16963_v62 = vld [vmem:[%s17272_s7 + $0x2040] ss:$16 sps:$4 sm:$0xff]   ;;  %v16966_v63 = vld [vmem:[%s17272_s7 + $0x2048] ss:$16 sps:$4 sm:$0xff]   ;;  %v16971_v0 = vld [vmem:[%s17272_s7 + $0x2064] ss:$16 sps:$4 sm:$0xff]  }
 0x40d   : > { %10033 = vmatmul.mubr.bf16.gmra.mrb[12].mxu0 %v16872_v1  ;;  %11954 = vmatmul.mubr.bf16.gmra.mrb[12].mxu1 %v16872_v1  ;;  %v16974_v1 = vld [vmem:[%s17272_s7 + $0x206c] ss:$16 sps:$4 sm:$0xff]  }
 0x40e   : > { %10096 = vmatpush1.bf16.msra.mxu0 %v16873_v2  ;;  %12017 = vmatpush1.bf16.msra.mxu1 %v16876_v3  ;;  %v16975_v2 = vld [vmem:[%s19418_s0 + $0x29c] ss:$136 sps:$4 sm:$0xff]   ;;  %v16969_v3 = vld [vmem:[%s17272_s7 + $0x2060] ss:$16 sps:$4 sm:$0xff]  }
 0x40f   : > { %10097 = vmatprep.subr.bf16.mxu0 %v16881_v4  ;;  %12018 = vmatprep.subr.bf16.mxu1 %v16884_v5  ;;  %v16972_v4 = vld [vmem:[%s17272_s7 + $0x2068] ss:$16 sps:$4 sm:$0xff]   ;;  %v16980_v5 = vld [vmem:[%s17272_s7 + $0x2084] ss:$16 sps:$4 sm:$0xff]  }
 0x410   : > { %10042 = vmatprep.mubr.bf16.mxu0 %v16885_v6  ;;  %11963 = vmatprep.mubr.bf16.mxu1 %v16885_v6  ;;  %v16983_v6 = vld [vmem:[%s17272_s7 + $0x208c] ss:$16 sps:$4 sm:$0xff]  }
 0x412   : > { %10098 = vmatpush1.bf16.msra.mxu0 %v16879_v7  ;;  %12019 = vmatpush1.bf16.msra.mxu1 %v16882_v8  ;;  %v16977_v7 = vld [vmem:[%s19418_s0 + $0x298] ss:$136 sps:$4 sm:$0xff]  }
 0x413   : > { %10099 = vmatprep.subr.bf16.mxu0 %v16890_v9  ;;  %12020 = vmatprep.subr.bf16.mxu1 %v16893_v10  ;;  %v16978_v8 = vld [vmem:[%s17272_s7 + $0x2080] ss:$16 sps:$4 sm:$0xff]   ;;  %v16981_v9 = vld [vmem:[%s17272_s7 + $0x2088] ss:$16 sps:$4 sm:$0xff]   ;;  %v16986_v10 = vld [vmem:[%s17272_s7 + $0x20a4] ss:$16 sps:$4 sm:$0xff]  }
 0x415   : > { %10043 = vmatmul.mubr.bf16.gmra.mrb[16].mxu0 %v16887_v11  ;;  %11964 = vmatmul.mubr.bf16.gmra.mrb[16].mxu1 %v16887_v11  ;;  %v16989_v11 = vld [vmem:[%s17272_s7 + $0x20ac] ss:$16 sps:$4 sm:$0xff]  }
 0x416   : > { %10100 = vmatpush1.bf16.msra.mxu0 %v16888_v12  ;;  %12021 = vmatpush1.bf16.msra.mxu1 %v16891_v13  ;;  %v16990_v12 = vld [vmem:[%s19418_s0 + $0x3ac] ss:$136 sps:$4 sm:$0xff]   ;;  %v16984_v13 = vld [vmem:[%s17272_s7 + $0x20a0] ss:$16 sps:$4 sm:$0xff]  }
 0x417   : > { %10101 = vmatprep.subr.bf16.mxu0 %v16896_v14  ;;  %12022 = vmatprep.subr.bf16.mxu1 %v16899_v15  ;;  %v16987_v14 = vld [vmem:[%s17272_s7 + $0x20a8] ss:$16 sps:$4 sm:$0xff]   ;;  %v16995_v15 = vld [vmem:[%s17272_s7 + $0x20c4] ss:$16 sps:$4 sm:$0xff]  }
 0x418   : > { %10052 = vmatprep.mubr.bf16.mxu0 %v16900_v16  ;;  %11973 = vmatprep.mubr.bf16.mxu1 %v16900_v16  ;;  %v16998_v16 = vld [vmem:[%s17272_s7 + $0x20cc] ss:$16 sps:$4 sm:$0xff]  }
 0x41a   : > { %10102 = vmatpush1.bf16.msra.mxu0 %v16894_v17  ;;  %12023 = vmatpush1.bf16.msra.mxu1 %v16897_v18  ;;  %v16992_v17 = vld [vmem:[%s19418_s0 + $0x3a8] ss:$136 sps:$4 sm:$0xff]  }
 0x41b   : > { %10103 = vmatprep.subr.bf16.mxu0 %v16905_v19  ;;  %12024 = vmatprep.subr.bf16.mxu1 %v16908_v20  ;;  %v16993_v18 = vld [vmem:[%s17272_s7 + $0x20c0] ss:$16 sps:$4 sm:$0xff]   ;;  %v16996_v19 = vld [vmem:[%s17272_s7 + $0x20c8] ss:$16 sps:$4 sm:$0xff]   ;;  %v17001_v20 = vld [vmem:[%s17272_s7 + $0x20e4] ss:$16 sps:$4 sm:$0xff]  }
 0x41d   : > { %10053 = vmatmul.mubr.bf16.gmra.mrb[20].mxu0 %v16902_v21  ;;  %11974 = vmatmul.mubr.bf16.gmra.mrb[20].mxu1 %v16902_v21  ;;  %v17004_v21 = vld [vmem:[%s17272_s7 + $0x20ec] ss:$16 sps:$4 sm:$0xff]  }
 0x41e   : > { %10104 = vmatpush1.bf16.msra.mxu0 %v16903_v22  ;;  %12025 = vmatpush1.bf16.msra.mxu1 %v16906_v23  ;;  %v17005_v22 = vld [vmem:[%s19418_s0 + $0x4bc] ss:$136 sps:$4 sm:$0xff]   ;;  %v16999_v23 = vld [vmem:[%s17272_s7 + $0x20e0] ss:$16 sps:$4 sm:$0xff]  }
 0x41f   : > { %10105 = vmatprep.subr.bf16.mxu0 %v16911_v24  ;;  %12026 = vmatprep.subr.bf16.mxu1 %v16914_v25  ;;  %v17002_v24 = vld [vmem:[%s17272_s7 + $0x20e8] ss:$16 sps:$4 sm:$0xff]   ;;  %v17010_v25 = vld [vmem:[%s17272_s7 + $0x2104] ss:$16 sps:$4 sm:$0xff]  }
 0x420   : > { %10062 = vmatprep.mubr.bf16.mxu0 %v16915_v26  ;;  %11983 = vmatprep.mubr.bf16.mxu1 %v16915_v26  ;;  %v17013_v26 = vld [vmem:[%s17272_s7 + $0x210c] ss:$16 sps:$4 sm:$0xff]  }
 0x422   : > { %10106 = vmatpush1.bf16.msra.mxu0 %v16909_v27  ;;  %12027 = vmatpush1.bf16.msra.mxu1 %v16912_v28  ;;  %v17007_v27 = vld [vmem:[%s19418_s0 + $0x4b8] ss:$136 sps:$4 sm:$0xff]  }
 0x423   : > { %10107 = vmatprep.subr.bf16.mxu0 %v16920_v29  ;;  %12028 = vmatprep.subr.bf16.mxu1 %v16923_v30  ;;  %v17008_v28 = vld [vmem:[%s17272_s7 + $0x2100] ss:$16 sps:$4 sm:$0xff]   ;;  %v17011_v29 = vld [vmem:[%s17272_s7 + $0x2108] ss:$16 sps:$4 sm:$0xff]   ;;  %v17016_v30 = vld [vmem:[%s17272_s7 + $0x2124] ss:$16 sps:$4 sm:$0xff]  }
 0x425   : > { %10063 = vmatmul.mubr.bf16.gmra.mrb[24].mxu0 %v16917_v31  ;;  %11984 = vmatmul.mubr.bf16.gmra.mrb[24].mxu1 %v16917_v31  ;;  %v17019_v31 = vld [vmem:[%s17272_s7 + $0x212c] ss:$16 sps:$4 sm:$0xff]  }
 0x426   : > { %10108 = vmatpush1.bf16.msra.mxu0 %v16918_v32  ;;  %12029 = vmatpush1.bf16.msra.mxu1 %v16921_v33  ;;  %v17020_v32 = vld [vmem:[%s19418_s0 + $0x5cc] ss:$136 sps:$4 sm:$0xff]   ;;  %v17014_v33 = vld [vmem:[%s17272_s7 + $0x2120] ss:$16 sps:$4 sm:$0xff]  }
 0x427   : > { %10109 = vmatprep.subr.bf16.mxu0 %v16926_v34  ;;  %12030 = vmatprep.subr.bf16.mxu1 %v16929_v35  ;;  %v17017_v34 = vld [vmem:[%s17272_s7 + $0x2128] ss:$16 sps:$4 sm:$0xff]   ;;  %v17025_v35 = vld [vmem:[%s17272_s7 + $0x2144] ss:$16 sps:$4 sm:$0xff]  }
 0x428   : > { %10072 = vmatprep.mubr.bf16.mxu0 %v16930_v36  ;;  %11993 = vmatprep.mubr.bf16.mxu1 %v16930_v36  ;;  %v17028_v36 = vld [vmem:[%s17272_s7 + $0x214c] ss:$16 sps:$4 sm:$0xff]  }
 0x42a   : > { %10110 = vmatpush1.bf16.msra.mxu0 %v16924_v37  ;;  %12031 = vmatpush1.bf16.msra.mxu1 %v16927_v38  ;;  %v17022_v37 = vld [vmem:[%s19418_s0 + $0x5c8] ss:$136 sps:$4 sm:$0xff]  }
 0x42b   : > { %10111 = vmatprep.subr.bf16.mxu0 %v16935_v39  ;;  %12032 = vmatprep.subr.bf16.mxu1 %v16938_v40  ;;  %v17023_v38 = vld [vmem:[%s17272_s7 + $0x2140] ss:$16 sps:$4 sm:$0xff]   ;;  %v17026_v39 = vld [vmem:[%s17272_s7 + $0x2148] ss:$16 sps:$4 sm:$0xff]   ;;  %v17031_v40 = vld [vmem:[%s17272_s7 + $0x2164] ss:$16 sps:$4 sm:$0xff]  }
 0x42d   : > { %10073 = vmatmul.mubr.bf16.gmra.mrb[28].mxu0 %v16932_v41  ;;  %11994 = vmatmul.mubr.bf16.gmra.mrb[28].mxu1 %v16932_v41  ;;  %v17034_v41 = vld [vmem:[%s17272_s7 + $0x216c] ss:$16 sps:$4 sm:$0xff]  }
 0x42e   : > { %10112 = vmatpush1.bf16.msra.mxu0 %v16933_v42  ;;  %12033 = vmatpush1.bf16.msra.mxu1 %v16936_v43  ;;  %v17035_v42 = vld [vmem:[%s19418_s0 + $0x6dc] ss:$136 sps:$4 sm:$0xff]   ;;  %v17029_v43 = vld [vmem:[%s17272_s7 + $0x2160] ss:$16 sps:$4 sm:$0xff]  }
 0x42f   : > { %10113 = vmatprep.subr.bf16.mxu0 %v16941_v44  ;;  %12034 = vmatprep.subr.bf16.mxu1 %v16944_v45  ;;  %v17032_v44 = vld [vmem:[%s17272_s7 + $0x2168] ss:$16 sps:$4 sm:$0xff]   ;;  %v17040_v45 = vld [vmem:[%s17272_s7 + $0x2184] ss:$16 sps:$4 sm:$0xff]  }
 0x430   : > { %10115 = vmatprep.mubr.bf16.mxu0 %v16947_v46  ;;  %12036 = vmatprep.mubr.bf16.mxu1 %v16947_v46  ;;  %v17043_v46 = vld [vmem:[%s17272_s7 + $0x218c] ss:$16 sps:$4 sm:$0xff]  }
 0x432   : > { %10114 = vmatpush1.bf16.msra.mxu0 %v16939_v47  ;;  %12035 = vmatpush1.bf16.msra.mxu1 %v16942_v48  ;;  %v17037_v47 = vld [vmem:[%s19418_s0 + $0x6d8] ss:$136 sps:$4 sm:$0xff]  }
 0x433   : > { %10196 = vmatprep.subr.bf16.mxu0 %v16950_v49  ;;  %12117 = vmatprep.subr.bf16.mxu1 %v16953_v50  ;;  %v17038_v48 = vld [vmem:[%s17272_s7 + $0x2180] ss:$16 sps:$4 sm:$0xff]   ;;  %v17041_v49 = vld [vmem:[%s17272_s7 + $0x2188] ss:$16 sps:$4 sm:$0xff]   ;;  %v17046_v50 = vld [vmem:[%s17272_s7 + $0x21a4] ss:$16 sps:$4 sm:$0xff]  }
 0x435   : > { %10116 = vmatmul.mubr.bf16.vlgmr.msra.gmra.mrb[0].mxu0 %v16945_v51  ;;  %12037 = vmatmul.mubr.bf16.vlgmr.msra.gmra.mrb[0].mxu1 %v16945_v51  ;;  %v17049_v51 = vld [vmem:[%s17272_s7 + $0x21ac] ss:$16 sps:$4 sm:$0xff]  }
 0x436   : > { %10197 = vmatpush1.bf16.msra.mxu0 %v16948_v52  ;;  %12118 = vmatpush1.bf16.msra.mxu1 %v16951_v53  ;;  %v17050_v52 = vld [vmem:[%s19418_s0 + $0x7ec] ss:$136 sps:$4 sm:$0xff]   ;;  %v17044_v53 = vld [vmem:[%s17272_s7 + $0x21a0] ss:$16 sps:$4 sm:$0xff]  }
 0x437   : > { %10198 = vmatprep.subr.bf16.mxu0 %v16956_v54  ;;  %12119 = vmatprep.subr.bf16.mxu1 %v16959_v55  ;;  %v17047_v54 = vld [vmem:[%s17272_s7 + $0x21a8] ss:$16 sps:$4 sm:$0xff]   ;;  %v17055_v55 = vld [vmem:[%s17272_s7 + $0x21c4] ss:$16 sps:$4 sm:$0xff]  }
 0x438   : > { %10125 = vmatprep.mubr.bf16.mxu0 %v16960_v56  ;;  %12046 = vmatprep.mubr.bf16.mxu1 %v16960_v56  ;;  %v17058_v56 = vld [vmem:[%s17272_s7 + $0x21cc] ss:$16 sps:$4 sm:$0xff]  }
 0x43a   : > { %10199 = vmatpush1.bf16.msra.mxu0 %v16954_v57  ;;  %12120 = vmatpush1.bf16.msra.mxu1 %v16957_v58  ;;  %v17052_v57 = vld [vmem:[%s19418_s0 + $0x7e8] ss:$136 sps:$4 sm:$0xff]  }
 0x43b   : > { %10200 = vmatprep.subr.bf16.mxu0 %v16965_v59  ;;  %12121 = vmatprep.subr.bf16.mxu1 %v16968_v60  ;;  %v17053_v58 = vld [vmem:[%s17272_s7 + $0x21c0] ss:$16 sps:$4 sm:$0xff]   ;;  %v17056_v59 = vld [vmem:[%s17272_s7 + $0x21c8] ss:$16 sps:$4 sm:$0xff]   ;;  %v17061_v60 = vld [vmem:[%s17272_s7 + $0x21e4] ss:$16 sps:$4 sm:$0xff]  }
 0x43d   : > { %10126 = vmatmul.mubr.bf16.gmra.mrb[4].mxu0 %v16962_v61  ;;  %12047 = vmatmul.mubr.bf16.gmra.mrb[4].mxu1 %v16962_v61  ;;  %v17064_v61 = vld [vmem:[%s17272_s7 + $0x21ec] ss:$16 sps:$4 sm:$0xff]  }
 0x43e   : > { %10201 = vmatpush1.bf16.msra.mxu0 %v16963_v62  ;;  %12122 = vmatpush1.bf16.msra.mxu1 %v16966_v63  ;;  %v17067_v62 = vld [vmem:[%s19418_s0 + $0x84] ss:$136 sps:$4 sm:$0xff]   ;;  %v17059_v63 = vld [vmem:[%s17272_s7 + $0x21e0] ss:$16 sps:$4 sm:$0xff]  }
 0x43f   : > { %10202 = vmatprep.subr.bf16.mxu0 %v16971_v0  ;;  %12123 = vmatprep.subr.bf16.mxu1 %v16974_v1  ;;  %v17062_v0 = vld [vmem:[%s17272_s7 + $0x21e8] ss:$16 sps:$4 sm:$0xff]  }
 0x440   : > { %10135 = vmatprep.mubr.bf16.mxu0 %v16975_v2  ;;  %12056 = vmatprep.mubr.bf16.mxu1 %v16975_v2  ;;  %v17065_v1 = vld [vmem:[%s19418_s0 + $0x80] ss:$136 sps:$4 sm:$0xff]   ;;  %v17068_v2 = vld [vmem:[%s19418_s0 + $0x194] ss:$136 sps:$4 sm:$0xff]  }
 0x442   : > { %10203 = vmatpush1.bf16.msra.mxu0 %v16969_v3  ;;  %12124 = vmatpush1.bf16.msra.mxu1 %v16972_v4  ;;  %v17070_v3 = vld [vmem:[%s19418_s0 + $0x190] ss:$136 sps:$4 sm:$0xff]   ;;  %v17071_v4 = vld [vmem:[%s19418_s0 + $0x2a4] ss:$136 sps:$4 sm:$0xff]  }
 0x443   : > { %10204 = vmatprep.subr.bf16.mxu0 %v16980_v5  ;;  %12125 = vmatprep.subr.bf16.mxu1 %v16983_v6  ;;  %v17073_v5 = vld [vmem:[%s19418_s0 + $0x2a0] ss:$136 sps:$4 sm:$0xff]   ;;  %v17074_v6 = vld [vmem:[%s19418_s0 + $0x3b4] ss:$136 sps:$4 sm:$0xff]  }
 0x445   : > { %10136 = vmatmul.mubr.bf16.gmra.mrb[8].mxu0 %v16977_v7  ;;  %12057 = vmatmul.mubr.bf16.gmra.mrb[8].mxu1 %v16977_v7  ;;  %v17076_v7 = vld [vmem:[%s19418_s0 + $0x3b0] ss:$136 sps:$4 sm:$0xff]  }
 0x446   : > { %10205 = vmatpush1.bf16.msra.mxu0 %v16978_v8  ;;  %12126 = vmatpush1.bf16.msra.mxu1 %v16981_v9  ;;  %v17077_v8 = vld [vmem:[%s19418_s0 + $0x4c4] ss:$136 sps:$4 sm:$0xff]   ;;  %v17079_v9 = vld [vmem:[%s19418_s0 + $0x4c0] ss:$136 sps:$4 sm:$0xff]  }
 0x447   : > { %10206 = vmatprep.subr.bf16.mxu0 %v16986_v10  ;;  %12127 = vmatprep.subr.bf16.mxu1 %v16989_v11  ;;  %v17080_v10 = vld [vmem:[%s19418_s0 + $0x5d4] ss:$136 sps:$4 sm:$0xff]   ;;  %v17082_v11 = vld [vmem:[%s19418_s0 + $0x5d0] ss:$136 sps:$4 sm:$0xff]  }
 0x448   : > { %10145 = vmatprep.mubr.bf16.mxu0 %v16990_v12  ;;  %12066 = vmatprep.mubr.bf16.mxu1 %v16990_v12  ;;  %v17083_v12 = vld [vmem:[%s19418_s0 + $0x6e4] ss:$136 sps:$4 sm:$0xff]  }
 0x44a   : > { %10207 = vmatpush1.bf16.msra.mxu0 %v16984_v13  ;;  %12128 = vmatpush1.bf16.msra.mxu1 %v16987_v14  ;;  %v17085_v13 = vld [vmem:[%s19418_s0 + $0x6e0] ss:$136 sps:$4 sm:$0xff]   ;;  %v17086_v14 = vld [vmem:[%s19418_s0 + $0x7f4] ss:$136 sps:$4 sm:$0xff]  }
 0x44b   : > { %10208 = vmatprep.subr.bf16.mxu0 %v16995_v15  ;;  %12129 = vmatprep.subr.bf16.mxu1 %v16998_v16  ;;  %v17088_v15 = vld [vmem:[%s19418_s0 + $0x7f0] ss:$136 sps:$4 sm:$0xff]   ;;  %v1568_v16 = vlaneseq }
 0x44d   : > { %10146 = vmatmul.mubr.bf16.gmra.mrb[12].mxu0 %v16992_v17  ;;  %12067 = vmatmul.mubr.bf16.gmra.mrb[12].mxu1 %v16992_v17  ;;  %v1569_v17 = vshrl.u32 %v1568_v16, 7 }
 0x44e   : > { %10209 = vmatpush1.bf16.msra.mxu0 %v16993_v18  ;;  %12130 = vmatpush1.bf16.msra.mxu1 %v16996_v19 }
 0x44f   : > { %10210 = vmatprep.subr.bf16.mxu0 %v17001_v20  ;;  %12131 = vmatprep.subr.bf16.mxu1 %v17004_v21 }
 0x450   : > { %10155 = vmatprep.mubr.bf16.mxu0 %v17005_v22  ;;  %12076 = vmatprep.mubr.bf16.mxu1 %v17005_v22  ;;  %v1570_v22 = vsub.s32 0, %v1569_v17 }
 0x452   : > { %10211 = vmatpush1.bf16.msra.mxu0 %v16999_v23  ;;  %12132 = vmatpush1.bf16.msra.mxu1 %v17002_v24  ;;  %v1578_v23 = vsub.s32 2, %v1569_v17  ;;  %v1574_v24 = vsub.s32 1, %v1569_v17 }
 0x453   : > { %10212 = vmatprep.subr.bf16.mxu0 %v17010_v25  ;;  %12133 = vmatprep.subr.bf16.mxu1 %v17013_v26  ;;  %v1582_v25 = vsub.s32 3, %v1569_v17 }
 0x455   : > { %10156 = vmatmul.mubr.bf16.gmra.mrb[16].mxu0 %v17007_v27  ;;  %12077 = vmatmul.mubr.bf16.gmra.mrb[16].mxu1 %v17007_v27 }
 0x456   : > { %10213 = vmatpush1.bf16.msra.mxu0 %v17008_v28  ;;  %12134 = vmatpush1.bf16.msra.mxu1 %v17011_v29  ;;  %v1566_v28 = vld [vmem:[%s203_s23] sm:$0xf] }
 0x457   : > { %10214 = vmatprep.subr.bf16.mxu0 %v17016_v30  ;;  %12135 = vmatprep.subr.bf16.mxu1 %v17019_v31  ;;  %v19186_v31 = vrot.slane %v1566_v28, %v1570_v22 }
 0x458   : > { %10165 = vmatprep.mubr.bf16.mxu0 %v17020_v32  ;;  %12086 = vmatprep.mubr.bf16.mxu1 %v17020_v32  ;;  %v19188_v32 = vrot.slane %v1566_v28, %v1578_v23 }
 0x45a   : > { %10215 = vmatpush1.bf16.msra.mxu0 %v17014_v33  ;;  %12136 = vmatpush1.bf16.msra.mxu1 %v17017_v34  ;;  %v19190_v33 = vrot.slane %v1566_v28, %v1574_v24  ;;  %v19192_v34 = vrot.slane %v1566_v28, %v1582_v25 }
 0x45b   : > { %10216 = vmatprep.subr.bf16.mxu0 %v17025_v35  ;;  %12137 = vmatprep.subr.bf16.mxu1 %v17028_v36 }
 0x45d   : > { %10166 = vmatmul.mubr.bf16.gmra.mrb[20].mxu0 %v17022_v37  ;;  %12087 = vmatmul.mubr.bf16.gmra.mrb[20].mxu1 %v17022_v37 }
 0x45e   : > { %10217 = vmatpush1.bf16.msra.mxu0 %v17023_v38  ;;  %12138 = vmatpush1.bf16.msra.mxu1 %v17026_v39 }
 0x45f   : > { %10218 = vmatprep.subr.bf16.mxu0 %v17031_v40  ;;  %12139 = vmatprep.subr.bf16.mxu1 %v17034_v41 }
 0x460   : > { %10175 = vmatprep.mubr.bf16.mxu0 %v17035_v42  ;;  %12096 = vmatprep.mubr.bf16.mxu1 %v17035_v42 }
 0x462   : > { %10219 = vmatpush1.bf16.msra.mxu0 %v17029_v43  ;;  %12140 = vmatpush1.bf16.msra.mxu1 %v17032_v44 }
 0x463   : > { %10220 = vmatprep.subr.bf16.mxu0 %v17040_v45  ;;  %12141 = vmatprep.subr.bf16.mxu1 %v17043_v46 }
 0x465   : > { %10176 = vmatmul.mubr.bf16.gmra.mrb[24].mxu0 %v17037_v47  ;;  %12097 = vmatmul.mubr.bf16.gmra.mrb[24].mxu1 %v17037_v47 }
 0x466   : > { %10221 = vmatpush1.bf16.msra.mxu0 %v17038_v48  ;;  %12142 = vmatpush1.bf16.msra.mxu1 %v17041_v49 }
 0x467   : > { %10222 = vmatprep.subr.bf16.mxu0 %v17046_v50  ;;  %12143 = vmatprep.subr.bf16.mxu1 %v17049_v51 }
 0x468   : > { %10185 = vmatprep.mubr.bf16.mxu0 %v17050_v52  ;;  %12106 = vmatprep.mubr.bf16.mxu1 %v17050_v52 }
 0x46a   : > { %10223 = vmatpush1.bf16.msra.mxu0 %v17044_v53  ;;  %12144 = vmatpush1.bf16.msra.mxu1 %v17047_v54 }
 0x46b   : > { %10224 = vmatprep.subr.bf16.mxu0 %v17055_v55  ;;  %12145 = vmatprep.subr.bf16.mxu1 %v17058_v56 }
 0x46d   : > { %10186 = vmatmul.mubr.bf16.gmra.mrb[28].mxu0 %v17052_v57  ;;  %12107 = vmatmul.mubr.bf16.gmra.mrb[28].mxu1 %v17052_v57 }
 0x46e   : > { %10225 = vmatpush1.bf16.msra.mxu0 %v17053_v58  ;;  %12146 = vmatpush1.bf16.msra.mxu1 %v17056_v59 }
 0x46f   : > { %10226 = vmatprep.subr.bf16.mxu0 %v17061_v60  ;;  %12147 = vmatprep.subr.bf16.mxu1 %v17064_v61 }
 0x470   : > { %10228 = vmatprep.mubr.bf16.mxu0 %v17067_v62  ;;  %12149 = vmatprep.mubr.bf16.mxu1 %v17067_v62 }
 0x472   : > { %10227 = vmatpush1.bf16.msra.mxu0 %v17059_v63  ;;  %12148 = vmatpush1.bf16.msra.mxu1 %v17062_v0 }
 0x475   : > { %10229 = vmatmul.mubr.bf16.vlgmr.msra.gmra.mrb[0].mxu0 %v17065_v1  ;;  %12150 = vmatmul.mubr.bf16.vlgmr.msra.gmra.mrb[0].mxu1 %v17065_v1 }
 0x476   : > { %10238 = vmatprep.mubr.bf16.mxu0 %v17068_v2  ;;  %12159 = vmatprep.mubr.bf16.mxu1 %v17068_v2 }
 0x47d   : > { %10239 = vmatmul.mubr.bf16.gmra.mrb[4].mxu0 %v17070_v3  ;;  %12160 = vmatmul.mubr.bf16.gmra.mrb[4].mxu1 %v17070_v3 }
 0x47e   : > { %10248 = vmatprep.mubr.bf16.mxu0 %v17071_v4  ;;  %12169 = vmatprep.mubr.bf16.mxu1 %v17071_v4 }
 0x485   : > { %10249 = vmatmul.mubr.bf16.gmra.mrb[8].mxu0 %v17073_v5  ;;  %12170 = vmatmul.mubr.bf16.gmra.mrb[8].mxu1 %v17073_v5 }
 0x486   : > { %10258 = vmatprep.mubr.bf16.mxu0 %v17074_v6  ;;  %12179 = vmatprep.mubr.bf16.mxu1 %v17074_v6 }
 0x48d   : > { %10259 = vmatmul.mubr.bf16.gmra.mrb[12].mxu0 %v17076_v7  ;;  %12180 = vmatmul.mubr.bf16.gmra.mrb[12].mxu1 %v17076_v7 }
 0x48e   : > { %10268 = vmatprep.mubr.bf16.mxu0 %v17077_v8  ;;  %12189 = vmatprep.mubr.bf16.mxu1 %v17077_v8 }
 0x495   : > { %10269 = vmatmul.mubr.bf16.gmra.mrb[16].mxu0 %v17079_v9  ;;  %12190 = vmatmul.mubr.bf16.gmra.mrb[16].mxu1 %v17079_v9 }
 0x496   : > { %10278 = vmatprep.mubr.bf16.mxu0 %v17080_v10  ;;  %12199 = vmatprep.mubr.bf16.mxu1 %v17080_v10 }
 0x49d   : > { %10279 = vmatmul.mubr.bf16.gmra.mrb[20].mxu0 %v17082_v11  ;;  %12200 = vmatmul.mubr.bf16.gmra.mrb[20].mxu1 %v17082_v11 }
 0x49e   : > { %10288 = vmatprep.mubr.bf16.mxu0 %v17083_v12  ;;  %12209 = vmatprep.mubr.bf16.mxu1 %v17083_v12 }
 0x4a5   : > { %10289 = vmatmul.mubr.bf16.gmra.mrb[24].mxu0 %v17085_v13  ;;  %12210 = vmatmul.mubr.bf16.gmra.mrb[24].mxu1 %v17085_v13 }
 0x4a6   : > { %10298 = vmatprep.mubr.bf16.mxu0 %v17086_v14  ;;  %12219 = vmatprep.mubr.bf16.mxu1 %v17086_v14 }
 0x4ad   : > { %10299 = vmatmul.mubr.bf16.gmra.mrb[28].mxu0 %v17088_v15  ;;  %12220 = vmatmul.mubr.bf16.gmra.mrb[28].mxu1 %v17088_v15 }
 0x548   : > { %v10230_v18 = vpop.f32.mrb[0].mxu0  ;;  %v12151_v19 = vpop.f32.mrb[0].mxu1 }
 0x549   : > { %v10232_v20 = vpop.f32.mrb[1].mxu0  ;;  %v12153_v21 = vpop.f32.mrb[1].mxu1  ;;  %v13917_v39 = vadd.f32 %v10230_v18, %v19186_v31  ;;  %v13949_v40 = vadd.f32 %v12151_v19, %v19188_v32 }
 0x54a   : > { %v10234_v26 = vpop.f32.mrb[2].mxu0  ;;  %v12155_v27 = vpop.f32.mrb[2].mxu1  ;;  %v13918_v41 = vadd.f32 %v10232_v20, %v19190_v33  ;;  %v13950_v42 = vadd.f32 %v12153_v21, %v19192_v34 }
 0x54b   : > { %v10236_v29 = vpop.f32.mrb[3].mxu0  ;;  %v12157_v30 = vpop.f32.mrb[3].mxu1  ;;  %v13919_v45 = vadd.f32 %v10234_v26, %v19186_v31  ;;  %v13951_v46 = vadd.f32 %v12155_v27, %v19188_v32  ;;  %v12230_v51 = vmax.f32 %v13917_v39, 0.0  ;;  %v12232_v52 = vmax.f32 %v13949_v40, 0.0 }
 0x54c   : > { %v13920_v47 = vadd.f32 %v10236_v29, %v19190_v33  ;;  %v13952_v48 = vadd.f32 %v12157_v30, %v19192_v34  ;;  %v12231_v53 = vmax.f32 %v13918_v41, 0.0  ;;  %v12233_v54 = vmax.f32 %v13950_v42, 0.0 }
 0x54d   : > { %v12234_v55 = vmax.f32 %v13919_v45, 0.0  ;;  %v12236_v56 = vmax.f32 %v13951_v46, 0.0 }
 0x54e   : > { %v12235_v57 = vmax.f32 %v13920_v47, 0.0  ;;  %v12237_v58 = vmax.f32 %v13952_v48, 0.0 }
 0x550   : > { %v10240_v35 = vpop.f32.mrb[4].mxu0  ;;  %v12161_v36 = vpop.f32.mrb[4].mxu1 }
 0x551   : > { %v10242_v37 = vpop.f32.mrb[5].mxu0  ;;  %v12163_v38 = vpop.f32.mrb[5].mxu1  ;;  %v19203_v59 = vadd.f32 %v10240_v35, %v19186_v31  ;;  %v19206_v60 = vadd.f32 %v12161_v36, %v19188_v32 }
 0x552   : > { %v10244_v43 = vpop.f32.mrb[6].mxu0  ;;  %v12165_v44 = vpop.f32.mrb[6].mxu1  ;;  %v19209_v61 = vadd.f32 %v10242_v37, %v19190_v33  ;;  %v19212_v62 = vadd.f32 %v12163_v38, %v19192_v34 }
 0x553   : > { %v10246_v49 = vpop.f32.mrb[7].mxu0  ;;  %v12167_v50 = vpop.f32.mrb[7].mxu1  ;;  %v19215_v1 = vadd.f32 %v10244_v43, %v19186_v31  ;;  %v19218_v2 = vadd.f32 %v12165_v44, %v19188_v32  ;;  %v12238_v35 = vmax.f32 %v19203_v59, 0.0  ;;  %v12240_v36 = vmax.f32 %v19206_v60, 0.0 }
 0x554   : > { %v19223_v7 = vadd.f32 %v10246_v49, %v19190_v33  ;;  %v19226_v8 = vadd.f32 %v12167_v50, %v19192_v34  ;;  %v12239_v39 = vmax.f32 %v19209_v61, 0.0  ;;  %v12241_v40 = vmax.f32 %v19212_v62, 0.0 }
 0x555   : > { %v12242_v45 = vmax.f32 %v19215_v1, 0.0  ;;  %v12244_v46 = vmax.f32 %v19218_v2, 0.0 }
 0x558   : > { %v10250_v63 = vpop.f32.mrb[8].mxu0  ;;  %v12171_v0 = vpop.f32.mrb[8].mxu1 }
 0x559   : > { %v13925_v3 = vadd.f32 %v10250_v63, %v19186_v31  ;;  %v13957_v4 = vadd.f32 %v12171_v0, %v19188_v32  ;;  %v10252_v5 = vpop.f32.mrb[9].mxu0  ;;  %v12173_v6 = vpop.f32.mrb[9].mxu1 }
 0x55a   : > { %v13926_v9 = vadd.f32 %v10252_v5, %v19190_v33  ;;  %v13958_v10 = vadd.f32 %v12173_v6, %v19192_v34  ;;  %v10254_v11 = vpop.f32.mrb[10].mxu0  ;;  %v12175_v12 = vpop.f32.mrb[10].mxu1 }
 0x55b   : > { %v12246_v13 = vmax.f32 %v13925_v3, 0.0  ;;  %v12248_v14 = vmax.f32 %v13957_v4, 0.0  ;;  %v13927_v15 = vadd.f32 %v10254_v11, %v19186_v31  ;;  %v13959_v16 = vadd.f32 %v12175_v12, %v19188_v32  ;;  %v10256_v17 = vpop.f32.mrb[11].mxu0  ;;  %v12177_v18 = vpop.f32.mrb[11].mxu1 }
 0x55c   : > { %v12247_v19 = vmax.f32 %v13926_v9, 0.0  ;;  %v12249_v20 = vmax.f32 %v13958_v10, 0.0  ;;  %v13928_v21 = vadd.f32 %v10256_v17, %v19190_v33  ;;  %v13960_v22 = vadd.f32 %v12177_v18, %v19192_v34 }
 0x55d   : > { %v19234_v23 = vadd.f32 %v12246_v13, %v12230_v51  ;;  %v19236_v24 = vadd.f32 %v12248_v14, %v12232_v52  ;;  %v12250_v25 = vmax.f32 %v13927_v15, 0.0  ;;  %v12252_v26 = vmax.f32 %v13959_v16, 0.0 }
 0x55e   : > { %v19238_v27 = vadd.f32 %v12247_v19, %v12231_v53  ;;  %v19240_v28 = vadd.f32 %v12249_v20, %v12233_v54  ;;  %v12251_v29 = vmax.f32 %v13928_v21, 0.0  ;;  %v12253_v30 = vmax.f32 %v13960_v22, 0.0 }
 0x55f   : > { %v19244_v37 = vadd.f32 %v12250_v25, %v12234_v55  ;;  %v19246_v38 = vadd.f32 %v12252_v26, %v12236_v56  ;;  %v12243_v51 = vmax.f32 %v19223_v7, 0.0  ;;  %v12245_v52 = vmax.f32 %v19226_v8, 0.0 }
 0x560   : > { %v19250_v41 = vadd.f32 %v12251_v29, %v12235_v57  ;;  %v19252_v42 = vadd.f32 %v12253_v30, %v12237_v58  ;;  %v10260_v43 = vpop.f32.mrb[12].mxu0  ;;  %v12181_v44 = vpop.f32.mrb[12].mxu1 }
 0x561   : > { %v13929_v47 = vadd.f32 %v10260_v43, %v19186_v31  ;;  %v13961_v48 = vadd.f32 %v12181_v44, %v19188_v32  ;;  %v10262_v49 = vpop.f32.mrb[13].mxu0  ;;  %v12183_v50 = vpop.f32.mrb[13].mxu1 }
 0x562   : > { %v13930_v53 = vadd.f32 %v10262_v49, %v19190_v33  ;;  %v13962_v54 = vadd.f32 %v12183_v50, %v19192_v34  ;;  %v10264_v55 = vpop.f32.mrb[14].mxu0  ;;  %v12185_v56 = vpop.f32.mrb[14].mxu1 }
 0x563   : > { %v12254_v57 = vmax.f32 %v13929_v47, 0.0  ;;  %v12256_v58 = vmax.f32 %v13961_v48, 0.0  ;;  %v13931_v59 = vadd.f32 %v10264_v55, %v19186_v31  ;;  %v13963_v60 = vadd.f32 %v12185_v56, %v19188_v32  ;;  %v10266_v61 = vpop.f32.mrb[15].mxu0  ;;  %v12187_v62 = vpop.f32.mrb[15].mxu1 }
 0x564   : > { %v12255_v63 = vmax.f32 %v13930_v53, 0.0  ;;  %v12257_v0 = vmax.f32 %v13962_v54, 0.0  ;;  %v13932_v1 = vadd.f32 %v10266_v61, %v19190_v33  ;;  %v13964_v2 = vadd.f32 %v12187_v62, %v19192_v34 }
 0x565   : > { %v19266_v3 = vadd.f32 %v12254_v57, %v12238_v35  ;;  %v19268_v4 = vadd.f32 %v12256_v58, %v12240_v36  ;;  %v12258_v5 = vmax.f32 %v13931_v59, 0.0  ;;  %v12260_v6 = vmax.f32 %v13963_v60, 0.0 }
 0x566   : > { %v19270_v7 = vadd.f32 %v12255_v63, %v12239_v39  ;;  %v19272_v8 = vadd.f32 %v12257_v0, %v12241_v40  ;;  %v12259_v9 = vmax.f32 %v13932_v1, 0.0  ;;  %v12261_v10 = vmax.f32 %v13964_v2, 0.0 }
 0x567   : > { %v19274_v11 = vadd.f32 %v12258_v5, %v12242_v45  ;;  %v19276_v12 = vadd.f32 %v12260_v6, %v12244_v46 }
 0x568   : > { %v19278_v13 = vadd.f32 %v12259_v9, %v12243_v51  ;;  %v19280_v14 = vadd.f32 %v12261_v10, %v12245_v52  ;;  %v10270_v15 = vpop.f32.mrb[16].mxu0  ;;  %v12191_v16 = vpop.f32.mrb[16].mxu1 }
 0x569   : > { %v13933_v17 = vadd.f32 %v10270_v15, %v19186_v31  ;;  %v13965_v18 = vadd.f32 %v12191_v16, %v19188_v32  ;;  %v10272_v19 = vpop.f32.mrb[17].mxu0  ;;  %v12193_v20 = vpop.f32.mrb[17].mxu1 }
 0x56a   : > { %v13934_v21 = vadd.f32 %v10272_v19, %v19190_v33  ;;  %v13966_v22 = vadd.f32 %v12193_v20, %v19192_v34  ;;  %v10274_v25 = vpop.f32.mrb[18].mxu0  ;;  %v12195_v26 = vpop.f32.mrb[18].mxu1 }
 0x56b   : > { %v12262_v29 = vmax.f32 %v13933_v17, 0.0  ;;  %v12264_v30 = vmax.f32 %v13965_v18, 0.0  ;;  %v13935_v35 = vadd.f32 %v10274_v25, %v19186_v31  ;;  %v13967_v36 = vadd.f32 %v12195_v26, %v19188_v32  ;;  %v10276_v39 = vpop.f32.mrb[19].mxu0  ;;  %v12197_v40 = vpop.f32.mrb[19].mxu1 }
 0x56c   : > { %v12263_v43 = vmax.f32 %v13934_v21, 0.0  ;;  %v12265_v44 = vmax.f32 %v13966_v22, 0.0  ;;  %v13936_v45 = vadd.f32 %v10276_v39, %v19190_v33  ;;  %v13968_v46 = vadd.f32 %v12197_v40, %v19192_v34 }
 0x56d   : > { %v19291_v47 = vadd.f32 %v19234_v23, %v12262_v29  ;;  %v19294_v48 = vadd.f32 %v19236_v24, %v12264_v30  ;;  %v12266_v49 = vmax.f32 %v13935_v35, 0.0  ;;  %v12268_v50 = vmax.f32 %v13967_v36, 0.0 }
 0x56e   : > { %v19297_v51 = vadd.f32 %v19238_v27, %v12263_v43  ;;  %v19300_v52 = vadd.f32 %v19240_v28, %v12265_v44  ;;  %v12267_v53 = vmax.f32 %v13936_v45, 0.0  ;;  %v12269_v54 = vmax.f32 %v13968_v46, 0.0 }
 0x56f   : > { %v19303_v55 = vadd.f32 %v19244_v37, %v12266_v49  ;;  %v19306_v56 = vadd.f32 %v19246_v38, %v12268_v50 }
 0x570   : > { %v19309_v23 = vadd.f32 %v19250_v41, %v12267_v53  ;;  %v19312_v24 = vadd.f32 %v19252_v42, %v12269_v54  ;;  %v10280_v57 = vpop.f32.mrb[20].mxu0  ;;  %v12201_v27 = vpop.f32.mrb[20].mxu1 }
 0x571   : > { %v13937_v58 = vadd.f32 %v10280_v57, %v19186_v31  ;;  %v13969_v28 = vadd.f32 %v12201_v27, %v19188_v32  ;;  %v10282_v59 = vpop.f32.mrb[21].mxu0  ;;  %v12203_v60 = vpop.f32.mrb[21].mxu1 }
 0x572   : > { %v13938_v37 = vadd.f32 %v10282_v59, %v19190_v33  ;;  %v13970_v61 = vadd.f32 %v12203_v60, %v19192_v34  ;;  %v10284_v38 = vpop.f32.mrb[22].mxu0  ;;  %v12205_v62 = vpop.f32.mrb[22].mxu1 }
 0x573   : > { %v12270_v63 = vmax.f32 %v13937_v58, 0.0  ;;  %v12272_v41 = vmax.f32 %v13969_v28, 0.0  ;;  %v13939_v0 = vadd.f32 %v10284_v38, %v19186_v31  ;;  %v13971_v42 = vadd.f32 %v12205_v62, %v19188_v32  ;;  %v10286_v1 = vpop.f32.mrb[23].mxu0  ;;  %v12207_v2 = vpop.f32.mrb[23].mxu1 }
 0x574   : > { %v12271_v5 = vmax.f32 %v13938_v37, 0.0  ;;  %v12273_v6 = vmax.f32 %v13970_v61, 0.0  ;;  %v13940_v9 = vadd.f32 %v10286_v1, %v19190_v33  ;;  %v13972_v10 = vadd.f32 %v12207_v2, %v19192_v34 }
 0x575   : > { %v19323_v15 = vadd.f32 %v19266_v3, %v12270_v63  ;;  %v19326_v16 = vadd.f32 %v19268_v4, %v12272_v41  ;;  %v12274_v17 = vmax.f32 %v13939_v0, 0.0  ;;  %v12276_v18 = vmax.f32 %v13971_v42, 0.0 }
 0x576   : > { %v19329_v19 = vadd.f32 %v19270_v7, %v12271_v5  ;;  %v19332_v20 = vadd.f32 %v19272_v8, %v12273_v6  ;;  %v12275_v21 = vmax.f32 %v13940_v9, 0.0  ;;  %v12277_v22 = vmax.f32 %v13972_v10, 0.0 }
 0x577   : > { %v19335_v25 = vadd.f32 %v19274_v11, %v12274_v17  ;;  %v19338_v26 = vadd.f32 %v19276_v12, %v12276_v18 }
 0x578   : > { %v19341_v3 = vadd.f32 %v19278_v13, %v12275_v21  ;;  %v19344_v4 = vadd.f32 %v19280_v14, %v12277_v22  ;;  %v10290_v29 = vpop.f32.mrb[24].mxu0  ;;  %v12211_v7 = vpop.f32.mrb[24].mxu1 }
 0x579   : > { %v13941_v30 = vadd.f32 %v10290_v29, %v19186_v31  ;;  %v13973_v8 = vadd.f32 %v12211_v7, %v19188_v32  ;;  %v10292_v35 = vpop.f32.mrb[25].mxu0  ;;  %v12213_v36 = vpop.f32.mrb[25].mxu1 }
 0x57a   : > { %v13942_v11 = vadd.f32 %v10292_v35, %v19190_v33  ;;  %v13974_v39 = vadd.f32 %v12213_v36, %v19192_v34  ;;  %v10294_v12 = vpop.f32.mrb[26].mxu0  ;;  %v12215_v40 = vpop.f32.mrb[26].mxu1 }
 0x57b   : > { %v12278_v13 = vmax.f32 %v13941_v30, 0.0  ;;  %v12280_v43 = vmax.f32 %v13973_v8, 0.0  ;;  %v13943_v14 = vadd.f32 %v10294_v12, %v19186_v31  ;;  %v13975_v44 = vadd.f32 %v12215_v40, %v19188_v32  ;;  %v10296_v45 = vpop.f32.mrb[27].mxu0  ;;  %v12217_v46 = vpop.f32.mrb[27].mxu1 }
 0x57c   : > { %v12279_v49 = vmax.f32 %v13942_v11, 0.0  ;;  %v12281_v50 = vmax.f32 %v13974_v39, 0.0  ;;  %v13944_v53 = vadd.f32 %v10296_v45, %v19190_v33  ;;  %v13976_v54 = vadd.f32 %v12217_v46, %v19192_v34 }
 0x57d   : > { %v12326_v57 = vadd.f32 %v19291_v47, %v12278_v13  ;;  %v12328_v27 = vadd.f32 %v19294_v48, %v12280_v43  ;;  %v12282_v58 = vmax.f32 %v13943_v14, 0.0  ;;  %v12284_v28 = vmax.f32 %v13975_v44, 0.0 }
 0x57e   : > { %v12327_v59 = vadd.f32 %v19297_v51, %v12279_v49  ;;  %v12329_v60 = vadd.f32 %v19300_v52, %v12281_v50  ;;  %v12283_v37 = vmax.f32 %v13944_v53, 0.0  ;;  %v12285_v61 = vmax.f32 %v13976_v54, 0.0 }
 0x57f   : > { %v12342_v38 = vmul.f32 0.25, %v12326_v57  ;;  %v12344_v62 = vmul.f32 0.25, %v12328_v27  ;;  %v12330_v63 = vadd.f32 %v19303_v55, %v12282_v58  ;;  %v12332_v41 = vadd.f32 %v19306_v56, %v12284_v28 }
 0x580   : > { %v12343_v0 = vmul.f32 0.25, %v12327_v59  ;;  %v12345_v42 = vmul.f32 0.25, %v12329_v60  ;;  %v12331_v47 = vadd.f32 %v19309_v23, %v12283_v37  ;;  %v12333_v48 = vadd.f32 %v19312_v24, %v12285_v61  ;;  %v10300_v1 = vpop.f32.mrb[28].mxu0  ;;  %v12221_v2 = vpop.f32.mrb[28].mxu1 }
 0x581   : > { %v12346_v5 = vmul.f32 0.25, %v12330_v63  ;;  %v12348_v51 = vmul.f32 0.25, %v12332_v41  ;;  %v13945_v52 = vadd.f32 %v10300_v1, %v19186_v31  ;;  %v13977_v6 = vadd.f32 %v12221_v2, %v19188_v32  ;;  %v10302_v9 = vpop.f32.mrb[29].mxu0  ;;  %v12223_v10 = vpop.f32.mrb[29].mxu1 }
 0x582   : > { %v13908_v55 = vpack.c.bf16 %v12343_v0, %v12342_v38  ;;  %v13909_v17 = vpack.c.bf16 %v12345_v42, %v12344_v62  ;;  %v12347_v56 = vmul.f32 0.25, %v12331_v47  ;;  %v12349_v18 = vmul.f32 0.25, %v12333_v48  ;;  %v10304_v21 = vpop.f32.mrb[30].mxu0  ;;  %v12225_v22 = vpop.f32.mrb[30].mxu1 }
 0x583   : > { %v12286_v23 = vmax.f32 %v13945_v52, 0.0  ;;  %v12288_v29 = vmax.f32 %v13977_v6, 0.0  ;;  %v13946_v24 = vadd.f32 %v10302_v9, %v19190_v33  ;;  %v13978_v7 = vadd.f32 %v12223_v10, %v19192_v34  ;;  %v10306_v30 = vpop.f32.mrb[31].mxu0  ;;  %v12227_v8 = vpop.f32.mrb[31].mxu1 }
 0x584   : > { %12406 = vst [vmem:[%s19369_s25] sm:$0xff] %v13908_v55  ;;  %12407 = vst [vmem:[%s19369_s25 + $0x8] sm:$0xff] %v13909_v17  ;;  %v13910_v35 = vpack.c.bf16 %v12347_v56, %v12346_v5  ;;  %v13911_v36 = vpack.c.bf16 %v12349_v18, %v12348_v51  ;;  %v13947_v11 = vadd.f32 %v10304_v21, %v19186_v31 }
 0x585   : > { %v13979_v39 = vadd.f32 %v12225_v22, %v19188_v32  ;;  %v12334_v12 = vadd.f32 %v19323_v15, %v12286_v23  ;;  %v12336_v40 = vadd.f32 %v19326_v16, %v12288_v29  ;;  %v12287_v13 = vmax.f32 %v13946_v24, 0.0 }
 0x586   : > { %v12289_v43 = vmax.f32 %v13978_v7, 0.0  ;;  %12408 = vst [vmem:[%s19369_s25 + $0x10] sm:$0xff] %v13910_v35  ;;  %12409 = vst [vmem:[%s19369_s25 + $0x18] sm:$0xff] %v13911_v36  ;;  %v12290_v14 = vmax.f32 %v13947_v11, 0.0  ;;  %v13948_v45 = vadd.f32 %v10306_v30, %v19190_v33  ;;  %v13980_v46 = vadd.f32 %v12227_v8, %v19192_v34 }
 0x587   : > { %v12292_v44 = vmax.f32 %v13979_v39, 0.0  ;;  %v12350_v49 = vmul.f32 0.25, %v12334_v12  ;;  %v12352_v50 = vmul.f32 0.25, %v12336_v40  ;;  %v12335_v31 = vadd.f32 %v19329_v19, %v12287_v13 }
 0x588   : > { %v12337_v32 = vadd.f32 %v19332_v20, %v12289_v43  ;;  %v12338_v15 = vadd.f32 %v19335_v25, %v12290_v14  ;;  %v12291_v53 = vmax.f32 %v13948_v45, 0.0  ;;  %v12293_v54 = vmax.f32 %v13980_v46, 0.0 }
 0x589   : > { %v12340_v16 = vadd.f32 %v19338_v26, %v12292_v44  ;;  %v12351_v57 = vmul.f32 0.25, %v12335_v31 }
 0x58a   : > { %v12353_v33 = vmul.f32 0.25, %v12337_v32  ;;  %v12354_v27 = vmul.f32 0.25, %v12338_v15  ;;  %v12339_v58 = vadd.f32 %v19341_v3, %v12291_v53  ;;  %v12341_v19 = vadd.f32 %v19344_v4, %v12293_v54  ;;  %12420 = sbr.rel (!%p19425_p9) target bundleno = 1433 (0x599), region = 40 }
 0x58b   : > { %v12356_v34 = vmul.f32 0.25, %v12340_v16  ;;  %v13912_v28 = vpack.c.bf16 %v12351_v57, %v12350_v49  ;;  %v12436_v3 = vld [vmem:[%s19369_s25] sm:$0xff] (%p19425_p9)  ;;  %v12438_v4 = vld [vmem:[%s19369_s25 + $0x8] sm:$0xff] (%p19425_p9) }
 0x58c   : > { %v13913_v59 = vpack.c.bf16 %v12353_v33, %v12352_v50  ;;  %v12355_v20 = vmul.f32 0.25, %v12339_v58  ;;  %v12357_v60 = vmul.f32 0.25, %v12341_v19  ;;  %12437 = vst [vmem:[%s12423_s6] sm:$0xff] (%p19425_p9), %v12436_v3  ;;  %12439 = vst [vmem:[%s12423_s6 + $0x8] sm:$0xff] (%p19425_p9), %v12438_v4 }
 0x58d   : > { %12410 = vst [vmem:[%s19369_s25 + $0x20] sm:$0xff] %v13912_v28  ;;  %v12440_v37 = vld [vmem:[%s19369_s25 + $0x10] sm:$0xff] (%p19425_p9)  ;;  %v12442_v61 = vld [vmem:[%s19369_s25 + $0x18] sm:$0xff] (%p19425_p9) }
 0x58e   : > { %12411 = vst [vmem:[%s19369_s25 + $0x28] sm:$0xff] %v13913_v59  ;;  %v13914_v25 = vpack.c.bf16 %v12355_v20, %v12354_v27  ;;  %v13915_v26 = vpack.c.bf16 %v12357_v60, %v12356_v34  ;;  %12441 = vst [vmem:[%s12423_s6 + $0x20] sm:$0xff] (%p19425_p9), %v12440_v37 }
 0x58f   : > { %12443 = vst [vmem:[%s12423_s6 + $0x28] sm:$0xff] (%p19425_p9), %v12442_v61 }
 0x590   : > { %12412 = vst [vmem:[%s19369_s25 + $0x30] sm:$0xff] %v13914_v25  ;;  %12413 = vst [vmem:[%s19369_s25 + $0x38] sm:$0xff] %v13915_v26 }
 0x594   : > { %v12444_v38 = vld [vmem:[%s19369_s25 + $0x20] sm:$0xff] }
 0x595   : > { %v12446_v62 = vld [vmem:[%s19369_s25 + $0x28] sm:$0xff]  ;;  %12445 = vst [vmem:[%s12423_s6 + $0x40] sm:$0xff] %v12444_v38 }
 0x596   : > { %12447 = vst [vmem:[%s12423_s6 + $0x48] sm:$0xff] %v12446_v62 }
 0x597   : > { %v12448_v63 = vld [vmem:[%s19369_s25 + $0x30] sm:$0xff]  ;;  %v12450_v41 = vld [vmem:[%s19369_s25 + $0x38] sm:$0xff] }
 0x598   : > { %12449 = vst [vmem:[%s12423_s6 + $0x60] sm:$0xff] %v12448_v63  ;;  %12451 = vst [vmem:[%s12423_s6 + $0x68] sm:$0xff] %v12450_v41 }
 0x599 PF: > { %p13_p10 = scmp.ge.s32.totalorder %s17201_s17, 4   ;;  %s19426_s12 = smov %s17145_s13 }
 0x59a   : > { %s19427_s13 = smov %s17149_s14  ;;  %s19428_s14 = smov %s17211_s20 }
 0x59b   : > { %s19429_s15 = smov %s17201_s17  ;;  %15 = sbr.rel (!%p13_p10) target bundleno = 3 (0x3), region = 98 }
 0x5a2   :  { %12467 = vsyncpa [#allocation3], 1 }
 0x5a3   :  { %12469 = vsyncpa [#allocation3 + $0x1], 1 }

</bundles_post_ra>
